<compile_context>
chip_gen: v7x
topology: tpu7x:2x2x1
jax: 0.10.0
libtpu: 0.0.40
codegen_flags: <defaults>
</compile_context>

<pallas_src>
import jax
import jax.numpy as jnp
from jax.experimental import pallas as pl
from jax.experimental.pallas import tpu as pltpu
import numpy as np

EPS = 1e-5


def _residual_kernel(xp_ref, w1_ref, g1_ref, be1_ref, w2_ref, g2_ref, be2_ref,
                     o_ref, ypad_ref):
    _, H, W, C = o_ref.shape
    n_inv = 1.0 / float(H * W)
    mm_dtype = w1_ref.dtype                      # matmul operand dtype (bf16)

    def conv3x3(tap, w_ref):
        # im2col: build the (H*W, 9*C) slab in the matmul dtype and do a
        # single MXU matmul with f32 accumulation. K-order = (kh, kw, cin),
        # matching the (9*Cin, Cout) weight reshape done in the wrapper.
        slab = jnp.concatenate(
            [tap(di, dj).reshape(H * W, C).astype(mm_dtype)
             for di in range(3) for dj in range(3)],
            axis=-1)
        return jnp.dot(slab, w_ref[...], preferred_element_type=jnp.float32)

    def inorm_scale_shift(y, g_ref, be_ref):
        # Fused single-pass InstanceNorm statistics -> per-channel scale/shift.
        s = jnp.sum(y, axis=0, keepdims=True)                  # (1, C)
        ss = jnp.sum(y * y, axis=0, keepdims=True)             # (1, C)
        mean = s * n_inv
        var = ss * n_inv - mean * mean                         # biased variance
        scale = g_ref[...] * jax.lax.rsqrt(var + EPS)
        shift = be_ref[...] - mean * scale
        return scale, shift

    xp = xp_ref[0]                                             # (H+2, W+2, C) f32

    # ---- conv1 (input pre-padded in the wrapper) -> IN1 -> ReLU (fused) ----
    y1 = conv3x3(lambda di, dj: xp[di:di + H, dj:dj + W, :], w1_ref)
    sc1, sh1 = inorm_scale_shift(y1, g1_ref, be1_ref)
    a1 = jnp.maximum(y1 * sc1 + sh1, 0.0)                      # (H*W, C) f32

    # ---- reflect-pad a1 into a VMEM scratch via slice stores (no concat) ----
    a1p = a1.reshape(H, W, C).astype(ypad_ref.dtype)
    ypad_ref[1:H + 1, 1:W + 1, :] = a1p                         # interior
    ypad_ref[0:1, 1:W + 1, :] = a1p[1:2, :, :]                  # mirror row 1
    ypad_ref[H + 1:H + 2, 1:W + 1, :] = a1p[H - 2:H - 1, :, :]  # mirror row H-2
    ypad_ref[:, 0:1, :] = ypad_ref[:, 2:3, :]                   # mirror col (+corners)
    ypad_ref[:, W + 1:W + 2, :] = ypad_ref[:, W - 1:W, :]       # mirror col (+corners)

    # ---- conv2 -> IN2 -> residual add (fused) ----
    y2 = conv3x3(lambda di, dj: ypad_ref[di:di + H, dj:dj + W, :], w2_ref)
    sc2, sh2 = inorm_scale_shift(y2, g2_ref, be2_ref)
    x_in = xp[1:H + 1, 1:W + 1, :].reshape(H * W, C)            # original x (f32)
    out = y2 * sc2 + sh2 + x_in
    o_ref[0] = out.reshape(H, W, C).astype(o_ref.dtype)


def residual_layer_pallas(x_nchw, params, *, matmul_dtype=jnp.bfloat16):
    """x_nchw: (B, C, H, W) float32.  params: PyTorch-layout parameters.

    Conv biases ("b1"/"b2") are accepted but intentionally NOT passed to the
    kernel: a per-channel bias added before InstanceNorm is cancelled exactly
    by the mean subtraction, so it is dropped (saves two broadcast-adds and
    two operand DMAs per image).
    """
    B, C, H, W = x_nchw.shape
    assert H >= 2 and W >= 2, "reflection padding requires H, W >= 2"

    x = jnp.transpose(x_nchw, (0, 2, 3, 1)).astype(jnp.float32)         # NHWC
    # Reflection pad for conv1 done once, outside the kernel (XLA glue).
    xp = jnp.pad(x, ((0, 0), (1, 1), (1, 1), (0, 0)), mode="reflect")   # (B,H+2,W+2,C)

    def to_im2col_weight(w_oihw):
        # (O, I, kh, kw) -> (kh, kw, I, O) -> (9*I, O); K order = (kh, kw, cin).
        return (jnp.transpose(w_oihw, (2, 3, 1, 0))
                .reshape(9 * C, C).astype(matmul_dtype))

    w1 = to_im2col_weight(params["w1"])
    w2 = to_im2col_weight(params["w2"])
    g1 = params["g1"].reshape(1, C).astype(jnp.float32)
    be1 = params["be1"].reshape(1, C).astype(jnp.float32)
    g2 = params["g2"].reshape(1, C).astype(jnp.float32)
    be2 = params["be2"].reshape(1, C).astype(jnp.float32)

    in_img_spec = pl.BlockSpec((1, H + 2, W + 2, C), lambda b: (b, 0, 0, 0))
    out_img_spec = pl.BlockSpec((1, H, W, C), lambda b: (b, 0, 0, 0))
    w_spec = pl.BlockSpec((9 * C, C), lambda b: (0, 0))
    v_spec = pl.BlockSpec((1, C), lambda b: (0, 0))

    out_nhwc = pl.pallas_call(
        _residual_kernel,
        out_shape=jax.ShapeDtypeStruct((B, H, W, C), jnp.float32),
        grid_spec=pltpu.PrefetchScalarGridSpec(
            num_scalar_prefetch=0,
            grid=(B,),
            in_specs=[in_img_spec, w_spec, v_spec, v_spec,
                      w_spec, v_spec, v_spec],
            out_specs=out_img_spec,
            scratch_shapes=[pltpu.VMEM((H + 2, W + 2, C), matmul_dtype)]),
        compiler_params=pltpu.CompilerParams(
            dimension_semantics=("parallel",),        # B images -> both v7x TCs
            vmem_limit_bytes=64 * 1024 * 1024),       # raise 16/32 MiB default cap
    )(xp, w1, g1, be1, w2, g2, be2)

    return jnp.transpose(out_nhwc, (0, 3, 1, 2))                        # back to NCHW


# ---------------- pure-JAX reference (for correctness check) ----------------
def _ref_conv_in(x_nhwc, w_oihw, b, g, be, matmul_dtype):
    xp = jnp.pad(x_nhwc, ((0, 0), (1, 1), (1, 1), (0, 0)), mode="reflect")
    w = jnp.transpose(w_oihw, (2, 3, 1, 0))                             # HWIO
    y = jax.lax.conv_general_dilated(
        xp.astype(matmul_dtype), w.astype(matmul_dtype), (1, 1), "VALID",
        dimension_numbers=("NHWC", "HWIO", "NHWC"),
        preferred_element_type=jnp.float32) + b                         # bias kept here
    mean = jnp.mean(y, axis=(1, 2), keepdims=True)
    var = jnp.mean((y - mean) ** 2, axis=(1, 2), keepdims=True)
    return (y - mean) * jax.lax.rsqrt(var + EPS) * g + be


def _ref_residual(x_nchw, p, matmul_dtype):
    x = jnp.transpose(x_nchw, (0, 2, 3, 1)).astype(jnp.float32)
    y = jax.nn.relu(_ref_conv_in(x, p["w1"], p["b1"], p["g1"], p["be1"], matmul_dtype))
    y = _ref_conv_in(y, p["w2"], p["b2"], p["g2"], p["be2"], matmul_dtype)
    return jnp.transpose(y + x, (0, 3, 1, 2))


if __name__ == "__main__":
    # channels=128 is the ResidualLayer default; it also makes the channel
    # (lane) axis exactly one full vreg wide. Spatial / batch kept small.
    B, C, H, W = 2, 128, 16, 16
    key = jax.random.PRNGKey(0)
    ks = jax.random.split(key, 9)

    x = jax.random.normal(ks[0], (B, C, H, W), jnp.float32)
    params = {
        "w1": 0.05 * jax.random.normal(ks[1], (C, C, 3, 3), jnp.float32),
        "b1": 0.1 * jax.random.normal(ks[2], (C,), jnp.float32),
        "g1": 1.0 + 0.1 * jax.random.normal(ks[3], (C,), jnp.float32),
        "be1": 0.1 * jax.random.normal(ks[4], (C,), jnp.float32),
        "w2": 0.05 * jax.random.normal(ks[5], (C, C, 3, 3), jnp.float32),
        "b2": 0.1 * jax.random.normal(ks[6], (C,), jnp.float32),
        "g2": 1.0 + 0.1 * jax.random.normal(ks[7], (C,), jnp.float32),
        "be2": 0.1 * jax.random.normal(ks[8], (C,), jnp.float32),
    }

    out = jax.block_until_ready(residual_layer_pallas(x, params))

    # Reference keeps the conv biases (proving their cancellation by IN) and
    # mirrors the bf16 matmul-operand cast (f32 accumulation / stats), so the
    # structural logic (reflect pad, im2col conv, IN, ReLU, residual) is
    # verified tightly. Remaining diffs are only f32 summation-order effects.
    ref = jax.block_until_ready(_ref_residual(x, params, jnp.bfloat16))

    np.testing.assert_allclose(np.asarray(out), np.asarray(ref),
                               rtol=2e-3, atol=2e-3)
    print("KERNEL_OK")
</pallas_src>

<mosaic_0001>
module attributes {stable_mosaic.version = 11 : i64} {
  func.func @_residual_kernel(%arg0: i32, %arg1: memref<1x18x18x128xf32, #tpu.memory_space<vmem>>, %arg2: memref<1152x128xbf16, #tpu.memory_space<vmem>>, %arg3: memref<1x128xf32, #tpu.memory_space<vmem>>, %arg4: memref<1x128xf32, #tpu.memory_space<vmem>>, %arg5: memref<1152x128xbf16, #tpu.memory_space<vmem>>, %arg6: memref<1x128xf32, #tpu.memory_space<vmem>>, %arg7: memref<1x128xf32, #tpu.memory_space<vmem>>, %arg8: memref<1x16x16x128xf32, #tpu.memory_space<vmem>>, %arg9: memref<18x18x128xbf16, #tpu.memory_space<vmem>>) attributes {dimension_semantics = [#tpu.dimension_semantics<parallel>], iteration_bounds = array<i64: 2>, scalar_prefetch = 0 : i64, scratch_operands = 1 : i64, tpu.core_type = #tpu.core_type<tc>, window_params = [{transform_indices = @transform_0, window_bounds = array<i64: 1, 18, 18, 128>}, {pipeline_mode = #tpu.pipeline_mode<synchronous>, transform_indices = @transform_1, window_bounds = array<i64: 1152, 128>}, {pipeline_mode = #tpu.pipeline_mode<synchronous>, transform_indices = @transform_2, window_bounds = array<i64: 1, 128>}, {pipeline_mode = #tpu.pipeline_mode<synchronous>, transform_indices = @transform_3, window_bounds = array<i64: 1, 128>}, {pipeline_mode = #tpu.pipeline_mode<synchronous>, transform_indices = @transform_4, window_bounds = array<i64: 1152, 128>}, {pipeline_mode = #tpu.pipeline_mode<synchronous>, transform_indices = @transform_5, window_bounds = array<i64: 1, 128>}, {pipeline_mode = #tpu.pipeline_mode<synchronous>, transform_indices = @transform_6, window_bounds = array<i64: 1, 128>}, {transform_indices = @transform_7, window_bounds = array<i64: 1, 16, 16, 128>}]} {
    %c0 = arith.constant 0 : index
    %c0_0 = arith.constant 0 : index
    %c0_1 = arith.constant 0 : index
    %c0_2 = arith.constant 0 : index
    %0 = vector.load %arg1[%c0, %c0_0, %c0_1, %c0_2] : memref<1x18x18x128xf32, #tpu.memory_space<vmem>>, vector<1x18x18x128xf32>
    %1 = vector.shape_cast %0 : vector<1x18x18x128xf32> to vector<18x18x128xf32>
    %2 = vector.extract_strided_slice %1 {offsets = [0, 0, 0], sizes = [16, 16, 128], strides = [1, 1, 1]} : vector<18x18x128xf32> to vector<16x16x128xf32>
    %3 = vector.shape_cast %2 : vector<16x16x128xf32> to vector<256x128xf32>
    %4 = arith.truncf %3 : vector<256x128xf32> to vector<256x128xbf16>
    %5 = vector.extract_strided_slice %1 {offsets = [0, 1, 0], sizes = [16, 16, 128], strides = [1, 1, 1]} : vector<18x18x128xf32> to vector<16x16x128xf32>
    %6 = vector.shape_cast %5 : vector<16x16x128xf32> to vector<256x128xf32>
    %7 = arith.truncf %6 : vector<256x128xf32> to vector<256x128xbf16>
    %8 = vector.extract_strided_slice %1 {offsets = [0, 2, 0], sizes = [16, 16, 128], strides = [1, 1, 1]} : vector<18x18x128xf32> to vector<16x16x128xf32>
    %9 = vector.shape_cast %8 : vector<16x16x128xf32> to vector<256x128xf32>
    %10 = arith.truncf %9 : vector<256x128xf32> to vector<256x128xbf16>
    %11 = vector.extract_strided_slice %1 {offsets = [1, 0, 0], sizes = [16, 16, 128], strides = [1, 1, 1]} : vector<18x18x128xf32> to vector<16x16x128xf32>
    %12 = vector.shape_cast %11 : vector<16x16x128xf32> to vector<256x128xf32>
    %13 = arith.truncf %12 : vector<256x128xf32> to vector<256x128xbf16>
    %14 = vector.extract_strided_slice %1 {offsets = [1, 1, 0], sizes = [16, 16, 128], strides = [1, 1, 1]} : vector<18x18x128xf32> to vector<16x16x128xf32>
    %15 = vector.shape_cast %14 : vector<16x16x128xf32> to vector<256x128xf32>
    %16 = arith.truncf %15 : vector<256x128xf32> to vector<256x128xbf16>
    %17 = vector.extract_strided_slice %1 {offsets = [1, 2, 0], sizes = [16, 16, 128], strides = [1, 1, 1]} : vector<18x18x128xf32> to vector<16x16x128xf32>
    %18 = vector.shape_cast %17 : vector<16x16x128xf32> to vector<256x128xf32>
    %19 = arith.truncf %18 : vector<256x128xf32> to vector<256x128xbf16>
    %20 = vector.extract_strided_slice %1 {offsets = [2, 0, 0], sizes = [16, 16, 128], strides = [1, 1, 1]} : vector<18x18x128xf32> to vector<16x16x128xf32>
    %21 = vector.shape_cast %20 : vector<16x16x128xf32> to vector<256x128xf32>
    %22 = arith.truncf %21 : vector<256x128xf32> to vector<256x128xbf16>
    %23 = vector.extract_strided_slice %1 {offsets = [2, 1, 0], sizes = [16, 16, 128], strides = [1, 1, 1]} : vector<18x18x128xf32> to vector<16x16x128xf32>
    %24 = vector.shape_cast %23 : vector<16x16x128xf32> to vector<256x128xf32>
    %25 = arith.truncf %24 : vector<256x128xf32> to vector<256x128xbf16>
    %26 = vector.extract_strided_slice %1 {offsets = [2, 2, 0], sizes = [16, 16, 128], strides = [1, 1, 1]} : vector<18x18x128xf32> to vector<16x16x128xf32>
    %27 = vector.shape_cast %26 : vector<16x16x128xf32> to vector<256x128xf32>
    %28 = arith.truncf %27 : vector<256x128xf32> to vector<256x128xbf16>
    %29 = tpu.concatenate %4, %7, %10, %13, %16, %19, %22, %25, %28 in 1 : vector<256x128xbf16>, vector<256x128xbf16>, vector<256x128xbf16>, vector<256x128xbf16>, vector<256x128xbf16>, vector<256x128xbf16>, vector<256x128xbf16>, vector<256x128xbf16>, vector<256x128xbf16> -> vector<256x1152xbf16>
    %c0_3 = arith.constant 0 : index
    %c0_4 = arith.constant 0 : index
    %30 = vector.load %arg2[%c0_3, %c0_4] : memref<1152x128xbf16, #tpu.memory_space<vmem>>, vector<1152x128xbf16>
    %cst = arith.constant dense<0.000000e+00> : vector<256x128xf32>
    %31 = tpu.matmul %29, %30, %cst {dimension_numbers = #tpu.dot_dimension_numbers<[1], [0], [0], [1], [0, 0, 1, 1], [], []>} : vector<256x1152xbf16>, vector<1152x128xbf16>, vector<256x128xf32> -> vector<256x128xf32>
    %cst_5 = arith.constant dense<0.000000e+00> : vector<128xf32>
    %32 = vector.multi_reduction <add>, %31, %cst_5 [0] : vector<256x128xf32> to vector<128xf32>
    %33 = vector.shape_cast %32 : vector<128xf32> to vector<1x128xf32>
    %34 = arith.mulf %31, %31 : vector<256x128xf32>
    %cst_6 = arith.constant dense<0.000000e+00> : vector<128xf32>
    %35 = vector.multi_reduction <add>, %34, %cst_6 [0] : vector<256x128xf32> to vector<128xf32>
    %36 = vector.shape_cast %35 : vector<128xf32> to vector<1x128xf32>
    %cst_7 = arith.constant 3.906250e-03 : f32
    %37 = vector.broadcast %cst_7 : f32 to vector<1x128xf32>
    %38 = arith.mulf %33, %37 : vector<1x128xf32>
    %cst_8 = arith.constant 3.906250e-03 : f32
    %39 = vector.broadcast %cst_8 : f32 to vector<1x128xf32>
    %40 = arith.mulf %36, %39 : vector<1x128xf32>
    %41 = arith.mulf %38, %38 : vector<1x128xf32>
    %42 = arith.subf %40, %41 : vector<1x128xf32>
    %c0_9 = arith.constant 0 : index
    %c0_10 = arith.constant 0 : index
    %43 = vector.load %arg3[%c0_9, %c0_10] : memref<1x128xf32, #tpu.memory_space<vmem>>, vector<1x128xf32>
    %cst_11 = arith.constant 9.99999974E-6 : f32
    %44 = vector.broadcast %cst_11 : f32 to vector<1x128xf32>
    %45 = arith.addf %42, %44 : vector<1x128xf32>
    %46 = math.rsqrt %45 : vector<1x128xf32>
    %47 = arith.mulf %43, %46 : vector<1x128xf32>
    %c0_12 = arith.constant 0 : index
    %c0_13 = arith.constant 0 : index
    %48 = vector.load %arg4[%c0_12, %c0_13] : memref<1x128xf32, #tpu.memory_space<vmem>>, vector<1x128xf32>
    %49 = arith.mulf %38, %47 : vector<1x128xf32>
    %50 = arith.subf %48, %49 : vector<1x128xf32>
    %51 = vector.broadcast %47 : vector<1x128xf32> to vector<256x128xf32>
    %52 = arith.mulf %31, %51 : vector<256x128xf32>
    %53 = vector.broadcast %50 : vector<1x128xf32> to vector<256x128xf32>
    %54 = arith.addf %52, %53 : vector<256x128xf32>
    %cst_14 = arith.constant 0.000000e+00 : f32
    %55 = vector.broadcast %cst_14 : f32 to vector<256x128xf32>
    %56 = arith.maximumf %54, %55 : vector<256x128xf32>
    %57 = vector.shape_cast %56 : vector<256x128xf32> to vector<16x16x128xf32>
    %58 = arith.truncf %57 : vector<16x16x128xf32> to vector<16x16x128xbf16>
    %c1 = arith.constant 1 : index
    %c1_15 = arith.constant 1 : index
    %c0_16 = arith.constant 0 : index
    %59 = vector.load %arg9[%c1, %c1_15, %c0_16] : memref<18x18x128xbf16, #tpu.memory_space<vmem>>, vector<16x16x128xbf16>
    tpu.vector_store %arg9[%c1, %c1_15, %c0_16], %58 {strides = array<i32>} : memref<18x18x128xbf16, #tpu.memory_space<vmem>>, vector<16x16x128xbf16>,
    %60 = vector.extract_strided_slice %58 {offsets = [1, 0, 0], sizes = [1, 16, 128], strides = [1, 1, 1]} : vector<16x16x128xbf16> to vector<1x16x128xbf16>
    %c0_17 = arith.constant 0 : index
    %c1_18 = arith.constant 1 : index
    %c0_19 = arith.constant 0 : index
    %61 = vector.load %arg9[%c0_17, %c1_18, %c0_19] : memref<18x18x128xbf16, #tpu.memory_space<vmem>>, vector<1x16x128xbf16>
    tpu.vector_store %arg9[%c0_17, %c1_18, %c0_19], %60 {strides = array<i32>} : memref<18x18x128xbf16, #tpu.memory_space<vmem>>, vector<1x16x128xbf16>,
    %62 = vector.extract_strided_slice %58 {offsets = [14, 0, 0], sizes = [1, 16, 128], strides = [1, 1, 1]} : vector<16x16x128xbf16> to vector<1x16x128xbf16>
    %c17 = arith.constant 17 : index
    %c1_20 = arith.constant 1 : index
    %c0_21 = arith.constant 0 : index
    %63 = vector.load %arg9[%c17, %c1_20, %c0_21] : memref<18x18x128xbf16, #tpu.memory_space<vmem>>, vector<1x16x128xbf16>
    tpu.vector_store %arg9[%c17, %c1_20, %c0_21], %62 {strides = array<i32>} : memref<18x18x128xbf16, #tpu.memory_space<vmem>>, vector<1x16x128xbf16>,
    %c0_22 = arith.constant 0 : index
    %c2 = arith.constant 2 : index
    %c0_23 = arith.constant 0 : index
    %64 = vector.load %arg9[%c0_22, %c2, %c0_23] : memref<18x18x128xbf16, #tpu.memory_space<vmem>>, vector<18x1x128xbf16>
    %c0_24 = arith.constant 0 : index
    %c0_25 = arith.constant 0 : index
    %c0_26 = arith.constant 0 : index
    %65 = vector.load %arg9[%c0_24, %c0_25, %c0_26] : memref<18x18x128xbf16, #tpu.memory_space<vmem>>, vector<18x1x128xbf16>
    tpu.vector_store %arg9[%c0_24, %c0_25, %c0_26], %64 {strides = array<i32>} : memref<18x18x128xbf16, #tpu.memory_space<vmem>>, vector<18x1x128xbf16>,
    %c0_27 = arith.constant 0 : index
    %c15 = arith.constant 15 : index
    %c0_28 = arith.constant 0 : index
    %66 = vector.load %arg9[%c0_27, %c15, %c0_28] : memref<18x18x128xbf16, #tpu.memory_space<vmem>>, vector<18x1x128xbf16>
    %c0_29 = arith.constant 0 : index
    %c17_30 = arith.constant 17 : index
    %c0_31 = arith.constant 0 : index
    %67 = vector.load %arg9[%c0_29, %c17_30, %c0_31] : memref<18x18x128xbf16, #tpu.memory_space<vmem>>, vector<18x1x128xbf16>
    tpu.vector_store %arg9[%c0_29, %c17_30, %c0_31], %66 {strides = array<i32>} : memref<18x18x128xbf16, #tpu.memory_space<vmem>>, vector<18x1x128xbf16>,
    %c0_32 = arith.constant 0 : index
    %c0_33 = arith.constant 0 : index
    %c0_34 = arith.constant 0 : index
    %68 = vector.load %arg9[%c0_32, %c0_33, %c0_34] : memref<18x18x128xbf16, #tpu.memory_space<vmem>>, vector<16x16x128xbf16>
    %69 = vector.shape_cast %68 : vector<16x16x128xbf16> to vector<256x128xbf16>
    %c0_35 = arith.constant 0 : index
    %c1_36 = arith.constant 1 : index
    %c0_37 = arith.constant 0 : index
    %70 = vector.load %arg9[%c0_35, %c1_36, %c0_37] : memref<18x18x128xbf16, #tpu.memory_space<vmem>>, vector<16x16x128xbf16>
    %71 = vector.shape_cast %70 : vector<16x16x128xbf16> to vector<256x128xbf16>
    %c0_38 = arith.constant 0 : index
    %c2_39 = arith.constant 2 : index
    %c0_40 = arith.constant 0 : index
    %72 = vector.load %arg9[%c0_38, %c2_39, %c0_40] : memref<18x18x128xbf16, #tpu.memory_space<vmem>>, vector<16x16x128xbf16>
    %73 = vector.shape_cast %72 : vector<16x16x128xbf16> to vector<256x128xbf16>
    %c1_41 = arith.constant 1 : index
    %c0_42 = arith.constant 0 : index
    %c0_43 = arith.constant 0 : index
    %74 = vector.load %arg9[%c1_41, %c0_42, %c0_43] : memref<18x18x128xbf16, #tpu.memory_space<vmem>>, vector<16x16x128xbf16>
    %75 = vector.shape_cast %74 : vector<16x16x128xbf16> to vector<256x128xbf16>
    %c1_44 = arith.constant 1 : index
    %c1_45 = arith.constant 1 : index
    %c0_46 = arith.constant 0 : index
    %76 = vector.load %arg9[%c1_44, %c1_45, %c0_46] : memref<18x18x128xbf16, #tpu.memory_space<vmem>>, vector<16x16x128xbf16>
    %77 = vector.shape_cast %76 : vector<16x16x128xbf16> to vector<256x128xbf16>
    %c1_47 = arith.constant 1 : index
    %c2_48 = arith.constant 2 : index
    %c0_49 = arith.constant 0 : index
    %78 = vector.load %arg9[%c1_47, %c2_48, %c0_49] : memref<18x18x128xbf16, #tpu.memory_space<vmem>>, vector<16x16x128xbf16>
    %79 = vector.shape_cast %78 : vector<16x16x128xbf16> to vector<256x128xbf16>
    %c2_50 = arith.constant 2 : index
    %c0_51 = arith.constant 0 : index
    %c0_52 = arith.constant 0 : index
    %80 = vector.load %arg9[%c2_50, %c0_51, %c0_52] : memref<18x18x128xbf16, #tpu.memory_space<vmem>>, vector<16x16x128xbf16>
    %81 = vector.shape_cast %80 : vector<16x16x128xbf16> to vector<256x128xbf16>
    %c2_53 = arith.constant 2 : index
    %c1_54 = arith.constant 1 : index
    %c0_55 = arith.constant 0 : index
    %82 = vector.load %arg9[%c2_53, %c1_54, %c0_55] : memref<18x18x128xbf16, #tpu.memory_space<vmem>>, vector<16x16x128xbf16>
    %83 = vector.shape_cast %82 : vector<16x16x128xbf16> to vector<256x128xbf16>
    %c2_56 = arith.constant 2 : index
    %c2_57 = arith.constant 2 : index
    %c0_58 = arith.constant 0 : index
    %84 = vector.load %arg9[%c2_56, %c2_57, %c0_58] : memref<18x18x128xbf16, #tpu.memory_space<vmem>>, vector<16x16x128xbf16>
    %85 = vector.shape_cast %84 : vector<16x16x128xbf16> to vector<256x128xbf16>
    %86 = tpu.concatenate %69, %71, %73, %75, %77, %79, %81, %83, %85 in 1 : vector<256x128xbf16>, vector<256x128xbf16>, vector<256x128xbf16>, vector<256x128xbf16>, vector<256x128xbf16>, vector<256x128xbf16>, vector<256x128xbf16>, vector<256x128xbf16>, vector<256x128xbf16> -> vector<256x1152xbf16>
    %c0_59 = arith.constant 0 : index
    %c0_60 = arith.constant 0 : index
    %87 = vector.load %arg5[%c0_59, %c0_60] : memref<1152x128xbf16, #tpu.memory_space<vmem>>, vector<1152x128xbf16>
    %cst_61 = arith.constant dense<0.000000e+00> : vector<256x128xf32>
    %88 = tpu.matmul %86, %87, %cst_61 {dimension_numbers = #tpu.dot_dimension_numbers<[1], [0], [0], [1], [0, 0, 1, 1], [], []>} : vector<256x1152xbf16>, vector<1152x128xbf16>, vector<256x128xf32> -> vector<256x128xf32>
    %cst_62 = arith.constant dense<0.000000e+00> : vector<128xf32>
    %89 = vector.multi_reduction <add>, %88, %cst_62 [0] : vector<256x128xf32> to vector<128xf32>
    %90 = vector.shape_cast %89 : vector<128xf32> to vector<1x128xf32>
    %91 = arith.mulf %88, %88 : vector<256x128xf32>
    %cst_63 = arith.constant dense<0.000000e+00> : vector<128xf32>
    %92 = vector.multi_reduction <add>, %91, %cst_63 [0] : vector<256x128xf32> to vector<128xf32>
    %93 = vector.shape_cast %92 : vector<128xf32> to vector<1x128xf32>
    %cst_64 = arith.constant 3.906250e-03 : f32
    %94 = vector.broadcast %cst_64 : f32 to vector<1x128xf32>
    %95 = arith.mulf %90, %94 : vector<1x128xf32>
    %cst_65 = arith.constant 3.906250e-03 : f32
    %96 = vector.broadcast %cst_65 : f32 to vector<1x128xf32>
    %97 = arith.mulf %93, %96 : vector<1x128xf32>
    %98 = arith.mulf %95, %95 : vector<1x128xf32>
    %99 = arith.subf %97, %98 : vector<1x128xf32>
    %c0_66 = arith.constant 0 : index
    %c0_67 = arith.constant 0 : index
    %100 = vector.load %arg6[%c0_66, %c0_67] : memref<1x128xf32, #tpu.memory_space<vmem>>, vector<1x128xf32>
    %cst_68 = arith.constant 9.99999974E-6 : f32
    %101 = vector.broadcast %cst_68 : f32 to vector<1x128xf32>
    %102 = arith.addf %99, %101 : vector<1x128xf32>
    %103 = math.rsqrt %102 : vector<1x128xf32>
    %104 = arith.mulf %100, %103 : vector<1x128xf32>
    %c0_69 = arith.constant 0 : index
    %c0_70 = arith.constant 0 : index
    %105 = vector.load %arg7[%c0_69, %c0_70] : memref<1x128xf32, #tpu.memory_space<vmem>>, vector<1x128xf32>
    %106 = arith.mulf %95, %104 : vector<1x128xf32>
    %107 = arith.subf %105, %106 : vector<1x128xf32>
    %108 = vector.extract_strided_slice %1 {offsets = [1, 1, 0], sizes = [16, 16, 128], strides = [1, 1, 1]} : vector<18x18x128xf32> to vector<16x16x128xf32>
    %109 = vector.shape_cast %108 : vector<16x16x128xf32> to vector<256x128xf32>
    %110 = vector.broadcast %104 : vector<1x128xf32> to vector<256x128xf32>
    %111 = arith.mulf %88, %110 : vector<256x128xf32>
    %112 = vector.broadcast %107 : vector<1x128xf32> to vector<256x128xf32>
    %113 = arith.addf %111, %112 : vector<256x128xf32>
    %114 = arith.addf %113, %109 : vector<256x128xf32>
    %115 = vector.shape_cast %114 : vector<256x128xf32> to vector<16x16x128xf32>
    %c0_71 = arith.constant 0 : index
    %c0_72 = arith.constant 0 : index
    %c0_73 = arith.constant 0 : index
    %c0_74 = arith.constant 0 : index
    %116 = vector.load %arg8[%c0_71, %c0_72, %c0_73, %c0_74] : memref<1x16x16x128xf32, #tpu.memory_space<vmem>>, vector<1x16x16x128xf32>
    %117 = vector.shape_cast %116 : vector<1x16x16x128xf32> to vector<16x16x128xf32>
    %118 = vector.shape_cast %115 : vector<16x16x128xf32> to vector<1x16x16x128xf32>
    tpu.vector_store %arg8[%c0_71, %c0_72, %c0_73, %c0_74], %118 {strides = array<i32>} : memref<1x16x16x128xf32, #tpu.memory_space<vmem>>, vector<1x16x16x128xf32>,
    return
  }
  func.func @transform_0(%arg0: i32) -> (i32, i32, i32, i32) {
    %c0_i32 = arith.constant 0 : i32
    %c0_i32_0 = arith.constant 0 : i32
    %c0_i32_1 = arith.constant 0 : i32
    %c0_i32_2 = arith.constant 0 : i32
    return %arg0, %c0_i32, %c0_i32_0, %c0_i32_1 : i32, i32, i32, i32
  }
  func.func @transform_1(%arg0: i32) -> (i32, i32) {
    %c0_i32 = arith.constant 0 : i32
    %c0_i32_0 = arith.constant 0 : i32
    %c0_i32_1 = arith.constant 0 : i32
    return %c0_i32, %c0_i32_0 : i32, i32
  }
  func.func @transform_2(%arg0: i32) -> (i32, i32) {
    %c0_i32 = arith.constant 0 : i32
    %c0_i32_0 = arith.constant 0 : i32
    %c0_i32_1 = arith.constant 0 : i32
    return %c0_i32, %c0_i32_0 : i32, i32
  }
  func.func @transform_3(%arg0: i32) -> (i32, i32) {
    %c0_i32 = arith.constant 0 : i32
    %c0_i32_0 = arith.constant 0 : i32
    %c0_i32_1 = arith.constant 0 : i32
    return %c0_i32, %c0_i32_0 : i32, i32
  }
  func.func @transform_4(%arg0: i32) -> (i32, i32) {
    %c0_i32 = arith.constant 0 : i32
    %c0_i32_0 = arith.constant 0 : i32
    %c0_i32_1 = arith.constant 0 : i32
    return %c0_i32, %c0_i32_0 : i32, i32
  }
  func.func @transform_5(%arg0: i32) -> (i32, i32) {
    %c0_i32 = arith.constant 0 : i32
    %c0_i32_0 = arith.constant 0 : i32
    %c0_i32_1 = arith.constant 0 : i32
    return %c0_i32, %c0_i32_0 : i32, i32
  }
  func.func @transform_6(%arg0: i32) -> (i32, i32) {
    %c0_i32 = arith.constant 0 : i32
    %c0_i32_0 = arith.constant 0 : i32
    %c0_i32_1 = arith.constant 0 : i32
    return %c0_i32, %c0_i32_0 : i32, i32
  }
  func.func @transform_7(%arg0: i32) -> (i32, i32, i32, i32) {
    %c0_i32 = arith.constant 0 : i32
    %c0_i32_0 = arith.constant 0 : i32
    %c0_i32_1 = arith.constant 0 : i32
    %c0_i32_2 = arith.constant 0 : i32
    return %arg0, %c0_i32, %c0_i32_0, %c0_i32_1 : i32, i32, i32, i32
  }
}

</mosaic_0001>

<bundles_post_ra>
// kernel: tpu_custom_call.1
= control target key start
LH: loop header
LB: loop body
LE: loop exit
PB: predicated region body
PF: predicated region fallthrough
CT: control target
= control target key end

     0   :  { %s13574_s0 = inlined_call_operand.hbm [shape: f32[2,18,18,128], index: 0, kind: input, shape index: {}]   ;;  %s13575_s1 = inlined_call_operand.hbm [shape: bf16[1152,128], index: 1, kind: input, shape index: {}]   ;;  %s13576_s2 = inlined_call_operand.hbm [shape: f32[1,128], index: 2, kind: input, shape index: {}]   ;;  %s13577_s3 = inlined_call_operand.hbm [shape: f32[1,128], index: 3, kind: input, shape index: {}]   ;;  %s13578_s4 = inlined_call_operand.hbm [shape: bf16[1152,128], index: 4, kind: input, shape index: {}]   ;;  %s13579_s5 = inlined_call_operand.hbm [shape: f32[1,128], index: 5, kind: input, shape index: {}]   ;;  %s13580_s6 = inlined_call_operand.hbm [shape: f32[1,128], index: 6, kind: input, shape index: {}]   ;;  %s13581_s7 = inlined_call_operand.hbm [shape: f32[2,16,16,128], index: 7, kind: output, shape index: {}]  }
   0x1   :  { %13644 = sst [smem:[#allocation82_spill]] %s13575_s1 }
   0x2   :  { %12 = vsyncpa [#allocation4], 0 }
   0x3   :  { %14 = vsyncpa [#allocation4 + $0x1], 0 }
   0x4   :  { %15 = vsyncpa [#allocation7], 0 }
   0x5   :  { %16 = vsyncpa [#allocation10], 0 }
   0x6   :  { %17 = vsyncpa [#allocation13], 0 }
   0x7   :  { %18 = vsyncpa [#allocation5], 0 }
   0x8   :  { %20 = vsyncpa [#allocation5 + $0x1], 0  ;;  %s9650_s24 = smov 0   ;;  %s9652_s25 = smov 0  }
   0x9   :  { %s9654_s26 = smov 0   ;;  %s9656_s27 = smov 0  }
   0xa LB: > { %s9596_s28 = smov [#allocation6]   ;;  %s9671_s30 = sadd.s32 4294967295, %s9594_s27   ;;  %s9594_s27 = sphi %s9656_s27, %s13922_s27   ;;  %s9590_s26 = sphi %s9654_s26, %s13921_s26   ;;  %s9586_s25 = sphi %s9652_s25, %s13920_s25   ;;  %s9582_s24 = sphi %s9650_s24, %s13919_s24  }
   0xb   : > { %s221_s29 = sshll.u32 %s9596_s28, 4  ;;  %p7478_p0 = scmp.ge.s32.totalorder %s9594_s27, 1  ;;  %s9676_s29 = int_to_ptr.vmem [resolvable:$true] %s221_s29 }
   0xc   : > { %p13582_p1 = scmp.eq.s32.totalorder %s9671_s30, 0  ;;  %p209_p2 = scmp.lt.s32.totalorder %s9594_s27, 3 }
   0xd   : > { %s9597_s9 = smov [#allocation9]   ;;  %s9598_s12 = smov [#allocation12]  }
   0xe   : > { %p9678_p3 = pnand %p7478_p0, %p209_p2  ;;  %s246_s10 = sshll.u32 %s9597_s9, 4  ;;  %s9691_s10 = int_to_ptr.vmem [resolvable:$true] %s246_s10 }
   0xf   : > { %s270_s13 = sshll.u32 %s9598_s12, 4  ;;  %s13647_s1 = sld [smem:[#allocation82_spill]]  ;;  %s9693_s13 = int_to_ptr.vmem [resolvable:$true] %s270_s13 }
  0x10   : > { %s13645_s8 = scalar_select %p9678_p3, 1, 0 }
  0x11   : > { %p9008_p5 = pneg %p9678_p3 }
  0x13   : > { %p9687_p6 = pnand %p9008_p5, %p13582_p1 }
  0x15   : > { %s9318_s16 = scalar_lea.hbm %s13647_s1, 9216  ;;  %p9703_p8 = pneg %p9687_p6 }
  0x16   : > { %p9319_p7 = scmp.ne.s32.totalorder %s13647_s1, %s9318_s16  ;;  %p9325_p11 = scmp.lt.u32.totalorder %s9318_s16, %s13647_s1 }
  0x18   : > { %p9321_p9 = pnand %p9703_p8, %p9319_p7 }
  0x1a   : > { %p9322_p10 = pneg %p9321_p9 }
  0x1c   : > { %p9327_p12 = pnand %p9325_p11, %p9322_p10 }
  0x1e   : > { %9330 = shalt.err (!%p9327_p12)
}
  0x1f   : > { %s9331_s22 = scalar_lea.vmem %s9676_s29, 9216  ;;  %p9339_p5 = scmp.lt.s32.totalorder %s9676_s29, %s9676_s29 }
  0x20   : > { %p9332_p13 = scmp.ne.s32.totalorder %s9676_s29, %s9331_s22  ;;  %p9340_p4 = scmp.lt.s32.totalorder %s9331_s22, %s9331_s22 }
  0x22   : > { %p9334_p0 = pnand %p9332_p13, %p9703_p8  ;;  %p9341_p7 = por %p9340_p4, %p9339_p5 }
  0x24   : > { %p9335_p2 = pneg %p9334_p0 }
  0x26   : > { %p9342_p9 = pnand %p9341_p7, %p9335_p2 }
  0x28   : > { %9345 = shalt.err (!%p9342_p9)
}
  0x29   : > { %s9599_s23 = smov 64   ;;  %s9600_s28 = smov 4  }
  0x2a   : > { %9011 = dma.hbm_to_vmem [thread:$0]  (!%p9687_p6), %s13647_s1, 9216, %s9676_s29, [#allocation7], %s9599_s23, %s9599_s23, %s9600_s28  }
  0x2b   : > { %s9346_s16 = scalar_lea.hbm %s13577_s3, 16 }
  0x2c   : > { %p9347_p4 = scmp.ne.s32.totalorder %s13577_s3, %s9346_s16  ;;  %p9353_p12 = scmp.lt.u32.totalorder %s9346_s16, %s13577_s3 }
  0x2e   : > { %p9349_p10 = pnand %p9347_p4, %p9703_p8 }
  0x30   : > { %p9350_p11 = pneg %p9349_p10 }
  0x32   : > { %p9355_p13 = pnand %p9353_p12, %p9350_p11 }
  0x34   : > { %9358 = shalt.err (!%p9355_p13)
}
  0x35   : > { %s9359_s29 = scalar_lea.vmem %s9691_s10, 16  ;;  %s9366_s22 = scalar_lea.vmem %s9691_s10, 32 }
  0x36   : > { %p9360_p0 = scmp.ne.s32.totalorder %s9691_s10, %s9359_s29  ;;  %p9367_p7 = scmp.lt.s32.totalorder %s9691_s10, %s9691_s10 }
  0x37   : > { %p9368_p9 = scmp.lt.s32.totalorder %s9366_s22, %s9359_s29 }
  0x38   : > { %p9362_p2 = pnand %p9360_p0, %p9703_p8 }
  0x39   : > { %p9369_p4 = por %p9368_p9, %p9367_p7 }
  0x3a   : > { %p9363_p5 = pneg %p9362_p2 }
  0x3c   : > { %p9370_p10 = pnand %p9369_p4, %p9363_p5 }
  0x3e   : > { %9373 = shalt.err (!%p9370_p10)
}
  0x3f   : > { %9017 = dma.hbm_to_vmem [thread:$0]  (!%p9687_p6), %s13577_s3, 16, %s9691_s10, [#allocation10]  }
  0x40   : > { %s9374_s16 = scalar_lea.hbm %s13579_s5, 16 }
  0x41   : > { %p9375_p11 = scmp.ne.s32.totalorder %s13579_s5, %s9374_s16  ;;  %p9381_p0 = scmp.lt.u32.totalorder %s9374_s16, %s13579_s5 }
  0x43   : > { %p9377_p12 = pnand %p9375_p11, %p9703_p8 }
  0x45   : > { %p9378_p13 = pneg %p9377_p12 }
  0x47   : > { %p9383_p2 = pnand %p9381_p0, %p9378_p13 }
  0x49   : > { %9386 = shalt.err (!%p9383_p2)
}
  0x4a   : > { %s9387_s10 = scalar_lea.vmem %s9693_s13, 16  ;;  %s9394_s29 = scalar_lea.vmem %s9693_s13, 32 }
  0x4b   : > { %p9388_p5 = scmp.ne.s32.totalorder %s9693_s13, %s9387_s10  ;;  %p9395_p4 = scmp.lt.s32.totalorder %s9693_s13, %s9693_s13 }
  0x4c   : > { %p9396_p10 = scmp.lt.s32.totalorder %s9394_s29, %s9387_s10 }
  0x4d   : > { %p9390_p7 = pnand %p9388_p5, %p9703_p8 }
  0x4e   : > { %p9397_p11 = por %p9396_p10, %p9395_p4 }
  0x4f   : > { %p9391_p9 = pneg %p9390_p7 }
  0x51   : > { %p9398_p12 = pnand %p9397_p11, %p9391_p9 }
  0x53   : > { %9401 = shalt.err (!%p9398_p12)
}
  0x54   : > { %9023 = dma.hbm_to_vmem [thread:$0]  (!%p9687_p6), %s13579_s5, 16, %s9693_s13, [#allocation13]  }
  0x55   : > { %s9601_s12 = smov [#allocation8]   ;;  %s9602_s15 = smov [#allocation11]  }
  0x56   : > { %s235_s14 = sshll.u32 %s9601_s12, 4  ;;  %s256_s16 = sshll.u32 %s9602_s15, 4  ;;  %s236_s14 = int_to_ptr.vmem [resolvable:$true] %s235_s14  ;;  %s257_s16 = int_to_ptr.vmem [resolvable:$true] %s256_s16 }
  0x57   : > { %s9402_s20 = scalar_lea.hbm %s13576_s2, 16 }
  0x58   : > { %p9403_p13 = scmp.ne.s32.totalorder %s13576_s2, %s9402_s20  ;;  %p9409_p5 = scmp.lt.u32.totalorder %s9402_s20, %s13576_s2 }
  0x5a   : > { %p9405_p0 = pnand %p9403_p13, %p9703_p8 }
  0x5c   : > { %p9406_p2 = pneg %p9405_p0 }
  0x5e   : > { %p9411_p7 = pnand %p9409_p5, %p9406_p2 }
  0x60   : > { %9414 = shalt.err (!%p9411_p7)
}
  0x61   : > { %s9415_s13 = scalar_lea.vmem %s236_s14, 16  ;;  %s9422_s9 = scalar_lea.vmem %s236_s14, 32 }
  0x62   : > { %p9416_p9 = scmp.ne.s32.totalorder %s236_s14, %s9415_s13  ;;  %p9423_p11 = scmp.lt.s32.totalorder %s236_s14, %s236_s14 }
  0x63   : > { %p9424_p12 = scmp.lt.s32.totalorder %s9422_s9, %s9415_s13 }
  0x64   : > { %p9418_p4 = pnand %p9416_p9, %p9703_p8 }
  0x65   : > { %p9425_p1 = por %p9424_p12, %p9423_p11 }
  0x66   : > { %p9419_p10 = pneg %p9418_p4 }
  0x68   : > { %p9426_p3 = pnand %p9425_p1, %p9419_p10 }
  0x6a   : > { %9429 = shalt.err (!%p9426_p3)
}
  0x6b   : > { %9014 = dma.hbm_to_vmem [thread:$0]  (!%p9687_p6), %s13576_s2, 16, %s236_s14, [#allocation7]  }
  0x6c   : > { %s9430_s20 = scalar_lea.hbm %s13578_s4, 9216 }
  0x6d   : > { %p9431_p13 = scmp.ne.s32.totalorder %s13578_s4, %s9430_s20  ;;  %p9437_p3 = scmp.lt.u32.totalorder %s9430_s20, %s13578_s4 }
  0x6f   : > { %p9433_p0 = pnand %p9431_p13, %p9703_p8 }
  0x71   : > { %p9434_p1 = pneg %p9433_p0 }
  0x73   : > { %p9439_p2 = pnand %p9437_p3, %p9434_p1 }
  0x75   : > { %9442 = shalt.err (!%p9439_p2)
}
  0x76   : > { %s9443_s13 = scalar_lea.vmem %s257_s16, 9216  ;;  %p9451_p4 = scmp.lt.s32.totalorder %s257_s16, %s257_s16 }
  0x77   : > { %p9444_p5 = scmp.ne.s32.totalorder %s257_s16, %s9443_s13  ;;  %p9452_p10 = scmp.lt.s32.totalorder %s9443_s13, %s9443_s13 }
  0x79   : > { %p9446_p7 = pnand %p9444_p5, %p9703_p8  ;;  %p9453_p11 = por %p9452_p10, %p9451_p4 }
  0x7b   : > { %p9447_p9 = pneg %p9446_p7 }
  0x7d   : > { %p9454_p12 = pnand %p9453_p11, %p9447_p9 }
  0x7f   : > { %9457 = shalt.err (!%p9454_p12)
}
  0x80   : > { %9020 = dma.hbm_to_vmem [thread:$0]  (!%p9687_p6), %s13578_s4, 9216, %s257_s16, [#allocation10], %s9599_s23, %s9599_s23, %s9600_s28  }
  0x81   : > { %s9603_s12 = smov [#allocation14]   ;;  %s9458_s20 = scalar_lea.hbm %s13580_s6, 16 }
  0x82   : > { %s281_s15 = sshll.u32 %s9603_s12, 4  ;;  %p9459_p13 = scmp.ne.s32.totalorder %s13580_s6, %s9458_s20  ;;  %s282_s15 = int_to_ptr.vmem [resolvable:$true] %s281_s15 }
  0x83   : > { %p9465_p3 = scmp.lt.u32.totalorder %s9458_s20, %s13580_s6 }
  0x84   : > { %p9461_p0 = pnand %p9459_p13, %p9703_p8 }
  0x86   : > { %p9462_p1 = pneg %p9461_p0 }
  0x88   : > { %p9467_p2 = pnand %p9465_p3, %p9462_p1 }
  0x8a   : > { %9470 = shalt.err (!%p9467_p2)
}
  0x8b   : > { %s9471_s23 = scalar_lea.vmem %s282_s15, 16  ;;  %s9478_s28 = scalar_lea.vmem %s282_s15, 32 }
  0x8c   : > { %p9472_p5 = scmp.ne.s32.totalorder %s282_s15, %s9471_s23  ;;  %p9479_p4 = scmp.lt.s32.totalorder %s282_s15, %s282_s15 }
  0x8d   : > { %p9480_p10 = scmp.lt.s32.totalorder %s9478_s28, %s9471_s23 }
  0x8e   : > { %p9474_p7 = pnand %p9472_p5, %p9703_p8 }
  0x8f   : > { %p9481_p11 = por %p9480_p10, %p9479_p4 }
  0x90   : > { %p9475_p9 = pneg %p9474_p7 }
  0x92   : > { %p9482_p12 = pnand %p9481_p11, %p9475_p9 }
  0x94   : > { %9485 = shalt.err (!%p9482_p12)
}
  0x95   : > { %9026 = dma.hbm_to_vmem [thread:$0]  (!%p9687_p6), %s13580_s6, 16, %s282_s15, [#allocation13]  }
  0x96   : > { %s7477_s19 = sadd.s32 4294967294, %s9594_s27   ;;  %s9834_s11 = sadd.s32 1, %s9594_s27  }
  0x97   : > { %s30_s14 = ssub.s32 %s9594_s27, %s9834_s11  ;;  %s33_s9 = sadd.s32 1, %s9590_s26 }
  0x98   : > { %p31_p8 = scmp.eq.s32.totalorder %s30_s14, 0  ;;  %p40_p13 = scmp.ne.s32.totalorder %s9590_s26, %s9586_s25 }
  0x99   : > { %p41_p0 = scmp.eq.s32.totalorder %s9594_s27, 0  ;;  %p46_p1 = scmp.ne.s32.totalorder %s9586_s25, %s9582_s24 }
  0x9a   : > { %s9845_s12 = scalar_select %p31_p8, %s9590_s26, %s33_s9  }
  0x9b   : > { %p42_p3 = por %p41_p0, %p40_p13  ;;  %p13649_p2 = scmp.eq.s32.totalorder %s9671_s30, 0 }
  0x9c   : > { %p196_p6 = scmp.eq.s32.totalorder %s9671_s30, 1  ;;  %p202_p7 = scmp.eq.s32.totalorder %s7477_s19, 1 }
  0x9d   : > { %p9849_p5 = por %p13649_p2, %p46_p1  ;;  %p9041_p9 = scmp.lt.s32.totalorder %s9594_s27, 2 }
  0x9e   : > { %s292_s15 = sand.u32 1, %s9590_s26   ;;  %p9856_p4 = por %p196_p6, %p40_p13 }
  0x9f   : > { %p9860_p10 = por %p202_p7, %p46_p1  ;;  %s8977_s21 = smul.u32 432, %s292_s15 }
  0xa0   : > { %s13651_s18 = scalar_select %p9856_p4, 1, 0 }
  0xa1   : > { %s13652_s20 = scalar_select %p9860_p10, 1, 0 }
  0xa2   : > { %s8978_s10 = smul.u32 6912, %s9594_s27  ;;  %p9865_p11 = pnand %p9041_p9, %p42_p3 }
  0xa3   : > { %s296_s16 = scalar_lea.vmem [#allocation3], %s8977_s21  ;;  %s9876_s19 = scalar_lea.sflag [#allocation4], %s292_s15 }
  0xa4   : > { %s9872_s28 = scalar_lea.hbm %s13574_s0, %s8978_s10  ;;  %s303_s13 = sshll.u32 %s296_s16, 4  ;;  %s9874_s13 = int_to_ptr.vmem [resolvable:$true] %s303_s13 }
  0xa5   : > { %s9486_s14 = scalar_lea.hbm %s9872_s28, 6912  ;;  %p9488_p8 = pneg %p9865_p11 }
  0xa6   : > { %p9487_p12 = scmp.ne.s32.totalorder %s9872_s28, %s9486_s14  ;;  %s9491_s22 = scalar_lea.hbm %s13574_s0, 13824 }
  0xa7   : > { %p9492_p1 = scmp.lt.u32.totalorder %s9872_s28, %s13574_s0  ;;  %p9493_p3 = scmp.lt.u32.totalorder %s9491_s22, %s9486_s14 }
  0xa8   : > { %p9489_p13 = pnand %p9488_p8, %p9487_p12  ;;  %p9495_p6 = scmp.lt.u32.totalorder %s9486_s14, %s9872_s28 }
  0xa9   : > { %p9494_p2 = por %p9493_p3, %p9492_p1 }
  0xaa   : > { %p9490_p0 = pneg %p9489_p13 }
  0xab   : > { %p9496_p7 = por %p9495_p6, %p9494_p2 }
  0xad   : > { %p9497_p9 = pnand %p9496_p7, %p9490_p0 }
  0xaf   : > { %9500 = shalt.err (!%p9497_p9)
}
  0xb0   : > { %s9501_s15 = scalar_lea.vmem %s9874_s13, 6912  ;;  %s9604_s21 = smov [#allocation3]  }
  0xb1   : > { %p9502_p12 = scmp.ne.s32.totalorder %s9874_s13, %s9501_s15  ;;  %s9506_s16 = sshll.u32 %s9604_s21, 4  ;;  %s9507_s16 = int_to_ptr.vmem [resolvable:$false] %s9506_s16 }
  0xb2   : > { %s9508_s1 = scalar_lea.vmem %s9507_s16, 13824  ;;  %p9509_p4 = scmp.lt.s32.totalorder %s9874_s13, %s9507_s16 }
  0xb3   : > { %p9504_p13 = pnand %p9502_p12, %p9488_p8  ;;  %p9510_p1 = scmp.lt.s32.totalorder %s9508_s1, %s9501_s15 }
  0xb5   : > { %p9505_p10 = pneg %p9504_p13  ;;  %p9511_p3 = por %p9510_p1, %p9509_p4 }
  0xb7   : > { %p9512_p2 = pnand %p9511_p3, %p9505_p10 }
  0xb9   : > { %9515 = shalt.err (!%p9512_p2)
}
  0xba   : > { %s9605_s14 = smov 128   ;;  %s9606_s9 = smov 8  }
  0xbb   : > { %9030 = dma.hbm_to_vmem [thread:$0]  (!%p9865_p11), %s9872_s28, 6912, %s9874_s13, %s9876_s19, %s9605_s14, %s9605_s14, %s9606_s9  }
  0xbc   : > { %p13654_p8 = scmp.ne.s32.totalorder %s13645_s8, 0 }
  0xbe   : > { %315 = sbr.rel (%p13654_p8) target bundleno = 1625 (0x659), region = 48 }
  0xc5   : > { %s9907_s10 = sand.u32 1, %s9586_s25  }
  0xc6   : > { %s8979_s22 = smul.u32 432, %s9907_s10  ;;  %s318_s23 = scalar_lea.sflag [#allocation4], %s9907_s10 }
  0xc8   : > { %s9911_s15 = scalar_lea.vmem [#allocation3], %s8979_s22 }
  0xc9   : > { %9561 = dma.done.wait (%p9849_p5), %s318_s23, 6912  }
  0xca   : > { %9563 = vsyncadd (%p9849_p5), %s318_s23, 4294960384  ;;  %p13655_p4 = scmp.eq.s32.totalorder %s9671_s30, 0 }
  0xcc   : > { %9565 = dma.done.wait (%p13655_p4), [#allocation7], 9232   ;;  %p13656_p10 = pmov %p13655_p4 }
  0xcd   : > { %p13657_p11 = pmov %p13655_p4 }
  0xce   : > { %9567 = vsyncadd (%p13656_p10), [#allocation7], 4294958064 }
  0xcf   : > { %9569 = dma.done.wait (%p13657_p11), [#allocation10], 9232   ;;  %p13658_p0 = pmov %p13655_p4 }
  0xd1   : > { %9571 = vsyncadd (%p13658_p0), [#allocation10], 4294958064  ;;  %p13659_p6 = pmov %p13658_p0 }
  0xd2   : > { %p13660_p7 = pmov %p13658_p0 }
  0xd3   : > { %9573 = dma.done.wait (%p13659_p6), [#allocation13], 32  }
  0xd4   : > { %9575 = vsyncadd (%p13660_p7), [#allocation13], 4294967264  ;;  %v9093_v0 = vld [vmem:[#allocation6 + $0x40] sm:$0xff]   ;;  %v9097_v4 = vld [vmem:[#allocation6 + $0x48] sm:$0xff]   ;;  %vm495_vm0 = vcmask 1046528   ;;  %vm624_vm1 = vcmask 1045504  }
  0xd5   : > { %v9094_v1 = vld [vmem:[#allocation6 + $0xc0] sm:$0xff]   ;;  %7937 = vmatprep.subr.bf16.mxu0 %v9093_v0  ;;  %v9098_v5 = vld [vmem:[#allocation6 + $0xc8] sm:$0xff]   ;;  %v9101_v8 = vld [vmem:[#allocation6 + $0x50] sm:$0xff]   ;;  %vm2826_vm2 = vcmask 1040384   ;;  %vm2495_vm3 = vsmask.f32 256 }
  0xd6   : > { %v9095_v2 = vld [vmem:[#allocation6] sm:$0xff]   ;;  %8049 = vmatprep.subr.bf16.mxu1 %v9094_v1  ;;  %v9099_v6 = vld [vmem:[#allocation6 + $0x8] sm:$0xff]   ;;  %v9102_v9 = vld [vmem:[#allocation6 + $0xd0] sm:$0xff]   ;;  %vm2496_vm4 = vsmask.f32 4368  ;;  %vm2819_vm9 = vcmask 1043456  }
  0xd7   : > { %v9096_v3 = vld [vmem:[#allocation6 + $0x80] sm:$0xff]   ;;  %7938 = vmatpush3.bf16.msra.mxu0 %v9095_v2  ;;  %v9100_v7 = vld [vmem:[#allocation6 + $0x88] sm:$0xff]   ;;  %v9103_v10 = vld [vmem:[#allocation6 + $0x10] sm:$0xff]   ;;  %vm2820_vm7 = vsmask.f32 7938  ;;  %vm3739_vm11 = vcmask 1042432  }
  0xd8   : > { %8050 = vmatpush3.bf16.msra.mxu1 %v9096_v3  ;;  %7939 = vmatprep.subr.bf16.mxu0 %v9097_v4  ;;  %v9104_v11 = vld [vmem:[#allocation6 + $0x90] sm:$0xff]   ;;  %v9105_v12 = vld [vmem:[#allocation6 + $0x58] sm:$0xff]   ;;  %v9109_v16 = vld [vmem:[#allocation6 + $0x60] sm:$0xff]   ;;  %vm3740_vm12 = vcmask 1046532   ;;  %vm3288_vm14 = vsmask.f32 3328 }
  0xd9   : > { %8051 = vmatprep.subr.bf16.mxu1 %v9098_v5  ;;  %v9106_v13 = vld [vmem:[#allocation6 + $0xd8] sm:$0xff]   ;;  %v9110_v17 = vld [vmem:[#allocation6 + $0xe0] sm:$0xff]   ;;  %v9113_v20 = vld [vmem:[#allocation6 + $0x68] sm:$0xff]   ;;  %vm3289_vm15 = vsmask.f32 7440  ;;  %s7494_s8 = sshll.u32 %s9907_s10, 8 }
  0xda   : > { %v9107_v14 = vld [vmem:[#allocation6 + $0x18] sm:$0xff]   ;;  %v9111_v18 = vld [vmem:[#allocation6 + $0x20] sm:$0xff]   ;;  %v9114_v21 = vld [vmem:[#allocation6 + $0xe8] sm:$0xff]   ;;  %s13454_s17 = scalar_lea.vmem [#allocation15], %s7494_s8  ;;  %s7936_s29 = sshll.u32 %s9671_s30, 12 }
  0xdb   : > { %7940 = vmatpush3.bf16.msra.mxu0 %v9099_v6  ;;  %v9108_v15 = vld [vmem:[#allocation6 + $0x98] sm:$0xff]   ;;  %v9112_v19 = vld [vmem:[#allocation6 + $0xa0] sm:$0xff]   ;;  %v9115_v22 = vld [vmem:[#allocation6 + $0x28] sm:$0xff]   ;;  %s7347_s28 = sshll.u32 %s13454_s17, 4  ;;  %s13516_s19 = scalar_lea.hbm %s13581_s7, %s7936_s29  ;;  %s13518_s28 = int_to_ptr.vmem [resolvable:$true] %s7347_s28 }
  0xdc   : > { %8052 = vmatpush3.bf16.msra.mxu1 %v9100_v7  ;;  %7941 = vmatprep.subr.bf16.mxu0 %v9101_v8  ;;  %v9116_v23 = vld [vmem:[#allocation6 + $0xa8] sm:$0xff]   ;;  %v9117_v24 = vld [vmem:[#allocation6 + $0x70] sm:$0xff]   ;;  %v9121_v28 = vld [vmem:[#allocation6 + $0x78] sm:$0xff]   ;;  %s7334_s21 = scalar_lea.sflag [#allocation5], %s9907_s10  ;;  %s9516_s16 = scalar_lea.vmem %s13518_s28, 4096 }
  0xdd   : > { %8053 = vmatprep.subr.bf16.mxu1 %v9102_v9  ;;  %v9118_v25 = vld [vmem:[#allocation6 + $0xf0] sm:$0xff]   ;;  %v9122_v29 = vld [vmem:[#allocation6 + $0xf8] sm:$0xff]   ;;  %v9125_v45 = vld [vmem:[#allocation6 + $0x140] sm:$0xff]   ;;  %p9517_p5 = scmp.ne.s32.totalorder %s13518_s28, %s9516_s16  ;;  %p13916_p9 = scmp.ne.s32.totalorder %s13651_s18, 0 }
  0xde   : > { %v9119_v26 = vld [vmem:[#allocation6 + $0x30] sm:$0xff]   ;;  %v9123_v30 = vld [vmem:[#allocation6 + $0x38] sm:$0xff]   ;;  %v9126_v50 = vld [vmem:[#allocation6 + $0x100] sm:$0xff]   ;;  %s9607_s1 = smov [#allocation15]  }
  0xdf   : > { %7942 = vmatpush3.bf16.msra.mxu0 %v9103_v10  ;;  %v9120_v27 = vld [vmem:[#allocation6 + $0xb0] sm:$0xff]   ;;  %v9124_v31 = vld [vmem:[#allocation6 + $0xb8] sm:$0xff]   ;;  %v9127_v4 = vld [vmem:[#allocation6 + $0x148] sm:$0xff]   ;;  %p9518_p12 = pnand %p9517_p5, %p13916_p9  ;;  %s9520_s14 = sshll.u32 %s9607_s1, 4  ;;  %s9521_s14 = int_to_ptr.vmem [resolvable:$false] %s9520_s14 }
  0xe0   : > { %8054 = vmatpush3.bf16.msra.mxu1 %v9104_v11  ;;  %7943 = vmatprep.subr.bf16.mxu0 %v9105_v12  ;;  %v377_v32 = vld [vmem:[%s9911_s15] sm:$0xff]  ;;  %v378_v33 = vld [vmem:[%s9911_s15 + $0x8] sm:$0xff]  ;;  %v379_v34 = vld [vmem:[%s9911_s15 + $0x10] sm:$0x3]  ;;  %s9522_s9 = scalar_lea.vmem %s9521_s14, 8192  ;;  %p9523_p1 = scmp.lt.s32.totalorder %s13518_s28, %s9521_s14 }
  0xe1   : > { %8055 = vmatprep.subr.bf16.mxu1 %v9106_v13  ;;  %v496_v35 = vrot.slane %v377_v32, 1  ;;  %v497_v36 = vrot.slane %v378_v33, 1  ;;  %v499_v37 = vrot.slane %v379_v34, 1  ;;  %v628_v38 = vrot.slane %v379_v34, 2  ;;  %v380_v39 = vld [vmem:[%s9911_s15 + $0x18] sm:$0xff]  ;;  %v381_v40 = vld [vmem:[%s9911_s15 + $0x20] sm:$0xff]  ;;  %vm11099_vm5 = vmand %vm2826_vm2, %vm2495_vm3  ;;  %p9519_p13 = pneg %p9518_p12  ;;  %p9524_p3 = scmp.lt.s32.totalorder %s9522_s9, %s9516_s16 }
  0xe2   : > { %v432_v41 = vpack.c.bf16 %v381_v40, %v380_v39  ;;  %v501_v42 = vrot.slane %v380_v39, 1  ;;  %v502_v43 = vrot.slane %v381_v40, 1  ;;  %v630_v44 = vrot.slane %v380_v39, 2  ;;  %v382_v54 = vld [vmem:[%s9911_s15 + $0x28] sm:$0x3]  ;;  %v383_v57 = vld [vmem:[%s9911_s15 + $0x30] sm:$0xff]  ;;  %vm11113_vm6 = vmor %vm2495_vm3, %vm2496_vm4 }
  0xe3   : > { %7944 = vmatpush3.bf16.msra.mxu0 %v9107_v14  ;;  %v498_v46 = vsel %vm495_vm0, %v496_v35, %v497_v36  ;;  %v500_v47 = vsel %vm495_vm0, %v497_v36, %v499_v37  ;;  %v631_v48 = vrot.slane %v381_v40, 2  ;;  %v431_v49 = vpack.c.bf16 %v378_v33, %v377_v32  ;;  %v384_v58 = vld [vmem:[%s9911_s15 + $0x38] sm:$0xff]  ;;  %v385_v60 = vld [vmem:[%s9911_s15 + $0x40] sm:$0x3]  ;;  %v386_v12 = vld [vmem:[%s9911_s15 + $0x48] sm:$0xff]  ;;  %p9525_p2 = por %p9524_p3, %p9523_p1 }
  0xe4   : > { %8056 = vmatpush3.bf16.msra.mxu1 %v9108_v15  ;;  %7945 = vmatprep.subr.bf16.mxu0 %v9109_v16  ;;  %v608_v51 = vpack.c.bf16 %v500_v47, %v498_v46  ;;  %v625_v52 = vrot.slane %v377_v32, 2  ;;  %v626_v53 = vrot.slane %v378_v33, 2  ;;  %v9938_v55 = vsel %vm495_vm0, %v501_v42, %v502_v43  ;;  %v9128_v7 = vld [vmem:[#allocation6 + $0x108] sm:$0xff]   ;;  %v387_v14 = vld [vmem:[%s9911_s15 + $0x50] sm:$0xff]  ;;  %v389_v33 = vld [vmem:[%s9911_s15 + $0x60] sm:$0xff] }
  0xe5   : > { %8057 = vmatprep.subr.bf16.mxu1 %v9110_v17  ;;  %1562 = vmatprep.mubr.bf16.mxu1 %v432_v41  ;;  %13661 = vst [vmem:[#allocation21_spill] sm:$0xff] %v9938_v55  ;;  %v504_v56 = vrot.slane %v382_v54, 1  ;;  %v633_v59 = vrot.slane %v382_v54, 2  ;;  %v9945_v63 = vpack.c.bf16 %v384_v58, %v383_v57  ;;  %v506_v0 = vrot.slane %v383_v57, 1  ;;  %v388_v13 = vld [vmem:[%s9911_s15 + $0x58] sm:$0x3]  ;;  %vm11212_vm8 = vmand %vm2826_vm2, %vm2820_vm7  ;;  %p9526_p8 = pnand %p9525_p2, %p9519_p13 }
  0xe6   : > { %1401 = vmatprep.mubr.bf16.mxu0 %v608_v51  ;;  %v627_v61 = vsel %vm624_vm1, %v625_v52, %v626_v53  ;;  %v629_v62 = vsel %vm624_vm1, %v626_v53, %v628_v38  ;;  %v507_v3 = vrot.slane %v384_v58, 1  ;;  %v509_v6 = vrot.slane %v385_v60, 1  ;;  %v9129_v15 = vld [vmem:[#allocation6 + $0x150] sm:$0xff]   ;;  %v390_v34 = vld [vmem:[%s9911_s15 + $0x68] sm:$0xff]  ;;  %v9133_v40 = vld [vmem:[#allocation6 + $0x160] sm:$0xff]  }
  0xe7   : > { %7946 = vmatpush3.bf16.msra.mxu0 %v9111_v18  ;;  %v737_v1 = vpack.c.bf16 %v629_v62, %v627_v61  ;;  %v9948_v2 = vsel %vm495_vm0, %v502_v43, %v504_v56  ;;  %v632_v9 = vsel %vm624_vm1, %v630_v44, %v631_v48  ;;  %v634_v10 = vsel %vm624_vm1, %v631_v48, %v633_v59  ;;  %v391_v32 = vld [vmem:[%s9911_s15 + $0x70] sm:$0x3]  ;;  %v10010_v52 = vld [vmem:[%s9911_s15 + $0x78] sm:$0xff]  ;;  %v10013_v53 = vld [vmem:[%s9911_s15 + $0x80] sm:$0xff] }
  0xe8   : > { %8058 = vmatpush3.bf16.msra.mxu1 %v9112_v19  ;;  %7947 = vmatprep.subr.bf16.mxu0 %v9113_v20  ;;  %13662 = vst [vmem:[#allocation22_spill] sm:$0xff] %v9948_v2  ;;  %v9952_v5 = vpack.c.bf16 %v9948_v2, %v9938_v55  ;;  %v9955_v8 = vsel %vm495_vm0, %v506_v0, %v507_v3  ;;  %v511_v18 = vrot.slane %v386_v12, 1  ;;  %v512_v19 = vrot.slane %v387_v14, 1  ;;  %v9135_v46 = vld [vmem:[#allocation6 + $0x120] sm:$0xff]   ;;  %v10016_v54 = vld [vmem:[%s9911_s15 + $0x88] sm:$0x3]  ;;  %vm11451_vm10 = vmand %vm2819_vm9, %vm2820_vm7 }
  0xe9   : > { %8059 = vmatprep.subr.bf16.mxu1 %v9114_v21  ;;  %13663 = vst [vmem:[#allocation23_spill] sm:$0xff] %v9955_v8  ;;  %v9962_v11 = vsel %vm495_vm0, %v507_v3, %v509_v6  ;;  %v9971_v17 = vpack.c.bf16 %v634_v10, %v632_v9  ;;  %v514_v20 = vrot.slane %v388_v13, 1  ;;  %v9130_v21 = vld [vmem:[#allocation6 + $0x110] sm:$0xff]   ;;  %v516_v36 = vrot.slane %v389_v33, 1  ;;  %v9136_v47 = vld [vmem:[#allocation6 + $0x180] sm:$0xff]   ;;  %v9137_v56 = vld [vmem:[#allocation6 + $0x168] sm:$0xff]  }
  0xea   : > { %13664 = vst [vmem:[#allocation24_spill] sm:$0xff] %v9962_v11  ;;  %v9969_v16 = vpack.c.bf16 %v9962_v11, %v9955_v8  ;;  %v517_v38 = vrot.slane %v390_v34, 1  ;;  %v519_v39 = vrot.slane %v391_v32, 1  ;;  %v640_v42 = vrot.slane %v386_v12, 2  ;;  %v9139_v6 = vld [vmem:[#allocation6 + $0x128] sm:$0xff]   ;;  %v10034_v9 = vld [vmem:[%s9911_s15 + $0x90] sm:$0xff]  ;;  %vm11722_vm13 = vmor %vm3739_vm11, %vm3740_vm12 }
  0xeb   : > { %7948 = vmatpush3.bf16.msra.mxu0 %v9115_v22  ;;  %v635_v22 = vrot.slane %v383_v57, 2  ;;  %v641_v43 = vrot.slane %v387_v14, 2  ;;  %v9995_v44 = vpack.c.bf16 %v390_v34, %v389_v33  ;;  %v645_v57 = vrot.slane %v389_v33, 2  ;;  %v2873_v2 = vld [vmem:[#allocation2 + $0x60] sm:$0xf] }
  0xec   : > { %8060 = vmatpush3.bf16.msra.mxu1 %v9116_v23  ;;  %7949 = vmatprep.subr.bf16.mxu0 %v9117_v24  ;;  %v636_v23 = vrot.slane %v384_v58, 2  ;;  %v9973_v24 = vpack.c.bf16 %v387_v14, %v386_v12  ;;  %v10001_v48 = vsel %vm495_vm0, %v516_v36, %v517_v38  ;;  %v646_v58 = vrot.slane %v390_v34, 2  ;;  %v10047_v14 = vld [vmem:[%s9911_s15 + $0xa0] sm:$0x3]  ;;  %v10074_v36 = vld [vmem:[%s9911_s15 + $0xd0] sm:$0x3] }
  0xed   : > { %8061 = vmatprep.subr.bf16.mxu1 %v9118_v25  ;;  %v638_v25 = vrot.slane %v385_v60, 2  ;;  %13667 = vst [vmem:[#allocation27_spill] sm:$0xff] %v10001_v48  ;;  %v521_v61 = vrot.slane %v10010_v52, 1  ;;  %v522_v62 = vrot.slane %v10013_v53, 1  ;;  %v524_v0 = vrot.slane %v10016_v54, 1  ;;  %v10071_v34 = vld [vmem:[%s9911_s15 + $0xc0] sm:$0xff] }
  0xee   : > { %v10029_v3 = vpack.c.bf16 %v10013_v53, %v10010_v52  ;;  %v529_v33 = vrot.slane %v10047_v14, 1  ;;  %v2866_v55 = vld [vmem:[#allocation2 + $0x54] sm:$0xf] }
  0xef   : > { %7950 = vmatpush3.bf16.msra.mxu0 %v9119_v26  ;;  %v9131_v26 = vld [vmem:[#allocation6 + $0x158] sm:$0xff]   ;;  %v10038_v10 = vsel %vm495_vm0, %v521_v61, %v522_v62  ;;  %v10041_v12 = vsel %vm495_vm0, %v522_v62, %v524_v0  ;;  %v10204_v0 = vld [vmem:[%s9911_s15 + $0x140] sm:$0xff] }
  0xf0   : > { %8062 = vmatpush3.bf16.msra.mxu1 %v9120_v27  ;;  %7951 = vmatprep.subr.bf16.mxu0 %v9121_v28  ;;  %v9978_v27 = vsel %vm495_vm0, %v511_v18, %v512_v19  ;;  %v9981_v28 = vsel %vm495_vm0, %v512_v19, %v514_v20  ;;  %13669 = vst [vmem:[#allocation29_spill] sm:$0xff] %v10038_v10  ;;  %13670 = vst [vmem:[#allocation30_spill] sm:$0xff] %v10041_v12  ;;  %v10054_v20 = vld [vmem:[%s9911_s15 + $0xb8] sm:$0x3] }
  0xf1   : > { %8063 = vmatprep.subr.bf16.mxu1 %v9122_v29  ;;  %13665 = vst [vmem:[#allocation25_spill] sm:$0xff] %v9978_v27  ;;  %13666 = vst [vmem:[#allocation26_spill] sm:$0xff] %v9981_v28  ;;  %v9132_v29 = vld [vmem:[#allocation6 + $0x118] sm:$0xff]   ;;  %v9991_v35 = vpack.c.bf16 %v9981_v28, %v9978_v27  ;;  %v647_v18 = vsel %vm624_vm1, %v645_v57, %v646_v58 }
  0xf2   : > { %v10097_v57 = vld [vmem:[%s9911_s15 + $0xd8] sm:$0xff] }
  0xf3   : > { %7952 = vmatpush3.bf16.msra.mxu0 %v9123_v30  ;;  %v637_v30 = vsel %vm624_vm1, %v635_v22, %v636_v23  ;;  %v9142_v22 = vld [vmem:[#allocation6 + $0x1d0] sm:$0xff]  }
  0xf4   : > { %8064 = vmatpush3.bf16.msra.mxu1 %v9124_v31  ;;  %8161 = vmatprep.subr.bf16.mxu0 %v9125_v45  ;;  %v639_v31 = vsel %vm624_vm1, %v636_v23, %v638_v25  ;;  %v643_v45 = vrot.slane %v388_v13, 2  ;;  %v10044_v13 = vld [vmem:[%s9911_s15 + $0x98] sm:$0xff]  ;;  %v651_v23 = vrot.slane %v10013_v53, 2  ;;  %v526_v25 = vrot.slane %v10034_v9, 1 }
  0xf5   : > { %v9993_v37 = vpack.c.bf16 %v639_v31, %v637_v30  ;;  %v10063_v30 = vld [vmem:[%s9911_s15 + $0xb0] sm:$0xff]  ;;  %v534_v53 = vrot.slane %v10054_v20, 1 }
  0xf6   : > { %1402 = vmatmul.mubr.bf16.vlgmr.msra.gmra.mrb[0].mxu0 %v431_v49  ;;  %v10004_v49 = vsel %vm495_vm0, %v517_v38, %v519_v39  ;;  %v644_v51 = vsel %vm624_vm1, %v641_v43, %v643_v45  ;;  %v9143_v31 = vld [vmem:[#allocation6 + $0x130] sm:$0xff]   ;;  %v653_v45 = vrot.slane %v10016_v54, 2 }
  0xf7   : > { %8162 = vmatpush3.bf16.msra.mxu0 %v9126_v50  ;;  %1563 = vmatmul.mubr.bf16.vlgmr.msra.gmra.mrb[0].mxu1 %v737_v1  ;;  %13668 = vst [vmem:[#allocation28_spill] sm:$0xff] %v10004_v49  ;;  %v642_v50 = vsel %vm624_vm1, %v640_v42, %v641_v43  ;;  %v10020_v59 = vpack.c.bf16 %v10004_v49, %v10001_v48  ;;  %v9138_v1 = vld [vmem:[#allocation6 + $0x1c8] sm:$0xff]   ;;  %v9144_v38 = vld [vmem:[#allocation6 + $0x190] sm:$0xff]   ;;  %v656_v42 = vrot.slane %v10044_v13, 2 }
  0xf8   : > { %8163 = vmatprep.subr.bf16.mxu0 %v9127_v4  ;;  %1409 = vmatprep.mubr.bf16.mxu0 %v9952_v5  ;;  %v10022_v60 = vpack.c.bf16 %v644_v51, %v642_v50  ;;  %v648_v4 = vrot.slane %v391_v32, 2  ;;  %v10067_v32 = vpack.c.bf16 %v10041_v12, %v10038_v10  ;;  %v10085_v43 = vld [vmem:[%s9911_s15 + $0xc8] sm:$0xff]  ;;  %v10100_v54 = vld [vmem:[%s9911_s15 + $0xe0] sm:$0xff]  ;;  %v10151_v51 = vld [vmem:[%s9911_s15 + $0x110] sm:$0xff]  ;;  %v13681_v12 = vrot.slane %v10063_v30, 2 }
  0xf9   : > { %1570 = vmatprep.mubr.bf16.mxu1 %v9945_v63  ;;  %v10148_v50 = vld [vmem:[%s9911_s15 + $0x108] sm:$0xff] }
  0xfa   : > { %v649_v19 = vsel %vm624_vm1, %v646_v58, %v648_v4  ;;  %v9145_v4 = vld [vmem:[#allocation6 + $0x1d8] sm:$0xff]   ;;  %v13684_v49 = vmov %v13681_v12  ;;  %v10357_v48 = vpack.c.bf16 %v10151_v51, %v10148_v50 }
  0xfb   : > { %8164 = vmatpush3.bf16.msra.mxu0 %v9128_v7  ;;  %v9140_v7 = vld [vmem:[#allocation6 + $0x188] sm:$0xff]   ;;  %v10076_v39 = vpack.c.bf16 %v649_v19, %v647_v18  ;;  %v654_v19 = vsel %vm624_vm1, %v651_v23, %v653_v45  ;;  %v9149_v18 = vld [vmem:[#allocation6 + $0x1e0] sm:$0xff]   ;;  %v10220_v45 = vpack.c.bf16 %v10085_v43, %v10071_v34 }
  0xfc   : > { %8165 = vmatprep.subr.bf16.mxu0 %v9129_v15  ;;  %v650_v15 = vrot.slane %v10010_v52, 2  ;;  %v658_v52 = vrot.slane %v10047_v14, 2  ;;  %v9153_v14 = vld [vmem:[#allocation6 + $0x1f0] sm:$0xff]  }
  0xfe   : > { %1410 = vmatmul.mubr.bf16.gmra.mrb[4].mxu0 %v432_v41  ;;  %v9134_v41 = vld [vmem:[#allocation6 + $0x1c0] sm:$0xff]   ;;  %v652_v58 = vsel %vm624_vm1, %v650_v15, %v651_v23  ;;  %v9151_v15 = vld [vmem:[#allocation6 + $0x1e8] sm:$0xff]  }
  0xff   : > { %1417 = vmatprep.mubr.bf16.mxu0 %v9969_v16  ;;  %8166 = vmatpush3.bf16.msra.mxu0 %v9130_v21  ;;  %v9141_v21 = vld [vmem:[#allocation6 + $0x170] sm:$0xff]  }
 0x100   : > { %1571 = vmatmul.mubr.bf16.gmra.mrb[4].mxu1 %v9971_v17  ;;  %8167 = vmatprep.subr.bf16.mxu0 %v9131_v26  ;;  %v527_v26 = vrot.slane %v10044_v13, 1 }
 0x101   : > { %1578 = vmatprep.mubr.bf16.mxu1 %v9973_v24  ;;  %8273 = vmatprep.subr.bf16.mxu1 %v9134_v41  ;;  %v655_v41 = vrot.slane %v10034_v9, 2 }
 0x102   : > { %8274 = vmatpush3.bf16.msra.mxu1 %v9136_v47  ;;  %v532_v47 = vrot.slane %v10063_v30, 1  ;;  %v10105_v61 = vsel %vm495_vm0, %v526_v25, %v527_v26  ;;  %v10108_v62 = vsel %vm495_vm0, %v527_v26, %v529_v33  ;;  %v10125_v26 = vld [vmem:[%s9911_s15 + $0xf0] sm:$0xff]  ;;  %v9146_v33 = vld [vmem:[#allocation6 + $0x198] sm:$0xff]  }
 0x103   : > { %8168 = vmatpush3.bf16.msra.mxu0 %v9132_v29  ;;  %8275 = vmatprep.subr.bf16.mxu1 %v9138_v1  ;;  %v10060_v29 = vld [vmem:[%s9911_s15 + $0xa8] sm:$0xff]  ;;  %13671 = vst [vmem:[#allocation31_spill] sm:$0xff] %v10105_v61  ;;  %13672 = vst [vmem:[#allocation32_spill] sm:$0xff] %v10108_v62  ;;  %v10136_v23 = vpack.c.bf16 %v10108_v62, %v10105_v61  ;;  %v10140_v25 = vld [vmem:[%s9911_s15 + $0x118] sm:$0x3] }
 0x104   : > { %8169 = vmatprep.subr.bf16.mxu0 %v9133_v40  ;;  %v10080_v40 = vpack.c.bf16 %v10044_v13, %v10034_v9  ;;  %v10112_v1 = vld [vmem:[%s9911_s15 + $0xe8] sm:$0x3]  ;;  %v9154_v9 = vld [vmem:[#allocation6 + $0x1b0] sm:$0xff]   ;;  %v13682_v10 = vrot.slane %v10060_v29, 2  ;;  %v13723_v11 = vrot.slane %v10140_v25, 2 }
 0x106   : > { %1418 = vmatmul.mubr.bf16.gmra.mrb[8].mxu0 %v9945_v63  ;;  %8276 = vmatpush3.bf16.msra.mxu1 %v9140_v7  ;;  %v9147_v7 = vld [vmem:[#allocation6 + $0x178] sm:$0xff]  }
 0x107   : > { %1425 = vmatprep.mubr.bf16.mxu0 %v9991_v35  ;;  %8170 = vmatpush3.bf16.msra.mxu0 %v9135_v46  ;;  %v531_v46 = vrot.slane %v10060_v29, 1 }
 0x108   : > { %1579 = vmatmul.mubr.bf16.gmra.mrb[8].mxu1 %v9993_v37  ;;  %8171 = vmatprep.subr.bf16.mxu0 %v9137_v56  ;;  %v10175_v56 = vld [vmem:[%s9911_s15 + $0x128] sm:$0xff] }
 0x109   : > { %1586 = vmatprep.mubr.bf16.mxu1 %v9995_v44  ;;  %8277 = vmatprep.subr.bf16.mxu1 %v9142_v22  ;;  %v10142_v22 = vpack.c.bf16 %v654_v19, %v652_v58  ;;  %v9150_v19 = vld [vmem:[#allocation6 + $0x1a0] sm:$0xff]   ;;  %v13676_v58 = vrot.slane %v10071_v34, 1 }
 0x10a   : > { %8278 = vmatpush3.bf16.msra.mxu1 %v9144_v38  ;;  %v10160_v38 = vsel %vm495_vm0, %v531_v46, %v532_v47  ;;  %v13675_v46 = vrot.slane %v10085_v43, 1 }
 0x10b   : > { %8172 = vmatpush3.bf16.msra.mxu0 %v9139_v6  ;;  %8279 = vmatprep.subr.bf16.mxu1 %v9145_v4  ;;  %v10132_v6 = vld [vmem:[%s9911_s15 + $0x100] sm:$0x3]  ;;  %13673 = vst [vmem:[#allocation33_spill] sm:$0xff] %v10160_v38  ;;  %v10169_v4 = vsel %vm495_vm0, %v532_v47, %v534_v53  ;;  %v10198_v47 = vld [vmem:[%s9911_s15 + $0x138] sm:$0xff] }
 0x10c   : > { %8173 = vmatprep.subr.bf16.mxu0 %v9141_v21  ;;  %v9148_v21 = vld [vmem:[#allocation6 + $0x138] sm:$0xff]   ;;  %13674 = vst [vmem:[#allocation34_spill] sm:$0xff] %v10169_v4  ;;  %v9152_v53 = vld [vmem:[#allocation6 + $0x1a8] sm:$0xff]   ;;  %v10208_v13 = vpack.c.bf16 %v10169_v4, %v10160_v38  ;;  %v13678_v38 = vrot.slane %v10074_v36, 1  ;;  %v13679_v62 = vmov %v13675_v46 }
 0x10d   : > { %v9155_v4 = vld [vmem:[#allocation6 + $0x1f8] sm:$0xff]  }
 0x10e   : > { %1426 = vmatmul.mubr.bf16.gmra.mrb[12].mxu0 %v9973_v24  ;;  %8280 = vmatpush3.bf16.msra.mxu1 %v9146_v33  ;;  %v10155_v33 = vpack.c.bf16 %v10063_v30, %v10060_v29  ;;  %v10248_v61 = vsel %vm495_vm0, %v13679_v62, %v13678_v38  ;;  %v13686_v29 = vrot.slane %v10097_v57, 1  ;;  %v13693_v38 = vrot.slane %v10074_v36, 2 }
 0x10f   : > { %1433 = vmatprep.mubr.bf16.mxu0 %v10020_v59  ;;  %8174 = vmatpush3.bf16.msra.mxu0 %v9143_v31  ;;  %v10128_v31 = vld [vmem:[%s9911_s15 + $0xf8] sm:$0xff]  ;;  %13680 = vst [vmem:[#allocation36_spill] sm:$0xff] %v10248_v61 }
 0x110   : > { %1587 = vmatmul.mubr.bf16.gmra.mrb[12].mxu1 %v10022_v60  ;;  %8175 = vmatprep.subr.bf16.mxu0 %v9147_v7  ;;  %v10165_v7 = vld [vmem:[%s9911_s15 + $0x120] sm:$0xff] }
 0x111   : > { %1594 = vmatprep.mubr.bf16.mxu1 %v10029_v3  ;;  %8281 = vmatprep.subr.bf16.mxu1 %v9149_v18  ;;  %v659_v18 = vsel %vm624_vm1, %v656_v42, %v658_v52  ;;  %v10213_v52 = vld [vmem:[%s9911_s15 + $0x148] sm:$0x3] }
 0x112   : > { %8282 = vmatpush3.bf16.msra.mxu1 %v9150_v19  ;;  %v657_v19 = vsel %vm624_vm1, %v655_v41, %v656_v42  ;;  %v10226_v42 = vld [vmem:[%s9911_s15 + $0x150] sm:$0xff]  ;;  %v10241_v41 = vsel %vm495_vm0, %v13676_v58, %v13675_v46  ;;  %v662_v58 = vsel %vm624_vm1, %v13682_v10, %v13681_v12  ;;  %v13683_v46 = vrot.slane %v10054_v20, 2 }
 0x113   : > { %8176 = vmatpush3.bf16.msra.mxu0 %v9148_v21  ;;  %v10183_v21 = vld [vmem:[%s9911_s15 + $0x130] sm:$0x3]  ;;  %8283 = vmatprep.subr.bf16.mxu1 %v9151_v15  ;;  %v10215_v15 = vpack.c.bf16 %v659_v18, %v657_v19  ;;  %v9156_v18 = vld [vmem:[#allocation6 + $0x1b8] sm:$0xff]   ;;  %13677 = vst [vmem:[#allocation35_spill] sm:$0xff] %v10241_v41  ;;  %v10270_v10 = vpack.c.bf16 %v10248_v61, %v10241_v41  ;;  %v13685_v20 = vrot.slane %v10100_v54, 1 }
 0x114   : > { %v664_v62 = vsel %vm624_vm1, %v13684_v49, %v13683_v46  ;;  %v10276_v49 = vpack.c.bf16 %v10100_v54, %v10097_v57  ;;  %v10317_v61 = vpack.c.bf16 %v10128_v31, %v10125_v26 }
 0x115   : > { %v10272_v12 = vpack.c.bf16 %v664_v62, %v662_v58  ;;  %v10286_v30 = vsel %vm495_vm0, %v13686_v29, %v13685_v20  ;;  %v13689_v58 = vmov %v13685_v20  ;;  %v13691_v62 = vrot.slane %v10085_v43, 2 }
 0x116   : > { %1434 = vmatmul.mubr.bf16.gmra.mrb[16].mxu0 %v9995_v44  ;;  %8284 = vmatpush3.bf16.msra.mxu1 %v9152_v53  ;;  %v10229_v53 = vld [vmem:[%s9911_s15 + $0x158] sm:$0xff]  ;;  %13687 = vst [vmem:[#allocation37_spill] sm:$0xff] %v10286_v30  ;;  %v13695_v43 = vrot.slane %v10128_v31, 1 }
 0x117   : > { %1441 = vmatprep.mubr.bf16.mxu0 %v10067_v32  ;;  %8285 = vmatprep.subr.bf16.mxu1 %v9153_v14  ;;  %v10233_v14 = vld [vmem:[#allocation6 + $0x200] sm:$0xff]   ;;  %v13694_v20 = vmov %v13691_v62 }
 0x118   : > { %1595 = vmatmul.mubr.bf16.gmra.mrb[16].mxu1 %v10076_v39  ;;  %8881 = vmatprep.subr.bf16.mxu0 %v10233_v14  ;;  %v669_v29 = vsel %vm624_vm1, %v13694_v20, %v13693_v38  ;;  %v13696_v38 = vrot.slane %v10125_v26, 1 }
 0x119   : > { %1602 = vmatprep.mubr.bf16.mxu1 %v10080_v40 }
 0x11a   : > { %8286 = vmatpush3.bf16.msra.mxu1 %v9154_v9  ;;  %v10307_v9 = vld [vmem:[%s9911_s15 + $0x160] sm:$0x3] }
 0x11b   : > { %8287 = vmatprep.subr.bf16.mxu1 %v9155_v4  ;;  %v13692_v4 = vrot.slane %v10071_v34, 2  ;;  %v693_v34 = vrot.slane %v10213_v52, 2  ;;  %v569_v36 = vrot.slane %v10307_v9, 1 }
 0x11d   : > { %v667_v19 = vsel %vm624_vm1, %v13692_v4, %v13691_v62  ;;  %v13698_v4 = vrot.slane %v10132_v6, 1  ;;  %v13699_v62 = vmov %v13695_v43 }
 0x11e   : > { %1442 = vmatmul.mubr.bf16.gmra.mrb[20].mxu0 %v10029_v3  ;;  %8288 = vmatpush3.bf16.msra.mxu1 %v9156_v18  ;;  %v13688_v18 = vrot.slane %v10112_v1, 1 }
 0x11f   : > { %1449 = vmatprep.mubr.bf16.mxu0 %v10136_v23  ;;  %v10336_v20 = vsel %vm495_vm0, %v13699_v62, %v13698_v4 }
 0x120   : > { %1603 = vmatmul.mubr.bf16.gmra.mrb[20].mxu1 %v10142_v22  ;;  %v10293_v46 = vsel %vm495_vm0, %v13689_v58, %v13688_v18  ;;  %v10313_v58 = vpack.c.bf16 %v669_v29, %v667_v19  ;;  %v10329_v19 = vsel %vm495_vm0, %v13696_v38, %v13695_v43  ;;  %13700 = vst [vmem:[#allocation40_spill] sm:$0xff] %v10336_v20  ;;  %v13701_v29 = vrot.slane %v10100_v54, 2 }
 0x121   : > { %1610 = vmatprep.mubr.bf16.mxu1 %v10155_v33  ;;  %13690 = vst [vmem:[#allocation38_spill] sm:$0xff] %v10293_v46  ;;  %v10311_v18 = vpack.c.bf16 %v10293_v46, %v10286_v30  ;;  %13697 = vst [vmem:[#allocation39_spill] sm:$0xff] %v10329_v19  ;;  %v13702_v46 = vrot.slane %v10097_v57, 2  ;;  %v13703_v43 = vrot.slane %v10112_v1, 2  ;;  %v10351_v4 = vpack.c.bf16 %v10336_v20, %v10329_v19 }
 0x122   : > { %v13704_v38 = vmov %v13701_v29  ;;  %v13705_v57 = vrot.slane %v10151_v51, 1  ;;  %v13706_v54 = vrot.slane %v10148_v50, 1  ;;  %v13713_v20 = vrot.slane %v10132_v6, 2 }
 0x123   : > { %v672_v30 = vsel %vm624_vm1, %v13702_v46, %v13701_v29  ;;  %v674_v41 = vsel %vm624_vm1, %v13704_v38, %v13703_v43  ;;  %v13711_v29 = vrot.slane %v10128_v31, 2  ;;  %v13712_v43 = vrot.slane %v10125_v26, 2 }
 0x124   : > { %v10353_v62 = vpack.c.bf16 %v674_v41, %v672_v30  ;;  %v10367_v1 = vsel %vm495_vm0, %v13706_v54, %v13705_v57  ;;  %v13708_v41 = vrot.slane %v10140_v25, 1  ;;  %v13709_v30 = vmov %v13705_v57 }
 0x125   : > { %13707 = vst [vmem:[#allocation41_spill] sm:$0xff] %v10367_v1  ;;  %v677_v38 = vsel %vm624_vm1, %v13712_v43, %v13711_v29  ;;  %v13714_v57 = vmov %v13711_v29  ;;  %v10401_v26 = vpack.c.bf16 %v10175_v56, %v10165_v7  ;;  %v13716_v29 = vrot.slane %v10165_v7, 1 }
 0x126   : > { %1450 = vmatmul.mubr.bf16.gmra.mrb[24].mxu0 %v10080_v40  ;;  %v10374_v46 = vsel %vm495_vm0, %v13709_v30, %v13708_v41  ;;  %v679_v54 = vsel %vm624_vm1, %v13714_v57, %v13713_v20  ;;  %v10392_v41 = vld [vmem:[%s9911_s15 + $0x168] sm:$0xff]  ;;  %v10395_v30 = vld [vmem:[%s9911_s15 + $0x170] sm:$0xff]  ;;  %v13715_v20 = vrot.slane %v10175_v56, 1 }
 0x127   : > { %1457 = vmatprep.mubr.bf16.mxu0 %v10208_v13  ;;  %13710 = vst [vmem:[#allocation42_spill] sm:$0xff] %v10374_v46  ;;  %v10389_v19 = vpack.c.bf16 %v10374_v46, %v10367_v1  ;;  %v10397_v28 = vpack.c.bf16 %v679_v54, %v677_v38  ;;  %v571_v6 = vrot.slane %v10392_v41, 1  ;;  %v572_v31 = vrot.slane %v10395_v30, 1 }
 0x128   : > { %1611 = vmatmul.mubr.bf16.gmra.mrb[24].mxu1 %v10215_v15  ;;  %v10413_v43 = vsel %vm495_vm0, %v13716_v29, %v13715_v20  ;;  %v13718_v38 = vrot.slane %v10183_v21, 1  ;;  %v13719_v57 = vmov %v13715_v20  ;;  %v13721_v46 = vrot.slane %v10151_v51, 2 }
 0x129   : > { %1618 = vmatprep.mubr.bf16.mxu1 %v10220_v45  ;;  %13717 = vst [vmem:[#allocation43_spill] sm:$0xff] %v10413_v43  ;;  %v13722_v1 = vrot.slane %v10148_v50, 2  ;;  %v13725_v50 = vrot.slane %v10204_v0, 1 }
 0x12a   : > { %v10420_v54 = vsel %vm495_vm0, %v13719_v57, %v13718_v38  ;;  %v13724_v20 = vmov %v13721_v46  ;;  %v10441_v57 = vpack.c.bf16 %v10204_v0, %v10198_v47 }
 0x12b   : > { %13720 = vst [vmem:[#allocation44_spill] sm:$0xff] %v10420_v54  ;;  %v682_v27 = vsel %vm624_vm1, %v13722_v1, %v13721_v46  ;;  %v684_v29 = vsel %vm624_vm1, %v13724_v20, %v13723_v11  ;;  %v10435_v8 = vpack.c.bf16 %v10420_v54, %v10413_v43  ;;  %v13726_v11 = vrot.slane %v10198_v47, 1 }
 0x12c   : > { %v10437_v38 = vpack.c.bf16 %v684_v29, %v682_v27  ;;  %v13728_v27 = vrot.slane %v10213_v52, 1  ;;  %v13729_v25 = vmov %v13725_v50  ;;  %v13731_v46 = vrot.slane %v10175_v56, 2  ;;  %v424_v52 = vld [vmem:[%s9911_s15 + $0x178] sm:$0x3] }
 0x12d   : > { %v10451_v51 = vsel %vm495_vm0, %v13726_v11, %v13725_v50  ;;  %v13732_v20 = vrot.slane %v10165_v7, 2  ;;  %v13733_v54 = vrot.slane %v10183_v21, 2  ;;  %v698_v7 = vrot.slane %v10307_v9, 2 }
 0x12e   : > { %1458 = vmatmul.mubr.bf16.gmra.mrb[28].mxu0 %v10155_v33  ;;  %13727 = vst [vmem:[#allocation45_spill] sm:$0xff] %v10451_v51  ;;  %v10458_v1 = vsel %vm495_vm0, %v13729_v25, %v13728_v27  ;;  %v13734_v50 = vmov %v13731_v46  ;;  %v10480_v25 = vpack.c.bf16 %v10229_v53, %v10226_v42  ;;  %v574_v56 = vrot.slane %v424_v52, 1 }
 0x12f   : > { %1465 = vmatprep.mubr.bf16.mxu0 %v10270_v10  ;;  %13730 = vst [vmem:[#allocation46_spill] sm:$0xff] %v10458_v1  ;;  %v687_v29 = vsel %vm624_vm1, %v13732_v20, %v13731_v46  ;;  %v689_v11 = vsel %vm624_vm1, %v13734_v50, %v13733_v54  ;;  %v10474_v43 = vpack.c.bf16 %v10458_v1, %v10451_v51  ;;  %v13735_v21 = vrot.slane %v10229_v53, 1 }
 0x130   : > { %1619 = vmatmul.mubr.bf16.gmra.mrb[28].mxu1 %v10272_v12  ;;  %v10476_v27 = vpack.c.bf16 %v689_v11, %v687_v29  ;;  %v13736_v54 = vrot.slane %v10226_v42, 1  ;;  %v13740_v9 = vrot.slane %v10204_v0, 2  ;;  %v13741_v50 = vrot.slane %v10198_v47, 2 }
 0x131   : > { %1626 = vmatprep.mubr.bf16.mxu1 %v10276_v49  ;;  %v13738_v20 = vmov %v13735_v21  ;;  %v10521_v0 = vsel %vm495_vm0, %v571_v6, %v572_v31  ;;  %v10524_v47 = vsel %vm495_vm0, %v572_v31, %v574_v56 }
 0x132   : > { %v10491_v46 = vsel %vm495_vm0, %v13736_v54, %v13735_v21  ;;  %v10496_v29 = vsel %vm495_vm0, %v13738_v20, %v569_v36  ;;  %v692_v11 = vsel %vm624_vm1, %v13741_v50, %v13740_v9  ;;  %v13742_v1 = vmov %v13740_v9  ;;  %13743 = vst [vmem:[#allocation49_spill] sm:$0xff] %v10521_v0  ;;  %13744 = vst [vmem:[#allocation50_spill] sm:$0xff] %v10524_v47 }
 0x133   : > { %13737 = vst [vmem:[#allocation47_spill] sm:$0xff] %v10491_v46  ;;  %13739 = vst [vmem:[#allocation48_spill] sm:$0xff] %v10496_v29  ;;  %v694_v21 = vsel %vm624_vm1, %v13742_v1, %v693_v34  ;;  %v10509_v54 = vpack.c.bf16 %v10496_v29, %v10491_v46  ;;  %v10515_v36 = vpack.c.bf16 %v10395_v30, %v10392_v41  ;;  %v13745_v34 = vrot.slane %v10229_v53, 2 }
 0x134   : > { %v10511_v51 = vpack.c.bf16 %v694_v21, %v692_v11  ;;  %v13746_v1 = vrot.slane %v10226_v42, 2  ;;  %v425_v11 = vld [vmem:[%s9911_s15 + $0x180] sm:$0xff]  ;;  %v10537_v21 = vld [vmem:[%s9911_s15 + $0x188] sm:$0xff]  ;;  %v10542_v31 = vpack.c.bf16 %v10524_v47, %v10521_v0  ;;  %v700_v42 = vrot.slane %v10392_v41, 2 }
 0x135   : > { %v13747_v9 = vmov %v13745_v34  ;;  %v757_v6 = vrot.slane %v425_v11, 1  ;;  %v13611_v29 = vrot.slane %v10537_v21, 1  ;;  %v10549_v53 = vpack.c.bf16 %v10537_v21, %v425_v11 }
 0x136   : > { %1466 = vmatmul.mubr.bf16.gmra.mrb[32].mxu0 %v10220_v45  ;;  %v697_v20 = vsel %vm624_vm1, %v13746_v1, %v13745_v34  ;;  %v699_v50 = vsel %vm624_vm1, %v13747_v9, %v698_v7  ;;  %v701_v34 = vrot.slane %v10395_v30, 2  ;;  %v703_v7 = vrot.slane %v424_v52, 2  ;;  %v10564_v9 = vld [vmem:[%s9911_s15 + $0x190] sm:$0x3] }
 0x137   : > { %1473 = vmatprep.mubr.bf16.mxu0 %v10311_v18  ;;  %v10544_v56 = vpack.c.bf16 %v699_v50, %v697_v20  ;;  %v10555_v1 = vsel %vm495_vm0, %v757_v6, %v13611_v29  ;;  %v765_v20 = vrot.slane %v425_v11, 2  ;;  %v766_v41 = vrot.slane %v10537_v21, 2  ;;  %v9158_v11 = vld [vmem:[#allocation6 + $0x208] sm:$0xff]  }
 0x138   : > { %1627 = vmatmul.mubr.bf16.gmra.mrb[32].mxu1 %v10313_v58  ;;  %13748 = vst [vmem:[#allocation51_spill] sm:$0xff] %v10555_v1  ;;  %v702_v30 = vsel %vm624_vm1, %v700_v42, %v701_v34  ;;  %v704_v52 = vsel %vm624_vm1, %v701_v34, %v703_v7  ;;  %v768_v50 = vrot.slane %v10564_v9, 2 }
 0x139   : > { %1634 = vmatprep.mubr.bf16.mxu1 %v10317_v61  ;;  %v10567_v0 = vpack.c.bf16 %v704_v52, %v702_v30  ;;  %v767_v6 = vsel %vm624_vm1, %v765_v20, %v766_v41 }
 0x13a   : > { %v769_v29 = vsel %vm624_vm1, %v766_v41, %v768_v50 }
 0x13b   : > { %v10571_v46 = vpack.c.bf16 %v769_v29, %v767_v6  ;;  %v9159_v29 = vld [vmem:[#allocation6 + $0x210] sm:$0xff]  }
 0x13e   : > { %1474 = vmatmul.mubr.bf16.gmra.mrb[36].mxu0 %v10276_v49 }
 0x13f   : > { %1481 = vmatprep.mubr.bf16.mxu0 %v10351_v4 }
 0x140   : > { %1635 = vmatmul.mubr.bf16.gmra.mrb[36].mxu1 %v10353_v62 }
 0x141   : > { %1642 = vmatprep.mubr.bf16.mxu1 %v10357_v48 }
 0x146   : > { %1482 = vmatmul.mubr.bf16.gmra.mrb[40].mxu0 %v10317_v61 }
 0x147   : > { %1489 = vmatprep.mubr.bf16.mxu0 %v10389_v19 }
 0x148   : > { %1643 = vmatmul.mubr.bf16.gmra.mrb[40].mxu1 %v10397_v28 }
 0x149   : > { %1650 = vmatprep.mubr.bf16.mxu1 %v10401_v26 }
 0x14e   : > { %1490 = vmatmul.mubr.bf16.gmra.mrb[44].mxu0 %v10357_v48 }
 0x14f   : > { %1497 = vmatprep.mubr.bf16.mxu0 %v10435_v8 }
 0x150   : > { %1651 = vmatmul.mubr.bf16.gmra.mrb[44].mxu1 %v10437_v38 }
 0x151   : > { %1658 = vmatprep.mubr.bf16.mxu1 %v10441_v57 }
 0x156   : > { %1498 = vmatmul.mubr.bf16.gmra.mrb[48].mxu0 %v10401_v26 }
 0x157   : > { %1505 = vmatprep.mubr.bf16.mxu0 %v10474_v43 }
 0x158   : > { %1659 = vmatmul.mubr.bf16.gmra.mrb[48].mxu1 %v10476_v27 }
 0x159   : > { %1666 = vmatprep.mubr.bf16.mxu1 %v10480_v25 }
 0x15e   : > { %1506 = vmatmul.mubr.bf16.gmra.mrb[52].mxu0 %v10441_v57 }
 0x15f   : > { %1513 = vmatprep.mubr.bf16.mxu0 %v10509_v54 }
 0x160   : > { %1667 = vmatmul.mubr.bf16.gmra.mrb[52].mxu1 %v10511_v51 }
 0x161   : > { %1674 = vmatprep.mubr.bf16.mxu1 %v10515_v36 }
 0x166   : > { %1514 = vmatmul.mubr.bf16.gmra.mrb[56].mxu0 %v10480_v25 }
 0x167   : > { %1521 = vmatprep.mubr.bf16.mxu0 %v10542_v31 }
 0x168   : > { %1675 = vmatmul.mubr.bf16.gmra.mrb[56].mxu1 %v10544_v56 }
 0x169   : > { %1682 = vmatprep.mubr.bf16.mxu1 %v10549_v53 }
 0x16e   : > { %1522 = vmatmul.mubr.bf16.gmra.mrb[60].mxu0 %v10515_v36 }
 0x16f   : > { %1723 = vmatprep.mubr.bf16.mxu0 %v9971_v17  ;;  %v9160_v17 = vld [vmem:[#allocation6 + $0x218] sm:$0xff]  }
 0x170   : > { %1683 = vmatmul.mubr.bf16.gmra.mrb[60].mxu1 %v10567_v0 }
 0x171   : > { %1884 = vmatprep.mubr.bf16.mxu1 %v9969_v16 }
 0x176   : > { %1724 = vmatmul.mubr.bf16.vlgmr.msra.gmra.mrb[64].mxu0 %v9952_v5  ;;  %v9161_v5 = vld [vmem:[#allocation6 + $0x220] sm:$0xff]  }
 0x177   : > { %8882 = vmatpush3.bf16.msra.mxu0 %v10233_v14  ;;  %1731 = vmatprep.mubr.bf16.mxu0 %v9993_v37 }
 0x178   : > { %1885 = vmatmul.mubr.bf16.vlgmr.msra.gmra.mrb[64].mxu1 %v9945_v63  ;;  %8883 = vmatprep.subr.bf16.mxu0 %v9158_v11  ;;  %v9162_v63 = vld [vmem:[#allocation6 + $0x228] sm:$0xff]  }
 0x179   : > { %1892 = vmatprep.mubr.bf16.mxu1 %v9991_v35 }
 0x17b   : > { %8884 = vmatpush3.bf16.msra.mxu0 %v9158_v11 }
 0x17c   : > { %8885 = vmatprep.subr.bf16.mxu0 %v9159_v29 }
 0x17e   : > { %1732 = vmatmul.mubr.bf16.gmra.mrb[68].mxu0 %v9969_v16  ;;  %v9163_v16 = vld [vmem:[#allocation6 + $0x230] sm:$0xff]  }
 0x17f   : > { %1739 = vmatprep.mubr.bf16.mxu0 %v10022_v60  ;;  %8886 = vmatpush3.bf16.msra.mxu0 %v9159_v29 }
 0x180   : > { %1893 = vmatmul.mubr.bf16.gmra.mrb[68].mxu1 %v9973_v24  ;;  %8887 = vmatprep.subr.bf16.mxu0 %v9160_v17  ;;  %v9164_v24 = vld [vmem:[#allocation6 + $0x238] sm:$0xff]  }
 0x181   : > { %1900 = vmatprep.mubr.bf16.mxu1 %v10020_v59 }
 0x183   : > { %8888 = vmatpush3.bf16.msra.mxu0 %v9160_v17 }
 0x184   : > { %8889 = vmatprep.subr.bf16.mxu0 %v9161_v5 }
 0x186   : > { %1740 = vmatmul.mubr.bf16.gmra.mrb[72].mxu0 %v9991_v35  ;;  %v10607_v35 = vld [vmem:[%s9911_s15 + $0x198] sm:$0xff] }
 0x187   : > { %1747 = vmatprep.mubr.bf16.mxu0 %v10076_v39  ;;  %8890 = vmatpush3.bf16.msra.mxu0 %v9161_v5 }
 0x188   : > { %1901 = vmatmul.mubr.bf16.gmra.mrb[72].mxu1 %v9995_v44  ;;  %8891 = vmatprep.subr.bf16.mxu0 %v9162_v63  ;;  %v10610_v44 = vld [vmem:[%s9911_s15 + $0x1a0] sm:$0xff] }
 0x189   : > { %1908 = vmatprep.mubr.bf16.mxu1 %v10067_v32 }
 0x18b   : > { %8892 = vmatpush3.bf16.msra.mxu0 %v9162_v63 }
 0x18c   : > { %8893 = vmatprep.subr.bf16.mxu0 %v9163_v16 }
 0x18e   : > { %1748 = vmatmul.mubr.bf16.gmra.mrb[76].mxu0 %v10020_v59  ;;  %v10613_v59 = vld [vmem:[%s9911_s15 + $0x1a8] sm:$0x3] }
 0x18f   : > { %1755 = vmatprep.mubr.bf16.mxu0 %v10142_v22  ;;  %8894 = vmatpush3.bf16.msra.mxu0 %v9163_v16  ;;  %v760_v16 = vrot.slane %v10564_v9, 1 }
 0x190   : > { %1909 = vmatmul.mubr.bf16.gmra.mrb[76].mxu1 %v10029_v3  ;;  %8895 = vmatprep.subr.bf16.mxu0 %v9164_v24  ;;  %v785_v3 = vrot.slane %v10607_v35, 2 }
 0x191   : > { %1916 = vmatprep.mubr.bf16.mxu1 %v10136_v23 }
 0x193   : > { %8896 = vmatpush3.bf16.msra.mxu0 %v9164_v24 }
 0x196   : > { %1756 = vmatmul.mubr.bf16.gmra.mrb[80].mxu0 %v10067_v32  ;;  %v786_v32 = vrot.slane %v10610_v44, 2 }
 0x197   : > { %1763 = vmatprep.mubr.bf16.mxu0 %v10215_v15 }
 0x198   : > { %1917 = vmatmul.mubr.bf16.gmra.mrb[80].mxu1 %v10080_v40  ;;  %v788_v40 = vrot.slane %v10613_v59, 2 }
 0x199   : > { %1924 = vmatprep.mubr.bf16.mxu1 %v10208_v13 }
 0x19e   : > { %1764 = vmatmul.mubr.bf16.gmra.mrb[84].mxu0 %v10136_v23  ;;  %v10619_v23 = vsel %vm624_vm1, %v785_v3, %v786_v32 }
 0x19f   : > { %1771 = vmatprep.mubr.bf16.mxu0 %v10272_v12 }
 0x1a0   : > { %1925 = vmatmul.mubr.bf16.gmra.mrb[84].mxu1 %v10155_v33  ;;  %v10622_v33 = vsel %vm624_vm1, %v786_v32, %v788_v40 }
 0x1a1   : > { %1932 = vmatprep.mubr.bf16.mxu1 %v10270_v10 }
 0x1a6   : > { %1772 = vmatmul.mubr.bf16.gmra.mrb[88].mxu0 %v10208_v13 }
 0x1a7   : > { %1779 = vmatprep.mubr.bf16.mxu0 %v10313_v58 }
 0x1a8   : > { %1933 = vmatmul.mubr.bf16.gmra.mrb[88].mxu1 %v10220_v45  ;;  %v792_v45 = vpack.c.bf16 %v10622_v33, %v10619_v23 }
 0x1a9   : > { %1940 = vmatprep.mubr.bf16.mxu1 %v10311_v18 }
 0x1ae   : > { %1780 = vmatmul.mubr.bf16.gmra.mrb[92].mxu0 %v10270_v10 }
 0x1af   : > { %1787 = vmatprep.mubr.bf16.mxu0 %v10353_v62 }
 0x1b0   : > { %1941 = vmatmul.mubr.bf16.gmra.mrb[92].mxu1 %v10276_v49 }
 0x1b1   : > { %1948 = vmatprep.mubr.bf16.mxu1 %v10351_v4 }
 0x1b6   : > { %1788 = vmatmul.mubr.bf16.gmra.mrb[96].mxu0 %v10311_v18 }
 0x1b7   : > { %1795 = vmatprep.mubr.bf16.mxu0 %v10397_v28 }
 0x1b8   : > { %1949 = vmatmul.mubr.bf16.gmra.mrb[96].mxu1 %v10317_v61 }
 0x1b9   : > { %1956 = vmatprep.mubr.bf16.mxu1 %v10389_v19 }
 0x1be   : > { %1796 = vmatmul.mubr.bf16.gmra.mrb[100].mxu0 %v10351_v4 }
 0x1bf   : > { %1803 = vmatprep.mubr.bf16.mxu0 %v10437_v38 }
 0x1c0   : > { %1957 = vmatmul.mubr.bf16.gmra.mrb[100].mxu1 %v10357_v48 }
 0x1c1   : > { %1964 = vmatprep.mubr.bf16.mxu1 %v10435_v8 }
 0x1c6   : > { %1804 = vmatmul.mubr.bf16.gmra.mrb[104].mxu0 %v10389_v19 }
 0x1c7   : > { %1811 = vmatprep.mubr.bf16.mxu0 %v10476_v27 }
 0x1c8   : > { %1965 = vmatmul.mubr.bf16.gmra.mrb[104].mxu1 %v10401_v26 }
 0x1c9   : > { %v7953_v13 = vpop.f32.mrb[0].mxu0  ;;  %1972 = vmatprep.mubr.bf16.mxu1 %v10474_v43 }
 0x1ca   : > { %v7954_v61 = vpop.f32.mrb[1].mxu0  ;;  %v8065_v14 = vpop.f32.mrb[0].mxu1 }
 0x1cb   : > { %v7955_v10 = vadd.f32 %v7954_v61, %v7953_v13  ;;  %v7956_v49 = vpop.f32.mrb[2].mxu0  ;;  %v8066_v18 = vpop.f32.mrb[1].mxu1  ;;  %v13749_v13 = vrot.slane %v10537_v21, 1  ;;  %v778_v21 = vrot.slane %v10610_v44, 1 }
 0x1cc   : > { %v7957_v4 = vpop.f32.mrb[3].mxu0  ;;  %v8067_v42 = vadd.f32 %v8066_v18, %v8065_v14  ;;  %v8068_v34 = vpop.f32.mrb[2].mxu1 }
 0x1cd   : > { %v7958_v48 = vadd.f32 %v7957_v4, %v7956_v49  ;;  %v8069_v7 = vpop.f32.mrb[3].mxu1  ;;  %v10662_v61 = vsel %vm495_vm0, %v13749_v13, %v760_v16 }
 0x1ce   : > { %1812 = vmatmul.mubr.bf16.gmra.mrb[108].mxu0 %v10435_v8  ;;  %v8070_v19 = vadd.f32 %v8069_v7, %v8068_v34  ;;  %v10644_v20 = vadd.f32 %v8067_v42, %v7955_v10  ;;  %13750 = vst [vmem:[#allocation52_spill] sm:$0xff] %v10662_v61  ;;  %v780_v7 = vrot.slane %v10613_v59, 1 }
 0x1cf   : > { %1819 = vmatprep.mubr.bf16.mxu0 %v10511_v51 }
 0x1d0   : > { %1973 = vmatmul.mubr.bf16.gmra.mrb[108].mxu1 %v10441_v57  ;;  %v10648_v41 = vadd.f32 %v8070_v19, %v7958_v48  ;;  %v777_v48 = vrot.slane %v10607_v35, 1 }
 0x1d1   : > { %v7959_v26 = vpop.f32.mrb[4].mxu0  ;;  %1980 = vmatprep.mubr.bf16.mxu1 %v10509_v54 }
 0x1d2   : > { %v7960_v30 = vpop.f32.mrb[5].mxu0 }
 0x1d3   : > { %v8071_v52 = vpop.f32.mrb[4].mxu1  ;;  %v7961_v50 = vadd.f32 %v7960_v30, %v7959_v26  ;;  %v7962_v6 = vpop.f32.mrb[6].mxu0 }
 0x1d4   : > { %v8072_v11 = vpop.f32.mrb[5].mxu1  ;;  %v7963_v29 = vpop.f32.mrb[7].mxu0 }
 0x1d5   : > { %v8073_v17 = vadd.f32 %v8072_v11, %v8071_v52  ;;  %v8074_v8 = vpop.f32.mrb[6].mxu1  ;;  %v7964_v5 = vadd.f32 %v7963_v29, %v7962_v6  ;;  %v781_v6 = vsel %vm495_vm0, %v778_v21, %v780_v7 }
 0x1d6   : > { %v8075_v63 = vpop.f32.mrb[7].mxu1  ;;  %1820 = vmatmul.mubr.bf16.gmra.mrb[112].mxu0 %v10474_v43 }
 0x1d7   : > { %v8076_v57 = vadd.f32 %v8075_v63, %v8074_v8  ;;  %1827 = vmatprep.mubr.bf16.mxu0 %v10544_v56  ;;  %v10653_v24 = vadd.f32 %v8073_v17, %v7961_v50 }
 0x1d8   : > { %1981 = vmatmul.mubr.bf16.gmra.mrb[112].mxu1 %v10480_v25  ;;  %v764_v25 = vpack.c.bf16 %v10662_v61, %v10555_v1  ;;  %v2856_v61 = vld [vmem:[#allocation2 + $0x44] sm:$0x1] }
 0x1d9   : > { %v7965_v3 = vpop.f32.mrb[8].mxu0  ;;  %1988 = vmatprep.mubr.bf16.mxu1 %v10542_v31  ;;  %v10657_v32 = vadd.f32 %v8076_v57, %v7964_v5 }
 0x1da   : > { %v7966_v40 = vpop.f32.mrb[9].mxu0 }
 0x1db   : > { %v8077_v43 = vpop.f32.mrb[8].mxu1  ;;  %v7967_v9 = vadd.f32 %v7966_v40, %v7965_v3  ;;  %v7968_v14 = vpop.f32.mrb[10].mxu0 }
 0x1dc   : > { %v8078_v10 = vpop.f32.mrb[9].mxu1  ;;  %v7969_v49 = vpop.f32.mrb[11].mxu0 }
 0x1dd   : > { %v8079_v18 = vadd.f32 %v8078_v10, %v8077_v43  ;;  %v8080_v4 = vpop.f32.mrb[10].mxu1  ;;  %v7970_v42 = vadd.f32 %v7969_v49, %v7968_v14 }
 0x1de   : > { %v8081_v34 = vpop.f32.mrb[11].mxu1  ;;  %1828 = vmatmul.mubr.bf16.gmra.mrb[116].mxu0 %v10509_v54  ;;  %v779_v54 = vsel %vm495_vm0, %v777_v48, %v778_v21  ;;  %vm11763_vm0 = vmor %vm3288_vm14, %vm3289_vm15 }
 0x1df   : > { %v8082_v19 = vadd.f32 %v8081_v34, %v8080_v4  ;;  %1835 = vmatprep.mubr.bf16.mxu0 %v10567_v0  ;;  %v10671_v26 = vadd.f32 %v8079_v18, %v7967_v9  ;;  %v784_v57 = vpack.c.bf16 %v781_v6, %v779_v54 }
 0x1e0   : > { %1989 = vmatmul.mubr.bf16.gmra.mrb[116].mxu1 %v10515_v36 }
 0x1e1   : > { %v7971_v30 = vpop.f32.mrb[12].mxu0  ;;  %1996 = vmatprep.mubr.bf16.mxu1 %v764_v25  ;;  %v10674_v52 = vadd.f32 %v8082_v19, %v7970_v42 }
 0x1e2   : > { %v7972_v50 = vpop.f32.mrb[13].mxu0 }
 0x1e3   : > { %v8083_v11 = vpop.f32.mrb[12].mxu1  ;;  %v7973_v29 = vadd.f32 %v7972_v50, %v7971_v30  ;;  %v7974_v17 = vpop.f32.mrb[14].mxu0 }
 0x1e4   : > { %v8084_v59 = vpop.f32.mrb[13].mxu1  ;;  %v7975_v8 = vpop.f32.mrb[15].mxu0 }
 0x1e5   : > { %v8085_v5 = vadd.f32 %v8084_v59, %v8083_v11  ;;  %v8086_v63 = vpop.f32.mrb[14].mxu1  ;;  %v7976_v16 = vadd.f32 %v7975_v8, %v7974_v17 }
 0x1e6   : > { %v8087_v3 = vpop.f32.mrb[15].mxu1  ;;  %1836 = vmatmul.mubr.bf16.gmra.mrb[120].mxu0 %v10542_v31  ;;  %v773_v31 = vpack.c.bf16 %v10610_v44, %v10607_v35 }
 0x1e7   : > { %v8088_v36 = vadd.f32 %v8087_v3, %v8086_v63  ;;  %1843 = vmatprep.mubr.bf16.mxu0 %v10571_v46  ;;  %v10680_v40 = vadd.f32 %v8085_v5, %v7973_v29 }
 0x1e8   : > { %1997 = vmatmul.mubr.bf16.gmra.mrb[120].mxu1 %v10549_v53 }
 0x1e9   : > { %v7977_v13 = vpop.f32.mrb[16].mxu0  ;;  %2004 = vmatprep.mubr.bf16.mxu1 %v784_v57  ;;  %v10683_v43 = vadd.f32 %v8088_v36, %v7976_v16 }
 0x1ea   : > { %v7978_v9 = vpop.f32.mrb[17].mxu0 }
 0x1eb   : > { %v8089_v14 = vpop.f32.mrb[16].mxu1  ;;  %v7979_v10 = vadd.f32 %v7978_v9, %v7977_v13  ;;  %v7980_v49 = vpop.f32.mrb[18].mxu0 }
 0x1ec   : > { %v8090_v18 = vpop.f32.mrb[17].mxu1  ;;  %v7981_v4 = vpop.f32.mrb[19].mxu0 }
 0x1ed   : > { %v8091_v42 = vadd.f32 %v8090_v18, %v8089_v14  ;;  %v8092_v34 = vpop.f32.mrb[18].mxu1  ;;  %v7982_v48 = vadd.f32 %v7981_v4, %v7980_v49 }
 0x1ee   : > { %v8093_v21 = vpop.f32.mrb[19].mxu1  ;;  %1844 = vmatmul.mubr.bf16.gmra.mrb[124].mxu0 %v764_v25 }
 0x1ef   : > { %v8094_v7 = vadd.f32 %v8093_v21, %v8092_v34  ;;  %8897 = vmatprep.mubr.bf16.mxu0 %v9993_v37  ;;  %v10688_v53 = vadd.f32 %v8091_v42, %v7979_v10 }
 0x1f0   : > { %2005 = vmatmul.mubr.bf16.gmra.mrb[124].mxu1 %v773_v31 }
 0x1f1   : > { %v7983_v19 = vpop.f32.mrb[20].mxu0  ;;  %v10690_v30 = vadd.f32 %v8094_v7, %v7982_v48 }
 0x1f2   : > { %v7984_v50 = vpop.f32.mrb[21].mxu0 }
 0x1f3   : > { %v8095_v54 = vpop.f32.mrb[20].mxu1  ;;  %v7985_v6 = vadd.f32 %v7984_v50, %v7983_v19  ;;  %v7986_v11 = vpop.f32.mrb[22].mxu0 }
 0x1f4   : > { %v8096_v29 = vpop.f32.mrb[21].mxu1  ;;  %v7987_v35 = vpop.f32.mrb[23].mxu0 }
 0x1f5   : > { %v8097_v44 = vadd.f32 %v8096_v29, %v8095_v54  ;;  %v8098_v17 = vpop.f32.mrb[22].mxu1  ;;  %v7988_v59 = vadd.f32 %v7987_v35, %v7986_v11 }
 0x1f6   : > { %v8099_v8 = vpop.f32.mrb[23].mxu1  ;;  %8898 = vmatmul.mubr.bf16.vlgmr.msra.gmra.mrb[128].mxu0 %v10022_v60 }
 0x1f7   : > { %v8100_v25 = vadd.f32 %v8099_v8, %v8098_v17  ;;  %8901 = vmatprep.mubr.bf16.mxu0 %v10076_v39  ;;  %v10694_v37 = vadd.f32 %v8097_v44, %v7985_v6 }
 0x1f9   : > { %v7989_v5 = vpop.f32.mrb[24].mxu0  ;;  %v10696_v63 = vadd.f32 %v8100_v25, %v7988_v59 }
 0x1fa   : > { %v7990_v16 = vpop.f32.mrb[25].mxu0 }
 0x1fb   : > { %v8101_v57 = vpop.f32.mrb[24].mxu1  ;;  %v7991_v3 = vadd.f32 %v7990_v16, %v7989_v5  ;;  %v7992_v36 = vpop.f32.mrb[26].mxu0 }
 0x1fc   : > { %v8102_v13 = vpop.f32.mrb[25].mxu1  ;;  %v7993_v9 = vpop.f32.mrb[27].mxu0 }
 0x1fd   : > { %v8103_v14 = vadd.f32 %v8102_v13, %v8101_v57  ;;  %v8104_v10 = vpop.f32.mrb[26].mxu1  ;;  %v7994_v49 = vadd.f32 %v7993_v9, %v7992_v36 }
 0x1fe   : > { %v8105_v18 = vpop.f32.mrb[27].mxu1  ;;  %8902 = vmatmul.mubr.bf16.gmra.mrb[132].mxu0 %v10142_v22 }
 0x1ff   : > { %v8106_v60 = vadd.f32 %v8105_v18, %v8104_v10  ;;  %8905 = vmatprep.mubr.bf16.mxu0 %v10215_v15  ;;  %v10700_v39 = vadd.f32 %v8103_v14, %v7991_v3 }
 0x201   : > { %v7995_v4 = vpop.f32.mrb[28].mxu0  ;;  %v10702_v31 = vadd.f32 %v8106_v60, %v7994_v49 }
 0x202   : > { %v7996_v42 = vpop.f32.mrb[29].mxu0 }
 0x203   : > { %v8107_v34 = vpop.f32.mrb[28].mxu1  ;;  %v7997_v48 = vadd.f32 %v7996_v42, %v7995_v4  ;;  %v7998_v21 = vpop.f32.mrb[30].mxu0 }
 0x204   : > { %v8108_v7 = vpop.f32.mrb[29].mxu1  ;;  %v7999_v19 = vpop.f32.mrb[31].mxu0 }
 0x205   : > { %v8109_v50 = vadd.f32 %v8108_v7, %v8107_v34  ;;  %v8110_v54 = vpop.f32.mrb[30].mxu1  ;;  %v8000_v6 = vadd.f32 %v7999_v19, %v7998_v21 }
 0x206   : > { %v8111_v11 = vpop.f32.mrb[31].mxu1  ;;  %8906 = vmatmul.mubr.bf16.gmra.mrb[136].mxu0 %v10272_v12 }
 0x207   : > { %v8112_v22 = vadd.f32 %v8111_v11, %v8110_v54  ;;  %8909 = vmatprep.mubr.bf16.mxu0 %v10313_v58  ;;  %v10706_v15 = vadd.f32 %v8109_v50, %v7997_v48 }
 0x209   : > { %v8001_v29 = vpop.f32.mrb[32].mxu0  ;;  %v10708_v35 = vadd.f32 %v8112_v22, %v8000_v6 }
 0x20a   : > { %v8002_v44 = vpop.f32.mrb[33].mxu0 }
 0x20b   : > { %v8113_v17 = vpop.f32.mrb[32].mxu1  ;;  %v8003_v59 = vadd.f32 %v8002_v44, %v8001_v29  ;;  %v8004_v8 = vpop.f32.mrb[34].mxu0 }
 0x20c   : > { %v8114_v25 = vpop.f32.mrb[33].mxu1  ;;  %v8005_v5 = vpop.f32.mrb[35].mxu0 }
 0x20d   : > { %v8115_v16 = vadd.f32 %v8114_v25, %v8113_v17  ;;  %v8116_v57 = vpop.f32.mrb[34].mxu1  ;;  %v8006_v3 = vadd.f32 %v8005_v5, %v8004_v8 }
 0x20e   : > { %v8117_v36 = vpop.f32.mrb[35].mxu1  ;;  %8910 = vmatmul.mubr.bf16.gmra.mrb[140].mxu0 %v10353_v62 }
 0x20f   : > { %v10711_v12 = vadd.f32 %v8115_v16, %v8003_v59  ;;  %v8118_v58 = vadd.f32 %v8117_v36, %v8116_v57  ;;  %8913 = vmatprep.mubr.bf16.mxu0 %v10397_v28 }
 0x211   : > { %v10714_v13 = vadd.f32 %v8118_v58, %v8006_v3  ;;  %v8007_v9 = vpop.f32.mrb[36].mxu0 }
 0x212   : > { %v8008_v14 = vpop.f32.mrb[37].mxu0 }
 0x213   : > { %v8119_v10 = vpop.f32.mrb[36].mxu1  ;;  %v8009_v49 = vadd.f32 %v8008_v14, %v8007_v9  ;;  %v8010_v18 = vpop.f32.mrb[38].mxu0 }
 0x214   : > { %v8120_v60 = vpop.f32.mrb[37].mxu1  ;;  %v8011_v4 = vpop.f32.mrb[39].mxu0 }
 0x215   : > { %v8121_v42 = vadd.f32 %v8120_v60, %v8119_v10  ;;  %v8122_v34 = vpop.f32.mrb[38].mxu1  ;;  %v8012_v48 = vadd.f32 %v8011_v4, %v8010_v18 }
 0x216   : > { %v8123_v21 = vpop.f32.mrb[39].mxu1  ;;  %8914 = vmatmul.mubr.bf16.gmra.mrb[144].mxu0 %v10437_v38 }
 0x217   : > { %v10717_v62 = vadd.f32 %v8121_v42, %v8009_v49  ;;  %v8124_v7 = vadd.f32 %v8123_v21, %v8122_v34  ;;  %8917 = vmatprep.mubr.bf16.mxu0 %v10476_v27 }
 0x219   : > { %v10720_v28 = vadd.f32 %v8124_v7, %v8012_v48  ;;  %v8013_v19 = vpop.f32.mrb[40].mxu0 }
 0x21a   : > { %v8014_v50 = vpop.f32.mrb[41].mxu0 }
 0x21b   : > { %v8125_v54 = vpop.f32.mrb[40].mxu1  ;;  %v8015_v6 = vadd.f32 %v8014_v50, %v8013_v19  ;;  %v8016_v11 = vpop.f32.mrb[42].mxu0 }
 0x21c   : > { %v8126_v22 = vpop.f32.mrb[41].mxu1  ;;  %v8017_v29 = vpop.f32.mrb[43].mxu0 }
 0x21d   : > { %v8127_v44 = vadd.f32 %v8126_v22, %v8125_v54  ;;  %v8128_v17 = vpop.f32.mrb[42].mxu1  ;;  %v8018_v59 = vadd.f32 %v8017_v29, %v8016_v11 }
 0x21e   : > { %v8129_v8 = vpop.f32.mrb[43].mxu1  ;;  %8918 = vmatmul.mubr.bf16.gmra.mrb[148].mxu0 %v10511_v51 }
 0x21f   : > { %v10723_v38 = vadd.f32 %v8127_v44, %v8015_v6  ;;  %v8130_v25 = vadd.f32 %v8129_v8, %v8128_v17  ;;  %8921 = vmatprep.mubr.bf16.mxu0 %v10544_v56 }
 0x221   : > { %v10726_v27 = vadd.f32 %v8130_v25, %v8018_v59  ;;  %v8019_v5 = vpop.f32.mrb[44].mxu0 }
 0x222   : > { %v8020_v16 = vpop.f32.mrb[45].mxu0 }
 0x223   : > { %v8131_v57 = vpop.f32.mrb[44].mxu1  ;;  %v8021_v3 = vadd.f32 %v8020_v16, %v8019_v5  ;;  %v8022_v36 = vpop.f32.mrb[46].mxu0 }
 0x224   : > { %v8132_v58 = vpop.f32.mrb[45].mxu1  ;;  %v8023_v9 = vpop.f32.mrb[47].mxu0 }
 0x225   : > { %v8133_v14 = vadd.f32 %v8132_v58, %v8131_v57  ;;  %v8134_v10 = vpop.f32.mrb[46].mxu1  ;;  %v8024_v49 = vadd.f32 %v8023_v9, %v8022_v36 }
 0x226   : > { %v8135_v18 = vpop.f32.mrb[47].mxu1  ;;  %8922 = vmatmul.mubr.bf16.gmra.mrb[152].mxu0 %v10567_v0 }
 0x227   : > { %v10729_v51 = vadd.f32 %v8133_v14, %v8021_v3  ;;  %v8136_v60 = vadd.f32 %v8135_v18, %v8134_v10  ;;  %8925 = vmatprep.mubr.bf16.mxu0 %v10571_v46 }
 0x229   : > { %v10732_v56 = vadd.f32 %v8136_v60, %v8024_v49  ;;  %v8025_v4 = vpop.f32.mrb[48].mxu0 }
 0x22a   : > { %v8026_v42 = vpop.f32.mrb[49].mxu0 }
 0x22b   : > { %v8137_v34 = vpop.f32.mrb[48].mxu1  ;;  %v8027_v48 = vadd.f32 %v8026_v42, %v8025_v4  ;;  %v8028_v21 = vpop.f32.mrb[50].mxu0 }
 0x22c   : > { %v8138_v7 = vpop.f32.mrb[49].mxu1  ;;  %v8029_v19 = vpop.f32.mrb[51].mxu0 }
 0x22d   : > { %v8139_v50 = vadd.f32 %v8138_v7, %v8137_v34  ;;  %v8140_v54 = vpop.f32.mrb[50].mxu1  ;;  %v8030_v6 = vadd.f32 %v8029_v19, %v8028_v21 }
 0x22e   : > { %v8141_v11 = vpop.f32.mrb[51].mxu1  ;;  %8926 = vmatmul.mubr.bf16.gmra.mrb[156].mxu0 %v792_v45 }
 0x22f   : > { %v10737_v0 = vadd.f32 %v8139_v50, %v8027_v48  ;;  %v8142_v46 = vadd.f32 %v8141_v11, %v8140_v54 }
 0x231   : > { %v10739_v22 = vadd.f32 %v8142_v46, %v8030_v6  ;;  %v8031_v29 = vpop.f32.mrb[52].mxu0 }
 0x232   : > { %v8032_v44 = vpop.f32.mrb[53].mxu0 }
 0x233   : > { %v8143_v17 = vpop.f32.mrb[52].mxu1  ;;  %v8033_v59 = vadd.f32 %v8032_v44, %v8031_v29  ;;  %v8034_v8 = vpop.f32.mrb[54].mxu0 }
 0x234   : > { %v8144_v25 = vpop.f32.mrb[53].mxu1  ;;  %v8035_v5 = vpop.f32.mrb[55].mxu0 }
 0x235   : > { %v8145_v16 = vadd.f32 %v8144_v25, %v8143_v17  ;;  %v8146_v57 = vpop.f32.mrb[54].mxu1  ;;  %v8036_v3 = vadd.f32 %v8035_v5, %v8034_v8 }
 0x236   : > { %v8147_v36 = vpop.f32.mrb[55].mxu1 }
 0x237   : > { %v10741_v58 = vadd.f32 %v8145_v16, %v8033_v59  ;;  %v8148_v23 = vadd.f32 %v8147_v36, %v8146_v57 }
 0x239   : > { %v10743_v33 = vadd.f32 %v8148_v23, %v8036_v3  ;;  %v8037_v45 = vpop.f32.mrb[56].mxu0 }
 0x23a   : > { %v8038_v9 = vpop.f32.mrb[57].mxu0 }
 0x23b   : > { %v8149_v14 = vpop.f32.mrb[56].mxu1  ;;  %v8039_v10 = vadd.f32 %v8038_v9, %v8037_v45  ;;  %v8040_v49 = vpop.f32.mrb[58].mxu0 }
 0x23c   : > { %v8150_v18 = vpop.f32.mrb[57].mxu1  ;;  %v8041_v60 = vpop.f32.mrb[59].mxu0 }
 0x23d   : > { %v8151_v4 = vadd.f32 %v8150_v18, %v8149_v14  ;;  %v8152_v42 = vpop.f32.mrb[58].mxu1  ;;  %v8042_v34 = vadd.f32 %v8041_v60, %v8040_v49 }
 0x23e   : > { %v8153_v48 = vpop.f32.mrb[59].mxu1 }
 0x23f   : > { %v10745_v21 = vadd.f32 %v8151_v4, %v8039_v10  ;;  %v8154_v7 = vadd.f32 %v8153_v48, %v8152_v42 }
 0x241   : > { %v10747_v19 = vadd.f32 %v8154_v7, %v8042_v34  ;;  %v8043_v50 = vpop.f32.mrb[60].mxu0 }
 0x242   : > { %v8044_v54 = vpop.f32.mrb[61].mxu0 }
 0x243   : > { %v8155_v6 = vpop.f32.mrb[60].mxu1  ;;  %v8045_v11 = vadd.f32 %v8044_v54, %v8043_v50  ;;  %v8046_v46 = vpop.f32.mrb[62].mxu0 }
 0x244   : > { %v8156_v29 = vpop.f32.mrb[61].mxu1  ;;  %v8047_v44 = vpop.f32.mrb[63].mxu0 }
 0x245   : > { %v8157_v17 = vadd.f32 %v8156_v29, %v8155_v6  ;;  %v8158_v59 = vpop.f32.mrb[62].mxu1  ;;  %v8048_v8 = vadd.f32 %v8047_v44, %v8046_v46 }
 0x246   : > { %v8159_v25 = vpop.f32.mrb[63].mxu1 }
 0x247   : > { %v10749_v5 = vadd.f32 %v8157_v17, %v8045_v11  ;;  %v8160_v16 = vadd.f32 %v8159_v25, %v8158_v59 }
 0x249   : > { %v10751_v57 = vadd.f32 %v8160_v16, %v8048_v8  ;;  %v8177_v3 = vpop.f32.mrb[64].mxu0 }
 0x24a   : > { %v8178_v36 = vpop.f32.mrb[65].mxu0 }
 0x24b   : > { %v8179_v23 = vadd.f32 %v8178_v36, %v8177_v3  ;;  %v8180_v45 = vpop.f32.mrb[66].mxu0  ;;  %v8289_v9 = vpop.f32.mrb[64].mxu1 }
 0x24c   : > { %v8181_v14 = vpop.f32.mrb[67].mxu0  ;;  %v8290_v10 = vpop.f32.mrb[65].mxu1 }
 0x24d   : > { %v1726_v49 = vadd.f32 %v8179_v23, %v10644_v20  ;;  %v8182_v18 = vadd.f32 %v8181_v14, %v8180_v45  ;;  %v8291_v60 = vadd.f32 %v8290_v10, %v8289_v9  ;;  %v8292_v4 = vpop.f32.mrb[66].mxu1 }
 0x24e   : > { %v8293_v42 = vpop.f32.mrb[67].mxu1 }
 0x24f   : > { %v1729_v34 = vadd.f32 %v8182_v18, %v10648_v41  ;;  %v8294_v48 = vadd.f32 %v8293_v42, %v8292_v4  ;;  %v10755_v7 = vadd.f32 %v8291_v60, %v1726_v49 }
 0x251   : > { %v8183_v50 = vpop.f32.mrb[68].mxu0  ;;  %v10757_v54 = vadd.f32 %v8294_v48, %v1729_v34 }
 0x252   : > { %v8184_v6 = vpop.f32.mrb[69].mxu0 }
 0x253   : > { %v8185_v11 = vadd.f32 %v8184_v6, %v8183_v50  ;;  %v8186_v46 = vpop.f32.mrb[70].mxu0  ;;  %v8295_v29 = vpop.f32.mrb[68].mxu1 }
 0x254   : > { %v8187_v44 = vpop.f32.mrb[71].mxu0  ;;  %v8296_v17 = vpop.f32.mrb[69].mxu1 }
 0x255   : > { %v1734_v20 = vadd.f32 %v8185_v11, %v10653_v24  ;;  %v8188_v59 = vadd.f32 %v8187_v44, %v8186_v46  ;;  %v8297_v8 = vadd.f32 %v8296_v17, %v8295_v29  ;;  %v8298_v25 = vpop.f32.mrb[70].mxu1 }
 0x256   : > { %v8299_v16 = vpop.f32.mrb[71].mxu1 }
 0x257   : > { %v1737_v41 = vadd.f32 %v8188_v59, %v10657_v32  ;;  %v8300_v3 = vadd.f32 %v8299_v16, %v8298_v25  ;;  %v10761_v36 = vadd.f32 %v8297_v8, %v1734_v20  ;;  %v9165_v59 = vld [vmem:[#allocation11 + $0x40] sm:$0xff]  }
 0x258   : > { %8409 = vmatprep.subr.bf16.mxu1 %v9165_v59 }
 0x259   : > { %v8189_v23 = vpop.f32.mrb[72].mxu0  ;;  %v10763_v45 = vadd.f32 %v8300_v3, %v1737_v41 }
 0x25a   : > { %v8190_v9 = vpop.f32.mrb[73].mxu0 }
 0x25b   : > { %v8191_v14 = vadd.f32 %v8190_v9, %v8189_v23  ;;  %v8192_v10 = vpop.f32.mrb[74].mxu0  ;;  %v8301_v49 = vpop.f32.mrb[72].mxu1 }
 0x25c   : > { %v8193_v18 = vpop.f32.mrb[75].mxu0  ;;  %v8302_v60 = vpop.f32.mrb[73].mxu1 }
 0x25d   : > { %v1742_v24 = vadd.f32 %v8191_v14, %v10671_v26  ;;  %v8194_v4 = vadd.f32 %v8193_v18, %v8192_v10  ;;  %v8303_v42 = vadd.f32 %v8302_v60, %v8301_v49  ;;  %v8304_v34 = vpop.f32.mrb[74].mxu1  ;;  %v9166_v26 = vld [vmem:[#allocation11] sm:$0xff]  }
 0x25e   : > { %v8305_v48 = vpop.f32.mrb[75].mxu1  ;;  %8410 = vmatpush3.bf16.msra.mxu1 %v9166_v26 }
 0x25f   : > { %v1745_v32 = vadd.f32 %v8194_v4, %v10674_v52  ;;  %v8306_v50 = vadd.f32 %v8305_v48, %v8304_v34  ;;  %v10767_v6 = vadd.f32 %v8303_v42, %v1742_v24 }
 0x261   : > { %v8195_v11 = vpop.f32.mrb[76].mxu0  ;;  %v10769_v46 = vadd.f32 %v8306_v50, %v1745_v32 }
 0x262   : > { %v8196_v29 = vpop.f32.mrb[77].mxu0 }
 0x263   : > { %v8197_v44 = vadd.f32 %v8196_v29, %v8195_v11  ;;  %v8198_v17 = vpop.f32.mrb[78].mxu0  ;;  %v8307_v20 = vpop.f32.mrb[76].mxu1 }
 0x264   : > { %v8199_v8 = vpop.f32.mrb[79].mxu0  ;;  %v8308_v25 = vpop.f32.mrb[77].mxu1 }
 0x265   : > { %v1750_v16 = vadd.f32 %v8197_v44, %v10680_v40  ;;  %v8200_v41 = vadd.f32 %v8199_v8, %v8198_v17  ;;  %v8309_v3 = vadd.f32 %v8308_v25, %v8307_v20  ;;  %v8310_v23 = vpop.f32.mrb[78].mxu1 }
 0x266   : > { %v8311_v52 = vpop.f32.mrb[79].mxu1 }
 0x267   : > { %v1753_v9 = vadd.f32 %v8200_v41, %v10683_v43  ;;  %v8312_v14 = vadd.f32 %v8311_v52, %v8310_v23  ;;  %v10773_v10 = vadd.f32 %v8309_v3, %v1750_v16  ;;  %v9167_v41 = vld [vmem:[#allocation11 + $0x48] sm:$0xff]  }
 0x268   : > { %8411 = vmatprep.subr.bf16.mxu1 %v9167_v41 }
 0x269   : > { %v8201_v49 = vpop.f32.mrb[80].mxu0  ;;  %v10775_v18 = vadd.f32 %v8312_v14, %v1753_v9 }
 0x26a   : > { %v8202_v60 = vpop.f32.mrb[81].mxu0 }
 0x26b   : > { %v8203_v24 = vadd.f32 %v8202_v60, %v8201_v49  ;;  %v8204_v4 = vpop.f32.mrb[82].mxu0  ;;  %v8313_v42 = vpop.f32.mrb[80].mxu1 }
 0x26c   : > { %v8205_v34 = vpop.f32.mrb[83].mxu0  ;;  %v8314_v40 = vpop.f32.mrb[81].mxu1 }
 0x26d   : > { %v1758_v48 = vadd.f32 %v8203_v24, %v10688_v53  ;;  %v8206_v32 = vadd.f32 %v8205_v34, %v8204_v4  ;;  %v8315_v50 = vadd.f32 %v8314_v40, %v8313_v42  ;;  %v8316_v11 = vpop.f32.mrb[82].mxu1  ;;  %v9168_v53 = vld [vmem:[#allocation11 + $0x8] sm:$0xff]  }
 0x26e   : > { %v8317_v29 = vpop.f32.mrb[83].mxu1  ;;  %8412 = vmatpush3.bf16.msra.mxu1 %v9168_v53 }
 0x26f   : > { %v1761_v43 = vadd.f32 %v8206_v32, %v10690_v30  ;;  %v8318_v44 = vadd.f32 %v8317_v29, %v8316_v11  ;;  %v10779_v17 = vadd.f32 %v8315_v50, %v1758_v48 }
 0x271   : > { %v8207_v20 = vpop.f32.mrb[84].mxu0  ;;  %v10781_v59 = vadd.f32 %v8318_v44, %v1761_v43 }
 0x272   : > { %v8208_v8 = vpop.f32.mrb[85].mxu0 }
 0x273   : > { %v8209_v25 = vadd.f32 %v8208_v8, %v8207_v20  ;;  %v8210_v26 = vpop.f32.mrb[86].mxu0  ;;  %v8319_v16 = vpop.f32.mrb[84].mxu1 }
 0x274   : > { %v8211_v3 = vpop.f32.mrb[87].mxu0  ;;  %v8320_v23 = vpop.f32.mrb[85].mxu1 }
 0x275   : > { %v1766_v52 = vadd.f32 %v8209_v25, %v10694_v37  ;;  %v8212_v9 = vadd.f32 %v8211_v3, %v8210_v26  ;;  %v8321_v14 = vadd.f32 %v8320_v23, %v8319_v16  ;;  %v8322_v49 = vpop.f32.mrb[86].mxu1 }
 0x276   : > { %v8323_v30 = vpop.f32.mrb[87].mxu1 }
 0x277   : > { %v1769_v60 = vadd.f32 %v8212_v9, %v10696_v63  ;;  %v8324_v24 = vadd.f32 %v8323_v30, %v8322_v49  ;;  %v10785_v4 = vadd.f32 %v8321_v14, %v1766_v52  ;;  %v9169_v9 = vld [vmem:[#allocation11 + $0x50] sm:$0xff]  }
 0x278   : > { %8413 = vmatprep.subr.bf16.mxu1 %v9169_v9 }
 0x279   : > { %v8213_v42 = vpop.f32.mrb[88].mxu0  ;;  %v10787_v34 = vadd.f32 %v8324_v24, %v1769_v60 }
 0x27a   : > { %v8214_v40 = vpop.f32.mrb[89].mxu0 }
 0x27b   : > { %v8215_v48 = vadd.f32 %v8214_v40, %v8213_v42  ;;  %v8216_v32 = vpop.f32.mrb[90].mxu0  ;;  %v8325_v50 = vpop.f32.mrb[88].mxu1 }
 0x27c   : > { %v8217_v11 = vpop.f32.mrb[91].mxu0  ;;  %v8326_v37 = vpop.f32.mrb[89].mxu1 }
 0x27d   : > { %v1774_v29 = vadd.f32 %v8215_v48, %v10700_v39  ;;  %v8218_v43 = vadd.f32 %v8217_v11, %v8216_v32  ;;  %v8327_v44 = vadd.f32 %v8326_v37, %v8325_v50  ;;  %v8328_v20 = vpop.f32.mrb[90].mxu1  ;;  %v9170_v39 = vld [vmem:[#allocation11 + $0x10] sm:$0xff]  }
 0x27e   : > { %v8329_v8 = vpop.f32.mrb[91].mxu1  ;;  %8414 = vmatpush3.bf16.msra.mxu1 %v9170_v39 }
 0x27f   : > { %v1777_v63 = vadd.f32 %v8218_v43, %v10702_v31  ;;  %v8330_v25 = vadd.f32 %v8329_v8, %v8328_v20  ;;  %v10791_v26 = vadd.f32 %v8327_v44, %v1774_v29 }
 0x281   : > { %v8219_v16 = vpop.f32.mrb[92].mxu0  ;;  %v10793_v41 = vadd.f32 %v8330_v25, %v1777_v63 }
 0x282   : > { %v8220_v3 = vpop.f32.mrb[93].mxu0 }
 0x283   : > { %v8221_v23 = vadd.f32 %v8220_v3, %v8219_v16  ;;  %v8222_v53 = vpop.f32.mrb[94].mxu0  ;;  %v8331_v52 = vpop.f32.mrb[92].mxu1 }
 0x284   : > { %v8223_v14 = vpop.f32.mrb[95].mxu0  ;;  %v8332_v49 = vpop.f32.mrb[93].mxu1 }
 0x285   : > { %v1782_v30 = vadd.f32 %v8221_v23, %v10706_v15  ;;  %v8224_v60 = vadd.f32 %v8223_v14, %v8222_v53  ;;  %v8333_v24 = vadd.f32 %v8332_v49, %v8331_v52  ;;  %v8334_v42 = vpop.f32.mrb[94].mxu1 }
 0x286   : > { %v8335_v31 = vpop.f32.mrb[95].mxu1 }
 0x287   : > { %v1785_v40 = vadd.f32 %v8224_v60, %v10708_v35  ;;  %v8336_v48 = vadd.f32 %v8335_v31, %v8334_v42  ;;  %v10797_v32 = vadd.f32 %v8333_v24, %v1782_v30 }
 0x289   : > { %v8225_v50 = vpop.f32.mrb[96].mxu0  ;;  %v10799_v11 = vadd.f32 %v8336_v48, %v1785_v40 }
 0x28a   : > { %v8226_v37 = vpop.f32.mrb[97].mxu0 }
 0x28b   : > { %v8227_v29 = vadd.f32 %v8226_v37, %v8225_v50  ;;  %v8228_v43 = vpop.f32.mrb[98].mxu0  ;;  %v8337_v44 = vpop.f32.mrb[96].mxu1 }
 0x28c   : > { %v8229_v20 = vpop.f32.mrb[99].mxu0  ;;  %v8338_v15 = vpop.f32.mrb[97].mxu1 }
 0x28d   : > { %v1790_v8 = vadd.f32 %v8227_v29, %v10711_v12  ;;  %v8230_v63 = vadd.f32 %v8229_v20, %v8228_v43  ;;  %v8339_v25 = vadd.f32 %v8338_v15, %v8337_v44  ;;  %v8340_v16 = vpop.f32.mrb[98].mxu1 }
 0x28e   : > { %v8341_v3 = vpop.f32.mrb[99].mxu1 }
 0x28f   : > { %v1793_v35 = vadd.f32 %v8230_v63, %v10714_v13  ;;  %v8342_v23 = vadd.f32 %v8341_v3, %v8340_v16  ;;  %v10803_v53 = vadd.f32 %v8339_v25, %v1790_v8 }
 0x291   : > { %v8231_v52 = vpop.f32.mrb[100].mxu0  ;;  %v10805_v9 = vadd.f32 %v8342_v23, %v1793_v35 }
 0x292   : > { %v8232_v14 = vpop.f32.mrb[101].mxu0 }
 0x293   : > { %v8233_v49 = vadd.f32 %v8232_v14, %v8231_v52  ;;  %v8234_v39 = vpop.f32.mrb[102].mxu0  ;;  %v8343_v30 = vpop.f32.mrb[100].mxu1 }
 0x294   : > { %v8235_v60 = vpop.f32.mrb[103].mxu0  ;;  %v8344_v24 = vpop.f32.mrb[101].mxu1 }
 0x295   : > { %v1798_v12 = vadd.f32 %v8233_v49, %v10717_v62  ;;  %v8236_v42 = vadd.f32 %v8235_v60, %v8234_v39  ;;  %v8345_v31 = vadd.f32 %v8344_v24, %v8343_v30  ;;  %v8346_v40 = vpop.f32.mrb[102].mxu1 }
 0x296   : > { %v8347_v48 = vpop.f32.mrb[103].mxu1 }
 0x297   : > { %v1801_v13 = vadd.f32 %v8236_v42, %v10720_v28  ;;  %v8348_v50 = vadd.f32 %v8347_v48, %v8346_v40  ;;  %v10809_v37 = vadd.f32 %v8345_v31, %v1798_v12 }
 0x299   : > { %v8237_v29 = vpop.f32.mrb[104].mxu0  ;;  %v10811_v43 = vadd.f32 %v8348_v50, %v1801_v13 }
 0x29a   : > { %v8238_v44 = vpop.f32.mrb[105].mxu0 }
 0x29b   : > { %v8239_v20 = vadd.f32 %v8238_v44, %v8237_v29  ;;  %v8240_v15 = vpop.f32.mrb[106].mxu0  ;;  %v8349_v8 = vpop.f32.mrb[104].mxu1 }
 0x29c   : > { %v8241_v63 = vpop.f32.mrb[107].mxu0  ;;  %v8350_v25 = vpop.f32.mrb[105].mxu1 }
 0x29d   : > { %v1806_v62 = vadd.f32 %v8239_v20, %v10723_v38  ;;  %v8242_v16 = vadd.f32 %v8241_v63, %v8240_v15  ;;  %v8351_v3 = vadd.f32 %v8350_v25, %v8349_v8  ;;  %v8352_v35 = vpop.f32.mrb[106].mxu1 }
 0x29e   : > { %v8353_v23 = vpop.f32.mrb[107].mxu1 }
 0x29f   : > { %v1809_v28 = vadd.f32 %v8242_v16, %v10726_v27  ;;  %v8354_v52 = vadd.f32 %v8353_v23, %v8352_v35  ;;  %v10815_v14 = vadd.f32 %v8351_v3, %v1806_v62 }
 0x2a1   : > { %v8243_v49 = vpop.f32.mrb[108].mxu0  ;;  %v10817_v39 = vadd.f32 %v8354_v52, %v1809_v28 }
 0x2a2   : > { %v8244_v30 = vpop.f32.mrb[109].mxu0 }
 0x2a3   : > { %v8245_v60 = vadd.f32 %v8244_v30, %v8243_v49  ;;  %v8246_v24 = vpop.f32.mrb[110].mxu0  ;;  %v8355_v12 = vpop.f32.mrb[108].mxu1 }
 0x2a4   : > { %v8247_v42 = vpop.f32.mrb[111].mxu0  ;;  %v8356_v31 = vpop.f32.mrb[109].mxu1 }
 0x2a5   : > { %v1814_v38 = vadd.f32 %v8245_v60, %v10729_v51  ;;  %v8248_v40 = vadd.f32 %v8247_v42, %v8246_v24  ;;  %v8357_v48 = vadd.f32 %v8356_v31, %v8355_v12  ;;  %v8358_v13 = vpop.f32.mrb[110].mxu1 }
 0x2a6   : > { %v8359_v50 = vpop.f32.mrb[111].mxu1 }
 0x2a7   : > { %v1817_v27 = vadd.f32 %v8248_v40, %v10732_v56  ;;  %v8360_v29 = vadd.f32 %v8359_v50, %v8358_v13  ;;  %v10821_v44 = vadd.f32 %v8357_v48, %v1814_v38 }
 0x2a9   : > { %v8249_v20 = vpop.f32.mrb[112].mxu0  ;;  %v10823_v15 = vadd.f32 %v8360_v29, %v1817_v27 }
 0x2aa   : > { %v8250_v8 = vpop.f32.mrb[113].mxu0 }
 0x2ab   : > { %v8251_v63 = vadd.f32 %v8250_v8, %v8249_v20  ;;  %v8252_v25 = vpop.f32.mrb[114].mxu0  ;;  %v8361_v62 = vpop.f32.mrb[112].mxu1 }
 0x2ac   : > { %v8253_v16 = vpop.f32.mrb[115].mxu0  ;;  %v8362_v3 = vpop.f32.mrb[113].mxu1 }
 0x2ad   : > { %v1822_v51 = vadd.f32 %v8251_v63, %v10737_v0  ;;  %v8254_v35 = vadd.f32 %v8253_v16, %v8252_v25  ;;  %v8363_v23 = vadd.f32 %v8362_v3, %v8361_v62  ;;  %v8364_v28 = vpop.f32.mrb[114].mxu1 }
 0x2ae   : > { %v8365_v52 = vpop.f32.mrb[115].mxu1 }
 0x2af   : > { %v1825_v56 = vadd.f32 %v8254_v35, %v10739_v22  ;;  %v8366_v49 = vadd.f32 %v8365_v52, %v8364_v28  ;;  %v10827_v30 = vadd.f32 %v8363_v23, %v1822_v51 }
 0x2b1   : > { %v8255_v60 = vpop.f32.mrb[116].mxu0  ;;  %v10829_v24 = vadd.f32 %v8366_v49, %v1825_v56 }
 0x2b2   : > { %v8256_v12 = vpop.f32.mrb[117].mxu0 }
 0x2b3   : > { %v8257_v42 = vadd.f32 %v8256_v12, %v8255_v60  ;;  %v8258_v31 = vpop.f32.mrb[118].mxu0  ;;  %v8367_v38 = vpop.f32.mrb[116].mxu1 }
 0x2b4   : > { %v8259_v40 = vpop.f32.mrb[119].mxu0  ;;  %v8368_v48 = vpop.f32.mrb[117].mxu1 }
 0x2b5   : > { %v1830_v0 = vadd.f32 %v8257_v42, %v10741_v58  ;;  %v8260_v13 = vadd.f32 %v8259_v40, %v8258_v31  ;;  %v8369_v50 = vadd.f32 %v8368_v48, %v8367_v38  ;;  %v8370_v27 = vpop.f32.mrb[118].mxu1 }
 0x2b6   : > { %v8371_v29 = vpop.f32.mrb[119].mxu1 }
 0x2b7   : > { %v1833_v22 = vadd.f32 %v8260_v13, %v10743_v33  ;;  %v8372_v20 = vadd.f32 %v8371_v29, %v8370_v27  ;;  %v10833_v8 = vadd.f32 %v8369_v50, %v1830_v0 }
 0x2b9   : > { %v8261_v63 = vpop.f32.mrb[120].mxu0  ;;  %v10835_v25 = vadd.f32 %v8372_v20, %v1833_v22 }
 0x2ba   : > { %v8262_v62 = vpop.f32.mrb[121].mxu0 }
 0x2bb   : > { %v8263_v16 = vadd.f32 %v8262_v62, %v8261_v63  ;;  %v8264_v3 = vpop.f32.mrb[122].mxu0  ;;  %v8373_v51 = vpop.f32.mrb[120].mxu1 }
 0x2bc   : > { %v8265_v35 = vpop.f32.mrb[123].mxu0  ;;  %v8374_v23 = vpop.f32.mrb[121].mxu1 }
 0x2bd   : > { %v1838_v58 = vadd.f32 %v8263_v16, %v10745_v21  ;;  %v8266_v28 = vadd.f32 %v8265_v35, %v8264_v3  ;;  %v8375_v52 = vadd.f32 %v8374_v23, %v8373_v51  ;;  %v8376_v56 = vpop.f32.mrb[122].mxu1 }
 0x2be   : > { %v8377_v49 = vpop.f32.mrb[123].mxu1 }
 0x2bf   : > { %v1841_v33 = vadd.f32 %v8266_v28, %v10747_v19  ;;  %v8378_v60 = vadd.f32 %v8377_v49, %v8376_v56  ;;  %v10839_v12 = vadd.f32 %v8375_v52, %v1838_v58 }
 0x2c1   : > { %v8267_v42 = vpop.f32.mrb[124].mxu0  ;;  %v10841_v31 = vadd.f32 %v8378_v60, %v1841_v33 }
 0x2c2   : > { %v8268_v38 = vpop.f32.mrb[125].mxu0 }
 0x2c3   : > { %v8269_v40 = vadd.f32 %v8268_v38, %v8267_v42  ;;  %v8270_v48 = vpop.f32.mrb[126].mxu0  ;;  %v8379_v0 = vpop.f32.mrb[124].mxu1 }
 0x2c4   : > { %v8271_v13 = vpop.f32.mrb[127].mxu0  ;;  %v8380_v50 = vpop.f32.mrb[125].mxu1 }
 0x2c5   : > { %v1846_v21 = vadd.f32 %v8269_v40, %v10749_v5  ;;  %v8272_v27 = vadd.f32 %v8271_v13, %v8270_v48  ;;  %v8381_v29 = vadd.f32 %v8380_v50, %v8379_v0  ;;  %v8382_v22 = vpop.f32.mrb[126].mxu1 }
 0x2c6   : > { %v8383_v20 = vpop.f32.mrb[127].mxu1 }
 0x2c7   : > { %v1849_v19 = vadd.f32 %v8272_v27, %v10751_v57  ;;  %v8384_v63 = vadd.f32 %v8383_v20, %v8382_v22  ;;  %v10845_v62 = vadd.f32 %v8381_v29, %v1846_v21 }
 0x2c9   : > { %v8899_v16 = vpop.f32.mrb[128].mxu0  ;;  %v10847_v3 = vadd.f32 %v8384_v63, %v1849_v19 }
 0x2ca   : > { %v10850_v51 = vadd.f32 %v8899_v16, %v10761_v36  ;;  %v2047_v35 = vpop.f32.mrb[129].mxu0 }
 0x2cb   : > { %v10853_v23 = vadd.f32 %v2047_v35, %v10755_v7  ;;  %v8900_v5 = vpop.f32.mrb[130].mxu0 }
 0x2cc   : > { %v10856_v58 = vadd.f32 %v8900_v5, %v10763_v45  ;;  %v2050_v28 = vpop.f32.mrb[131].mxu0  ;;  %v2213_v7 = vmul.f32 %v10850_v51, %v10850_v51 }
 0x2cd   : > { %v10859_v57 = vadd.f32 %v2050_v28, %v10757_v54  ;;  %v2211_v52 = vmul.f32 %v10853_v23, %v10853_v23 }
 0x2ce   : > { %v2214_v42 = vmul.f32 %v10856_v58, %v10856_v58 }
 0x2cf   : > { %v2174_v56 = vadd.f32 %v10859_v57, %v10853_v23  ;;  %v2212_v36 = vmul.f32 %v10859_v57, %v10859_v57 }
 0x2d1   : > { %v2175_v49 = vadd.f32 %v2174_v56, %v10850_v51  ;;  %v2243_v45 = vadd.f32 %v2212_v36, %v2211_v52  ;;  %v8903_v33 = vpop.f32.mrb[132].mxu0 }
 0x2d2   : > { %v10871_v60 = vadd.f32 %v8903_v33, %v10773_v10  ;;  %v2063_v54 = vpop.f32.mrb[133].mxu0 }
 0x2d3   : > { %v2244_v38 = vadd.f32 %v2243_v45, %v2213_v7  ;;  %v10876_v40 = vadd.f32 %v2063_v54, %v10767_v6  ;;  %v2176_v48 = vadd.f32 %v2175_v49, %v10856_v58  ;;  %v8904_v0 = vpop.f32.mrb[134].mxu0 }
 0x2d4   : > { %v10880_v13 = vadd.f32 %v8904_v0, %v10775_v18  ;;  %v2066_v50 = vpop.f32.mrb[135].mxu0  ;;  %v2217_v18 = vmul.f32 %v10871_v60, %v10871_v60 }
 0x2d5   : > { %v2177_v21 = vadd.f32 %v2176_v48, %v10876_v40  ;;  %v2215_v10 = vmul.f32 %v10876_v40, %v10876_v40  ;;  %v2245_v27 = vadd.f32 %v2244_v38, %v2214_v42  ;;  %v10886_v29 = vadd.f32 %v2066_v50, %v10769_v46 }
 0x2d6   : > { %v2218_v46 = vmul.f32 %v10880_v13, %v10880_v13 }
 0x2d7   : > { %v2246_v22 = vadd.f32 %v2245_v27, %v2215_v10  ;;  %v2178_v6 = vadd.f32 %v2177_v21, %v10886_v29  ;;  %v2216_v20 = vmul.f32 %v10886_v29, %v10886_v29 }
 0x2d9   : > { %v2179_v19 = vadd.f32 %v2178_v6, %v10871_v60  ;;  %v2247_v63 = vadd.f32 %v2246_v22, %v2216_v20  ;;  %v8907_v16 = vpop.f32.mrb[136].mxu0 }
 0x2da   : > { %v10895_v35 = vadd.f32 %v8907_v16, %v10785_v4  ;;  %v2079_v5 = vpop.f32.mrb[137].mxu0 }
 0x2db   : > { %v2248_v28 = vadd.f32 %v2247_v63, %v2217_v18  ;;  %v10900_v52 = vadd.f32 %v2079_v5, %v10779_v17  ;;  %v2180_v56 = vadd.f32 %v2179_v19, %v10880_v13  ;;  %v8908_v36 = vpop.f32.mrb[138].mxu0 }
 0x2dc   : > { %v10904_v7 = vadd.f32 %v8908_v36, %v10787_v34  ;;  %v2082_v49 = vpop.f32.mrb[139].mxu0  ;;  %v2221_v34 = vmul.f32 %v10895_v35, %v10895_v35 }
 0x2dd   : > { %v2181_v45 = vadd.f32 %v2180_v56, %v10900_v52  ;;  %v2219_v4 = vmul.f32 %v10900_v52, %v10900_v52  ;;  %v2249_v33 = vadd.f32 %v2248_v28, %v2218_v46  ;;  %v10910_v54 = vadd.f32 %v2082_v49, %v10781_v59 }
 0x2de   : > { %v2222_v59 = vmul.f32 %v10904_v7, %v10904_v7 }
 0x2df   : > { %v2250_v42 = vadd.f32 %v2249_v33, %v2219_v4  ;;  %v2182_v17 = vadd.f32 %v2181_v45, %v10910_v54  ;;  %v2220_v38 = vmul.f32 %v10910_v54, %v10910_v54 }
 0x2e1   : > { %v2183_v48 = vadd.f32 %v2182_v17, %v10895_v35  ;;  %v2251_v0 = vadd.f32 %v2250_v42, %v2220_v38  ;;  %v8911_v50 = vpop.f32.mrb[140].mxu0 }
 0x2e2   : > { %v10919_v21 = vadd.f32 %v8911_v50, %v10797_v32  ;;  %v2095_v10 = vpop.f32.mrb[141].mxu0 }
 0x2e3   : > { %v2252_v27 = vadd.f32 %v2251_v0, %v2221_v34  ;;  %v10924_v22 = vadd.f32 %v2095_v10, %v10791_v26  ;;  %v2184_v6 = vadd.f32 %v2183_v48, %v10904_v7  ;;  %v8912_v20 = vpop.f32.mrb[142].mxu0 }
 0x2e4   : > { %v10928_v18 = vadd.f32 %v8912_v20, %v10799_v11  ;;  %v2098_v19 = vpop.f32.mrb[143].mxu0  ;;  %v2225_v11 = vmul.f32 %v10919_v21, %v10919_v21 }
 0x2e5   : > { %v2185_v63 = vadd.f32 %v2184_v6, %v10924_v22  ;;  %v2223_v32 = vmul.f32 %v10924_v22, %v10924_v22  ;;  %v2253_v16 = vadd.f32 %v2252_v27, %v2222_v59  ;;  %v10934_v5 = vadd.f32 %v2098_v19, %v10793_v41 }
 0x2e6   : > { %v2226_v41 = vmul.f32 %v10928_v18, %v10928_v18 }
 0x2e7   : > { %v2254_v46 = vadd.f32 %v2253_v16, %v2223_v32  ;;  %v2186_v26 = vadd.f32 %v2185_v63, %v10934_v5  ;;  %v2224_v28 = vmul.f32 %v10934_v5, %v10934_v5 }
 0x2e9   : > { %v2187_v56 = vadd.f32 %v2186_v26, %v10919_v21  ;;  %v2255_v36 = vadd.f32 %v2254_v46, %v2224_v28  ;;  %v8915_v49 = vpop.f32.mrb[144].mxu0 }
 0x2ea   : > { %v10943_v45 = vadd.f32 %v8915_v49, %v10809_v37  ;;  %v2111_v4 = vpop.f32.mrb[145].mxu0 }
 0x2eb   : > { %v2256_v33 = vadd.f32 %v2255_v36, %v2225_v11  ;;  %v10948_v42 = vadd.f32 %v2111_v4, %v10803_v53  ;;  %v2188_v17 = vadd.f32 %v2187_v56, %v10928_v18  ;;  %v8916_v38 = vpop.f32.mrb[146].mxu0 }
 0x2ec   : > { %v10952_v34 = vadd.f32 %v8916_v38, %v10811_v43  ;;  %v2114_v48 = vpop.f32.mrb[147].mxu0  ;;  %v2229_v43 = vmul.f32 %v10943_v45, %v10943_v45 }
 0x2ed   : > { %v2189_v0 = vadd.f32 %v2188_v17, %v10948_v42  ;;  %v2227_v37 = vmul.f32 %v10948_v42, %v10948_v42  ;;  %v2257_v50 = vadd.f32 %v2256_v33, %v2226_v41  ;;  %v10958_v10 = vadd.f32 %v2114_v48, %v10805_v9 }
 0x2ee   : > { %v2230_v9 = vmul.f32 %v10952_v34, %v10952_v34 }
 0x2ef   : > { %v2258_v59 = vadd.f32 %v2257_v50, %v2227_v37  ;;  %v2190_v53 = vadd.f32 %v2189_v0, %v10958_v10  ;;  %v2228_v27 = vmul.f32 %v10958_v10, %v10958_v10 }
 0x2f1   : > { %v2191_v6 = vadd.f32 %v2190_v53, %v10943_v45  ;;  %v2259_v20 = vadd.f32 %v2258_v59, %v2228_v27  ;;  %v8919_v19 = vpop.f32.mrb[148].mxu0 }
 0x2f2   : > { %v10967_v63 = vadd.f32 %v8919_v19, %v10821_v44  ;;  %v2127_v32 = vpop.f32.mrb[149].mxu0 }
 0x2f3   : > { %v2260_v16 = vadd.f32 %v2259_v20, %v2229_v43  ;;  %v10972_v46 = vadd.f32 %v2127_v32, %v10815_v14  ;;  %v2192_v26 = vadd.f32 %v2191_v6, %v10952_v34  ;;  %v8920_v28 = vpop.f32.mrb[150].mxu0 }
 0x2f4   : > { %v10976_v11 = vadd.f32 %v8920_v28, %v10823_v15  ;;  %v2130_v56 = vpop.f32.mrb[151].mxu0  ;;  %v2233_v15 = vmul.f32 %v10967_v63, %v10967_v63 }
 0x2f5   : > { %v2193_v36 = vadd.f32 %v2192_v26, %v10972_v46  ;;  %v2231_v44 = vmul.f32 %v10972_v46, %v10972_v46  ;;  %v2261_v49 = vadd.f32 %v2260_v16, %v2230_v9  ;;  %v10982_v4 = vadd.f32 %v2130_v56, %v10817_v39 }
 0x2f6   : > { %v2234_v39 = vmul.f32 %v10976_v11, %v10976_v11 }
 0x2f7   : > { %v2262_v41 = vadd.f32 %v2261_v49, %v2231_v44  ;;  %v2194_v14 = vadd.f32 %v2193_v36, %v10982_v4  ;;  %v2232_v33 = vmul.f32 %v10982_v4, %v10982_v4 }
 0x2f9   : > { %v2195_v17 = vadd.f32 %v2194_v14, %v10967_v63  ;;  %v2263_v38 = vadd.f32 %v2262_v41, %v2232_v33  ;;  %v8923_v48 = vpop.f32.mrb[152].mxu0 }
 0x2fa   : > { %v10991_v0 = vadd.f32 %v8923_v48, %v10833_v8  ;;  %v2143_v37 = vpop.f32.mrb[153].mxu0 }
 0x2fb   : > { %v2264_v50 = vadd.f32 %v2263_v38, %v2233_v15  ;;  %v10996_v59 = vadd.f32 %v2143_v37, %v10827_v30  ;;  %v2196_v53 = vadd.f32 %v2195_v17, %v10976_v11  ;;  %v8924_v27 = vpop.f32.mrb[154].mxu0 }
 0x2fc   : > { %v11000_v43 = vadd.f32 %v8924_v27, %v10835_v25  ;;  %v2146_v6 = vpop.f32.mrb[155].mxu0  ;;  %v2237_v25 = vmul.f32 %v10991_v0, %v10991_v0 }
 0x2fd   : > { %v2197_v20 = vadd.f32 %v2196_v53, %v10996_v59  ;;  %v2235_v8 = vmul.f32 %v10996_v59, %v10996_v59  ;;  %v2265_v19 = vadd.f32 %v2264_v50, %v2234_v39  ;;  %v11006_v32 = vadd.f32 %v2146_v6, %v10829_v24  ;;  %v9177_v6 = vld [vmem:[#allocation11 + $0xc0] sm:$0xff]  }
 0x2fe   : > { %v2238_v24 = vmul.f32 %v11000_v43, %v11000_v43  ;;  %8521 = vmatprep.subr.bf16.mxu0 %v9177_v6 }
 0x2ff   : > { %v2266_v9 = vadd.f32 %v2265_v19, %v2235_v8  ;;  %v2198_v30 = vadd.f32 %v2197_v20, %v11006_v32  ;;  %v2236_v16 = vmul.f32 %v11006_v32, %v11006_v32  ;;  %v9178_v19 = vld [vmem:[#allocation11 + $0x80] sm:$0xff]  }
 0x300   : > { %8522 = vmatpush3.bf16.msra.mxu0 %v9178_v19  ;;  %v9172_v19 = vld [vmem:[#allocation11 + $0x18] sm:$0xff]  }
 0x301   : > { %v2199_v26 = vadd.f32 %v2198_v30, %v10991_v0  ;;  %v2267_v28 = vadd.f32 %v2266_v9, %v2236_v16  ;;  %v8927_v56 = vpop.f32.mrb[156].mxu0  ;;  %v9179_v16 = vld [vmem:[#allocation11 + $0xc8] sm:$0xff]  }
 0x302   : > { %v11015_v36 = vadd.f32 %v8927_v56, %v10845_v62  ;;  %v2159_v44 = vpop.f32.mrb[157].mxu0  ;;  %8523 = vmatprep.subr.bf16.mxu0 %v9179_v16  ;;  %v9189_v16 = vld [vmem:[#allocation11 + $0xe8] sm:$0xff]  }
 0x303   : > { %v2268_v49 = vadd.f32 %v2267_v28, %v2237_v25  ;;  %v11020_v41 = vadd.f32 %v2159_v44, %v10839_v12  ;;  %v2200_v14 = vadd.f32 %v2199_v26, %v11000_v43  ;;  %v8928_v33 = vpop.f32.mrb[158].mxu0  ;;  %v9180_v28 = vld [vmem:[#allocation11 + $0x88] sm:$0xff]  }
 0x304   : > { %v11024_v15 = vadd.f32 %v8928_v33, %v10847_v3  ;;  %v2162_v17 = vpop.f32.mrb[159].mxu0  ;;  %v2241_v3 = vmul.f32 %v11015_v36, %v11015_v36  ;;  %8524 = vmatpush3.bf16.msra.mxu0 %v9180_v28  ;;  %v9184_v33 = vld [vmem:[#allocation11 + $0x90] sm:$0xff]   ;;  %v9175_v28 = vld [vmem:[#allocation11 + $0x68] sm:$0xff]  }
 0x305   : > { %v2201_v38 = vadd.f32 %v2200_v14, %v11020_v41  ;;  %v2239_v62 = vmul.f32 %v11020_v41, %v11020_v41  ;;  %v2269_v48 = vadd.f32 %v2268_v49, %v2238_v24  ;;  %v11030_v37 = vadd.f32 %v2162_v17, %v10841_v31  ;;  %v9183_v24 = vld [vmem:[#allocation11 + $0xd0] sm:$0xff]  }
 0x306   : > { %v2242_v20 = vmul.f32 %v11024_v15, %v11024_v15  ;;  %8525 = vmatprep.subr.bf16.mxu0 %v9183_v24  ;;  %v9194_v24 = vld [vmem:[#allocation11 + $0xb0] sm:$0xff]  }
 0x307   : > { %v2270_v39 = vadd.f32 %v2269_v48, %v2239_v62  ;;  %v2202_v12 = vadd.f32 %v2201_v38, %v11030_v37  ;;  %v2240_v50 = vmul.f32 %v11030_v37, %v11030_v37  ;;  %v9185_v62 = vld [vmem:[#allocation11 + $0xd8] sm:$0xff]  }
 0x308   : > { %8526 = vmatpush3.bf16.msra.mxu0 %v9184_v33  ;;  %v9181_v33 = vld [vmem:[#allocation11 + $0x70] sm:$0xff]  }
 0x309   : > { %v2203_v53 = vadd.f32 %v2202_v12, %v11015_v36  ;;  %v2271_v27 = vadd.f32 %v2270_v39, %v2240_v50  ;;  %v9186_v12 = vld [vmem:[#allocation11 + $0x98] sm:$0xff]   ;;  %8527 = vmatprep.subr.bf16.mxu0 %v9185_v62  ;;  %v9182_v62 = vld [vmem:[#allocation11 + $0x30] sm:$0xff]  }
 0x30b   : > { %v2204_v8 = vadd.f32 %v2203_v53, %v11024_v15  ;;  %v2272_v31 = vadd.f32 %v2271_v27, %v2241_v3  ;;  %v9187_v53 = vld [vmem:[#allocation11 + $0xe0] sm:$0xff]  }
 0x30c   : > { %8528 = vmatpush3.bf16.msra.mxu0 %v9186_v12 }
 0x30d   : > { %v2205_v9 = vrot.slane %v2204_v8, 4  ;;  %v2273_v30 = vadd.f32 %v2272_v31, %v2242_v20  ;;  %v9188_v20 = vld [vmem:[#allocation11 + $0xa0] sm:$0xff]   ;;  %8529 = vmatprep.subr.bf16.mxu0 %v9187_v53  ;;  %v9171_v31 = vld [vmem:[#allocation11 + $0x58] sm:$0xff]  }
 0x30e   : > { %8415 = vmatprep.subr.bf16.mxu1 %v9171_v31  ;;  %v9200_v31 = vld [vmem:[#allocation11 + $0x140] sm:$0xff]  }
 0x30f   : > { %v2206_v25 = vadd.f32 %v2205_v9, %v2204_v8  ;;  %v2274_v26 = vrot.slane %v2273_v30, 4  ;;  %v9173_v9 = vld [vmem:[#allocation11 + $0x60] sm:$0xff]   ;;  %8416 = vmatpush3.bf16.msra.mxu1 %v9172_v19 }
 0x310   : > { %8530 = vmatpush3.bf16.msra.mxu0 %v9188_v20  ;;  %8417 = vmatprep.subr.bf16.mxu1 %v9173_v9 }
 0x311   : > { %v2207_v56 = vrot.slane %v2206_v25, 2  ;;  %v2275_v44 = vadd.f32 %v2274_v26, %v2273_v30  ;;  %v9190_v26 = vld [vmem:[#allocation11 + $0xa8] sm:$0xff]   ;;  %8531 = vmatprep.subr.bf16.mxu0 %v9189_v16 }
 0x313   : > { %v2208_v49 = vadd.f32 %v2207_v56, %v2206_v25  ;;  %v2276_v14 = vrot.slane %v2275_v44, 2  ;;  %v9174_v25 = vld [vmem:[#allocation11 + $0x20] sm:$0xff]   ;;  %v9193_v56 = vld [vmem:[#allocation11 + $0xf0] sm:$0xff]  }
 0x314   : > { %8532 = vmatpush3.bf16.msra.mxu0 %v9190_v26  ;;  %8418 = vmatpush3.bf16.msra.mxu1 %v9174_v25 }
 0x315   : > { %v2209_v17 = vrot.slane %v2208_v49, 1  ;;  %v2277_v38 = vadd.f32 %v2276_v14, %v2275_v44  ;;  %v2292_v44 = vlaneseq  ;;  %8533 = vmatprep.subr.bf16.mxu0 %v9193_v56  ;;  %v9176_v14 = vld [vmem:[#allocation11 + $0x28] sm:$0xff]   ;;  %8419 = vmatprep.subr.bf16.mxu1 %v9175_v28 }
 0x317   : > { %v2210_v48 = vadd.f32 %v2209_v17, %v2208_v49  ;;  %v2278_v39 = vrot.slane %v2277_v38, 1  ;;  %v9195_v49 = vld [vmem:[#allocation11 + $0xf8] sm:$0xff]   ;;  %v2293_v17 = vshrl.u32 %v2292_v44, 7 }
 0x318   : > { %8534 = vmatpush3.bf16.msra.mxu0 %v9194_v24  ;;  %8420 = vmatpush3.bf16.msra.mxu1 %v9176_v14 }
 0x319   : > { %v2279_v50 = vadd.f32 %v2278_v39, %v2277_v38  ;;  %v2280_v3 = vmul.f32 0.00390625, %v2210_v48  ;;  %v9196_v38 = vld [vmem:[#allocation11 + $0xb8] sm:$0xff]   ;;  %8535 = vmatprep.subr.bf16.mxu0 %v9195_v49  ;;  %8421 = vmatprep.subr.bf16.mxu1 %v9181_v33  ;;  %v11041_v12 = vsub.s32 0, %v2293_v17 }
 0x31a   : > { %v2284_v48 = vld [vmem:[#allocation8] sm:$0x1] }
 0x31b   : > { %v2281_v27 = vmul.f32 0.00390625, %v2279_v50  ;;  %v2282_v6 = vmul.f32 %v2280_v3, %v2280_v3  ;;  %v9191_v39 = vld [vmem:[#allocation11 + $0x78] sm:$0xff]   ;;  %13751 = vst [vmem:[#allocation53_spill] sm:$0xff] %v11041_v12 }
 0x31c   : > { %8536 = vmatpush3.bf16.msra.mxu0 %v9196_v38  ;;  %8422 = vmatpush3.bf16.msra.mxu1 %v9182_v62 }
 0x31d   : > { %v2283_v8 = vsub.f32 %v2281_v27, %v2282_v6  ;;  %v9192_v27 = vld [vmem:[#allocation11 + $0x38] sm:$0xff]   ;;  %8423 = vmatprep.subr.bf16.mxu1 %v9191_v39 }
 0x31e   : > { %v2288_v6 = vld [vmem:[#allocation9] sm:$0x1] }
 0x31f   : > { %v2285_v30 = vadd.f32 1e-05, %v2283_v8 }
 0x320   : > { %8424 = vmatpush3.bf16.msra.mxu1 %v9192_v27  ;;  %v2908_v27 = vld [vmem:[#allocation2 + $0x9c] sm:$0xf] }
 0x321   : > { %9285 = vrsqrt.f32 %v2285_v30  ;;  %8633 = vmatprep.subr.bf16.mxu1 %v9200_v31 }
 0x32b   : > { %v9286_v50 = vpop.eup %9285 }
 0x32c   : > { %v2287_v53 = vmul.f32 %v9286_v50, %v2284_v48 }
 0x32e   : > { %v2289_v20 = vmul.f32 %v2287_v53, %v2280_v3  ;;  %v2295_v8 = vrot.slane %v2287_v53, %v11041_v12 }
 0x330   : > { %v2290_v19 = vsub.f32 %v2288_v6, %v2289_v20  ;;  %v2325_v9 = vmul.f32 %v2295_v8, %v11020_v41  ;;  %v2326_v30 = vmul.f32 %v2295_v8, %v11030_v37  ;;  %v2297_v16 = vmul.f32 %v2295_v8, %v10853_v23  ;;  %v2926_v6 = vld [vmem:[#allocation2 + $0xbc] sm:$0x1]  ;;  %v2948_v20 = vld [vmem:[#allocation2 + $0xd4] sm:$0x1] }
 0x331   : > { %v2298_v25 = vmul.f32 %v2295_v8, %v10859_v57  ;;  %v2299_v26 = vmul.f32 %v2295_v8, %v10850_v51  ;;  %v2300_v28 = vmul.f32 %v2295_v8, %v10856_v58  ;;  %v2301_v3 = vmul.f32 %v2295_v8, %v10876_v40 }
 0x332   : > { %v11052_v56 = vrot.slane %v2290_v19, %v11041_v12  ;;  %v2302_v41 = vmul.f32 %v2295_v8, %v10886_v29  ;;  %v2303_v23 = vmul.f32 %v2295_v8, %v10871_v60  ;;  %v2304_v37 = vmul.f32 %v2295_v8, %v10880_v13 }
 0x333   : > { %v2305_v44 = vmul.f32 %v2295_v8, %v10900_v52  ;;  %v2306_v57 = vmul.f32 %v2295_v8, %v10910_v54  ;;  %v2307_v51 = vmul.f32 %v2295_v8, %v10895_v35  ;;  %v2308_v58 = vmul.f32 %v2295_v8, %v10904_v7 }
 0x334   : > { %v2363_v40 = vadd.f32 %v11052_v56, %v2325_v9  ;;  %v2364_v24 = vadd.f32 %v11052_v56, %v2326_v30  ;;  %v2309_v49 = vmul.f32 %v2295_v8, %v10924_v22  ;;  %v2310_v29 = vmul.f32 %v2295_v8, %v10934_v5 }
 0x335   : > { %v2311_v60 = vmul.f32 %v2295_v8, %v10919_v21  ;;  %v2312_v13 = vmul.f32 %v2295_v8, %v10928_v18  ;;  %v2313_v52 = vmul.f32 %v2295_v8, %v10948_v42  ;;  %v2314_v54 = vmul.f32 %v2295_v8, %v10958_v10 }
 0x336   : > { %v2395_v14 = vmax.f32 %v2363_v40, 0.0  ;;  %v2396_v35 = vmax.f32 %v2364_v24, 0.0  ;;  %v2315_v7 = vmul.f32 %v2295_v8, %v10943_v45  ;;  %v2316_v33 = vmul.f32 %v2295_v8, %v10952_v34 }
 0x337   : > { %v2317_v17 = vmul.f32 %v2295_v8, %v10972_v46  ;;  %v2318_v22 = vmul.f32 %v2295_v8, %v10982_v4  ;;  %v2319_v5 = vmul.f32 %v2295_v8, %v10967_v63  ;;  %v2320_v21 = vmul.f32 %v2295_v8, %v10976_v11 }
 0x338   : > { %v11075_v38 = vpack.c.bf16 %v2395_v14, %v2395_v14  ;;  %v7933_v18 = vpack.c.bf16 %v2396_v35, %v2396_v35  ;;  %v2321_v42 = vmul.f32 %v2295_v8, %v10996_v59  ;;  %v2322_v10 = vmul.f32 %v2295_v8, %v11006_v32 }
 0x339   : > { %v2323_v62 = vmul.f32 %v2295_v8, %v10991_v0  ;;  %v2324_v45 = vmul.f32 %v2295_v8, %v11000_v43  ;;  %v2327_v34 = vmul.f32 %v2295_v8, %v11015_v36  ;;  %v2328_v46 = vmul.f32 %v2295_v8, %v11024_v15 }
 0x33a   : > { %v2737_v4 = vshrl.u32 %v11075_v38, 16  ;;  %v2745_v63 = vshrl.u32 %v7933_v18, 16  ;;  %v2748_v48 = vshll.u32 %v7933_v18, 16  ;;  %v2740_v11 = vshll.u32 %v11075_v38, 16  ;;  %v2845_v38 = vld [vmem:[#allocation2 + $0x30] sm:$0xf] }
 0x33b   : > { %v11086_v39 = vadd.f32 %v11052_v56, %v2297_v16  ;;  %v11089_v59 = vadd.f32 %v11052_v56, %v2298_v25  ;;  %v11092_v0 = vadd.f32 %v11052_v56, %v2299_v26  ;;  %v11095_v43 = vadd.f32 %v11052_v56, %v2300_v28 }
 0x33c   : > { %v11103_v36 = vrot.slane %v2737_v4, 7  ;;  %v2747_v15 = vrot.slane %v2745_v63, 7  ;;  %v11106_v50 = vadd.f32 %v11052_v56, %v2301_v3  ;;  %v11109_v53 = vadd.f32 %v11052_v56, %v2302_v41 }
 0x33d   : > { %v11118_v8 = vadd.f32 %v11052_v56, %v2303_v23  ;;  %v11121_v31 = vadd.f32 %v11052_v56, %v2304_v37  ;;  %v11124_v19 = vadd.f32 %v11052_v56, %v2305_v44  ;;  %v11127_v9 = vadd.f32 %v11052_v56, %v2306_v57 }
 0x33e   : > { %v2743_v30 = vrot.slane %v11103_v36, 4  ;;  %v2750_v16 = vor.u32 %v2748_v48, %v2747_v15  ;;  %v2752_v25 = vrot.slane %v2747_v15, 4  ;;  %v11131_v26 = vadd.f32 %v11052_v56, %v2307_v51 }
 0x33f   : > { %v11134_v28 = vadd.f32 %v11052_v56, %v2308_v58  ;;  %v11137_v3 = vadd.f32 %v11052_v56, %v2309_v49  ;;  %v11140_v41 = vadd.f32 %v11052_v56, %v2310_v29  ;;  %v11143_v23 = vadd.f32 %v11052_v56, %v2311_v60 }
 0x340   : > { %v2751_v37 = vsel %vm11113_vm6, %v2743_v30, %v2750_v16  ;;  %v2927_v44 = vsel %vm11099_vm5, %v2752_v25, %v2926_v6  ;;  %v2949_v57 = vsel %vm11099_vm5, %v2752_v25, %v2948_v20  ;;  %v11152_v51 = vadd.f32 %v11052_v56, %v2312_v13 }
 0x341   : > { %2925 = vst [vmem:[#allocation2 + $0xb8] sm:$0xf] %v2751_v37  ;;  %2928 = vst [vmem:[#allocation2 + $0xbc] sm:$0x1] %v2927_v44  ;;  %v11155_v58 = vadd.f32 %v11052_v56, %v2313_v52  ;;  %v11158_v40 = vadd.f32 %v11052_v56, %v2314_v54  ;;  %v11161_v24 = vadd.f32 %v11052_v56, %v2315_v7  ;;  %v2370_v18 = vmax.f32 %v11095_v43, 0.0 }
 0x342   : > { %2947 = vst [vmem:[#allocation2 + $0xd0] sm:$0xf] %v2751_v37  ;;  %2950 = vst [vmem:[#allocation2 + $0xd4] sm:$0x1] %v2949_v57  ;;  %v11164_v49 = vadd.f32 %v11052_v56, %v2316_v33  ;;  %v11167_v29 = vadd.f32 %v11052_v56, %v2317_v17  ;;  %v11170_v60 = vadd.f32 %v11052_v56, %v2318_v22  ;;  %v2367_v22 = vmax.f32 %v11086_v39, 0.0 }
 0x343   : > { %v11173_v13 = vadd.f32 %v11052_v56, %v2319_v5  ;;  %v11176_v52 = vadd.f32 %v11052_v56, %v2320_v21  ;;  %v11179_v54 = vadd.f32 %v11052_v56, %v2321_v42  ;;  %v11182_v14 = vadd.f32 %v11052_v56, %v2322_v10 }
 0x344   : > { %v11185_v35 = vadd.f32 %v11052_v56, %v2323_v62  ;;  %v11188_v7 = vadd.f32 %v11052_v56, %v2324_v45  ;;  %v11191_v33 = vadd.f32 %v11052_v56, %v2327_v34  ;;  %v11194_v17 = vadd.f32 %v11052_v56, %v2328_v46 }
 0x345   : > { %v2368_v5 = vmax.f32 %v11089_v59, 0.0  ;;  %v2369_v21 = vmax.f32 %v11092_v0, 0.0  ;;  %v2371_v42 = vmax.f32 %v11106_v50, 0.0  ;;  %v2372_v10 = vmax.f32 %v11109_v53, 0.0 }
 0x346   : > { %v2373_v62 = vmax.f32 %v11118_v8, 0.0  ;;  %v2374_v45 = vmax.f32 %v11121_v31, 0.0  ;;  %v2375_v34 = vmax.f32 %v11124_v19, 0.0  ;;  %v2376_v56 = vmax.f32 %v11127_v9, 0.0 }
 0x347   : > { %v2377_v46 = vmax.f32 %v11131_v26, 0.0  ;;  %v2378_v4 = vmax.f32 %v11134_v28, 0.0  ;;  %v2379_v63 = vmax.f32 %v11137_v3, 0.0  ;;  %v2380_v48 = vmax.f32 %v11140_v41, 0.0 }
 0x348   : > { %v3110_v59 = vld [vmem:[#allocation2 + $0xb8] sm:$0x8]  ;;  %v11216_v43 = vpack.c.bf16 %v2367_v22, %v2367_v22  ;;  %v11218_v15 = vpack.c.bf16 %v2368_v5, %v2368_v5  ;;  %v11220_v50 = vpack.c.bf16 %v2369_v21, %v2369_v21  ;;  %v11222_v53 = vpack.c.bf16 %v2370_v18, %v2370_v18  ;;  %v3231_v8 = vld [vmem:[#allocation2 + $0xbc] sm:$0x1] }
 0x349   : > { %v3112_v0 = vld [vmem:[#allocation2 + $0xd0] sm:$0x8]  ;;  %v7632_v6 = vrot.slane %v3110_v59, 11  ;;  %v2381_v31 = vmax.f32 %v11143_v23, 0.0  ;;  %v2382_v19 = vmax.f32 %v11152_v51, 0.0  ;;  %v2383_v30 = vmax.f32 %v11155_v58, 0.0 }
 0x34a   : > { %v7634_v20 = vrot.slane %v3112_v0, 11  ;;  %v3237_v9 = vld [vmem:[#allocation2 + $0xd4] sm:$0x1]  ;;  %v2384_v16 = vmax.f32 %v11158_v40, 0.0  ;;  %v2385_v25 = vmax.f32 %v11161_v24, 0.0  ;;  %v2386_v26 = vmax.f32 %v11164_v49, 0.0 }
 0x34b   : > { %v3232_v28 = vsel %vm11212_vm8, %v7632_v6, %v3231_v8  ;;  %v2387_v41 = vmax.f32 %v11167_v29, 0.0  ;;  %v2388_v23 = vmax.f32 %v11170_v60, 0.0  ;;  %v2389_v37 = vmax.f32 %v11173_v13, 0.0 }
 0x34c   : > { %v3238_v3 = vsel %vm11212_vm8, %v7634_v20, %v3237_v9  ;;  %3233 = vst [vmem:[#allocation2 + $0xbc] sm:$0x1] %v3232_v28  ;;  %v2390_v44 = vmax.f32 %v11176_v52, 0.0  ;;  %v2391_v57 = vmax.f32 %v11179_v54, 0.0  ;;  %v2392_v51 = vmax.f32 %v11182_v14, 0.0 }
 0x34d   : > { %3239 = vst [vmem:[#allocation2 + $0xd4] sm:$0x1] %v3238_v3  ;;  %v2393_v58 = vmax.f32 %v11185_v35, 0.0  ;;  %v2394_v40 = vmax.f32 %v11188_v7, 0.0  ;;  %v2397_v24 = vmax.f32 %v11191_v33, 0.0  ;;  %v2398_v49 = vmax.f32 %v11194_v17, 0.0 }
 0x34e   : > { %v7908_v29 = vpack.c.bf16 %v2371_v42, %v2371_v42  ;;  %v7909_v60 = vpack.c.bf16 %v2372_v10, %v2372_v10  ;;  %v11244_v22 = vpack.c.bf16 %v2373_v62, %v2373_v62  ;;  %v11246_v5 = vpack.c.bf16 %v2374_v45, %v2374_v45 }
 0x34f   : > { %v11248_v13 = vpack.c.bf16 %v2375_v34, %v2375_v34  ;;  %v11250_v52 = vpack.c.bf16 %v2376_v56, %v2376_v56  ;;  %v11252_v54 = vpack.c.bf16 %v2377_v46, %v2377_v46  ;;  %v11254_v14 = vpack.c.bf16 %v2378_v4, %v2378_v4 }
 0x350   : > { %v11256_v35 = vpack.c.bf16 %v2379_v63, %v2379_v63  ;;  %v11258_v7 = vpack.c.bf16 %v2380_v48, %v2380_v48  ;;  %v11260_v33 = vpack.c.bf16 %v2381_v31, %v2381_v31  ;;  %v11262_v17 = vpack.c.bf16 %v2382_v19, %v2382_v19 }
 0x351   : > { %v11264_v21 = vpack.c.bf16 %v2383_v30, %v2383_v30  ;;  %v11266_v18 = vpack.c.bf16 %v2384_v16, %v2384_v16  ;;  %v11268_v42 = vpack.c.bf16 %v2385_v25, %v2385_v25  ;;  %v11270_v10 = vpack.c.bf16 %v2386_v26, %v2386_v26 }
 0x352   : > { %v11272_v62 = vpack.c.bf16 %v2387_v41, %v2387_v41  ;;  %v11274_v45 = vpack.c.bf16 %v2388_v23, %v2388_v23  ;;  %v11276_v34 = vpack.c.bf16 %v2389_v37, %v2389_v37  ;;  %v11278_v56 = vpack.c.bf16 %v2390_v44, %v2390_v44 }
 0x353   : > { %v11280_v46 = vpack.c.bf16 %v2391_v57, %v2391_v57  ;;  %v11282_v4 = vpack.c.bf16 %v2392_v51, %v2392_v51  ;;  %v11284_v63 = vpack.c.bf16 %v2393_v58, %v2393_v58  ;;  %v11286_v48 = vpack.c.bf16 %v2394_v40, %v2394_v40 }
 0x354   : > { %v11288_v59 = vpack.c.bf16 %v2397_v24, %v2397_v24  ;;  %v11290_v0 = vpack.c.bf16 %v2398_v49, %v2398_v49  ;;  %v2499_v6 = vshrl.u32 %v11216_v43, 16  ;;  %v2502_v20 = vshll.u32 %v11216_v43, 16 }
 0x355   : > { %v2507_v8 = vshrl.u32 %v11218_v15, 16  ;;  %v2510_v31 = vshll.u32 %v11218_v15, 16  ;;  %v2516_v19 = vshrl.u32 %v11220_v50, 16  ;;  %v2519_v9 = vshll.u32 %v11220_v50, 16  ;;  %v2859_v50 = vld [vmem:[#allocation2 + $0x48] sm:$0xf] }
 0x356   : > { %v2501_v30 = vrot.slane %v2499_v6, 7  ;;  %v2524_v16 = vshrl.u32 %v11222_v53, 16  ;;  %v2527_v25 = vshll.u32 %v11222_v53, 16  ;;  %v2533_v26 = vshrl.u32 %v7908_v29, 16 }
 0x357   : > { %v11300_v28 = vrot.slane %v2507_v8, 7  ;;  %v2518_v3 = vrot.slane %v2516_v19, 7  ;;  %v2536_v41 = vshll.u32 %v7908_v29, 16  ;;  %v2541_v23 = vshrl.u32 %v7909_v60, 16 }
 0x358   : > { %v11302_v43 = vor.u32 %v2502_v20, %v2501_v30  ;;  %v2505_v37 = vrot.slane %v2501_v30, 4  ;;  %v11304_v44 = vrot.slane %v2524_v16, 7  ;;  %v2535_v15 = vrot.slane %v2533_v26, 7 }
 0x359   : > { %v2512_v57 = vor.u32 %v2510_v31, %v11300_v28  ;;  %v11308_v51 = vor.u32 %v2519_v9, %v2518_v3  ;;  %v2522_v58 = vrot.slane %v2518_v3, 4  ;;  %v11316_v6 = vrot.slane %v2541_v23, 7 }
 0x35a   : > { %v2529_v53 = vor.u32 %v2527_v25, %v11304_v44  ;;  %v11312_v24 = vor.u32 %v2536_v41, %v2535_v15  ;;  %v2539_v49 = vrot.slane %v2535_v15, 4  ;;  %v2544_v20 = vshll.u32 %v7909_v60, 16 }
 0x35b   : > { %v2513_v29 = vsel %vm11113_vm6, %v2505_v37, %v2512_v57  ;;  %v2550_v8 = vshrl.u32 %v11244_v22, 16  ;;  %v2553_v19 = vshll.u32 %v11244_v22, 16  ;;  %v2558_v9 = vshrl.u32 %v11246_v5, 16 }
 0x35c   : > { %v2530_v31 = vsel %vm11113_vm6, %v2522_v58, %v2529_v53  ;;  %v2561_v30 = vshll.u32 %v11246_v5, 16  ;;  %2825 = vst [vmem:[#allocation2 + $0x10] sm:$0xf] %v2513_v29  ;;  %v2546_v16 = vor.u32 %v2544_v20, %v11316_v6  ;;  %v2567_v3 = vshrl.u32 %v11248_v13, 16 }
 0x35d   : > { %v2552_v26 = vrot.slane %v2550_v8, 7  ;;  %2834 = vst [vmem:[#allocation2 + $0x1c] sm:$0xf] %v2530_v31  ;;  %2939 = vst [vmem:[#allocation2 + $0x4] sm:$0xf] %v2530_v31  ;;  %v11327_v60 = vrot.slane %v2558_v9, 7 }
 0x35e   : > { %v2570_v41 = vshll.u32 %v11248_v13, 16  ;;  %v2575_v22 = vshrl.u32 %v11250_v52, 16  ;;  %v2578_v23 = vshll.u32 %v11250_v52, 16  ;;  %v2547_v5 = vsel %vm11113_vm6, %v2539_v49, %v2546_v16 }
 0x35f   : > { %v11334_v37 = vor.u32 %v2553_v19, %v2552_v26  ;;  %v2556_v15 = vrot.slane %v2552_v26, 4  ;;  %v2569_v57 = vrot.slane %v2567_v3, 7  ;;  %v2563_v58 = vor.u32 %v2561_v30, %v11327_v60  ;;  %2841 = vst [vmem:[#allocation2 + $0x28] sm:$0xf] %v2547_v5 }
 0x360   : > { %v11338_v29 = vrot.slane %v2575_v22, 7  ;;  %v2584_v20 = vshrl.u32 %v11252_v54, 16  ;;  %v2587_v52 = vshll.u32 %v11252_v54, 16  ;;  %v2592_v49 = vshrl.u32 %v11254_v14, 16 }
 0x361   : > { %v11341_v13 = vor.u32 %v2570_v41, %v2569_v57  ;;  %v2573_v8 = vrot.slane %v2569_v57, 4  ;;  %v2564_v31 = vsel %vm11113_vm6, %v2556_v15, %v2563_v58  ;;  %v2595_v26 = vshll.u32 %v11254_v14, 16 }
 0x362   : > { %v2580_v19 = vor.u32 %v2578_v23, %v11338_v29  ;;  %v2586_v30 = vrot.slane %v2584_v20, 7  ;;  %v11349_v16 = vrot.slane %v2592_v49, 7  ;;  %v2601_v3 = vshrl.u32 %v11256_v35, 16  ;;  %2848 = vst [vmem:[#allocation2 + $0x34] sm:$0xf] %v2564_v31 }
 0x363   : > { %v2604_v41 = vshll.u32 %v11256_v35, 16  ;;  %v2609_v23 = vshrl.u32 %v11258_v7, 16  ;;  %v2612_v14 = vshll.u32 %v11258_v7, 16  ;;  %v2618_v35 = vshrl.u32 %v11260_v33, 16  ;;  %v9225_v7 = vld [vmem:[#allocation11 + $0x1c0] sm:$0xff]  }
 0x364   : > { %v2581_v54 = vsel %vm11113_vm6, %v2573_v8, %v2580_v19  ;;  %v11356_v22 = vor.u32 %v2587_v52, %v2586_v30  ;;  %v2590_v5 = vrot.slane %v2586_v30, 4  ;;  %v2597_v15 = vor.u32 %v2595_v26, %v11349_v16  ;;  %8745 = vmatprep.subr.bf16.mxu0 %v9225_v7 }
 0x365   : > { %v2603_v58 = vrot.slane %v2601_v3, 7  ;;  %2855 = vst [vmem:[#allocation2 + $0x40] sm:$0xf] %v2581_v54  ;;  %v11362_v20 = vrot.slane %v2609_v23, 7  ;;  %v2621_v49 = vshll.u32 %v11260_v33, 16  ;;  %v2626_v8 = vshrl.u32 %v11262_v17, 16 }
 0x366   : > { %v2598_v52 = vsel %vm11113_vm6, %v2590_v5, %v2597_v15  ;;  %v2629_v30 = vshll.u32 %v11262_v17, 16  ;;  %v2620_v3 = vrot.slane %v2618_v35, 7  ;;  %v2635_v33 = vshrl.u32 %v11264_v21, 16 }
 0x367   : > { %v11369_v31 = vor.u32 %v2604_v41, %v2603_v58  ;;  %v2607_v19 = vrot.slane %v2603_v58, 4  ;;  %v2614_v26 = vor.u32 %v2612_v14, %v11362_v20  ;;  %v11374_v54 = vrot.slane %v2626_v8, 7  ;;  %2862 = vst [vmem:[#allocation2 + $0x4c] sm:$0xf] %v2598_v52 }
 0x368   : > { %v2638_v23 = vshll.u32 %v11264_v21, 16  ;;  %v2643_v57 = vshrl.u32 %v11266_v18, 16  ;;  %v2646_v41 = vshll.u32 %v11266_v18, 16  ;;  %v11382_v17 = vor.u32 %v2621_v49, %v2620_v3 }
 0x369   : > { %v2615_v5 = vsel %vm11113_vm6, %v2607_v19, %v2614_v26  ;;  %v2624_v15 = vrot.slane %v2620_v3, 4  ;;  %v2631_v58 = vor.u32 %v2629_v30, %v11374_v54  ;;  %v2637_v35 = vrot.slane %v2635_v33, 7 }
 0x36a   : > { %v11386_v8 = vrot.slane %v2643_v57, 7  ;;  %v2652_v52 = vshrl.u32 %v11268_v42, 16  ;;  %2869 = vst [vmem:[#allocation2 + $0x58] sm:$0xf] %v2615_v5  ;;  %v2655_v18 = vshll.u32 %v11268_v42, 16  ;;  %v2660_v19 = vshrl.u32 %v11270_v10, 16 }
 0x36b   : > { %v2632_v21 = vsel %vm11113_vm6, %v2624_v15, %v2631_v58  ;;  %v2663_v49 = vshll.u32 %v11270_v10, 16  ;;  %v11394_v26 = vor.u32 %v2638_v23, %v2637_v35  ;;  %v2641_v30 = vrot.slane %v2637_v35, 4 }
 0x36c   : > { %v2648_v3 = vor.u32 %v2646_v41, %v11386_v8  ;;  %2876 = vst [vmem:[#allocation2 + $0x64] sm:$0xf] %v2632_v21  ;;  %v2654_v33 = vrot.slane %v2652_v52, 7  ;;  %v11398_v5 = vrot.slane %v2660_v19, 7  ;;  %v2669_v15 = vshrl.u32 %v11272_v62, 16 }
 0x36d   : > { %v2672_v42 = vshll.u32 %v11272_v62, 16  ;;  %v2677_v10 = vshrl.u32 %v11274_v45, 16  ;;  %v2680_v23 = vshll.u32 %v11274_v45, 16  ;;  %v2686_v41 = vshrl.u32 %v11276_v34, 16 }
 0x36e   : > { %v2649_v58 = vsel %vm11113_vm6, %v2641_v30, %v2648_v3  ;;  %v11407_v35 = vor.u32 %v2655_v18, %v2654_v33  ;;  %v2658_v21 = vrot.slane %v2654_v33, 4  ;;  %v2665_v52 = vor.u32 %v2663_v49, %v11398_v5 }
 0x36f   : > { %2883 = vst [vmem:[#allocation2 + $0x70] sm:$0xf] %v2649_v58  ;;  %v2671_v57 = vrot.slane %v2669_v15, 7  ;;  %v11411_v14 = vrot.slane %v2677_v10, 7  ;;  %v2688_v62 = vrot.slane %v2686_v41, 7  ;;  %v2689_v30 = vshll.u32 %v11276_v34, 16 }
 0x370   : > { %v2666_v3 = vsel %vm11113_vm6, %v2658_v21, %v2665_v52  ;;  %v2694_v45 = vshrl.u32 %v11278_v56, 16  ;;  %v2697_v18 = vshll.u32 %v11278_v56, 16  ;;  %v2703_v33 = vshrl.u32 %v11280_v46, 16  ;;  %v2828_v58 = vld [vmem:[#allocation2 + $0x14] sm:$0x1] }
 0x371   : > { %v11419_v49 = vor.u32 %v2672_v42, %v2671_v57  ;;  %v2675_v19 = vrot.slane %v2671_v57, 4  ;;  %v2682_v15 = vor.u32 %v2680_v23, %v11411_v14  ;;  %2890 = vst [vmem:[#allocation2 + $0x7c] sm:$0xf] %v2666_v3  ;;  %v11423_v10 = vor.u32 %v2689_v30, %v2688_v62 }
 0x372   : > { %v2692_v34 = vrot.slane %v2688_v62, 4  ;;  %v11425_v41 = vrot.slane %v2694_v45, 7  ;;  %v2705_v21 = vrot.slane %v2703_v33, 7  ;;  %v2706_v52 = vshll.u32 %v11280_v46, 16  ;;  %v2831_v33 = vld [vmem:[#allocation2 + $0x18] sm:$0xf] }
 0x373   : > { %v2683_v56 = vsel %vm11113_vm6, %v2675_v19, %v2682_v15  ;;  %v2711_v42 = vshrl.u32 %v11282_v4, 16  ;;  %v2714_v57 = vshll.u32 %v11282_v4, 16  ;;  %v2720_v62 = vshrl.u32 %v11284_v63, 16  ;;  %v2822_v15 = vld [vmem:[#allocation2 + $0xc] sm:$0xf] }
 0x374   : > { %v2699_v23 = vor.u32 %v2697_v18, %v11425_v41  ;;  %v2709_v30 = vrot.slane %v2705_v21, 4  ;;  %2897 = vst [vmem:[#allocation2 + $0x88] sm:$0xf] %v2683_v56  ;;  %v11435_v45 = vor.u32 %v2706_v52, %v2705_v21  ;;  %v2723_v19 = vshll.u32 %v11284_v63, 16  ;;  %v2835_v56 = vld [vmem:[#allocation2 + $0x20] sm:$0x1] }
 0x375   : > { %v11437_v7 = vrot.slane %v2711_v42, 7  ;;  %v2728_v46 = vshrl.u32 %v11286_v48, 16  ;;  %v2722_v18 = vrot.slane %v2720_v62, 7  ;;  %v2731_v3 = vshll.u32 %v11286_v48, 16  ;;  %v2838_v52 = vld [vmem:[#allocation2 + $0x24] sm:$0xf] }
 0x376   : > { %v2700_v4 = vsel %vm11113_vm6, %v2692_v34, %v2699_v23  ;;  %v11447_v21 = vor.u32 %v2740_v11, %v11103_v36  ;;  %v2754_v48 = vshrl.u32 %v11288_v59, 16  ;;  %v2849_v11 = vld [vmem:[#allocation2 + $0x38] sm:$0x1]  ;;  %v2842_v36 = vld [vmem:[#allocation2 + $0x2c] sm:$0x1]  ;;  %v2757_v25 = vshll.u32 %v11288_v59, 16 }
 0x377   : > { %v2716_v42 = vor.u32 %v2714_v57, %v11437_v7  ;;  %v11457_v23 = vrot.slane %v2728_v46, 7  ;;  %2904 = vst [vmem:[#allocation2 + $0x94] sm:$0xf] %v2700_v4  ;;  %v2852_v62 = vld [vmem:[#allocation2 + $0x3c] sm:$0xf]  ;;  %v11460_v9 = vor.u32 %v2723_v19, %v2722_v18  ;;  %v2726_v53 = vrot.slane %v2722_v18, 4 }
 0x378   : > { %v2762_v40 = vshrl.u32 %v11290_v0, 16  ;;  %v2863_v57 = vld [vmem:[#allocation2 + $0x50] sm:$0x1]  ;;  %v2756_v1 = vrot.slane %v2754_v48, 7  ;;  %v2877_v19 = vld [vmem:[#allocation2 + $0x68] sm:$0x1]  ;;  %v2823_v18 = vsel %vm11451_vm10, %v11302_v43, %v2822_v15 }
 0x379   : > { %v2717_v46 = vsel %vm11113_vm6, %v2709_v30, %v2716_v42  ;;  %v2733_v34 = vor.u32 %v2731_v3, %v11457_v23  ;;  %v2765_v59 = vshll.u32 %v11290_v0, 16  ;;  %v13760_v12 = vrot.slane %v11300_v28, 4  ;;  %v2870_v3 = vld [vmem:[#allocation2 + $0x5c] sm:$0x1]  ;;  %v2887_v42 = vld [vmem:[#allocation2 + $0x78] sm:$0xf] }
 0x37a   : > { %v11468_v47 = vrot.slane %v2762_v40, 7  ;;  %2911 = vst [vmem:[#allocation2 + $0xa0] sm:$0xf] %v2717_v46  ;;  %v11480_v4 = vor.u32 %v2757_v25, %v2756_v1  ;;  %v2760_v40 = vrot.slane %v2756_v1, 4  ;;  %2824 = vst [vmem:[#allocation2 + $0xc] sm:$0xf] %v2823_v18  ;;  %v2832_v0 = vsel %vm11451_vm10, %v11308_v51, %v2831_v33 }
 0x37b   : > { %v2829_v30 = vsel %vm11099_vm5, %v13760_v12, %v2828_v58  ;;  %v2734_v48 = vsel %vm11113_vm6, %v2726_v53, %v2733_v34  ;;  %v2880_v43 = vld [vmem:[#allocation2 + $0x6c] sm:$0xf]  ;;  %v2891_v28 = vld [vmem:[#allocation2 + $0x80] sm:$0x1]  ;;  %2833 = vst [vmem:[#allocation2 + $0x18] sm:$0xf] %v2832_v0  ;;  %v2839_v1 = vsel %vm11451_vm10, %v11312_v24, %v2838_v52  ;;  %v2846_v18 = vsel %vm11451_vm10, %v11334_v37, %v2845_v38 }
 0x37c   : > { %2830 = vst [vmem:[#allocation2 + $0x14] sm:$0x1] %v2829_v30  ;;  %v2767_v15 = vor.u32 %v2765_v59, %v11468_v47  ;;  %v2769_v12 = vrot.slane %v11468_v47, 4  ;;  %v13761_v58 = vrot.slane %v11304_v44, 4  ;;  %2918 = vst [vmem:[#allocation2 + $0xac] sm:$0xf] %v2734_v48  ;;  %v2853_v52 = vsel %vm11451_vm10, %v11341_v13, %v2852_v62 }
 0x37d   : > { %v2884_v53 = vld [vmem:[#allocation2 + $0x74] sm:$0x1]  ;;  %v2901_v34 = vld [vmem:[#allocation2 + $0x90] sm:$0xf]  ;;  %v2894_v33 = vld [vmem:[#allocation2 + $0x84] sm:$0xf]  ;;  %v2860_v13 = vsel %vm11451_vm10, %v11356_v22, %v2859_v50 }
 0x37e   : > { %v2836_v25 = vsel %vm11099_vm5, %v13761_v58, %v2835_v56  ;;  %2840 = vst [vmem:[#allocation2 + $0x24] sm:$0xf] %v2839_v1  ;;  %v13762_v46 = vrot.slane %v11316_v6, 4  ;;  %v13763_v56 = vrot.slane %v11327_v60, 4  ;;  %v11508_v30 = vld [vmem:[#allocation2] sm:$0xf] }
 0x37f   : > { %2837 = vst [vmem:[#allocation2 + $0x20] sm:$0x1] %v2836_v25  ;;  %v2905_v48 = vld [vmem:[#allocation2 + $0x98] sm:$0x1]  ;;  %v2898_v6 = vld [vmem:[#allocation2 + $0x8c] sm:$0x1] }
 0x380   : > { %v2843_v59 = vsel %vm11099_vm5, %v13762_v46, %v2842_v36  ;;  %v2850_v24 = vsel %vm11099_vm5, %v13763_v56, %v2849_v11  ;;  %v2915_v0 = vld [vmem:[#allocation2 + $0xa8] sm:$0xf]  ;;  %v2768_v36 = vsel %vm11113_vm6, %v2760_v40, %v2767_v15  ;;  %2847 = vst [vmem:[#allocation2 + $0x30] sm:$0xf] %v2846_v18  ;;  %2854 = vst [vmem:[#allocation2 + $0x3c] sm:$0xf] %v2853_v52 }
 0x381   : > { %2844 = vst [vmem:[#allocation2 + $0x2c] sm:$0x1] %v2843_v59  ;;  %2851 = vst [vmem:[#allocation2 + $0x38] sm:$0x1] %v2850_v24  ;;  %v13764_v60 = vrot.slane %v11338_v29, 4  ;;  %v13765_v38 = vrot.slane %v11349_v16, 4  ;;  %v2867_v29 = vsel %vm11451_vm10, %v11369_v31, %v2866_v55  ;;  %v2874_v16 = vsel %vm11451_vm10, %v11382_v17, %v2873_v2 }
 0x382   : > { %v2919_v62 = vld [vmem:[#allocation2 + $0xb0] sm:$0x1]  ;;  %v2912_v40 = vld [vmem:[#allocation2 + $0xa4] sm:$0x1]  ;;  %2861 = vst [vmem:[#allocation2 + $0x48] sm:$0xf] %v2860_v13  ;;  %v2881_v55 = vsel %vm11451_vm10, %v11394_v26, %v2880_v43  ;;  %v2888_v31 = vsel %vm11451_vm10, %v11407_v35, %v2887_v42 }
 0x383   : > { %v2857_v37 = vsel %vm11099_vm5, %v13764_v60, %v2856_v61  ;;  %v2864_v11 = vsel %vm11099_vm5, %v13765_v38, %v2863_v57  ;;  %v13766_v61 = vrot.slane %v11362_v20, 4  ;;  %v13767_v22 = vrot.slane %v11374_v54, 4  ;;  %2932 = vst [vmem:[#allocation2 + $0xc4] sm:$0xf] %v2768_v36  ;;  %v2929_v15 = vld [vmem:[#allocation2 + $0xc0] sm:$0xf] }
 0x384   : > { %2858 = vst [vmem:[#allocation2 + $0x44] sm:$0x1] %v2857_v37  ;;  %2865 = vst [vmem:[#allocation2 + $0x50] sm:$0x1] %v2864_v11  ;;  %v2922_v58 = vld [vmem:[#allocation2 + $0xb4] sm:$0xf] }
 0x385   : > { %v2871_v50 = vsel %vm11099_vm5, %v13766_v61, %v2870_v3  ;;  %v2878_v57 = vsel %vm11099_vm5, %v13767_v22, %v2877_v19  ;;  %v2933_v25 = vld [vmem:[#allocation2 + $0xc8] sm:$0x1]  ;;  %2868 = vst [vmem:[#allocation2 + $0x54] sm:$0xf] %v2867_v29  ;;  %2875 = vst [vmem:[#allocation2 + $0x60] sm:$0xf] %v2874_v16 }
 0x386   : > { %2872 = vst [vmem:[#allocation2 + $0x5c] sm:$0x1] %v2871_v50  ;;  %2879 = vst [vmem:[#allocation2 + $0x68] sm:$0x1] %v2878_v57  ;;  %v13768_v20 = vrot.slane %v11386_v8, 4  ;;  %v13769_v54 = vrot.slane %v11398_v5, 4  ;;  %v2895_v8 = vsel %vm11451_vm10, %v11419_v49, %v2894_v33  ;;  %v2902_v5 = vsel %vm11451_vm10, %v11423_v10, %v2901_v34 }
 0x387   : > { %v2940_v19 = vld [vmem:[#allocation2 + $0x8] sm:$0x1]  ;;  %v2944_v3 = vld [vmem:[#allocation2 + $0xcc] sm:$0xf]  ;;  %2882 = vst [vmem:[#allocation2 + $0x6c] sm:$0xf] %v2881_v55  ;;  %v2916_v10 = vsel %vm11451_vm10, %v11460_v9, %v2915_v0  ;;  %v2930_v9 = vsel %vm11451_vm10, %v11480_v4, %v2929_v15 }
 0x388   : > { %v2885_v2 = vsel %vm11099_vm5, %v13768_v20, %v2884_v53  ;;  %v2892_v17 = vsel %vm11099_vm5, %v13769_v54, %v2891_v28  ;;  %2889 = vst [vmem:[#allocation2 + $0x78] sm:$0xf] %v2888_v31  ;;  %v13770_v26 = vrot.slane %v11411_v14, 4  ;;  %v13771_v42 = vrot.slane %v11425_v41, 4  ;;  %2896 = vst [vmem:[#allocation2 + $0x84] sm:$0xf] %v2895_v8 }
 0x389   : > { %2886 = vst [vmem:[#allocation2 + $0x74] sm:$0x1] %v2885_v2  ;;  %2893 = vst [vmem:[#allocation2 + $0x80] sm:$0x1] %v2892_v17  ;;  %v2909_v14 = vsel %vm11451_vm10, %v11435_v45, %v2908_v27  ;;  %v13772_v49 = vrot.slane %v11437_v7, 4  ;;  %v13773_v41 = vrot.slane %v11457_v23, 4  ;;  %v2923_v45 = vsel %vm11451_vm10, %v11447_v21, %v2922_v58 }
 0x38a   : > { %v2899_v35 = vsel %vm11099_vm5, %v13770_v26, %v2898_v6  ;;  %v2906_v43 = vsel %vm11099_vm5, %v13771_v42, %v2905_v48  ;;  %2903 = vst [vmem:[#allocation2 + $0x90] sm:$0xf] %v2902_v5  ;;  %v2952_v53 = vld [vmem:[#allocation2 + $0xc] sm:$0x2]  ;;  %v11579_v34 = vld [vmem:[#allocation2 + $0x4] sm:$0x8]  ;;  %v2934_v7 = vsel %vm11099_vm5, %v2769_v12, %v2933_v25  ;;  %v2937_v23 = vsel %vm11451_vm10, %v11308_v51, %v11508_v30 }
 0x38b   : > { %2900 = vst [vmem:[#allocation2 + $0x8c] sm:$0x1] %v2899_v35  ;;  %2907 = vst [vmem:[#allocation2 + $0x98] sm:$0x1] %v2906_v43  ;;  %v2913_v28 = vsel %vm11099_vm5, %v13772_v49, %v2912_v40  ;;  %v2920_v1 = vsel %vm11099_vm5, %v13773_v41, %v2919_v62  ;;  %v3096_v33 = vld [vmem:[#allocation2 + $0x10] sm:$0x8]  ;;  %v2945_v4 = vsel %vm11451_vm10, %v11447_v21, %v2944_v3 }
 0x38c   : > { %2910 = vst [vmem:[#allocation2 + $0x9c] sm:$0xf] %v2909_v14  ;;  %2914 = vst [vmem:[#allocation2 + $0xa4] sm:$0x1] %v2913_v28  ;;  %v2953_v46 = vld [vmem:[#allocation2 + $0x18] sm:$0x2] }
 0x38d   : > { %2917 = vst [vmem:[#allocation2 + $0xa8] sm:$0xf] %v2916_v10  ;;  %2921 = vst [vmem:[#allocation2 + $0xb0] sm:$0x1] %v2920_v1  ;;  %v3044_v59 = vld [vmem:[#allocation2 + $0xc] sm:$0x1] }
 0x38e   : > { %v3047_v18 = vld [vmem:[#allocation2 + $0x18] sm:$0x1]  ;;  %2924 = vst [vmem:[#allocation2 + $0xb4] sm:$0xf] %v2923_v45  ;;  %2931 = vst [vmem:[#allocation2 + $0xc0] sm:$0xf] %v2930_v9 }
 0x38f   : > { %2935 = vst [vmem:[#allocation2 + $0xc8] sm:$0x1] %v2934_v7  ;;  %2938 = vst [vmem:[#allocation2] sm:$0xf] %v2937_v23  ;;  %v13774_v56 = vrot.slane %v11304_v44, 4  ;;  %v7600_v24 = vrot.slane %v2952_v53, 9 }
 0x390   : > { %v2954_v12 = vld [vmem:[#allocation2 + $0x24] sm:$0x2]  ;;  %v7601_v52 = vrot.slane %v2953_v46, 9  ;;  %v3050_v51 = vld [vmem:[#allocation2 + $0x24] sm:$0x1]  ;;  %v7617_v0 = vrot.slane %v11579_v34, 11 }
 0x391   : > { %v2941_v47 = vsel %vm11099_vm5, %v13774_v56, %v2940_v19  ;;  %2946 = vst [vmem:[#allocation2 + $0xcc] sm:$0xf] %v2945_v4  ;;  %v2955_v30 = vld [vmem:[#allocation2 + $0x30] sm:$0x2]  ;;  %v2956_v48 = vld [vmem:[#allocation2 + $0x3c] sm:$0x2]  ;;  %v3045_v37 = vsel %vm11099_vm5, %v7600_v24, %v3044_v59 }
 0x392   : > { %2942 = vst [vmem:[#allocation2 + $0x8] sm:$0x1] %v2941_v47  ;;  %v7602_v6 = vrot.slane %v2954_v12, 9  ;;  %v2957_v36 = vld [vmem:[#allocation2 + $0x48] sm:$0x2]  ;;  %v7603_v44 = vrot.slane %v2955_v30, 9  ;;  %v3048_v21 = vsel %vm11099_vm5, %v7601_v52, %v3047_v18 }
 0x393   : > { %v7604_v60 = vrot.slane %v2956_v48, 9  ;;  %v3053_v63 = vld [vmem:[#allocation2 + $0x30] sm:$0x1]  ;;  %v3189_v13 = vld [vmem:[#allocation2 + $0x14] sm:$0x1]  ;;  %v7605_v27 = vrot.slane %v2957_v36, 9 }
 0x394   : > { %v2958_v38 = vld [vmem:[#allocation2 + $0x54] sm:$0x2]  ;;  %v2959_v11 = vld [vmem:[#allocation2 + $0x60] sm:$0x2]  ;;  %3046 = vst [vmem:[#allocation2 + $0xc] sm:$0x1] %v3045_v37  ;;  %v3051_v62 = vsel %vm11099_vm5, %v7602_v6, %v3050_v51  ;;  %v3054_v22 = vsel %vm11099_vm5, %v7603_v44, %v3053_v63 }
 0x395   : > { %3049 = vst [vmem:[#allocation2 + $0x18] sm:$0x1] %v3048_v21  ;;  %v7618_v40 = vrot.slane %v3096_v33, 11  ;;  %v2960_v29 = vld [vmem:[#allocation2 + $0x6c] sm:$0x2]  ;;  %v7606_v50 = vrot.slane %v2958_v38, 9 }
 0x396   : > { %v2961_v61 = vld [vmem:[#allocation2 + $0x78] sm:$0x2]  ;;  %v7607_v16 = vrot.slane %v2959_v11, 9  ;;  %3052 = vst [vmem:[#allocation2 + $0x24] sm:$0x1] %v3051_v62  ;;  %v7608_v58 = vrot.slane %v2960_v29, 9 }
 0x397   : > { %v2962_v57 = vld [vmem:[#allocation2 + $0x84] sm:$0x2]  ;;  %v11611_v15 = vld [vmem:[#allocation2 + $0x90] sm:$0x2]  ;;  %v7609_v25 = vrot.slane %v2961_v61, 9  ;;  %v3190_v55 = vsel %vm11212_vm8, %v7618_v40, %v3189_v13 }
 0x398   : > { %3055 = vst [vmem:[#allocation2 + $0x30] sm:$0x1] %v3054_v22  ;;  %v2964_v20 = vld [vmem:[#allocation2 + $0x9c] sm:$0x2]  ;;  %v2965_v2 = vld [vmem:[#allocation2 + $0xa8] sm:$0x2] }
 0x399   : > { %v7610_v31 = vrot.slane %v2962_v57, 9  ;;  %v7611_v54 = vrot.slane %v11611_v15, 9  ;;  %3191 = vst [vmem:[#allocation2 + $0x14] sm:$0x1] %v3190_v55  ;;  %v2951_v17 = vld [vmem:[#allocation2] sm:$0x2] }
 0x39a   : > { %v2966_v19 = vld [vmem:[#allocation2 + $0xb4] sm:$0x2]  ;;  %v2967_v3 = vld [vmem:[#allocation2 + $0xc0] sm:$0x2]  ;;  %v2968_v8 = vld [vmem:[#allocation2 + $0xcc] sm:$0x2] }
 0x39b   : > { %v7599_v26 = vrot.slane %v2951_v17, 9  ;;  %v7612_v35 = vrot.slane %v2964_v20, 9  ;;  %v7613_v5 = vrot.slane %v2965_v2, 9  ;;  %v7614_v42 = vrot.slane %v2966_v19, 9  ;;  %v3041_v49 = vld [vmem:[#allocation2] sm:$0x1] }
 0x39c   : > { %v7615_v43 = vrot.slane %v2967_v3, 9  ;;  %v7616_v14 = vrot.slane %v2968_v8, 9  ;;  %v3056_v28 = vld [vmem:[#allocation2 + $0x3c] sm:$0x1]  ;;  %v11616_v10 = vld [vmem:[#allocation2 + $0x1c] sm:$0x8] }
 0x39d   : > { %v3042_v41 = vsel %vm11099_vm5, %v7599_v26, %v3041_v49  ;;  %v3057_v1 = vsel %vm11099_vm5, %v7604_v60, %v3056_v28  ;;  %v3059_v53 = vld [vmem:[#allocation2 + $0x48] sm:$0x1]  ;;  %v3062_v33 = vld [vmem:[#allocation2 + $0x54] sm:$0x1]  ;;  %v3065_v45 = vld [vmem:[#allocation2 + $0x60] sm:$0x1] }
 0x39e   : > { %v11622_v9 = vld [vmem:[#allocation2 + $0x28] sm:$0x8]  ;;  %v11624_v7 = vld [vmem:[#allocation2 + $0x34] sm:$0x8]  ;;  %v11626_v23 = vld [vmem:[#allocation2 + $0x40] sm:$0x8]  ;;  %v3060_v59 = vsel %vm11099_vm5, %v7605_v27, %v3059_v53  ;;  %v3063_v18 = vsel %vm11099_vm5, %v7606_v50, %v3062_v33  ;;  %v3066_v56 = vsel %vm11099_vm5, %v7607_v16, %v3065_v45 }
 0x39f   : > { %v11628_v46 = vld [vmem:[#allocation2 + $0x4c] sm:$0x8]  ;;  %3043 = vst [vmem:[#allocation2] sm:$0x1] %v3042_v41  ;;  %3058 = vst [vmem:[#allocation2 + $0x3c] sm:$0x1] %v3057_v1 }
 0x3a0   : > { %v3068_v47 = vld [vmem:[#allocation2 + $0x6c] sm:$0x1]  ;;  %v3071_v4 = vld [vmem:[#allocation2 + $0x78] sm:$0x1]  ;;  %v3074_v12 = vld [vmem:[#allocation2 + $0x84] sm:$0x1] }
 0x3a1   : > { %v11636_v24 = vld [vmem:[#allocation2 + $0x58] sm:$0x8]  ;;  %v11638_v52 = vld [vmem:[#allocation2 + $0x64] sm:$0x8]  ;;  %v11640_v51 = vld [vmem:[#allocation2 + $0x70] sm:$0x8]  ;;  %v3069_v48 = vsel %vm11099_vm5, %v7608_v58, %v3068_v47  ;;  %v3072_v6 = vsel %vm11099_vm5, %v7609_v25, %v3071_v4  ;;  %v3075_v36 = vsel %vm11099_vm5, %v7610_v31, %v3074_v12 }
 0x3a2   : > { %v11642_v30 = vld [vmem:[#allocation2 + $0x7c] sm:$0x8]  ;;  %3061 = vst [vmem:[#allocation2 + $0x48] sm:$0x1] %v3060_v59  ;;  %3064 = vst [vmem:[#allocation2 + $0x54] sm:$0x1] %v3063_v18 }
 0x3a3   : > { %3067 = vst [vmem:[#allocation2 + $0x60] sm:$0x1] %v3066_v56  ;;  %v3077_v44 = vld [vmem:[#allocation2 + $0x90] sm:$0x1]  ;;  %v3080_v60 = vld [vmem:[#allocation2 + $0x9c] sm:$0x1] }
 0x3a4   : > { %v3083_v37 = vld [vmem:[#allocation2 + $0xa8] sm:$0x1]  ;;  %v11650_v21 = vld [vmem:[#allocation2 + $0x88] sm:$0x8]  ;;  %v11652_v63 = vld [vmem:[#allocation2 + $0x94] sm:$0x8]  ;;  %v3078_v38 = vsel %vm11099_vm5, %v7611_v54, %v3077_v44  ;;  %v3081_v11 = vsel %vm11099_vm5, %v7612_v35, %v3080_v60 }
 0x3a5   : > { %v11654_v13 = vld [vmem:[#allocation2 + $0xa0] sm:$0x8]  ;;  %3070 = vst [vmem:[#allocation2 + $0x6c] sm:$0x1] %v3069_v48  ;;  %3073 = vst [vmem:[#allocation2 + $0x78] sm:$0x1] %v3072_v6  ;;  %v3084_v27 = vsel %vm11099_vm5, %v7613_v5, %v3083_v37 }
 0x3a6   : > { %3076 = vst [vmem:[#allocation2 + $0x84] sm:$0x1] %v3075_v36  ;;  %v3086_v62 = vld [vmem:[#allocation2 + $0xb4] sm:$0x1]  ;;  %v3089_v40 = vld [vmem:[#allocation2 + $0xc0] sm:$0x1] }
 0x3a7   : > { %v3092_v29 = vld [vmem:[#allocation2 + $0xcc] sm:$0x1]  ;;  %3079 = vst [vmem:[#allocation2 + $0x90] sm:$0x1] %v3078_v38  ;;  %3082 = vst [vmem:[#allocation2 + $0x9c] sm:$0x1] %v3081_v11  ;;  %v3087_v61 = vsel %vm11099_vm5, %v7614_v42, %v3086_v62  ;;  %v3090_v50 = vsel %vm11099_vm5, %v7615_v43, %v3089_v40 }
 0x3a8   : > { %3085 = vst [vmem:[#allocation2 + $0xa8] sm:$0x1] %v3084_v27  ;;  %v3093_v16 = vsel %vm11099_vm5, %v7616_v14, %v3092_v29  ;;  %v11668_v22 = vld [vmem:[#allocation2 + $0xac] sm:$0x8]  ;;  %v11670_v57 = vld [vmem:[#allocation2 + $0xc4] sm:$0x8] }
 0x3a9   : > { %v7619_v15 = vrot.slane %v11616_v10, 11  ;;  %3088 = vst [vmem:[#allocation2 + $0xb4] sm:$0x1] %v3087_v61  ;;  %3091 = vst [vmem:[#allocation2 + $0xc0] sm:$0x1] %v3090_v50  ;;  %v7620_v58 = vrot.slane %v11622_v9, 11 }
 0x3aa   : > { %3094 = vst [vmem:[#allocation2 + $0xcc] sm:$0x1] %v3093_v16  ;;  %v7621_v25 = vrot.slane %v11624_v7, 11  ;;  %v7622_v55 = vrot.slane %v11626_v23, 11  ;;  %v7623_v20 = vrot.slane %v11628_v46, 11  ;;  %v7624_v31 = vrot.slane %v11636_v24, 11 }
 0x3ab   : > { %v3186_v2 = vld [vmem:[#allocation2 + $0x8] sm:$0x1]  ;;  %v3192_v32 = vld [vmem:[#allocation2 + $0x20] sm:$0x1]  ;;  %v7625_v54 = vrot.slane %v11638_v52, 11  ;;  %v7626_v17 = vrot.slane %v11640_v51, 11 }
 0x3ac   : > { %v7627_v19 = vrot.slane %v11642_v30, 11  ;;  %v3195_v3 = vld [vmem:[#allocation2 + $0x2c] sm:$0x1]  ;;  %v7628_v8 = vrot.slane %v11650_v21, 11  ;;  %v7629_v26 = vrot.slane %v11652_v63, 11  ;;  %v7630_v35 = vrot.slane %v11654_v13, 11 }
 0x3ad   : > { %v7631_v5 = vrot.slane %v11668_v22, 11  ;;  %v3198_v42 = vld [vmem:[#allocation2 + $0x38] sm:$0x1]  ;;  %v3855_v43 = vld [vmem:[#allocation2 + $0x10] sm:$0xf]  ;;  %v7633_v14 = vrot.slane %v11670_v57, 11  ;;  %v3187_v49 = vsel %vm11212_vm8, %v7617_v0, %v3186_v2  ;;  %v3193_v28 = vsel %vm11212_vm8, %v7619_v15, %v3192_v32 }
 0x3ae   : > { %v3196_v10 = vsel %vm11212_vm8, %v7620_v58, %v3195_v3  ;;  %v3201_v41 = vld [vmem:[#allocation2 + $0x44] sm:$0x1]  ;;  %v3204_v1 = vld [vmem:[#allocation2 + $0x50] sm:$0x1]  ;;  %3188 = vst [vmem:[#allocation2 + $0x8] sm:$0x1] %v3187_v49  ;;  %v3199_v53 = vsel %vm11212_vm8, %v7621_v25, %v3198_v42 }
 0x3af   : > { %3194 = vst [vmem:[#allocation2 + $0x20] sm:$0x1] %v3193_v28  ;;  %3197 = vst [vmem:[#allocation2 + $0x2c] sm:$0x1] %v3196_v10  ;;  %v3202_v34 = vsel %vm11212_vm8, %v7622_v55, %v3201_v41  ;;  %v3205_v0 = vsel %vm11212_vm8, %v7623_v20, %v3204_v1  ;;  %v3207_v33 = vld [vmem:[#allocation2 + $0x5c] sm:$0x1] }
 0x3b0   : > { %v3210_v45 = vld [vmem:[#allocation2 + $0x68] sm:$0x1]  ;;  %v3213_v9 = vld [vmem:[#allocation2 + $0x74] sm:$0x1]  ;;  %v11700_v7 = vld [vmem:[#allocation2 + $0x4] sm:$0xf]  ;;  %v3208_v23 = vsel %vm11212_vm8, %v7624_v31, %v3207_v33 }
 0x3b1   : > { %3200 = vst [vmem:[#allocation2 + $0x38] sm:$0x1] %v3199_v53  ;;  %3203 = vst [vmem:[#allocation2 + $0x44] sm:$0x1] %v3202_v34  ;;  %v3211_v46 = vsel %vm11212_vm8, %v7625_v54, %v3210_v45  ;;  %v3214_v59 = vsel %vm11212_vm8, %v7626_v17, %v3213_v9  ;;  %v3216_v18 = vld [vmem:[#allocation2 + $0x80] sm:$0x1] }
 0x3b2   : > { %3206 = vst [vmem:[#allocation2 + $0x50] sm:$0x1] %v3205_v0  ;;  %v3219_v56 = vld [vmem:[#allocation2 + $0x8c] sm:$0x1]  ;;  %v3222_v47 = vld [vmem:[#allocation2 + $0x98] sm:$0x1]  ;;  %v3217_v4 = vsel %vm11212_vm8, %v7627_v19, %v3216_v18 }
 0x3b3   : > { %3209 = vst [vmem:[#allocation2 + $0x5c] sm:$0x1] %v3208_v23  ;;  %3212 = vst [vmem:[#allocation2 + $0x68] sm:$0x1] %v3211_v46  ;;  %v3220_v12 = vsel %vm11212_vm8, %v7628_v8, %v3219_v56  ;;  %v3223_v24 = vsel %vm11212_vm8, %v7629_v26, %v3222_v47  ;;  %v3225_v52 = vld [vmem:[#allocation2 + $0xa4] sm:$0x1] }
 0x3b4   : > { %3215 = vst [vmem:[#allocation2 + $0x74] sm:$0x1] %v3214_v59  ;;  %v3228_v51 = vld [vmem:[#allocation2 + $0xb0] sm:$0x1]  ;;  %v3234_v30 = vld [vmem:[#allocation2 + $0xc8] sm:$0x1]  ;;  %v3226_v48 = vsel %vm11212_vm8, %v7630_v35, %v3225_v52 }
 0x3b5   : > { %3218 = vst [vmem:[#allocation2 + $0x80] sm:$0x1] %v3217_v4  ;;  %3221 = vst [vmem:[#allocation2 + $0x8c] sm:$0x1] %v3220_v12  ;;  %v3229_v6 = vsel %vm11212_vm8, %v7631_v5, %v3228_v51  ;;  %v3235_v36 = vsel %vm11212_vm8, %v7633_v14, %v3234_v30  ;;  %v3854_v44 = vld [vmem:[#allocation2 + $0xc] sm:$0xf] }
 0x3b6   : > { %3224 = vst [vmem:[#allocation2 + $0x98] sm:$0x1] %v3223_v24  ;;  %v3912_v60 = vshll.u32 %v3855_v43, 16  ;;  %v3675_v37 = vld [vmem:[#allocation2] sm:$0xe]  ;;  %v3903_v21 = vshrl.u32 %v3854_v44, 16  ;;  %v7731_v38 = vcombine.low %v3854_v44, %v3855_v43 }
 0x3b7   : > { %3227 = vst [vmem:[#allocation2 + $0xa4] sm:$0x1] %v3226_v48  ;;  %3230 = vst [vmem:[#allocation2 + $0xb0] sm:$0x1] %v3229_v6  ;;  %v3906_v63 = vshll.u32 %v3854_v44, 16  ;;  %v3916_v13 = vshrl.u32 %v3855_v43, 16 }
 0x3b8   : > { %3236 = vst [vmem:[#allocation2 + $0xc8] sm:$0x1] %v3235_v36  ;;  %v3856_v27 = vld [vmem:[#allocation2 + $0x18] sm:$0xf]  ;;  %v11726_v39 = vrot.slane %v3912_v60, 5  ;;  %v7635_v62 = vrot.slane %v3675_v37, 9  ;;  %6464 = vmatprep.mubr.bf16.mxu0 %v7731_v38 }
 0x3b9   : > { %v3744_v40 = vrot.slane %v11700_v7, 5  ;;  %v11729_v29 = vld [vmem:[#allocation2 + $0x1c] sm:$0xf]  ;;  %v3927_v61 = vshrl.u32 %v3856_v27, 16  ;;  %v3905_v50 = vrot.slane %v3903_v21, 4  ;;  %v3908_v16 = vrot.slane %v3906_v63, 5 }
 0x3ba   : > { %v11731_v22 = vrot.slane %v3916_v13, 4  ;;  %v3930_v57 = vshll.u32 %v3856_v27, 16  ;;  %v11733_v15 = vld [vmem:[#allocation2] sm:$0xf]  ;;  %v3272_v58 = vld [vmem:[#allocation2 + $0x8] sm:$0x1]  ;;  %v7732_v5 = vcombine.low %v3856_v27, %v11729_v29 }
 0x3bb   : > { %v3745_v25 = vsel %vm11722_vm13, %v7635_v62, %v3744_v40  ;;  %v3746_v55 = vrot.slane %v3744_v40, 4  ;;  %v3909_v20 = vor.u32 %v3908_v16, %v3905_v50  ;;  %v3747_v2 = vrot.slane %v3272_v58, 5  ;;  %v11745_v8 = vld [vmem:[#allocation2 + $0xc] sm:$0xf]  ;;  %v11753_v43 = vld [vmem:[#allocation2 + $0x10] sm:$0xf] }
 0x3bc   : > { %v11737_v32 = vrot.slane %v3927_v61, 4  ;;  %v3919_v54 = vor.u32 %v11731_v22, %v11726_v39  ;;  %v3292_v17 = vshrl.u32 %v11733_v15, 16  ;;  %v3295_v19 = vshll.u32 %v11733_v15, 16  ;;  %v9227_v14 = vld [vmem:[#allocation11 + $0x180] sm:$0xff]   ;;  %v3273_v1 = vld [vmem:[#allocation2 + $0x14] sm:$0x1] }
 0x3bd   : > { %v3301_v3 = vshll.u32 %v11700_v7, 16  ;;  %v3748_v26 = vsel %vm11722_vm13, %v3746_v55, %v3747_v2  ;;  %v11749_v35 = vrot.slane %v3930_v57, 5  ;;  %v3305_v42 = vshrl.u32 %v11700_v7, 16  ;;  %v9233_v53 = vld [vmem:[#allocation11 + $0x1c8] sm:$0xff]   ;;  %v3676_v18 = vld [vmem:[#allocation2 + $0xc] sm:$0xe] }
 0x3be   : > { %v7715_v49 = vcombine.low %v3745_v25, %v3748_v26  ;;  %v3294_v28 = vrot.slane %v3292_v17, 4  ;;  %v3297_v10 = vrot.slane %v3295_v19, 5  ;;  %v11755_v34 = vrot.slane %v3909_v20, 4  ;;  %v9235_v24 = vld [vmem:[#allocation11 + $0x188] sm:$0xff]   ;;  %v9241_v52 = vld [vmem:[#allocation11 + $0x1d0] sm:$0xff]   ;;  %v9201_v40 = vld [vmem:[#allocation11 + $0x100] sm:$0xff]  }
 0x3bf   : > { %v3303_v41 = vrot.slane %v3301_v3, 5  ;;  %v3307_v0 = vrot.slane %v3305_v42, 4  ;;  %v3311_v33 = vshll.u32 %v3272_v58, 16  ;;  %v3316_v45 = vshrl.u32 %v11745_v8, 16  ;;  %v3858_v44 = vld [vmem:[#allocation2 + $0x24] sm:$0xf] }
 0x3c0   : > { %6465 = vmatmul.mubr.bf16.vlgmr.msra.gmra.mrb[160].mxu0 %v7715_v49  ;;  %v3298_v9 = vor.u32 %v3297_v10, %v3294_v28  ;;  %v3319_v23 = vshll.u32 %v11745_v8, 16  ;;  %v3325_v46 = vshll.u32 %v11753_v43, 16  ;;  %v3329_v59 = vshrl.u32 %v11753_v43, 16  ;;  %v11774_v22 = vld [vmem:[#allocation2 + $0x28] sm:$0xf]  ;;  %v9243_v58 = vld [vmem:[#allocation11 + $0x190] sm:$0xff]  }
 0x3c1   : > { %6472 = vmatprep.mubr.bf16.mxu0 %v7732_v5  ;;  %v3308_v56 = vor.u32 %v3307_v0, %v3303_v41  ;;  %v3313_v47 = vrot.slane %v3311_v33, 5  ;;  %v3318_v4 = vrot.slane %v3316_v45, 4  ;;  %v3335_v12 = vshll.u32 %v3273_v1, 16  ;;  %8746 = vmatpush3.bf16.msra.mxu0 %v9227_v14  ;;  %v11778_v17 = vld [vmem:[#allocation2 + $0x18] sm:$0xf]  ;;  %v9206_v10 = vld [vmem:[#allocation11 + $0x148] sm:$0xff]  }
 0x3c2   : > { %v3299_v30 = vrot.slane %v3298_v9, 4  ;;  %v3321_v48 = vrot.slane %v3319_v23, 5  ;;  %v3327_v6 = vrot.slane %v3325_v46, 5  ;;  %v3331_v36 = vrot.slane %v3329_v59, 4  ;;  %8747 = vmatprep.subr.bf16.mxu0 %v9233_v53  ;;  %v11780_v19 = vld [vmem:[#allocation2 + $0x1c] sm:$0xf] }
 0x3c3   : > { %v3309_v60 = vrot.slane %v3308_v56, 4  ;;  %v3337_v37 = vrot.slane %v3335_v12, 5  ;;  %v7636_v21 = vrot.slane %v3676_v18, 9  ;;  %v3751_v63 = vrot.slane %v11753_v43, 5  ;;  %v3274_v42 = vld [vmem:[#allocation2 + $0x20] sm:$0x1] }
 0x3c4   : > { %v3304_v13 = vsel %vm11763_vm0, %v3299_v30, %v3303_v41  ;;  %v3322_v38 = vor.u32 %v3321_v48, %v3318_v4  ;;  %v3332_v27 = vor.u32 %v3331_v36, %v3327_v6  ;;  %v3754_v62 = vrot.slane %v3273_v1, 5  ;;  %v3677_v14 = vld [vmem:[#allocation2 + $0x18] sm:$0xe]  ;;  %v11796_v45 = vld [vmem:[#allocation2 + $0x30] sm:$0xf]  ;;  %v9207_v56 = vld [vmem:[#allocation11 + $0x108] sm:$0xff]  }
 0x3c5   : > { %v11770_v61 = vrot.slane %v3919_v54, 4  ;;  %v3314_v50 = vsel %vm11763_vm0, %v3309_v60, %v3313_v47  ;;  %v3753_v16 = vrot.slane %v3751_v63, 4  ;;  %v3951_v57 = vshrl.u32 %v3858_v44, 16  ;;  %8748 = vmatpush3.bf16.msra.mxu0 %v9235_v24  ;;  %v9245_v41 = vld [vmem:[#allocation11 + $0x1d8] sm:$0xff]   ;;  %v9248_v47 = vld [vmem:[#allocation11 + $0x1e0] sm:$0xff]   ;;  %v9212_v30 = vld [vmem:[#allocation11 + $0x150] sm:$0xff]  }
 0x3c6   : > { %v7699_v25 = vcombine.low %v3304_v13, %v3314_v50  ;;  %v7683_v55 = vcombine.low %v11733_v15, %v11700_v7  ;;  %v3323_v20 = vrot.slane %v3322_v38, 4  ;;  %v3333_v2 = vrot.slane %v3332_v27, 4  ;;  %8749 = vmatprep.subr.bf16.mxu0 %v9241_v52  ;;  %v9246_v9 = vld [vmem:[#allocation11 + $0x198] sm:$0xff]   ;;  %v11808_v38 = vld [vmem:[#allocation2 + $0x24] sm:$0xf]  ;;  %v9213_v27 = vld [vmem:[#allocation11 + $0x110] sm:$0xff]  }
 0x3c7   : > { %v3752_v54 = vsel %vm11722_vm13, %v7636_v21, %v3751_v63  ;;  %v3755_v3 = vsel %vm11722_vm13, %v3753_v16, %v3754_v62  ;;  %v11786_v26 = vrot.slane %v3951_v57, 4  ;;  %v3954_v5 = vshll.u32 %v3858_v44, 16  ;;  %v9250_v62 = vld [vmem:[#allocation11 + $0x1a0] sm:$0xff]  }
 0x3c8   : > { %6303 = vmatprep.mubr.bf16.mxu1 %v7699_v25  ;;  %v3328_v7 = vsel %vm11763_vm0, %v3323_v20, %v3327_v6  ;;  %v3338_v15 = vsel %vm11763_vm0, %v3333_v2, %v3337_v37  ;;  %v7716_v49 = vcombine.low %v3752_v54, %v3755_v3  ;;  %v7733_v53 = vcombine.low %v3858_v44, %v11774_v22  ;;  %v11803_v44 = vld [vmem:[#allocation2 + $0x34] sm:$0xf]  ;;  %v11817_v25 = vld [vmem:[#allocation2 + $0x2c] sm:$0x1] }
 0x3c9   : > { %6304 = vmatmul.mubr.bf16.vlgmr.msra.gmra.mrb[128].mxu1 %v7683_v55  ;;  %v7700_v1 = vcombine.low %v3328_v7, %v3338_v15  ;;  %v3340_v0 = vshrl.u32 %v11778_v17, 16  ;;  %v3343_v33 = vshll.u32 %v11778_v17, 16  ;;  %8750 = vmatpush3.bf16.msra.mxu0 %v9243_v58  ;;  %v3349_v23 = vshll.u32 %v11780_v19, 16  ;;  %v11815_v58 = vld [vmem:[#allocation2 + $0x28] sm:$0xf]  ;;  %v9218_v2 = vld [vmem:[#allocation11 + $0x158] sm:$0xff]  }
 0x3ca   : > { %6473 = vmatmul.mubr.bf16.gmra.mrb[164].mxu0 %v7716_v49  ;;  %8634 = vmatpush3.bf16.msra.mxu1 %v9201_v40  ;;  %v3353_v46 = vshrl.u32 %v11780_v19, 16  ;;  %v3359_v59 = vshll.u32 %v3274_v42, 16  ;;  %v7637_v18 = vrot.slane %v3677_v14, 9  ;;  %v3758_v24 = vrot.slane %v11780_v19, 5  ;;  %v3678_v14 = vld [vmem:[#allocation2 + $0x24] sm:$0xe] }
 0x3cb   : > { %6311 = vmatprep.mubr.bf16.mxu1 %v7700_v1  ;;  %6480 = vmatprep.mubr.bf16.mxu0 %v7733_v53  ;;  %v3342_v4 = vrot.slane %v3340_v0, 4  ;;  %v3345_v12 = vrot.slane %v3343_v33, 5  ;;  %v3761_v52 = vrot.slane %v3274_v42, 5  ;;  %v11801_v48 = vrot.slane %v3954_v5, 5  ;;  %v9251_v7 = vld [vmem:[#allocation11 + $0x1e8] sm:$0xff]  }
 0x3cc   : > { %v3351_v6 = vrot.slane %v3349_v23, 5  ;;  %v3355_v36 = vrot.slane %v3353_v46, 4  ;;  %v3975_v60 = vshrl.u32 %v11796_v45, 16  ;;  %8635 = vmatprep.subr.bf16.mxu1 %v9206_v10  ;;  %8751 = vmatprep.subr.bf16.mxu0 %v9245_v41  ;;  %v7684_v37 = vcombine.low %v11745_v8, %v11753_v43  ;;  %v11831_v1 = vld [vmem:[#allocation2 + $0x3c] sm:$0xf]  ;;  %v9252_v53 = vld [vmem:[#allocation11 + $0x1a8] sm:$0xff]  }
 0x3cd   : > { %v3346_v21 = vor.u32 %v3345_v12, %v3342_v4  ;;  %v3361_v63 = vrot.slane %v3359_v59, 5  ;;  %v3760_v13 = vrot.slane %v3758_v24, 4  ;;  %8752 = vmatpush3.bf16.msra.mxu0 %v9246_v9  ;;  %v3759_v50 = vsel %vm11722_vm13, %v7637_v18, %v3758_v24  ;;  %v9219_v23 = vld [vmem:[#allocation11 + $0x118] sm:$0xff]   ;;  %v9256_v46 = vld [vmem:[#allocation11 + $0x1f0] sm:$0xff]   ;;  %v11837_v4 = vld [vmem:[#allocation2 + $0x40] sm:$0xf] }
 0x3ce   : > { %v3356_v40 = vor.u32 %v3355_v36, %v3351_v6  ;;  %v11812_v16 = vrot.slane %v3975_v60, 4  ;;  %v3978_v57 = vshll.u32 %v11796_v45, 16  ;;  %8636 = vmatpush3.bf16.msra.mxu1 %v9207_v56  ;;  %8753 = vmatprep.subr.bf16.mxu0 %v9248_v47  ;;  %v7734_v20 = vcombine.low %v11796_v45, %v11803_v44  ;;  %v9224_v12 = vld [vmem:[#allocation11 + $0x160] sm:$0xff]   ;;  %v11842_v36 = vld [vmem:[#allocation2 + $0x30] sm:$0xf] }
 0x3cf   : > { %v3347_v8 = vrot.slane %v3346_v21, 4  ;;  %v3762_v43 = vsel %vm11722_vm13, %v3760_v13, %v3761_v52  ;;  %8637 = vmatprep.subr.bf16.mxu1 %v9212_v30  ;;  %v3364_v5 = vshrl.u32 %v11808_v38, 16  ;;  %v3367_v42 = vshll.u32 %v11808_v38, 16  ;;  %v11847_v13 = vld [vmem:[#allocation2 + $0x34] sm:$0xf] }
 0x3d0   : > { %v3357_v54 = vrot.slane %v3356_v40, 4  ;;  %v7717_v3 = vcombine.low %v3759_v50, %v3762_v43  ;;  %v3373_v49 = vshll.u32 %v11815_v58, 16  ;;  %v3377_v10 = vshrl.u32 %v11815_v58, 16  ;;  %v12007_v50 = vld [vmem:[#allocation2 + $0x88] sm:$0xf] }
 0x3d1   : > { %6312 = vmatmul.mubr.bf16.gmra.mrb[132].mxu1 %v7684_v37  ;;  %v3352_v15 = vsel %vm11763_vm0, %v3347_v8, %v3351_v6  ;;  %v3383_v41 = vshll.u32 %v11817_v25, 16  ;;  %8754 = vmatpush3.bf16.msra.mxu0 %v9250_v62  ;;  %v11835_v33 = vrot.slane %v3978_v57, 5  ;;  %v3366_v45 = vrot.slane %v3364_v5, 4  ;;  %v9258_v8 = vld [vmem:[#allocation11 + $0x1f8] sm:$0xff]   ;;  %13780 = vst [vmem:[#allocation55_spill] sm:$0xff] %v12007_v50 }
 0x3d2   : > { %v3362_v0 = vsel %vm11763_vm0, %v3357_v54, %v3361_v63  ;;  %6481 = vmatmul.mubr.bf16.gmra.mrb[168].mxu0 %v7717_v3  ;;  %v3369_v9 = vrot.slane %v3367_v42, 5  ;;  %8638 = vmatpush3.bf16.msra.mxu1 %v9213_v27  ;;  %v3375_v18 = vrot.slane %v3373_v49, 5  ;;  %v3379_v56 = vrot.slane %v3377_v10, 4  ;;  %v9257_v27 = vld [vmem:[#allocation11 + $0x1b0] sm:$0xff]   ;;  %v9232_v54 = vld [vmem:[#allocation11 + $0x168] sm:$0xff]  }
 0x3d3   : > { %v7701_v59 = vcombine.low %v3352_v15, %v3362_v0  ;;  %6488 = vmatprep.mubr.bf16.mxu0 %v7734_v20  ;;  %v7638_v47 = vrot.slane %v3678_v14, 9  ;;  %8639 = vmatprep.subr.bf16.mxu1 %v9218_v2  ;;  %v3765_v52 = vrot.slane %v11815_v58, 5  ;;  %v3768_v30 = vrot.slane %v11817_v25, 5  ;;  %v9226_v25 = vld [vmem:[#allocation11 + $0x120] sm:$0xff]   ;;  %v3276_v20 = vld [vmem:[#allocation2 + $0x38] sm:$0x1] }
 0x3d4   : > { %v3370_v24 = vor.u32 %v3369_v9, %v3366_v45  ;;  %v3999_v6 = vshrl.u32 %v11831_v1, 16  ;;  %8755 = vmatprep.subr.bf16.mxu0 %v9251_v7  ;;  %v7685_v60 = vcombine.low %v11778_v17, %v11780_v19  ;;  %v3380_v37 = vor.u32 %v3379_v56, %v3375_v18  ;;  %v3679_v7 = vld [vmem:[#allocation2 + $0x30] sm:$0xe] }
 0x3d5   : > { %6319 = vmatprep.mubr.bf16.mxu1 %v7701_v59  ;;  %v3385_v21 = vrot.slane %v3383_v41, 5  ;;  %v4002_v63 = vshll.u32 %v11831_v1, 16  ;;  %8756 = vmatpush3.bf16.msra.mxu0 %v9252_v53  ;;  %v3767_v40 = vrot.slane %v3765_v52, 4  ;;  %v7735_v57 = vcombine.low %v11831_v1, %v11837_v4  ;;  %v11866_v1 = vld [vmem:[#allocation2 + $0x48] sm:$0xf]  ;;  %v9259_v53 = vld [vmem:[#allocation11 + $0x1b8] sm:$0xff]  }
 0x3d6   : > { %v3371_v62 = vrot.slane %v3370_v24, 4  ;;  %8640 = vmatpush3.bf16.msra.mxu1 %v9219_v23  ;;  %8757 = vmatprep.subr.bf16.mxu0 %v9256_v46  ;;  %v3381_v17 = vrot.slane %v3380_v37, 4  ;;  %v3766_v19 = vsel %vm11722_vm13, %v7638_v47, %v3765_v52  ;;  %v11854_v43 = vrot.slane %v3999_v6, 4  ;;  %v11868_v46 = vld [vmem:[#allocation2 + $0x4c] sm:$0xf]  ;;  %v9234_v59 = vld [vmem:[#allocation11 + $0x128] sm:$0xff]  }
 0x3d7   : > { %v3388_v2 = vshrl.u32 %v11842_v36, 16  ;;  %8641 = vmatprep.subr.bf16.mxu1 %v9224_v12  ;;  %v3769_v5 = vsel %vm11722_vm13, %v3767_v40, %v3768_v30  ;;  %v3391_v42 = vshll.u32 %v11842_v36, 16  ;;  %v3397_v14 = vshll.u32 %v11847_v13, 16  ;;  %v9240_v24 = vld [vmem:[#allocation11 + $0x170] sm:$0xff]   ;;  %v11876_v37 = vld [vmem:[#allocation2 + $0x3c] sm:$0xf] }
 0x3d8   : > { %v3376_v3 = vsel %vm11763_vm0, %v3371_v62, %v3375_v18  ;;  %v3386_v15 = vsel %vm11763_vm0, %v3381_v17, %v3385_v21  ;;  %v7718_v49 = vcombine.low %v3766_v19, %v3769_v5  ;;  %v3401_v41 = vshrl.u32 %v11847_v13, 16  ;;  %v9242_v17 = vld [vmem:[#allocation11 + $0x130] sm:$0xff]   ;;  %v9254_v5 = vld [vmem:[#allocation11 + $0x178] sm:$0xff]  }
 0x3d9   : > { %6320 = vmatmul.mubr.bf16.gmra.mrb[136].mxu1 %v7685_v60  ;;  %v3390_v10 = vrot.slane %v3388_v2, 4  ;;  %8758 = vmatpush3.bf16.msra.mxu0 %v9257_v27  ;;  %v7702_v0 = vcombine.low %v3376_v3, %v3386_v15  ;;  %v3393_v45 = vrot.slane %v3391_v42, 5  ;;  %v3399_v9 = vrot.slane %v3397_v14, 5  ;;  %v3680_v3 = vld [vmem:[#allocation2 + $0x3c] sm:$0xe] }
 0x3da   : > { %v3407_v23 = vshll.u32 %v3276_v20, 16  ;;  %8642 = vmatpush3.bf16.msra.mxu1 %v9226_v25  ;;  %8759 = vmatprep.subr.bf16.mxu0 %v9258_v8  ;;  %v3403_v18 = vrot.slane %v3401_v41, 4  ;;  %v7639_v56 = vrot.slane %v3679_v7, 9  ;;  %v3772_v47 = vrot.slane %v11847_v13, 5  ;;  %v11879_v25 = vld [vmem:[#allocation2 + $0x40] sm:$0xf] }
 0x3db   : > { %6489 = vmatmul.mubr.bf16.gmra.mrb[172].mxu0 %v7718_v49  ;;  %v3775_v12 = vrot.slane %v3276_v20, 5  ;;  %8643 = vmatprep.subr.bf16.mxu1 %v9232_v54  ;;  %v11871_v52 = vrot.slane %v4002_v63, 5  ;;  %v7686_v30 = vcombine.low %v11808_v38, %v11815_v58  ;;  %v3394_v6 = vor.u32 %v3393_v45, %v3390_v10  ;;  %v3277_v58 = vld [vmem:[#allocation2 + $0x44] sm:$0x1]  ;;  %v11984_v38 = vld [vmem:[#allocation2 + $0x6c] sm:$0xf] }
 0x3dc   : > { %6327 = vmatprep.mubr.bf16.mxu1 %v7702_v0  ;;  %6496 = vmatprep.mubr.bf16.mxu0 %v7735_v57  ;;  %v4023_v60 = vshrl.u32 %v11866_v1, 16  ;;  %v3404_v21 = vor.u32 %v3403_v18, %v3399_v9  ;;  %v3409_v27 = vrot.slane %v3407_v23, 5  ;;  %v3774_v62 = vrot.slane %v3772_v47, 4  ;;  %v11898_v18 = vld [vmem:[#allocation2 + $0x58] sm:$0xf] }
 0x3dd   : > { %v4026_v40 = vshll.u32 %v11866_v1, 16  ;;  %8760 = vmatpush3.bf16.msra.mxu0 %v9259_v53  ;;  %v3395_v8 = vrot.slane %v3394_v6, 4  ;;  %v3773_v63 = vsel %vm11722_vm13, %v7639_v56, %v3772_v47  ;;  %v7736_v2 = vcombine.low %v11866_v1, %v11868_v46  ;;  %v3866_v53 = vld [vmem:[#allocation2 + $0x54] sm:$0xf] }
 0x3de   : > { %v11883_v57 = vrot.slane %v4023_v60, 4  ;;  %8644 = vmatpush3.bf16.msra.mxu1 %v9234_v59  ;;  %v3405_v19 = vrot.slane %v3404_v21, 4  ;;  %v3776_v20 = vsel %vm11722_vm13, %v3774_v62, %v3775_v12  ;;  %v3412_v54 = vshrl.u32 %v11876_v37, 16  ;;  %v11905_v62 = vld [vmem:[#allocation2 + $0x48] sm:$0xf] }
 0x3df   : > { %8645 = vmatprep.subr.bf16.mxu1 %v9240_v24  ;;  %v3400_v42 = vsel %vm11763_vm0, %v3395_v8, %v3399_v9  ;;  %v7719_v14 = vcombine.low %v3773_v63, %v3776_v20  ;;  %v3415_v7 = vshll.u32 %v11876_v37, 16  ;;  %v3421_v15 = vshll.u32 %v11879_v25, 16  ;;  %v9255_v9 = vld [vmem:[#allocation11 + $0x138] sm:$0xff]  }
 0x3e0   : > { %v3410_v49 = vsel %vm11763_vm0, %v3405_v19, %v3409_v27  ;;  %v3414_v10 = vrot.slane %v3412_v54, 4  ;;  %v3425_v41 = vshrl.u32 %v11879_v25, 16  ;;  %v3431_v1 = vshll.u32 %v3277_v58, 16  ;;  %v11908_v19 = vld [vmem:[#allocation2 + $0x4c] sm:$0xf] }
 0x3e1   : > { %6328 = vmatmul.mubr.bf16.gmra.mrb[140].mxu1 %v7686_v30  ;;  %v7703_v0 = vcombine.low %v3400_v42, %v3410_v49  ;;  %v3417_v45 = vrot.slane %v3415_v7, 5  ;;  %v3423_v23 = vrot.slane %v3421_v15, 5  ;;  %v7640_v59 = vrot.slane %v3680_v3, 9  ;;  %v9262_v30 = vld [vmem:[#allocation11 + $0x200] sm:$0xff]  }
 0x3e2   : > { %8646 = vmatpush3.bf16.msra.mxu1 %v9242_v17  ;;  %v11900_v56 = vrot.slane %v4026_v40, 5  ;;  %v3427_v47 = vrot.slane %v3425_v41, 4  ;;  %v3779_v12 = vrot.slane %v11879_v25, 5  ;;  %v3782_v24 = vrot.slane %v3277_v58, 5 }
 0x3e3   : > { %6497 = vmatmul.mubr.bf16.gmra.mrb[176].mxu0 %v7719_v14  ;;  %8647 = vmatprep.subr.bf16.mxu1 %v9254_v5  ;;  %v7687_v6 = vcombine.low %v11842_v36, %v11847_v13  ;;  %v3418_v60 = vor.u32 %v3417_v45, %v3414_v10  ;;  %v3433_v21 = vrot.slane %v3431_v1, 5  ;;  %v4047_v27 = vshrl.u32 %v3866_v53, 16  ;;  %v3278_v13 = vld [vmem:[#allocation2 + $0x50] sm:$0x1]  ;;  %v3681_v14 = vld [vmem:[#allocation2 + $0x48] sm:$0xe] }
 0x3e4   : > { %6335 = vmatprep.mubr.bf16.mxu1 %v7703_v0  ;;  %6504 = vmatprep.mubr.bf16.mxu0 %v7736_v2  ;;  %v3428_v8 = vor.u32 %v3427_v47, %v3423_v23  ;;  %v3781_v63 = vrot.slane %v3779_v12, 4  ;;  %v4050_v40 = vshll.u32 %v3866_v53, 16  ;;  %v3780_v20 = vsel %vm11722_vm13, %v7640_v59, %v3779_v12  ;;  %v3868_v45 = vld [vmem:[#allocation2 + $0x60] sm:$0xf] }
 0x3e5   : > { %v3419_v58 = vrot.slane %v3418_v60, 4  ;;  %v11912_v2 = vrot.slane %v4047_v27, 4  ;;  %v7737_v36 = vcombine.low %v3866_v53, %v11898_v18  ;;  %v3436_v5 = vshrl.u32 %v11905_v62, 16 }
 0x3e6   : > { %8648 = vmatpush3.bf16.msra.mxu1 %v9255_v9  ;;  %v3429_v54 = vrot.slane %v3428_v8, 4  ;;  %v3783_v3 = vsel %vm11722_vm13, %v3781_v63, %v3782_v24  ;;  %v3439_v42 = vshll.u32 %v11905_v62, 16  ;;  %v3445_v49 = vshll.u32 %v11908_v19, 16  ;;  %v11925_v24 = vld [vmem:[#allocation2 + $0x64] sm:$0xf] }
 0x3e7   : > { %8929 = vmatprep.subr.bf16.mxu1 %v9262_v30  ;;  %v3424_v7 = vsel %vm11763_vm0, %v3419_v58, %v3423_v23  ;;  %v7720_v15 = vcombine.low %v3780_v20, %v3783_v3  ;;  %v3449_v10 = vshrl.u32 %v11908_v19, 16  ;;  %v3438_v1 = vrot.slane %v3436_v5, 4  ;;  %v11932_v58 = vld [vmem:[#allocation2 + $0x54] sm:$0xf]  ;;  %v11935_v5 = vld [vmem:[#allocation2 + $0x58] sm:$0xf] }
 0x3e8   : > { %v3434_v41 = vsel %vm11763_vm0, %v3429_v54, %v3433_v21  ;;  %v3441_v53 = vrot.slane %v3439_v42, 5  ;;  %v3455_v0 = vshll.u32 %v3278_v13, 16  ;;  %v3447_v9 = vrot.slane %v3445_v49, 5 }
 0x3e9   : > { %6336 = vmatmul.mubr.bf16.gmra.mrb[144].mxu1 %v7687_v6  ;;  %v7704_v59 = vcombine.low %v3424_v7, %v3434_v41  ;;  %v3451_v47 = vrot.slane %v3449_v10, 4  ;;  %v7641_v12 = vrot.slane %v3681_v14, 9  ;;  %v11927_v23 = vrot.slane %v4050_v40, 5  ;;  %v3682_v10 = vld [vmem:[#allocation2 + $0x54] sm:$0xe] }
 0x3ea   : > { %v3442_v30 = vor.u32 %v3441_v53, %v3438_v1  ;;  %v3786_v60 = vrot.slane %v11908_v19, 5  ;;  %v3789_v6 = vrot.slane %v3278_v13, 5  ;;  %v7688_v21 = vcombine.low %v11876_v37, %v11879_v25  ;;  %v3279_v25 = vld [vmem:[#allocation2 + $0x5c] sm:$0x1] }
 0x3eb   : > { %6505 = vmatmul.mubr.bf16.gmra.mrb[180].mxu0 %v7720_v15  ;;  %6343 = vmatprep.mubr.bf16.mxu1 %v7704_v59  ;;  %v3452_v27 = vor.u32 %v3451_v47, %v3447_v9  ;;  %v3457_v8 = vrot.slane %v3455_v0, 5  ;;  %v4071_v63 = vshrl.u32 %v3868_v45, 16  ;;  %v4074_v3 = vshll.u32 %v3868_v45, 16 }
 0x3ec   : > { %6512 = vmatprep.mubr.bf16.mxu0 %v7737_v36  ;;  %v3443_v20 = vrot.slane %v3442_v30, 4  ;;  %v3788_v54 = vrot.slane %v3786_v60, 4  ;;  %v3787_v13 = vsel %vm11722_vm13, %v7641_v12, %v3786_v60  ;;  %v7738_v37 = vcombine.low %v3868_v45, %v11925_v24  ;;  %v3870_v45 = vld [vmem:[#allocation2 + $0x6c] sm:$0xf] }
 0x3ed   : > { %v3453_v42 = vrot.slane %v3452_v27, 4  ;;  %v11939_v36 = vrot.slane %v4071_v63, 4  ;;  %v3460_v15 = vshrl.u32 %v11932_v58, 16  ;;  %v3463_v49 = vshll.u32 %v11932_v58, 16 }
 0x3ee   : > { %v3448_v14 = vsel %vm11763_vm0, %v3443_v20, %v3447_v9  ;;  %v3790_v7 = vsel %vm11722_vm13, %v3788_v54, %v3789_v6  ;;  %v3469_v53 = vshll.u32 %v11935_v5, 16  ;;  %v3473_v0 = vshrl.u32 %v11935_v5, 16  ;;  %v11955_v54 = vld [vmem:[#allocation2 + $0x70] sm:$0xf] }
 0x3ef   : > { %v3458_v41 = vsel %vm11763_vm0, %v3453_v42, %v3457_v8  ;;  %v7721_v1 = vcombine.low %v3787_v13, %v3790_v7  ;;  %v3462_v9 = vrot.slane %v3460_v15, 4  ;;  %v3465_v47 = vrot.slane %v3463_v49, 5  ;;  %v11959_v15 = vld [vmem:[#allocation2 + $0x60] sm:$0xf]  ;;  %v11961_v49 = vld [vmem:[#allocation2 + $0x64] sm:$0xf] }
 0x3f0   : > { %v7705_v59 = vcombine.low %v3448_v14, %v3458_v41  ;;  %v3479_v12 = vshll.u32 %v3279_v25, 16  ;;  %v3471_v30 = vrot.slane %v3469_v53, 5  ;;  %v3475_v60 = vrot.slane %v3473_v0, 4  ;;  %v3683_v0 = vld [vmem:[#allocation2 + $0x60] sm:$0xe] }
 0x3f1   : > { %6344 = vmatmul.mubr.bf16.gmra.mrb[148].mxu1 %v7688_v21  ;;  %v7642_v6 = vrot.slane %v3682_v10, 9  ;;  %v3793_v27 = vrot.slane %v11935_v5, 5  ;;  %v11953_v63 = vrot.slane %v4074_v3, 5  ;;  %v3466_v8 = vor.u32 %v3465_v47, %v3462_v9 }
 0x3f2   : > { %6351 = vmatprep.mubr.bf16.mxu1 %v7705_v59  ;;  %v3796_v20 = vrot.slane %v3279_v25, 5  ;;  %v4095_v42 = vshrl.u32 %v3870_v45, 16  ;;  %v7689_v21 = vcombine.low %v11905_v62, %v11908_v19  ;;  %v3476_v13 = vor.u32 %v3475_v60, %v3471_v30  ;;  %v11982_v62 = vld [vmem:[#allocation2 + $0x7c] sm:$0xf] }
 0x3f3   : > { %6513 = vmatmul.mubr.bf16.gmra.mrb[184].mxu0 %v7721_v1  ;;  %v3481_v14 = vrot.slane %v3479_v12, 5  ;;  %v3795_v7 = vrot.slane %v3793_v27, 4  ;;  %v3467_v10 = vrot.slane %v3466_v8, 4  ;;  %v3794_v3 = vsel %vm11722_vm13, %v7642_v6, %v3793_v27  ;;  %v3280_v1 = vld [vmem:[#allocation2 + $0x68] sm:$0x1]  ;;  %13779 = vst [vmem:[#allocation54_spill] sm:$0xff] %v11982_v62 }
 0x3f4   : > { %6520 = vmatprep.mubr.bf16.mxu0 %v7738_v37  ;;  %v11965_v41 = vrot.slane %v4095_v42, 4  ;;  %v4098_v25 = vshll.u32 %v3870_v45, 16  ;;  %v3477_v53 = vrot.slane %v3476_v13, 4  ;;  %v7739_v19 = vcombine.low %v3870_v45, %v11955_v54 }
 0x3f5   : > { %v3797_v37 = vsel %vm11722_vm13, %v3795_v7, %v3796_v20  ;;  %v3472_v59 = vsel %vm11763_vm0, %v3467_v10, %v3471_v30  ;;  %v3484_v47 = vshrl.u32 %v11959_v15, 16  ;;  %v3487_v12 = vshll.u32 %v11959_v15, 16  ;;  %v3872_v20 = vld [vmem:[#allocation2 + $0x78] sm:$0xf] }
 0x3f6   : > { %v7722_v9 = vcombine.low %v3794_v3, %v3797_v37  ;;  %v3482_v60 = vsel %vm11763_vm0, %v3477_v53, %v3481_v14  ;;  %v3493_v6 = vshll.u32 %v11961_v49, 16  ;;  %v3497_v27 = vshrl.u32 %v11961_v49, 16 }
 0x3f7   : > { %v3503_v8 = vshll.u32 %v3280_v1, 16  ;;  %v7706_v45 = vcombine.low %v3472_v59, %v3482_v60  ;;  %v3486_v42 = vrot.slane %v3484_v47, 4  ;;  %v3489_v13 = vrot.slane %v3487_v12, 5  ;;  %v11988_v47 = vld [vmem:[#allocation2 + $0x70] sm:$0xf] }
 0x3f8   : > { %v7643_v7 = vrot.slane %v3683_v0, 9  ;;  %v11979_v30 = vrot.slane %v4098_v25, 5  ;;  %v3495_v10 = vrot.slane %v3493_v6, 5  ;;  %v3499_v3 = vrot.slane %v3497_v27, 4  ;;  %v3281_v6 = vld [vmem:[#allocation2 + $0x74] sm:$0x1] }
 0x3f9   : > { %6352 = vmatmul.mubr.bf16.gmra.mrb[152].mxu1 %v7689_v21  ;;  %v3800_v37 = vrot.slane %v11961_v49, 5  ;;  %v3490_v14 = vor.u32 %v3489_v13, %v3486_v42  ;;  %v3803_v53 = vrot.slane %v3280_v1, 5  ;;  %v4119_v40 = vshrl.u32 %v3872_v20, 16 }
 0x3fa   : > { %6359 = vmatprep.mubr.bf16.mxu1 %v7706_v45  ;;  %v4122_v17 = vshll.u32 %v3872_v20, 16  ;;  %v7690_v21 = vcombine.low %v11932_v58, %v11935_v5  ;;  %v3500_v25 = vor.u32 %v3499_v3, %v3495_v10  ;;  %v3505_v0 = vrot.slane %v3503_v8, 5  ;;  %v3684_v5 = vld [vmem:[#allocation2 + $0x6c] sm:$0xe] }
 0x3fb   : > { %6521 = vmatmul.mubr.bf16.gmra.mrb[188].mxu0 %v7722_v9  ;;  %v3802_v59 = vrot.slane %v3800_v37, 4  ;;  %v3491_v12 = vrot.slane %v3490_v14, 4  ;;  %v3801_v60 = vsel %vm11722_vm13, %v7643_v7, %v3800_v37  ;;  %v11992_v9 = vrot.slane %v4119_v40, 4 }
 0x3fc   : > { %6528 = vmatprep.mubr.bf16.mxu0 %v7739_v19  ;;  %v3501_v27 = vrot.slane %v3500_v25, 4  ;;  %v11997_v45 = vrot.slane %v4122_v17, 5  ;;  %v3508_v58 = vshrl.u32 %v11984_v38, 16  ;;  %v3511_v13 = vshll.u32 %v11984_v38, 16  ;;  %v3874_v17 = vld [vmem:[#allocation2 + $0x84] sm:$0xf] }
 0x3fd   : > { %v3804_v19 = vsel %vm11722_vm13, %v3802_v59, %v3803_v53  ;;  %v3496_v8 = vsel %vm11763_vm0, %v3491_v12, %v3495_v10  ;;  %v3517_v40 = vshll.u32 %v11988_v47, 16  ;;  %v3521_v37 = vshrl.u32 %v11988_v47, 16 }
 0x3fe   : > { %v7723_v42 = vcombine.low %v3801_v60, %v3804_v19  ;;  %v3506_v7 = vsel %vm11763_vm0, %v3501_v27, %v3505_v0  ;;  %v3510_v3 = vrot.slane %v3508_v58, 4  ;;  %v3527_v14 = vshll.u32 %v3281_v6, 16 }
 0x3ff   : > { %v7707_v53 = vcombine.low %v3496_v8, %v3506_v7  ;;  %v3513_v25 = vrot.slane %v3511_v13, 5  ;;  %v3519_v59 = vrot.slane %v3517_v40, 5  ;;  %v7644_v1 = vrot.slane %v3684_v5, 9  ;;  %v12013_v8 = vld [vmem:[#allocation2 + $0x78] sm:$0xf] }
 0x400   : > { %v7740_v10 = vcombine.low %v3872_v20, %v11982_v62  ;;  %v3523_v12 = vrot.slane %v3521_v37, 4  ;;  %v3807_v60 = vrot.slane %v11988_v47, 5  ;;  %v3810_v19 = vrot.slane %v3281_v6, 5  ;;  %v12016_v7 = vld [vmem:[#allocation2 + $0x7c] sm:$0xf] }
 0x401   : > { %6360 = vmatmul.mubr.bf16.gmra.mrb[156].mxu1 %v7690_v21  ;;  %v7691_v0 = vcombine.low %v11959_v15, %v11961_v49  ;;  %v3514_v27 = vor.u32 %v3513_v25, %v3510_v3  ;;  %v3529_v58 = vrot.slane %v3527_v14, 5  ;;  %v4143_v21 = vshrl.u32 %v3874_v17, 16  ;;  %v3282_v49 = vld [vmem:[#allocation2 + $0x80] sm:$0x1]  ;;  %v12209_v62 = vld [vmem:[#allocation2 + $0x28] sm:$0xf] }
 0x402   : > { %6367 = vmatprep.mubr.bf16.mxu1 %v7707_v53  ;;  %v3524_v5 = vor.u32 %v3523_v12, %v3519_v59  ;;  %v3809_v13 = vrot.slane %v3807_v60, 4  ;;  %v4146_v40 = vshll.u32 %v3874_v17, 16  ;;  %v3808_v6 = vsel %vm11722_vm13, %v7644_v1, %v3807_v60 }
 0x403   : > { %6529 = vmatmul.mubr.bf16.gmra.mrb[192].mxu0 %v7723_v42  ;;  %v3515_v37 = vrot.slane %v3514_v27, 4  ;;  %v12020_v42 = vrot.slane %v4143_v21, 4  ;;  %v7741_v15 = vcombine.low %v3874_v17, %v12007_v50  ;;  %v3532_v53 = vshrl.u32 %v12013_v8, 16  ;;  %v12033_v50 = vld [vmem:[#allocation2 + $0x94] sm:$0xf] }
 0x404   : > { %6536 = vmatprep.mubr.bf16.mxu0 %v7740_v10  ;;  %v3525_v3 = vrot.slane %v3524_v5, 4  ;;  %v3811_v14 = vsel %vm11722_vm13, %v3809_v13, %v3810_v19  ;;  %v3535_v25 = vshll.u32 %v12013_v8, 16  ;;  %v3685_v10 = vld [vmem:[#allocation2 + $0x78] sm:$0xe]  ;;  %v3541_v1 = vshll.u32 %v12016_v7, 16  ;;  %13782 = vst [vmem:[#allocation57_spill] sm:$0xff] %v12033_v50 }
 0x405   : > { %13781 = vst [vmem:[#allocation56_spill] sm:$0xff] %v12020_v42  ;;  %v3520_v12 = vsel %vm11763_vm0, %v3515_v37, %v3519_v59  ;;  %v7724_v27 = vcombine.low %v3808_v6, %v3811_v14  ;;  %v3545_v60 = vshrl.u32 %v12016_v7, 16  ;;  %v3534_v21 = vrot.slane %v3532_v53, 4  ;;  %v3876_v19 = vld [vmem:[#allocation2 + $0x90] sm:$0xf] }
 0x406   : > { %v3530_v17 = vsel %vm11763_vm0, %v3525_v3, %v3529_v58  ;;  %v3537_v5 = vrot.slane %v3535_v25, 5  ;;  %v3551_v20 = vshll.u32 %v3282_v49, 16  ;;  %v3543_v55 = vrot.slane %v3541_v1, 5  ;;  %v12040_v25 = vld [vmem:[#allocation2 + $0x84] sm:$0xf] }
 0x407   : > { %v7708_v13 = vcombine.low %v3520_v12, %v3530_v17  ;;  %v3547_v28 = vrot.slane %v3545_v60, 4  ;;  %v7645_v31 = vrot.slane %v3685_v10, 9  ;;  %v12035_v59 = vrot.slane %v4146_v40, 5  ;;  %v12043_v60 = vld [vmem:[#allocation2 + $0x88] sm:$0xf] }
 0x408   : > { %v3538_v37 = vor.u32 %v3537_v5, %v3534_v21  ;;  %v3814_v6 = vrot.slane %v12016_v7, 5  ;;  %v3817_v14 = vrot.slane %v3282_v49, 5  ;;  %v7692_v58 = vcombine.low %v11984_v38, %v11988_v47  ;;  %v3283_v38 = vld [vmem:[#allocation2 + $0x8c] sm:$0x1]  ;;  %v3686_v5 = vld [vmem:[#allocation2 + $0x84] sm:$0xe] }
 0x409   : > { %6368 = vmatmul.mubr.bf16.gmra.mrb[160].mxu1 %v7691_v0  ;;  %13783 = vst [vmem:[#allocation58_spill] sm:$0xff] %v12035_v59  ;;  %v3548_v3 = vor.u32 %v3547_v28, %v3543_v55  ;;  %v3553_v53 = vrot.slane %v3551_v20, 5  ;;  %v4167_v0 = vshrl.u32 %v3876_v19, 16  ;;  %v4170_v1 = vshll.u32 %v3876_v19, 16  ;;  %v12101_v42 = vld [vmem:[#allocation2 + $0x9c] sm:$0xf] }
 0x40a   : > { %6375 = vmatprep.mubr.bf16.mxu1 %v7708_v13  ;;  %v3539_v10 = vrot.slane %v3538_v37, 4  ;;  %v3816_v12 = vrot.slane %v3814_v6, 4  ;;  %v3815_v49 = vsel %vm11722_vm13, %v7645_v31, %v3814_v6  ;;  %v7742_v28 = vcombine.low %v3876_v19, %v12033_v50  ;;  %v12060_v6 = vld [vmem:[#allocation2 + $0x9c] sm:$0xf] }
 0x40b   : > { %6537 = vmatmul.mubr.bf16.gmra.mrb[196].mxu0 %v7724_v27  ;;  %v3549_v17 = vrot.slane %v3548_v3, 4  ;;  %v12047_v27 = vrot.slane %v4167_v0, 4  ;;  %v3559_v21 = vshll.u32 %v12040_v25, 16  ;;  %v3565_v37 = vshll.u32 %v12043_v60, 16 }
 0x40c   : > { %6544 = vmatprep.mubr.bf16.mxu0 %v7741_v15  ;;  %v3544_v47 = vsel %vm11763_vm0, %v3539_v10, %v3543_v55  ;;  %v3818_v20 = vsel %vm11722_vm13, %v3816_v12, %v3817_v14  ;;  %v3556_v15 = vshrl.u32 %v12040_v25, 16  ;;  %v3569_v19 = vshrl.u32 %v12043_v60, 16 }
 0x40d   : > { %13784 = vst [vmem:[#allocation59_spill] sm:$0xff] %v12047_v27  ;;  %v3554_v13 = vsel %vm11763_vm0, %v3549_v17, %v3553_v53  ;;  %v7725_v31 = vcombine.low %v3815_v49, %v3818_v20  ;;  %v3561_v0 = vrot.slane %v3559_v21, 5  ;;  %v3575_v10 = vshll.u32 %v3283_v38, 16  ;;  %v12065_v49 = vld [vmem:[#allocation2 + $0xa0] sm:$0xf] }
 0x40e   : > { %v7709_v3 = vcombine.low %v3544_v47, %v3554_v13  ;;  %v3558_v55 = vrot.slane %v3556_v15, 4  ;;  %v3567_v14 = vrot.slane %v3565_v37, 5  ;;  %v3571_v12 = vrot.slane %v3569_v19, 4  ;;  %13786 = vst [vmem:[#allocation61_spill] sm:$0xff] %v12065_v49  ;;  %v12069_v13 = vld [vmem:[#allocation2 + $0x90] sm:$0xf] }
 0x40f   : > { %v7646_v40 = vrot.slane %v3686_v5, 9  ;;  %v3821_v50 = vrot.slane %v12043_v60, 5  ;;  %v12063_v27 = vrot.slane %v4170_v1, 5  ;;  %v3824_v17 = vrot.slane %v3283_v38, 5  ;;  %v12077_v19 = vld [vmem:[#allocation2 + $0x94] sm:$0xf] }
 0x410   : > { %v3562_v53 = vor.u32 %v3561_v0, %v3558_v55  ;;  %v4191_v20 = vshrl.u32 %v12060_v6, 16  ;;  %v3572_v47 = vor.u32 %v3571_v12, %v3567_v14  ;;  %v3577_v15 = vrot.slane %v3575_v10, 5  ;;  %v3687_v10 = vld [vmem:[#allocation2 + $0x90] sm:$0xe] }
 0x411   : > { %6376 = vmatmul.mubr.bf16.gmra.mrb[164].mxu1 %v7692_v58  ;;  %13785 = vst [vmem:[#allocation60_spill] sm:$0xff] %v12063_v27  ;;  %v3823_v21 = vrot.slane %v3821_v50, 4  ;;  %v4194_v58 = vshll.u32 %v12060_v6, 16  ;;  %v7693_v5 = vcombine.low %v12013_v8, %v12016_v7  ;;  %v3822_v38 = vsel %vm11722_vm13, %v7646_v40, %v3821_v50 }
 0x412   : > { %6383 = vmatprep.mubr.bf16.mxu1 %v7709_v3  ;;  %v3563_v1 = vrot.slane %v3562_v53, 4  ;;  %v12075_v37 = vrot.slane %v4191_v20, 4  ;;  %v3573_v3 = vrot.slane %v3572_v47, 4  ;;  %v3580_v50 = vshrl.u32 %v12069_v13, 16  ;;  %v12094_v47 = vld [vmem:[#allocation2 + $0xa8] sm:$0xf] }
 0x413   : > { %6545 = vmatmul.mubr.bf16.gmra.mrb[200].mxu0 %v7725_v31  ;;  %v3284_v31 = vld [vmem:[#allocation2 + $0x98] sm:$0x1]  ;;  %v3825_v55 = vsel %vm11722_vm13, %v3823_v21, %v3824_v17  ;;  %v12086_v7 = vrot.slane %v4194_v58, 5  ;;  %v3583_v40 = vshll.u32 %v12069_v13, 16  ;;  %v3589_v53 = vshll.u32 %v12077_v19, 16 }
 0x414   : > { %6552 = vmatprep.mubr.bf16.mxu0 %v7742_v28  ;;  %13787 = vst [vmem:[#allocation62_spill] sm:$0xff] %v12075_v37  ;;  %v7743_v28 = vcombine.low %v12060_v6, %v12065_v49  ;;  %v3568_v8 = vsel %vm11763_vm0, %v3563_v1, %v3567_v14  ;;  %v3578_v12 = vsel %vm11763_vm0, %v3573_v3, %v3577_v15  ;;  %v3593_v17 = vshrl.u32 %v12077_v19, 16  ;;  %v12097_v37 = vld [vmem:[#allocation2 + $0xac] sm:$0xf] }
 0x415   : > { %13788 = vst [vmem:[#allocation63_spill] sm:$0xff] %v12086_v7  ;;  %v3599_v20 = vshll.u32 %v3284_v31, 16  ;;  %v7710_v6 = vcombine.low %v3568_v8, %v3578_v12  ;;  %v3582_v21 = vrot.slane %v3580_v50, 4  ;;  %v3585_v0 = vrot.slane %v3583_v40, 5  ;;  %13789 = vst [vmem:[#allocation64_spill] sm:$0xff] %v12097_v37 }
 0x416   : > { %v7647_v14 = vrot.slane %v3687_v10, 9  ;;  %v7726_v58 = vcombine.low %v3822_v38, %v3825_v55  ;;  %v3591_v1 = vrot.slane %v3589_v53, 5  ;;  %v3595_v49 = vrot.slane %v3593_v17, 4  ;;  %v12107_v8 = vld [vmem:[#allocation2 + $0xa0] sm:$0xf] }
 0x417   : > { %v3828_v7 = vrot.slane %v12077_v19, 5  ;;  %v3586_v15 = vor.u32 %v3585_v0, %v3582_v21  ;;  %v3831_v3 = vrot.slane %v3284_v31, 5  ;;  %v4215_v27 = vshrl.u32 %v12094_v47, 16  ;;  %v3285_v12 = vld [vmem:[#allocation2 + $0xa4] sm:$0x1] }
 0x418   : > { %v4218_v59 = vshll.u32 %v12094_v47, 16  ;;  %v3596_v38 = vor.u32 %v3595_v49, %v3591_v1  ;;  %v3601_v55 = vrot.slane %v3599_v20, 5  ;;  %v3688_v49 = vld [vmem:[#allocation2 + $0x9c] sm:$0xe]  ;;  %v3617_v21 = vshrl.u32 %v12107_v8, 16 }
 0x419   : > { %6384 = vmatmul.mubr.bf16.gmra.mrb[168].mxu1 %v7693_v5  ;;  %v7694_v5 = vcombine.low %v12040_v25, %v12043_v60  ;;  %v3829_v10 = vsel %vm11722_vm13, %v7647_v14, %v3828_v7  ;;  %v3587_v0 = vrot.slane %v3586_v15, 4  ;;  %v3830_v31 = vrot.slane %v3828_v7, 4  ;;  %v12126_v14 = vld [vmem:[#allocation2 + $0xb4] sm:$0xf] }
 0x41a   : > { %6391 = vmatprep.mubr.bf16.mxu1 %v7710_v6  ;;  %v12109_v50 = vrot.slane %v4215_v27, 4  ;;  %v3597_v53 = vrot.slane %v3596_v38, 4  ;;  %v12112_v17 = vrot.slane %v4218_v59, 5  ;;  %v7744_v25 = vcombine.low %v12094_v47, %v12097_v37 }
 0x41b   : > { %6553 = vmatmul.mubr.bf16.gmra.mrb[204].mxu0 %v7726_v58  ;;  %v3604_v60 = vshrl.u32 %v12101_v42, 16  ;;  %v3592_v20 = vsel %vm11763_vm0, %v3587_v0, %v3591_v1  ;;  %v3607_v27 = vshll.u32 %v12101_v42, 16  ;;  %v3613_v7 = vshll.u32 %v12107_v8, 16  ;;  %v12128_v0 = vld [vmem:[#allocation2 + $0xb8] sm:$0xf] }
 0x41c   : > { %6560 = vmatprep.mubr.bf16.mxu0 %v7743_v28  ;;  %13790 = vst [vmem:[#allocation65_spill] sm:$0xff] %v12109_v50  ;;  %13791 = vst [vmem:[#allocation66_spill] sm:$0xff] %v12112_v17  ;;  %v3832_v28 = vsel %vm11722_vm13, %v3830_v31, %v3831_v3  ;;  %v3602_v59 = vsel %vm11763_vm0, %v3597_v53, %v3601_v55  ;;  %v3623_v47 = vshll.u32 %v3285_v12, 16  ;;  %v7648_v1 = vrot.slane %v3688_v49, 9 }
 0x41d   : > { %v3606_v6 = vrot.slane %v3604_v60, 4  ;;  %v7711_v58 = vcombine.low %v3592_v20, %v3602_v59  ;;  %v3609_v15 = vrot.slane %v3607_v27, 5  ;;  %v3615_v38 = vrot.slane %v3613_v7, 5  ;;  %13792 = vst [vmem:[#allocation67_spill] sm:$0xff] %v12128_v0  ;;  %v12135_v27 = vld [vmem:[#allocation2 + $0xa8] sm:$0xf] }
 0x41e   : > { %v7727_v3 = vcombine.low %v3829_v10, %v3832_v28  ;;  %v7695_v31 = vcombine.low %v12069_v13, %v12077_v19  ;;  %v3619_v40 = vrot.slane %v3617_v21, 4  ;;  %v3835_v55 = vrot.slane %v12107_v8, 5  ;;  %v12140_v19 = vld [vmem:[#allocation2 + $0xac] sm:$0xf] }
 0x41f   : > { %v3610_v53 = vor.u32 %v3609_v15, %v3606_v6  ;;  %v3838_v60 = vrot.slane %v3285_v12, 5  ;;  %v4239_v37 = vshrl.u32 %v12126_v14, 16  ;;  %v4242_v20 = vshll.u32 %v12126_v14, 16  ;;  %v3286_v6 = vld [vmem:[#allocation2 + $0xb0] sm:$0x1] }
 0x420   : > { %v3620_v49 = vor.u32 %v3619_v40, %v3615_v38  ;;  %v3625_v7 = vrot.slane %v3623_v47, 5  ;;  %v3837_v28 = vrot.slane %v3835_v55, 4  ;;  %v7745_v59 = vcombine.low %v12126_v14, %v12128_v0  ;;  %v3689_v15 = vld [vmem:[#allocation2 + $0xa8] sm:$0xe] }
 0x421   : > { %6392 = vmatmul.mubr.bf16.gmra.mrb[172].mxu1 %v7694_v5  ;;  %v3836_v5 = vsel %vm11722_vm13, %v7648_v1, %v3835_v55  ;;  %v3611_v10 = vrot.slane %v3610_v53, 4  ;;  %v12142_v12 = vrot.slane %v4239_v37, 4  ;;  %v3628_v40 = vshrl.u32 %v12135_v27, 16 }
 0x422   : > { %6399 = vmatprep.mubr.bf16.mxu1 %v7711_v58  ;;  %v3621_v21 = vrot.slane %v3620_v49, 4  ;;  %v12146_v58 = vrot.slane %v4242_v20, 5  ;;  %v3631_v47 = vshll.u32 %v12135_v27, 16  ;;  %v3637_v37 = vshll.u32 %v12140_v19, 16  ;;  %v12158_v49 = vld [vmem:[#allocation2 + $0xc0] sm:$0xf] }
 0x423   : > { %6561 = vmatmul.mubr.bf16.gmra.mrb[208].mxu0 %v7727_v3  ;;  %13793 = vst [vmem:[#allocation68_spill] sm:$0xff] %v12142_v12  ;;  %v3616_v1 = vsel %vm11763_vm0, %v3611_v10, %v3615_v38  ;;  %v3641_v3 = vshrl.u32 %v12140_v19, 16  ;;  %v3630_v55 = vrot.slane %v3628_v40, 4  ;;  %v3647_v20 = vshll.u32 %v3286_v6, 16  ;;  %13795 = vst [vmem:[#allocation70_spill] sm:$0xff] %v12158_v49 }
 0x424   : > { %6568 = vmatprep.mubr.bf16.mxu0 %v7744_v25  ;;  %13794 = vst [vmem:[#allocation69_spill] sm:$0xff] %v12146_v58  ;;  %v3839_v25 = vsel %vm11722_vm13, %v3837_v28, %v3838_v60  ;;  %v3626_v14 = vsel %vm11763_vm0, %v3621_v21, %v3625_v7  ;;  %v3633_v53 = vrot.slane %v3631_v47, 5  ;;  %v3639_v0 = vrot.slane %v3637_v37, 5  ;;  %v12160_v38 = vld [vmem:[#allocation2 + $0xc4] sm:$0xf] }
 0x425   : > { %v7712_v13 = vcombine.low %v3616_v1, %v3626_v14  ;;  %v3643_v58 = vrot.slane %v3641_v3, 4  ;;  %v7649_v12 = vrot.slane %v3689_v15, 9  ;;  %13796 = vst [vmem:[#allocation71_spill] sm:$0xff] %v12160_v38  ;;  %v7728_v60 = vcombine.low %v3836_v5, %v3839_v25  ;;  %v12166_v1 = vld [vmem:[#allocation2 + $0xb4] sm:$0xf] }
 0x426   : > { %v3634_v10 = vor.u32 %v3633_v53, %v3630_v55  ;;  %v3842_v28 = vrot.slane %v12140_v19, 5  ;;  %v3845_v17 = vrot.slane %v3286_v6, 5  ;;  %v7696_v7 = vcombine.low %v12101_v42, %v12107_v8  ;;  %v12170_v25 = vld [vmem:[#allocation2 + $0xb8] sm:$0xf]  ;;  %v3690_v53 = vld [vmem:[#allocation2 + $0xb4] sm:$0xe] }
 0x427   : > { %v3644_v21 = vor.u32 %v3643_v58, %v3639_v0  ;;  %v3649_v40 = vrot.slane %v3647_v20, 5  ;;  %v7746_v8 = vcombine.low %v12158_v49, %v12160_v38  ;;  %v3287_v58 = vld [vmem:[#allocation2 + $0xbc] sm:$0x1]  ;;  %v3652_v55 = vshrl.u32 %v12166_v1, 16 }
 0x428   : > { %v3635_v15 = vrot.slane %v3634_v10, 4  ;;  %v3844_v37 = vrot.slane %v3842_v28, 4  ;;  %v3843_v42 = vsel %vm11722_vm13, %v7649_v12, %v3842_v28  ;;  %v3665_v10 = vshrl.u32 %v12170_v25, 16  ;;  %v12188_v28 = vld [vmem:[#allocation2 + $0x18] sm:$0xf] }
 0x429   : > { %6400 = vmatmul.mubr.bf16.gmra.mrb[176].mxu1 %v7695_v31  ;;  %v3671_v5 = vshll.u32 %v3287_v58, 16  ;;  %v7650_v31 = vrot.slane %v3690_v53, 9  ;;  %v3849_v47 = vrot.slane %v12170_v25, 5  ;;  %v12191_v6 = vld [vmem:[#allocation2 + $0x1c] sm:$0xf]  ;;  %v4512_v38 = vshrl.u32 %v12188_v28, 16 }
 0x42a   : > { %6407 = vmatprep.mubr.bf16.mxu1 %v7712_v13  ;;  %v3645_v13 = vrot.slane %v3644_v21, 4  ;;  %v3640_v3 = vsel %vm11763_vm0, %v3635_v15, %v3639_v0  ;;  %v3846_v14 = vsel %vm11722_vm13, %v3844_v37, %v3845_v17  ;;  %v3654_v0 = vrot.slane %v3652_v55, 4 }
 0x42b   : > { %6569 = vmatmul.mubr.bf16.gmra.mrb[212].mxu0 %v7728_v60  ;;  %v7729_v20 = vcombine.low %v3843_v42, %v3846_v14  ;;  %v3661_v60 = vshll.u32 %v12170_v25, 16  ;;  %v3667_v37 = vrot.slane %v3665_v10, 4  ;;  %v3852_v42 = vrot.slane %v3287_v58, 5  ;;  %v4495_v14 = vld [vmem:[#allocation2 + $0x20] sm:$0x1] }
 0x42c   : > { %6576 = vmatprep.mubr.bf16.mxu0 %v7745_v59  ;;  %v3655_v59 = vshll.u32 %v12166_v1, 16  ;;  %v3650_v12 = vsel %vm11763_vm0, %v3645_v13, %v3649_v40  ;;  %v3673_v13 = vrot.slane %v3671_v5, 5  ;;  %v3851_v55 = vrot.slane %v3849_v47, 4  ;;  %v3886_v5 = vld [vmem:[#allocation2 + $0x14] sm:$0x1] }
 0x42d   : > { %v7713_v21 = vcombine.low %v3640_v3, %v3650_v12  ;;  %v3663_v17 = vrot.slane %v3661_v60, 5  ;;  %v3850_v3 = vsel %vm11722_vm13, %v7650_v31, %v3849_v47  ;;  %v4514_v12 = vrot.slane %v4512_v38, 4 }
 0x42e   : > { %v3657_v15 = vrot.slane %v3655_v59, 5  ;;  %v4515_v59 = vshll.u32 %v12188_v28, 16  ;;  %v4521_v60 = vshll.u32 %v12191_v6, 16  ;;  %v3853_v10 = vsel %vm11722_vm13, %v3851_v55, %v3852_v42 }
 0x42f   : > { %v3668_v49 = vor.u32 %v3667_v37, %v3663_v17  ;;  %v7730_v31 = vcombine.low %v3850_v3, %v3853_v10  ;;  %v9289_v3 = vld [vmem:[#allocation2 + $0x10] sm:$0xf] }
 0x430   : > { %v3658_v40 = vor.u32 %v3657_v15, %v3654_v0  ;;  %v4531_v0 = vshll.u32 %v4495_v14, 16  ;;  %v4286_v15 = vld [vmem:[#allocation2 + $0xc] sm:$0xe]  ;;  %v3922_v14 = vshll.u32 %v3886_v5, 16 }
 0x431   : > { %6408 = vmatmul.mubr.bf16.gmra.mrb[180].mxu1 %v7696_v7  ;;  %v4525_v7 = vshrl.u32 %v12191_v6, 16  ;;  %v3669_v58 = vrot.slane %v3668_v49, 4  ;;  %v7698_v49 = vcombine.low %v12166_v1, %v12170_v25 }
 0x432   : > { %6415 = vmatprep.mubr.bf16.mxu1 %v7713_v21  ;;  %v3659_v53 = vrot.slane %v3658_v40, 4  ;;  %v4517_v21 = vrot.slane %v4515_v59, 5  ;;  %v4533_v50 = vrot.slane %v4531_v0, 5  ;;  %v7651_v59 = vrot.slane %v4286_v15, 9 }
 0x433   : > { %6577 = vmatmul.mubr.bf16.gmra.mrb[216].mxu0 %v7729_v20  ;;  %v4523_v20 = vrot.slane %v4521_v60, 5  ;;  %v4527_v37 = vrot.slane %v4525_v7, 4  ;;  %v3674_v38 = vsel %vm11763_vm0, %v3669_v58, %v3673_v13  ;;  %v4355_v60 = vrot.slane %v3886_v5, 5  ;;  %v4496_v7 = vld [vmem:[#allocation2 + $0x2c] sm:$0x1] }
 0x434   : > { %6584 = vmatprep.mubr.bf16.mxu0 %v7746_v8  ;;  %v3664_v47 = vsel %vm11763_vm0, %v3659_v53, %v3663_v17  ;;  %v4518_v40 = vor.u32 %v4517_v21, %v4514_v12  ;;  %v12207_v8 = vld [vmem:[#allocation2 + $0x24] sm:$0xf]  ;;  %v4352_v53 = vrot.slane %v9289_v3, 5  ;;  %v7779_v13 = vcombine.low %v12188_v28, %v12191_v6 }
 0x435   : > { %v7714_v42 = vcombine.low %v3664_v47, %v3674_v38  ;;  %v4528_v55 = vor.u32 %v4527_v37, %v4523_v20  ;;  %v13797_v12 = vcombine.low %v12135_v27, %v12140_v19  ;;  %v3924_v25 = vrot.slane %v3922_v14, 5  ;;  %v4896_v28 = vld [vmem:[#allocation2 + $0x24] sm:$0xe] }
 0x436   : > { %v4519_v17 = vrot.slane %v4518_v40, 4  ;;  %v4536_v58 = vshrl.u32 %v12207_v8, 16  ;;  %v4539_v10 = vshll.u32 %v12207_v8, 16  ;;  %v4353_v5 = vsel %vm11722_vm13, %v7651_v59, %v4352_v53 }
 0x437   : > { %v4529_v1 = vrot.slane %v4528_v55, 4  ;;  %v4354_v0 = vrot.slane %v4352_v53, 4  ;;  %v4545_v6 = vshll.u32 %v12209_v62, 16  ;;  %v4549_v47 = vshrl.u32 %v12209_v62, 16 }
 0x438   : > { %v4524_v21 = vsel %vm11763_vm0, %v4519_v17, %v4523_v20  ;;  %v4538_v19 = vrot.slane %v4536_v58, 4  ;;  %v4541_v15 = vrot.slane %v4539_v10, 5  ;;  %v4555_v40 = vshll.u32 %v4496_v7, 16 }
 0x439   : > { %6416 = vmatmul.mubr.bf16.gmra.mrb[184].mxu1 %v13797_v12  ;;  %v4534_v27 = vsel %vm11763_vm0, %v4529_v1, %v4533_v50  ;;  %v4356_v38 = vsel %vm11722_vm13, %v4354_v0, %v4355_v60  ;;  %v4547_v20 = vrot.slane %v4545_v6, 5  ;;  %v4551_v59 = vrot.slane %v4549_v47, 4  ;;  %v3887_v12 = vld [vmem:[#allocation2 + $0x20] sm:$0x1]  ;;  %v9290_v6 = vld [vmem:[#allocation2 + $0x1c] sm:$0xf] }
 0x43a   : > { %6423 = vmatprep.mubr.bf16.mxu1 %v7714_v42  ;;  %v7795_v37 = vcombine.low %v4524_v21, %v4534_v27  ;;  %v4287_v42 = vld [vmem:[#allocation2 + $0x18] sm:$0xe]  ;;  %v7763_v55 = vcombine.low %v4353_v5, %v4356_v38  ;;  %v4542_v14 = vor.u32 %v4541_v15, %v4538_v19  ;;  %v7668_v17 = vrot.slane %v4896_v28, 9  ;;  %v12236_v21 = vld [vmem:[#allocation2 + $0x30] sm:$0xf] }
 0x43b   : > { %6585 = vmatmul.mubr.bf16.gmra.mrb[220].mxu0 %v7730_v31  ;;  %v4557_v31 = vrot.slane %v4555_v40, 5  ;;  %v4968_v3 = vrot.slane %v12209_v62, 5  ;;  %v4971_v50 = vrot.slane %v4496_v7, 5  ;;  %v3915_v53 = vsel %vm11763_vm0, %v11755_v34, %v11726_v39  ;;  %v12242_v27 = vld [vmem:[#allocation2 + $0x34] sm:$0xf] }
 0x43c   : > { %6786 = vmatprep.mubr.bf16.mxu0 %v7795_v37  ;;  %v4543_v1 = vrot.slane %v4542_v14, 4  ;;  %v4552_v60 = vor.u32 %v4551_v59, %v4547_v20  ;;  %v3925_v58 = vsel %vm11763_vm0, %v11770_v61, %v3924_v25  ;;  %v7652_v10 = vrot.slane %v4287_v42, 9  ;;  %v4497_v37 = vld [vmem:[#allocation2 + $0x38] sm:$0x1]  ;;  %v4288_v59 = vld [vmem:[#allocation2 + $0x24] sm:$0xe] }
 0x43d   : > { %v12240_v5 = vsel %vm11722_vm13, %v7668_v17, %v4968_v3  ;;  %v4970_v7 = vrot.slane %v4968_v3, 4  ;;  %v7747_v0 = vcombine.low %v3915_v53, %v3925_v58  ;;  %v4359_v28 = vrot.slane %v9290_v6, 5 }
 0x43e   : > { %v4548_v39 = vsel %vm11763_vm0, %v4543_v1, %v4547_v20  ;;  %v4553_v34 = vrot.slane %v4552_v60, 4  ;;  %v4362_v19 = vrot.slane %v3887_v12, 5  ;;  %v7780_v61 = vcombine.low %v12207_v8, %v12209_v62 }
 0x43f   : > { %v12250_v25 = vsel %vm11722_vm13, %v4970_v7, %v4971_v50  ;;  %v4360_v15 = vsel %vm11722_vm13, %v7652_v10, %v4359_v28  ;;  %v4361_v47 = vrot.slane %v4359_v28, 4  ;;  %v4563_v62 = vshll.u32 %v12236_v21, 16  ;;  %v12268_v10 = vld [vmem:[#allocation2 + $0x2c] sm:$0x1] }
 0x440   : > { %v4558_v38 = vsel %vm11763_vm0, %v4553_v34, %v4557_v31  ;;  %v4569_v8 = vshll.u32 %v12242_v27, 16  ;;  %v4573_v14 = vshrl.u32 %v12242_v27, 16  ;;  %v4579_v50 = vshll.u32 %v4497_v37, 16  ;;  %v12270_v37 = vld [vmem:[#allocation2 + $0x28] sm:$0xf] }
 0x441   : > { %6424 = vmatmul.mubr.bf16.gmra.mrb[188].mxu1 %v7698_v49  ;;  %v4560_v49 = vshrl.u32 %v12236_v21, 16  ;;  %v7796_v40 = vcombine.low %v4548_v39, %v4558_v38  ;;  %v4363_v42 = vsel %vm11722_vm13, %v4361_v47, %v4362_v19  ;;  %v3933_v53 = vor.u32 %v11749_v35, %v11737_v32  ;;  %v9265_v19 = vld [vmem:[#allocation11 + $0x208] sm:$0xff]  }
 0x442   : > { %6625 = vmatprep.mubr.bf16.mxu1 %v7763_v55  ;;  %v7764_v17 = vcombine.low %v4360_v15, %v4363_v42  ;;  %v4571_v3 = vrot.slane %v4569_v8, 5  ;;  %v4575_v31 = vrot.slane %v4573_v14, 4  ;;  %v3936_v1 = vshll.u32 %v9290_v6, 16  ;;  %v9292_v8 = vld [vmem:[#allocation11 + $0x200] sm:$0xff]  }
 0x443   : > { %6787 = vmatmul.mubr.bf16.vlgmr.msra.gmra.mrb[224].mxu0 %v7779_v13  ;;  %v4562_v55 = vrot.slane %v4560_v49, 4  ;;  %v4565_v13 = vrot.slane %v4563_v62, 5  ;;  %v13798_v60 = vshrl.u32 %v11729_v29, 16  ;;  %v4581_v28 = vrot.slane %v4579_v50, 5  ;;  %v12273_v62 = vld [vmem:[#allocation2 + $0x3c] sm:$0xf] }
 0x444   : > { %6794 = vmatprep.mubr.bf16.mxu0 %v7796_v40  ;;  %v3946_v39 = vshll.u32 %v3887_v12, 16  ;;  %v7653_v34 = vrot.slane %v4288_v59, 9  ;;  %v4576_v15 = vor.u32 %v4575_v31, %v4571_v3  ;;  %v3934_v47 = vrot.slane %v3933_v53, 4  ;;  %v12278_v12 = vld [vmem:[#allocation2 + $0x40] sm:$0xf] }
 0x445   : > { %v3942_v58 = vrot.slane %v13798_v60, 4  ;;  %v4566_v7 = vor.u32 %v4565_v13, %v4562_v55  ;;  %v3938_v49 = vrot.slane %v3936_v1, 5  ;;  %v4366_v38 = vrot.slane %v12270_v37, 5  ;;  %v4498_v13 = vld [vmem:[#allocation2 + $0x44] sm:$0x1] }
 0x446   : > { %v3948_v29 = vrot.slane %v3946_v39, 5  ;;  %v4369_v35 = vrot.slane %v12268_v10, 5  ;;  %v7781_v6 = vcombine.low %v12236_v21, %v12242_v27  ;;  %v4577_v40 = vrot.slane %v4576_v15, 4 }
 0x447   : > { %v4567_v32 = vrot.slane %v4566_v7, 4  ;;  %v3939_v42 = vsel %vm11763_vm0, %v3934_v47, %v3938_v49  ;;  %v3943_v55 = vor.u32 %v3942_v58, %v3938_v49  ;;  %v4368_v59 = vrot.slane %v4366_v38, 4 }
 0x448   : > { %v4584_v21 = vshrl.u32 %v12273_v62, 16  ;;  %v4587_v27 = vshll.u32 %v12273_v62, 16  ;;  %v4582_v50 = vsel %vm11763_vm0, %v4577_v40, %v4581_v28  ;;  %v4593_v53 = vshll.u32 %v12278_v12, 16 }
 0x449   : > { %6626 = vmatmul.mubr.bf16.vlgmr.msra.gmra.mrb[192].mxu1 %v7747_v0  ;;  %v4367_v0 = vsel %vm11722_vm13, %v7653_v34, %v4366_v38  ;;  %v4572_v14 = vsel %vm11763_vm0, %v4567_v32, %v4571_v3  ;;  %v3944_v31 = vrot.slane %v3943_v55, 4  ;;  %v4597_v1 = vshrl.u32 %v12278_v12, 16 }
 0x44a   : > { %6633 = vmatprep.mubr.bf16.mxu1 %v7764_v17  ;;  %8930 = vmatpush3.bf16.msra.mxu1 %v9292_v8  ;;  %v9268_v17 = vld [vmem:[#allocation11 + $0x210] sm:$0xff]   ;;  %v7797_v60 = vcombine.low %v4572_v14, %v4582_v50  ;;  %v4370_v3 = vsel %vm11722_vm13, %v4368_v59, %v4369_v35  ;;  %v4586_v58 = vrot.slane %v4584_v21, 4  ;;  %v4589_v7 = vrot.slane %v4587_v27, 5  ;;  %v9271_v8 = vld [vmem:[#allocation11 + $0x218] sm:$0xff]  }
 0x44b   : > { %6795 = vmatmul.mubr.bf16.gmra.mrb[228].mxu0 %v7780_v61  ;;  %8931 = vmatprep.subr.bf16.mxu1 %v9265_v19  ;;  %v4898_v61 = vld [vmem:[#allocation2 + $0x3c] sm:$0xe]  ;;  %v3949_v39 = vsel %vm11763_vm0, %v3944_v31, %v3948_v29  ;;  %v7765_v34 = vcombine.low %v4367_v0, %v4370_v3  ;;  %v4595_v15 = vrot.slane %v4593_v53, 5  ;;  %v4599_v47 = vrot.slane %v4597_v1, 4  ;;  %v4289_v59 = vld [vmem:[#allocation2 + $0x30] sm:$0xe] }
 0x44c   : > { %6802 = vmatprep.mubr.bf16.mxu0 %v7797_v60  ;;  %v7748_v28 = vcombine.low %v3939_v42, %v3949_v39  ;;  %v4590_v49 = vor.u32 %v4589_v7, %v4586_v58  ;;  %v4603_v38 = vshll.u32 %v4498_v13, 16  ;;  %v7670_v32 = vrot.slane %v4898_v61, 9  ;;  %v12302_v27 = vld [vmem:[#allocation2 + $0x38] sm:$0x1]  ;;  %v9275_v1 = vld [vmem:[#allocation11 + $0x220] sm:$0xff]  }
 0x44d   : > { %v4600_v40 = vor.u32 %v4599_v47, %v4595_v15  ;;  %v4982_v55 = vrot.slane %v12278_v12, 5  ;;  %v4985_v35 = vrot.slane %v4498_v13, 5  ;;  %v3957_v14 = vor.u32 %v11801_v48, %v11786_v26  ;;  %v9293_v3 = vld [vmem:[#allocation2 + $0x34] sm:$0xf]  ;;  %v12320_v7 = vld [vmem:[#allocation2 + $0x4c] sm:$0xf] }
 0x44e   : > { %8932 = vmatpush3.bf16.msra.mxu1 %v9265_v19  ;;  %v4591_v29 = vrot.slane %v4590_v49, 4  ;;  %v4605_v0 = vrot.slane %v4603_v38, 5  ;;  %v3960_v19 = vshll.u32 %v12270_v37, 16  ;;  %v13799_v42 = vshrl.u32 %v11774_v22, 16  ;;  %v4499_v47 = vld [vmem:[#allocation2 + $0x50] sm:$0x1] }
 0x44f   : > { %8933 = vmatprep.subr.bf16.mxu1 %v9268_v17  ;;  %v4601_v50 = vrot.slane %v4600_v40, 4  ;;  %v12306_v31 = vsel %vm11722_vm13, %v7670_v32, %v4982_v55  ;;  %v4984_v13 = vrot.slane %v4982_v55, 4  ;;  %v3958_v53 = vrot.slane %v3957_v14, 4 }
 0x450   : > { %v3966_v21 = vrot.slane %v13799_v42, 4  ;;  %13800 = vst [vmem:[#allocation72_spill] sm:$0xff] %v12306_v31  ;;  %v4596_v26 = vsel %vm11763_vm0, %v4591_v29, %v4595_v15  ;;  %v3962_v48 = vrot.slane %v3960_v19, 5  ;;  %v3970_v37 = vshll.u32 %v12268_v10, 16 }
 0x451   : > { %6634 = vmatmul.mubr.bf16.gmra.mrb[196].mxu1 %v7748_v28  ;;  %v7654_v22 = vrot.slane %v4289_v59, 9  ;;  %v4606_v61 = vsel %vm11763_vm0, %v4601_v50, %v4605_v0  ;;  %v12315_v60 = vsel %vm11722_vm13, %v4984_v13, %v4985_v35  ;;  %v4373_v58 = vrot.slane %v9293_v3, 5  ;;  %v9278_v59 = vld [vmem:[#allocation11 + $0x228] sm:$0xff]   ;;  %v4290_v50 = vld [vmem:[#allocation2 + $0x3c] sm:$0xe] }
 0x452   : > { %6641 = vmatprep.mubr.bf16.mxu1 %v7765_v34  ;;  %8934 = vmatpush3.bf16.msra.mxu1 %v9268_v17  ;;  %13801 = vst [vmem:[#allocation73_spill] sm:$0xff] %v12315_v60  ;;  %v12318_v17 = vld [vmem:[#allocation2 + $0x48] sm:$0xf]  ;;  %v7798_v39 = vcombine.low %v4596_v26, %v4606_v61  ;;  %v3963_v34 = vsel %vm11763_vm0, %v3958_v53, %v3962_v48  ;;  %v3972_v28 = vrot.slane %v3970_v37, 5  ;;  %v4617_v14 = vshll.u32 %v12320_v7, 16 }
 0x453   : > { %6803 = vmatmul.mubr.bf16.gmra.mrb[232].mxu0 %v7781_v6  ;;  %8935 = vmatprep.subr.bf16.mxu1 %v9271_v8  ;;  %v4376_v6 = vrot.slane %v12302_v27, 5  ;;  %v3967_v15 = vor.u32 %v3966_v21, %v3962_v48  ;;  %v4374_v49 = vsel %vm11722_vm13, %v7654_v22, %v4373_v58  ;;  %v4375_v38 = vrot.slane %v4373_v58, 4  ;;  %v12340_v37 = vld [vmem:[#allocation2 + $0x44] sm:$0x1] }
 0x454   : > { %v7782_v32 = vcombine.low %v12273_v62, %v12278_v12  ;;  %6810 = vmatprep.mubr.bf16.mxu0 %v7798_v39  ;;  %v4608_v55 = vshrl.u32 %v12318_v17, 16  ;;  %v4611_v35 = vshll.u32 %v12318_v17, 16  ;;  %v4621_v0 = vshrl.u32 %v12320_v7, 16 }
 0x455   : > { %v3968_v40 = vrot.slane %v3967_v15, 4  ;;  %v4377_v29 = vsel %vm11722_vm13, %v4375_v38, %v4376_v6  ;;  %v4627_v19 = vshll.u32 %v4499_v47, 16  ;;  %v3981_v62 = vor.u32 %v11835_v33, %v11812_v16  ;;  %v9281_v6 = vld [vmem:[#allocation11 + $0x230] sm:$0xff]   ;;  %v9294_v47 = vld [vmem:[#allocation2 + $0x40] sm:$0xf] }
 0x456   : > { %8936 = vmatpush3.bf16.msra.mxu1 %v9271_v8  ;;  %v7766_v8 = vcombine.low %v4374_v49, %v4377_v29  ;;  %v4610_v42 = vrot.slane %v4608_v55, 4  ;;  %v4613_v21 = vrot.slane %v4611_v35, 5  ;;  %v4619_v53 = vrot.slane %v4617_v14, 5  ;;  %v12345_v49 = vld [vmem:[#allocation2 + $0x54] sm:$0xf] }
 0x457   : > { %8937 = vmatprep.subr.bf16.mxu1 %v9275_v1  ;;  %v3973_v12 = vsel %vm11763_vm0, %v3968_v40, %v3972_v28  ;;  %v4623_v26 = vrot.slane %v4621_v0, 4  ;;  %v4629_v48 = vrot.slane %v4627_v19, 5  ;;  %v3982_v61 = vrot.slane %v3981_v62, 4  ;;  %v4500_v19 = vld [vmem:[#allocation2 + $0x5c] sm:$0x1] }
 0x458   : > { %v7749_v13 = vcombine.low %v3963_v34, %v3973_v12  ;;  %v4614_v22 = vor.u32 %v4613_v21, %v4610_v42  ;;  %v3984_v58 = vshll.u32 %v9293_v3, 16  ;;  %v13802_v16 = vshrl.u32 %v11803_v44, 16  ;;  %v12350_v3 = vld [vmem:[#allocation2 + $0x58] sm:$0xf]  ;;  %v4900_v42 = vld [vmem:[#allocation2 + $0x54] sm:$0xe] }
 0x459   : > { %v4624_v39 = vor.u32 %v4623_v26, %v4619_v53  ;;  %v3994_v15 = vshll.u32 %v12302_v27, 16  ;;  %v7655_v34 = vrot.slane %v4290_v50, 9  ;;  %v4380_v28 = vrot.slane %v9294_v47, 5 }
 0x45a   : > { %8938 = vmatpush3.bf16.msra.mxu1 %v9275_v1  ;;  %v3990_v33 = vrot.slane %v13802_v16, 4  ;;  %v4615_v1 = vrot.slane %v4614_v22, 4  ;;  %v3986_v38 = vrot.slane %v3984_v58, 5  ;;  %v7783_v44 = vcombine.low %v12318_v17, %v12320_v7  ;;  %v9284_v17 = vld [vmem:[#allocation11 + $0x238] sm:$0xff]  }
 0x45b   : > { %6811 = vmatmul.mubr.bf16.gmra.mrb[236].mxu0 %v7782_v32  ;;  %8939 = vmatprep.subr.bf16.mxu1 %v9278_v59  ;;  %v4383_v32 = vrot.slane %v12340_v37, 5  ;;  %v4625_v40 = vrot.slane %v4624_v39, 4  ;;  %v3996_v55 = vrot.slane %v3994_v15, 5  ;;  %v4381_v27 = vsel %vm11722_vm13, %v7655_v34, %v4380_v28 }
 0x45c   : > { %6642 = vmatmul.mubr.bf16.gmra.mrb[200].mxu1 %v7749_v13  ;;  %v4382_v35 = vrot.slane %v4380_v28, 4  ;;  %v4620_v14 = vsel %vm11763_vm0, %v4615_v1, %v4619_v53  ;;  %v3987_v29 = vsel %vm11763_vm0, %v3982_v61, %v3986_v38  ;;  %v3991_v0 = vor.u32 %v3990_v33, %v3986_v38  ;;  %v4291_v38 = vld [vmem:[#allocation2 + $0x48] sm:$0xe] }
 0x45d   : > { %6649 = vmatprep.mubr.bf16.mxu1 %v7766_v8  ;;  %v4632_v62 = vshrl.u32 %v12345_v49, 16  ;;  %v4630_v7 = vsel %vm11763_vm0, %v4625_v40, %v4629_v48  ;;  %v4641_v8 = vshll.u32 %v12350_v3, 16  ;;  %v4645_v61 = vshrl.u32 %v12350_v3, 16 }
 0x45e   : > { %8940 = vmatpush3.bf16.msra.mxu1 %v9278_v59  ;;  %v4384_v12 = vsel %vm11722_vm13, %v4382_v35, %v4383_v32  ;;  %v4635_v59 = vshll.u32 %v12345_v49, 16  ;;  %v7799_v21 = vcombine.low %v4620_v14, %v4630_v7  ;;  %v3992_v50 = vrot.slane %v3991_v0, 4  ;;  %v3891_v0 = vld [vmem:[#allocation2 + $0x50] sm:$0x1] }
 0x45f   : > { %8941 = vmatprep.subr.bf16.mxu1 %v9281_v6  ;;  %v7767_v13 = vcombine.low %v4381_v27, %v4384_v12  ;;  %v4634_v53 = vrot.slane %v4632_v62, 4  ;;  %v4643_v22 = vrot.slane %v4641_v8, 5  ;;  %v4651_v58 = vshll.u32 %v4500_v19, 16 }
 0x460   : > { %v4637_v26 = vrot.slane %v4635_v59, 5  ;;  %6818 = vmatprep.mubr.bf16.mxu0 %v7799_v21  ;;  %v3997_v48 = vsel %vm11763_vm0, %v3992_v50, %v3996_v55  ;;  %v7672_v16 = vrot.slane %v4900_v42, 9  ;;  %v4996_v33 = vrot.slane %v12350_v3, 5  ;;  %v12382_v59 = vld [vmem:[#allocation2 + $0x60] sm:$0xf] }
 0x461   : > { %v4999_v39 = vrot.slane %v4500_v19, 5  ;;  %v7750_v15 = vcombine.low %v3987_v29, %v3997_v48  ;;  %v4647_v28 = vrot.slane %v4645_v61, 4  ;;  %v4653_v1 = vrot.slane %v4651_v58, 5  ;;  %v9295_v42 = vld [vmem:[#allocation2 + $0x4c] sm:$0xf] }
 0x462   : > { %8942 = vmatpush3.bf16.msra.mxu1 %v9281_v6  ;;  %v4638_v34 = vor.u32 %v4637_v26, %v4634_v53  ;;  %v12371_v32 = vsel %vm11722_vm13, %v7672_v16, %v4996_v33  ;;  %v4998_v6 = vrot.slane %v4996_v33, 4  ;;  %v4005_v40 = vor.u32 %v11871_v52, %v11854_v43  ;;  %v4501_v26 = vld [vmem:[#allocation2 + $0x68] sm:$0x1] }
 0x463   : > { %8943 = vmatprep.subr.bf16.mxu1 %v9284_v17  ;;  %6819 = vmatmul.mubr.bf16.gmra.mrb[240].mxu0 %v7783_v44  ;;  %13803 = vst [vmem:[#allocation74_spill] sm:$0xff] %v12371_v32  ;;  %v4008_v55 = vshll.u32 %v9294_v47, 16  ;;  %v4648_v35 = vor.u32 %v4647_v28, %v4643_v22  ;;  %v13804_v14 = vshrl.u32 %v11837_v4, 16  ;;  %v4018_v44 = vshll.u32 %v12340_v37, 16 }
 0x464   : > { %6650 = vmatmul.mubr.bf16.gmra.mrb[204].mxu1 %v7750_v15  ;;  %v4639_v27 = vrot.slane %v4638_v34, 4  ;;  %v12380_v19 = vsel %vm11722_vm13, %v4998_v6, %v4999_v39  ;;  %v4006_v62 = vrot.slane %v4005_v40, 4  ;;  %v7656_v12 = vrot.slane %v4291_v38, 9  ;;  %v4292_v6 = vld [vmem:[#allocation2 + $0x54] sm:$0xe] }
 0x465   : > { %v4014_v29 = vrot.slane %v13804_v14, 4  ;;  %6657 = vmatprep.mubr.bf16.mxu1 %v7767_v13  ;;  %13805 = vst [vmem:[#allocation75_spill] sm:$0xff] %v12380_v19  ;;  %v4010_v7 = vrot.slane %v4008_v55, 5  ;;  %v4649_v52 = vrot.slane %v4648_v35, 4  ;;  %v4020_v37 = vrot.slane %v4018_v44, 5 }
 0x466   : > { %8944 = vmatpush3.bf16.msra.mxu1 %v9284_v17  ;;  %v4644_v43 = vsel %vm11763_vm0, %v4639_v27, %v4643_v22  ;;  %v4387_v21 = vrot.slane %v9295_v42, 5  ;;  %v4390_v50 = vrot.slane %v3891_v0, 5  ;;  %v12390_v13 = vld [vmem:[#allocation2 + $0x64] sm:$0xf]  ;;  %v7784_v53 = vcombine.low %v12345_v49, %v12350_v3  ;;  %v12408_v14 = vld [vmem:[#allocation2 + $0x5c] sm:$0x1] }
 0x467   : > { %v4011_v47 = vsel %vm11763_vm0, %v4006_v62, %v4010_v7  ;;  %v4015_v8 = vor.u32 %v4014_v29, %v4010_v7  ;;  %v4654_v17 = vsel %vm11763_vm0, %v4649_v52, %v4653_v1  ;;  %v4656_v22 = vshrl.u32 %v12382_v59, 16 }
 0x468   : > { %v4659_v61 = vshll.u32 %v12382_v59, 16  ;;  %v7800_v58 = vcombine.low %v4644_v43, %v4654_v17  ;;  %v4388_v16 = vsel %vm11722_vm13, %v7656_v12, %v4387_v21  ;;  %v4389_v33 = vrot.slane %v4387_v21, 4  ;;  %v12410_v12 = vld [vmem:[#allocation2 + $0x6c] sm:$0xf]  ;;  %v9296_v21 = vld [vmem:[#allocation2 + $0x58] sm:$0xf] }
 0x469   : > { %v4016_v48 = vrot.slane %v4015_v8, 4  ;;  %v4658_v39 = vrot.slane %v4656_v22, 4  ;;  %v4665_v34 = vshll.u32 %v12390_v13, 16  ;;  %v4669_v28 = vshrl.u32 %v12390_v13, 16 }
 0x46a   : > { %v4661_v15 = vrot.slane %v4659_v61, 5  ;;  %6826 = vmatprep.mubr.bf16.mxu0 %v7800_v58  ;;  %v4391_v3 = vsel %vm11722_vm13, %v4389_v33, %v4390_v50  ;;  %v4675_v1 = vshll.u32 %v4501_v26, 16  ;;  %v4029_v38 = vor.u32 %v11900_v56, %v11883_v57 }
 0x46b   : > { %v4021_v49 = vsel %vm11763_vm0, %v4016_v48, %v4020_v37  ;;  %v7768_v55 = vcombine.low %v4388_v16, %v4391_v3  ;;  %6827 = vmatmul.mubr.bf16.gmra.mrb[244].mxu0 %v7784_v53  ;;  %v4667_v35 = vrot.slane %v4665_v34, 5  ;;  %v4671_v29 = vrot.slane %v4669_v28, 4  ;;  %v12415_v53 = vld [vmem:[#allocation2 + $0x70] sm:$0xf]  ;;  %v4902_v3 = vld [vmem:[#allocation2 + $0x6c] sm:$0xe] }
 0x46c   : > { %v7751_v40 = vcombine.low %v4011_v47, %v4021_v49  ;;  %v4662_v27 = vor.u32 %v4661_v15, %v4658_v39  ;;  %v4677_v44 = vrot.slane %v4675_v1, 5  ;;  %v4030_v62 = vrot.slane %v4029_v38, 4 }
 0x46d   : > { %v4032_v7 = vshll.u32 %v9295_v42, 16  ;;  %v13806_v52 = vshrl.u32 %v11868_v46, 16  ;;  %v4042_v57 = vshll.u32 %v3891_v0, 16  ;;  %v7657_v56 = vrot.slane %v4292_v6, 9  ;;  %v4502_v46 = vld [vmem:[#allocation2 + $0x74] sm:$0x1] }
 0x46e   : > { %6658 = vmatmul.mubr.bf16.gmra.mrb[208].mxu1 %v7751_v40  ;;  %v4663_v43 = vrot.slane %v4662_v27, 4  ;;  %v4672_v47 = vor.u32 %v4671_v29, %v4667_v35  ;;  %v4394_v50 = vrot.slane %v9296_v21, 5  ;;  %v4397_v17 = vrot.slane %v12408_v14, 5 }
 0x46f   : > { %v4038_v37 = vrot.slane %v13806_v52, 4  ;;  %6665 = vmatprep.mubr.bf16.mxu1 %v7768_v55  ;;  %v4034_v8 = vrot.slane %v4032_v7, 5  ;;  %v4044_v26 = vrot.slane %v4042_v57, 5  ;;  %v7785_v22 = vcombine.low %v12382_v59, %v12390_v13 }
 0x470   : > { %v4668_v42 = vsel %vm11763_vm0, %v4663_v43, %v4667_v35  ;;  %v4680_v0 = vshrl.u32 %v12410_v12, 16  ;;  %v4673_v61 = vrot.slane %v4672_v47, 4  ;;  %v4395_v16 = vsel %vm11722_vm13, %v7657_v56, %v4394_v50  ;;  %v4293_v47 = vld [vmem:[#allocation2 + $0x60] sm:$0xe] }
 0x471   : > { %v4035_v58 = vsel %vm11763_vm0, %v4030_v62, %v4034_v8  ;;  %v4039_v48 = vor.u32 %v4038_v37, %v4034_v8  ;;  %v4396_v33 = vrot.slane %v4394_v50, 4  ;;  %v4683_v15 = vshll.u32 %v12410_v12, 16 }
 0x472   : > { %v4682_v39 = vrot.slane %v4680_v0, 4  ;;  %v4689_v34 = vshll.u32 %v12415_v53, 16  ;;  %v4678_v59 = vsel %vm11763_vm0, %v4673_v61, %v4677_v44  ;;  %v4693_v28 = vshrl.u32 %v12415_v53, 16 }
 0x473   : > { %v4040_v13 = vrot.slane %v4039_v48, 4  ;;  %v4699_v49 = vshll.u32 %v4502_v46, 16  ;;  %v7801_v1 = vcombine.low %v4668_v42, %v4678_v59  ;;  %v4398_v38 = vsel %vm11722_vm13, %v4396_v33, %v4397_v17  ;;  %v9297_v48 = vld [vmem:[#allocation2 + $0x64] sm:$0xf]  ;;  %v12451_v33 = vld [vmem:[#allocation2 + $0x78] sm:$0xf] }
 0x474   : > { %v4685_v6 = vrot.slane %v4683_v15, 5  ;;  %v4691_v40 = vrot.slane %v4689_v34, 5  ;;  %v7769_v27 = vcombine.low %v4395_v16, %v4398_v38  ;;  %v4695_v35 = vrot.slane %v4693_v28, 4  ;;  %v12459_v34 = vld [vmem:[#allocation2 + $0x7c] sm:$0xf] }
 0x475   : > { %v4045_v55 = vsel %vm11763_vm0, %v4040_v13, %v4044_v26  ;;  %v4701_v29 = vrot.slane %v4699_v49, 5  ;;  %6834 = vmatprep.mubr.bf16.mxu0 %v7801_v1  ;;  %v7674_v7 = vrot.slane %v4902_v3, 9  ;;  %v5010_v43 = vrot.slane %v12415_v53, 5  ;;  %v4503_v59 = vld [vmem:[#allocation2 + $0x80] sm:$0x1] }
 0x476   : > { %v7752_v62 = vcombine.low %v4035_v58, %v4045_v55  ;;  %v4686_v44 = vor.u32 %v4685_v6, %v4682_v39  ;;  %6835 = vmatmul.mubr.bf16.gmra.mrb[248].mxu0 %v7785_v22  ;;  %v4696_v52 = vor.u32 %v4695_v35, %v4691_v40  ;;  %v5013_v37 = vrot.slane %v4502_v46, 5 }
 0x477   : > { %v4053_v57 = vor.u32 %v11927_v23, %v11912_v2  ;;  %v4056_v56 = vshll.u32 %v9296_v21, 16  ;;  %v12440_v50 = vsel %vm11722_vm13, %v7674_v7, %v5010_v43  ;;  %v5012_v17 = vrot.slane %v5010_v43, 4  ;;  %v3893_v21 = vld [vmem:[#allocation2 + $0x68] sm:$0x1] }
 0x478   : > { %6666 = vmatmul.mubr.bf16.gmra.mrb[212].mxu1 %v7752_v62  ;;  %v4687_v8 = vrot.slane %v4686_v44, 4  ;;  %13807 = vst [vmem:[#allocation76_spill] sm:$0xff] %v12440_v50  ;;  %v13808_v42 = vshrl.u32 %v11898_v18, 16  ;;  %v4697_v0 = vrot.slane %v4696_v52, 4  ;;  %v4066_v46 = vshll.u32 %v12408_v14, 16 }
 0x479   : > { %6673 = vmatprep.mubr.bf16.mxu1 %v7769_v27  ;;  %v4054_v22 = vrot.slane %v4053_v57, 4  ;;  %v4058_v61 = vrot.slane %v4056_v56, 5  ;;  %v12449_v23 = vsel %vm11722_vm13, %v5012_v17, %v5013_v37  ;;  %v7658_v58 = vrot.slane %v4293_v47, 9  ;;  %v12475_v56 = vld [vmem:[#allocation2 + $0x74] sm:$0x1] }
 0x47a   : > { %v4062_v26 = vrot.slane %v13808_v42, 4  ;;  %v4692_v2 = vsel %vm11763_vm0, %v4687_v8, %v4691_v40  ;;  %13809 = vst [vmem:[#allocation77_spill] sm:$0xff] %v12449_v23  ;;  %v4401_v16 = vrot.slane %v9297_v48, 5  ;;  %v4702_v18 = vsel %vm11763_vm0, %v4697_v0, %v4701_v29 }
 0x47b   : > { %v4059_v14 = vsel %vm11763_vm0, %v4054_v22, %v4058_v61  ;;  %v7802_v13 = vcombine.low %v4692_v2, %v4702_v18  ;;  %v4068_v28 = vrot.slane %v4066_v46, 5  ;;  %v4404_v38 = vrot.slane %v3893_v21, 5  ;;  %v9298_v18 = vld [vmem:[#allocation2 + $0x70] sm:$0xf] }
 0x47c   : > { %v4063_v15 = vor.u32 %v4062_v26, %v4058_v61  ;;  %v4402_v49 = vsel %vm11722_vm13, %v7658_v58, %v4401_v16  ;;  %v4403_v3 = vrot.slane %v4401_v16, 4  ;;  %v7786_v6 = vcombine.low %v12410_v12, %v12415_v53  ;;  %v4294_v53 = vld [vmem:[#allocation2 + $0x6c] sm:$0xe]  ;;  %v12479_v26 = vld [vmem:[#allocation2 + $0x84] sm:$0xf] }
 0x47d   : > { %v4704_v40 = vshrl.u32 %v12451_v33, 16  ;;  %6842 = vmatprep.mubr.bf16.mxu0 %v7802_v13  ;;  %v4707_v55 = vshll.u32 %v12451_v33, 16  ;;  %v4713_v27 = vshll.u32 %v12459_v34, 16  ;;  %v4717_v35 = vshrl.u32 %v12459_v34, 16 }
 0x47e   : > { %v4064_v1 = vrot.slane %v4063_v15, 4  ;;  %v4723_v29 = vshll.u32 %v4503_v59, 16  ;;  %v4405_v44 = vsel %vm11722_vm13, %v4403_v3, %v4404_v38  ;;  %6843 = vmatmul.mubr.bf16.gmra.mrb[252].mxu0 %v7786_v6  ;;  %v7787_v12 = vcombine.low %v12451_v33, %v12459_v34 }
 0x47f   : > { %v4706_v7 = vrot.slane %v4704_v40, 4  ;;  %v7770_v52 = vcombine.low %v4402_v49, %v4405_v44  ;;  %v4709_v37 = vrot.slane %v4707_v55, 5  ;;  %v4715_v57 = vrot.slane %v4713_v27, 5 }
 0x480   : > { %v4069_v62 = vsel %vm11763_vm0, %v4064_v1, %v4068_v28  ;;  %v4719_v47 = vrot.slane %v4717_v35, 4  ;;  %v4725_v8 = vrot.slane %v4723_v29, 5  ;;  %v4077_v17 = vor.u32 %v11953_v63, %v11939_v36  ;;  %v12484_v63 = vld [vmem:[#allocation2 + $0x88] sm:$0xf]  ;;  %v4504_v28 = vld [vmem:[#allocation2 + $0x8c] sm:$0x1] }
 0x481   : > { %v7753_v43 = vcombine.low %v4059_v14, %v4069_v62  ;;  %v4080_v42 = vshll.u32 %v9297_v48, 16  ;;  %v4710_v0 = vor.u32 %v4709_v37, %v4706_v7  ;;  %v13810_v22 = vshrl.u32 %v11925_v24, 16  ;;  %v4904_v35 = vld [vmem:[#allocation2 + $0x84] sm:$0xe] }
 0x482   : > { %v4090_v46 = vshll.u32 %v3893_v21, 16  ;;  %v7659_v2 = vrot.slane %v4294_v53, 9  ;;  %v4720_v58 = vor.u32 %v4719_v47, %v4715_v57  ;;  %v4078_v16 = vrot.slane %v4077_v17, 4 }
 0x483   : > { %6674 = vmatmul.mubr.bf16.gmra.mrb[216].mxu1 %v7753_v43  ;;  %v4086_v61 = vrot.slane %v13810_v22, 4  ;;  %v4082_v33 = vrot.slane %v4080_v42, 5  ;;  %v4408_v14 = vrot.slane %v9298_v18, 5  ;;  %v4711_v15 = vrot.slane %v4710_v0, 4 }
 0x484   : > { %6681 = vmatprep.mubr.bf16.mxu1 %v7770_v52  ;;  %v4092_v34 = vrot.slane %v4090_v46, 5  ;;  %v4411_v36 = vrot.slane %v12475_v56, 5  ;;  %v4728_v48 = vshrl.u32 %v12479_v26, 16  ;;  %v4721_v59 = vrot.slane %v4720_v58, 4  ;;  %v4295_v46 = vld [vmem:[#allocation2 + $0x78] sm:$0xe] }
 0x485   : > { %v4083_v24 = vsel %vm11763_vm0, %v4078_v16, %v4082_v33  ;;  %v4087_v21 = vor.u32 %v4086_v61, %v4082_v33  ;;  %v4409_v13 = vsel %vm11722_vm13, %v7659_v2, %v4408_v14  ;;  %v4716_v49 = vsel %vm11763_vm0, %v4711_v15, %v4715_v57 }
 0x486   : > { %v4410_v3 = vrot.slane %v4408_v14, 4  ;;  %v4730_v1 = vrot.slane %v4728_v48, 4  ;;  %v4731_v38 = vshll.u32 %v12479_v26, 16  ;;  %v4726_v6 = vsel %vm11763_vm0, %v4721_v59, %v4725_v8 }
 0x487   : > { %v4088_v40 = vrot.slane %v4087_v21, 4  ;;  %v4737_v55 = vshll.u32 %v12484_v63, 16  ;;  %v4741_v27 = vshrl.u32 %v12484_v63, 16  ;;  %v7803_v29 = vcombine.low %v4716_v49, %v4726_v6  ;;  %v9299_v21 = vld [vmem:[#allocation2 + $0x7c] sm:$0xf] }
 0x488   : > { %v4412_v62 = vsel %vm11722_vm13, %v4410_v3, %v4411_v36  ;;  %v4733_v44 = vrot.slane %v4731_v38, 5  ;;  %v4747_v7 = vshll.u32 %v4504_v28, 16  ;;  %v7676_v17 = vrot.slane %v4904_v35, 9  ;;  %v4505_v38 = vld [vmem:[#allocation2 + $0x98] sm:$0x1] }
 0x489   : > { %v4093_v53 = vsel %vm11763_vm0, %v4088_v40, %v4092_v34  ;;  %v7771_v43 = vcombine.low %v4409_v13, %v4412_v62  ;;  %v4739_v52 = vrot.slane %v4737_v55, 5  ;;  %v4743_v37 = vrot.slane %v4741_v27, 4  ;;  %6850 = vmatprep.mubr.bf16.mxu0 %v7803_v29 }
 0x48a   : > { %v7754_v57 = vcombine.low %v4083_v24, %v4093_v53  ;;  %v4734_v47 = vor.u32 %v4733_v44, %v4730_v1  ;;  %v4749_v8 = vrot.slane %v4747_v7, 5  ;;  %6851 = vmatmul.mubr.bf16.gmra.mrb[0].mxu0 %v7787_v12  ;;  %v5024_v0 = vrot.slane %v12484_v63, 5 }
 0x48b   : > { %v4744_v42 = vor.u32 %v4743_v37, %v4739_v52  ;;  %v5027_v22 = vrot.slane %v4504_v28, 5  ;;  %v7788_v61 = vcombine.low %v12479_v26, %v12484_v63  ;;  %v4101_v58 = vor.u32 %v11979_v30, %v11965_v41  ;;  %v3895_v26 = vld [vmem:[#allocation2 + $0x80] sm:$0x1]  ;;  %v12516_v30 = vld [vmem:[#allocation2 + $0x90] sm:$0xf] }
 0x48c   : > { %6682 = vmatmul.mubr.bf16.gmra.mrb[220].mxu1 %v7754_v57  ;;  %v4735_v2 = vrot.slane %v4734_v47, 4  ;;  %v4104_v16 = vshll.u32 %v9298_v18, 16  ;;  %v13811_v33 = vshrl.u32 %v11955_v54, 16  ;;  %v12511_v12 = vsel %vm11722_vm13, %v7676_v17, %v5024_v0 }
 0x48d   : > { %6689 = vmatprep.mubr.bf16.mxu1 %v7771_v43  ;;  %v4745_v15 = vrot.slane %v4744_v42, 4  ;;  %13812 = vst [vmem:[#allocation78_spill] sm:$0xff] %v12511_v12  ;;  %v5026_v34 = vrot.slane %v5024_v0, 4  ;;  %v4114_v36 = vshll.u32 %v12475_v56, 16  ;;  %v4102_v48 = vrot.slane %v4101_v58, 4 }
 0x48e   : > { %v4110_v14 = vrot.slane %v13811_v33, 4  ;;  %v4740_v63 = vsel %vm11763_vm0, %v4735_v2, %v4739_v52  ;;  %v4106_v59 = vrot.slane %v4104_v16, 5  ;;  %v7660_v41 = vrot.slane %v4295_v46, 9  ;;  %v12524_v56 = vld [vmem:[#allocation2 + $0x94] sm:$0xf] }
 0x48f   : > { %v4750_v54 = vsel %vm11763_vm0, %v4745_v15, %v4749_v8  ;;  %v12522_v18 = vsel %vm11722_vm13, %v5026_v34, %v5027_v22  ;;  %v4116_v24 = vrot.slane %v4114_v36, 5  ;;  %v4415_v13 = vrot.slane %v9299_v21, 5  ;;  %v4296_v22 = vld [vmem:[#allocation2 + $0x84] sm:$0xe]  ;;  %v12552_v33 = vld [vmem:[#allocation2 + $0x8c] sm:$0x1] }
 0x490   : > { %13813 = vst [vmem:[#allocation79_spill] sm:$0xff] %v12522_v18  ;;  %v7804_v28 = vcombine.low %v4740_v63, %v4750_v54  ;;  %v4107_v3 = vsel %vm11763_vm0, %v4102_v48, %v4106_v59  ;;  %v4111_v1 = vor.u32 %v4110_v14, %v4106_v59  ;;  %v4418_v55 = vrot.slane %v3895_v26, 5  ;;  %v13814_v34 = vld [vmem:[#allocation54_spill] sm:$0xff]  ;;  %v12556_v59 = vld [vmem:[#allocation2 + $0x9c] sm:$0xf] }
 0x491   : > { %v4416_v6 = vsel %vm11722_vm13, %v7660_v41, %v4415_v13  ;;  %v4417_v40 = vrot.slane %v4415_v13, 4  ;;  %v4752_v27 = vshrl.u32 %v12516_v30, 16  ;;  %v4755_v62 = vshll.u32 %v12516_v30, 16  ;;  %v12558_v13 = vld [vmem:[#allocation2 + $0x88] sm:$0xf] }
 0x492   : > { %6858 = vmatprep.mubr.bf16.mxu0 %v7804_v28  ;;  %v4112_v29 = vrot.slane %v4111_v1, 4  ;;  %v4761_v44 = vshll.u32 %v12524_v56, 16  ;;  %v4765_v7 = vshrl.u32 %v12524_v56, 16  ;;  %v4771_v37 = vshll.u32 %v4505_v38, 16  ;;  %v12562_v1 = vld [vmem:[#allocation2 + $0xa0] sm:$0xf] }
 0x493   : > { %v12533_v35 = vpop.f32.mrb[160].mxu0  ;;  %v4419_v43 = vsel %vm11722_vm13, %v4417_v40, %v4418_v55  ;;  %6859 = vmatmul.mubr.bf16.gmra.mrb[4].mxu0 %v7788_v61  ;;  %v4754_v52 = vrot.slane %v4752_v27, 4  ;;  %v7789_v57 = vcombine.low %v12516_v30, %v12524_v56  ;;  %v4757_v42 = vrot.slane %v4755_v62, 5  ;;  %v4506_v62 = vld [vmem:[#allocation2 + $0xa4] sm:$0x1]  ;;  %v13817_v56 = vld [vmem:[#allocation56_spill] sm:$0xff] }
 0x494   : > { %v12538_v53 = vpop.f32.mrb[161].mxu0  ;;  %v4117_v8 = vsel %vm11763_vm0, %v4112_v29, %v4116_v24  ;;  %v7772_v17 = vcombine.low %v4416_v6, %v4419_v43  ;;  %v4763_v0 = vrot.slane %v4761_v44, 5  ;;  %v4767_v58 = vrot.slane %v4765_v7, 4  ;;  %v4906_v7 = vld [vmem:[#allocation2 + $0x9c] sm:$0xe] }
 0x495   : > { %v12544_v47 = vpop.f32.mrb[162].mxu0  ;;  %v7755_v2 = vcombine.low %v4107_v3, %v4117_v8  ;;  %v4773_v16 = vrot.slane %v4771_v37, 5  ;;  %v4125_v61 = vor.u32 %v11997_v45, %v11992_v9  ;;  %v4758_v14 = vor.u32 %v4757_v42, %v4754_v52 }
 0x496   : > { %v12548_v46 = vpop.f32.mrb[163].mxu0  ;;  %v4128_v15 = vshll.u32 %v9299_v21, 16  ;;  %v13815_v36 = vshrl.u32 %v13814_v34, 16  ;;  %v4138_v48 = vshll.u32 %v3895_v26, 16  ;;  %v4768_v41 = vor.u32 %v4767_v58, %v4763_v0 }
 0x497   : > { %6690 = vmatmul.mubr.bf16.gmra.mrb[224].mxu1 %v7755_v2  ;;  %v4126_v54 = vrot.slane %v4125_v61, 4  ;;  %v7661_v24 = vrot.slane %v4296_v22, 9  ;;  %v4422_v28 = vrot.slane %v12558_v13, 5  ;;  %v4759_v9 = vrot.slane %v4758_v14, 4 }
 0x498   : > { %v4134_v63 = vrot.slane %v13815_v36, 4  ;;  %6697 = vmatprep.mubr.bf16.mxu1 %v7772_v17  ;;  %v4130_v45 = vrot.slane %v4128_v15, 5  ;;  %v4140_v3 = vrot.slane %v4138_v48, 5  ;;  %v4425_v21 = vrot.slane %v12552_v33, 5 }
 0x499   : > { %v4769_v38 = vrot.slane %v4768_v41, 4  ;;  %v4423_v26 = vsel %vm11722_vm13, %v7661_v24, %v4422_v28  ;;  %v4424_v6 = vrot.slane %v4422_v28, 4  ;;  %v4776_v40 = vshrl.u32 %v12556_v59, 16 }
 0x49a   : > { %v4764_v55 = vsel %vm11763_vm0, %v4759_v9, %v4763_v0  ;;  %v4131_v27 = vsel %vm11763_vm0, %v4126_v54, %v4130_v45  ;;  %v4135_v29 = vor.u32 %v4134_v63, %v4130_v45  ;;  %v4779_v44 = vshll.u32 %v12556_v59, 16 }
 0x49b   : > { %v4774_v52 = vsel %vm11763_vm0, %v4769_v38, %v4773_v16  ;;  %v4426_v37 = vsel %vm11722_vm13, %v4424_v6, %v4425_v21  ;;  %v4778_v8 = vrot.slane %v4776_v40, 4  ;;  %v4785_v17 = vshll.u32 %v12562_v1, 16 }
 0x49c   : > { %v12572_v43 = vpop.f32.mrb[128].mxu1  ;;  %v7805_v22 = vcombine.low %v4764_v55, %v4774_v52  ;;  %v4136_v2 = vrot.slane %v4135_v29, 4  ;;  %v7773_v58 = vcombine.low %v4423_v26, %v4426_v37  ;;  %v4781_v61 = vrot.slane %v4779_v44, 5  ;;  %v4297_v44 = vld [vmem:[#allocation2 + $0x90] sm:$0xe] }
 0x49d   : > { %v12579_v42 = vpop.f32.mrb[129].mxu1  ;;  %v12581_v0 = vpop.f32.mrb[164].mxu0  ;;  %v4787_v34 = vrot.slane %v4785_v17, 5  ;;  %v4789_v16 = vshrl.u32 %v12562_v1, 16  ;;  %v4795_v36 = vshll.u32 %v4506_v62, 16  ;;  %v7678_v63 = vrot.slane %v4906_v7, 9 }
 0x49e   : > { %v12583_v14 = vpop.f32.mrb[130].mxu1  ;;  %v12585_v15 = vpop.f32.mrb[165].mxu0  ;;  %6866 = vmatprep.mubr.bf16.mxu0 %v7805_v22  ;;  %v4141_v54 = vsel %vm11763_vm0, %v4136_v2, %v4140_v3  ;;  %v4782_v24 = vor.u32 %v4781_v61, %v4778_v8  ;;  %v5038_v28 = vrot.slane %v12562_v1, 5  ;;  %v5041_v9 = vrot.slane %v4506_v62, 5  ;;  %v12628_v37 = vld [vmem:[#allocation2 + $0xa8] sm:$0xf] }
 0x49f   : > { %v12588_v48 = vpop.f32.mrb[131].mxu1  ;;  %v12590_v41 = vpop.f32.mrb[166].mxu0  ;;  %v7756_v21 = vcombine.low %v4131_v27, %v4141_v54  ;;  %6867 = vmatmul.mubr.bf16.gmra.mrb[8].mxu0 %v7789_v57  ;;  %v4791_v38 = vrot.slane %v4789_v16, 4  ;;  %v4797_v26 = vrot.slane %v4795_v36, 5  ;;  %v7790_v6 = vcombine.low %v12556_v59, %v12562_v1  ;;  %v13818_v57 = vld [vmem:[#allocation58_spill] sm:$0xff] }
 0x4a0   : > { %v12595_v45 = vpop.f32.mrb[167].mxu0  ;;  %v4783_v40 = vrot.slane %v4782_v24, 4  ;;  %v12604_v3 = vsel %vm11722_vm13, %v7678_v63, %v5038_v28  ;;  %v5040_v55 = vrot.slane %v5038_v28, 4  ;;  %v12608_v29 = vadd.f32 %v12538_v53, %v12533_v35  ;;  %v12617_v1 = vld [vmem:[#allocation2 + $0x98] sm:$0x1]  ;;  %v13820_v53 = vld [vmem:[#allocation55_spill] sm:$0xff] }
 0x4a1   : > { %13816 = vst [vmem:[#allocation54_spill] sm:$0xff] %v12604_v3  ;;  %6698 = vmatmul.mubr.bf16.gmra.mrb[228].mxu1 %v7756_v21  ;;  %v4792_v27 = vor.u32 %v4791_v38, %v4787_v34  ;;  %v12612_v30 = vadd.f32 %v12548_v46, %v12544_v47  ;;  %v4149_v62 = vor.u32 %v13818_v57, %v13817_v56  ;;  %v4152_v59 = vshll.u32 %v12558_v13, 16  ;;  %v12630_v8 = vld [vmem:[#allocation2 + $0xac] sm:$0xf]  ;;  %v9301_v63 = vld [vmem:[#allocation2 + $0x94] sm:$0xf] }
 0x4a2   : > { %6705 = vmatprep.mubr.bf16.mxu1 %v7773_v58  ;;  %v4788_v7 = vsel %vm11763_vm0, %v4783_v40, %v4787_v34  ;;  %v12623_v35 = vsel %vm11722_vm13, %v5040_v55, %v5041_v9  ;;  %v13821_v52 = vshrl.u32 %v13820_v53, 16  ;;  %v4162_v46 = vshll.u32 %v12552_v33, 16  ;;  %13822 = vst [vmem:[#allocation58_spill] sm:$0xff] %v12630_v8  ;;  %v12649_v40 = vld [vmem:[#allocation2 + $0xb0] sm:$0x1] }
 0x4a3   : > { %13819 = vst [vmem:[#allocation56_spill] sm:$0xff] %v12623_v35  ;;  %v4793_v17 = vrot.slane %v4792_v27, 4  ;;  %v4150_v2 = vrot.slane %v4149_v62, 4  ;;  %v4154_v58 = vrot.slane %v4152_v59, 5  ;;  %v7662_v36 = vrot.slane %v4297_v44, 9  ;;  %13823 = vst [vmem:[#allocation55_spill] sm:$0xff] %v12649_v40 }
 0x4a4   : > { %v4158_v47 = vrot.slane %v13821_v52, 4  ;;  %v12632_v13 = vpop.f32.mrb[132].mxu1  ;;  %v4164_v16 = vrot.slane %v4162_v46, 5  ;;  %v4429_v33 = vrot.slane %v9301_v63, 5  ;;  %v4432_v54 = vrot.slane %v12617_v1, 5 }
 0x4a5   : > { %v12636_v61 = vpop.f32.mrb[133].mxu1  ;;  %v12638_v34 = vpop.f32.mrb[168].mxu0  ;;  %v4798_v9 = vsel %vm11763_vm0, %v4793_v17, %v4797_v26  ;;  %v4155_v21 = vsel %vm11763_vm0, %v4150_v2, %v4154_v58  ;;  %v4800_v55 = vshrl.u32 %v12628_v37, 16  ;;  %v4803_v44 = vshll.u32 %v12628_v37, 16 }
 0x4a6   : > { %v12641_v24 = vpop.f32.mrb[134].mxu1  ;;  %v12643_v28 = vpop.f32.mrb[169].mxu0  ;;  %v4159_v38 = vor.u32 %v4158_v47, %v4154_v58  ;;  %v7806_v57 = vcombine.low %v4788_v7, %v4798_v9  ;;  %v4430_v62 = vsel %vm11722_vm13, %v7662_v36, %v4429_v33  ;;  %v4431_v59 = vrot.slane %v4429_v33, 4 }
 0x4a7   : > { %v12652_v27 = vpop.f32.mrb[135].mxu1  ;;  %v12654_v56 = vpop.f32.mrb[170].mxu0  ;;  %v4802_v52 = vrot.slane %v4800_v55, 4  ;;  %v4809_v47 = vshll.u32 %v12630_v8, 16  ;;  %v4813_v46 = vshrl.u32 %v12630_v8, 16  ;;  %v4805_v2 = vrot.slane %v4803_v44, 5 }
 0x4a8   : > { %v12659_v26 = vpop.f32.mrb[171].mxu0  ;;  %v4160_v53 = vrot.slane %v4159_v38, 4  ;;  %6874 = vmatprep.mubr.bf16.mxu0 %v7806_v57  ;;  %v4433_v17 = vsel %vm11722_vm13, %v4431_v59, %v4432_v54  ;;  %v4819_v7 = vshll.u32 %v12649_v40, 16  ;;  %v7791_v58 = vcombine.low %v12628_v37, %v12630_v8 }
 0x4a9   : > { %v7774_v33 = vcombine.low %v4430_v62, %v4433_v17  ;;  %6875 = vmatmul.mubr.bf16.gmra.mrb[12].mxu0 %v7790_v6  ;;  %v4811_v9 = vrot.slane %v4809_v47, 5  ;;  %v4815_v38 = vrot.slane %v4813_v46, 4  ;;  %v4806_v22 = vor.u32 %v4805_v2, %v4802_v52  ;;  %v4298_v62 = vld [vmem:[#allocation2 + $0x9c] sm:$0xe]  ;;  %v13825_v52 = vld [vmem:[#allocation59_spill] sm:$0xff]  ;;  %v13828_v17 = vld [vmem:[#allocation57_spill] sm:$0xff] }
 0x4aa   : > { %v4165_v36 = vsel %vm11763_vm0, %v4160_v53, %v4164_v16  ;;  %v4821_v49 = vrot.slane %v4819_v7, 5  ;;  %v8427_v57 = vadd.f32 %v12579_v42, %v12572_v43  ;;  %v12676_v44 = vadd.f32 %v12585_v15, %v12581_v0  ;;  %v13826_v0 = vld [vmem:[#allocation60_spill] sm:$0xff]  ;;  %v12693_v46 = vld [vmem:[#allocation2 + $0xb4] sm:$0xf] }
 0x4ab   : > { %v7757_v55 = vcombine.low %v4155_v21, %v4165_v36  ;;  %v4816_v59 = vor.u32 %v4815_v38, %v4811_v9  ;;  %v8430_v16 = vadd.f32 %v12588_v48, %v12583_v14  ;;  %v12682_v6 = vadd.f32 %v12595_v45, %v12590_v41  ;;  %v12684_v21 = vld [vmem:[#allocation2 + $0xa4] sm:$0x1] }
 0x4ac   : > { %v12672_v54 = vpop.f32.mrb[136].mxu1  ;;  %v4807_v43 = vrot.slane %v4806_v22, 4  ;;  %v12689_v42 = vadd.f32 %v12608_v29, %v8427_v57  ;;  %v4173_v15 = vor.u32 %v13826_v0, %v13825_v52  ;;  %v4176_v47 = vshll.u32 %v9301_v63, 16  ;;  %v12717_v52 = vld [vmem:[#allocation2 + $0xa0] sm:$0xf] }
 0x4ad   : > { %v12686_v53 = vpop.f32.mrb[137].mxu1  ;;  %6706 = vmatmul.mubr.bf16.gmra.mrb[232].mxu1 %v7757_v55  ;;  %v4817_v41 = vrot.slane %v4816_v59, 4  ;;  %v12700_v45 = vadd.f32 %v12612_v30, %v8430_v16  ;;  %v13829_v22 = vshrl.u32 %v13828_v17, 16  ;;  %v4186_v29 = vshll.u32 %v12617_v1, 16  ;;  %v4508_v17 = vld [vmem:[#allocation2 + $0xbc] sm:$0x1] }
 0x4ae   : > { %13824 = vst [vmem:[#allocation80_spill] sm:$0xff] %v12689_v42  ;;  %v12695_v14 = vpop.f32.mrb[172].mxu0  ;;  %v12697_v48 = vpop.f32.mrb[138].mxu1  ;;  %6713 = vmatprep.mubr.bf16.mxu1 %v7774_v33  ;;  %v4812_v63 = vsel %vm11763_vm0, %v4807_v43, %v4811_v9  ;;  %v4174_v38 = vrot.slane %v4173_v15, 4  ;;  %v4178_v55 = vrot.slane %v4176_v47, 5  ;;  %v7663_v57 = vrot.slane %v4298_v62, 9 }
 0x4af   : > { %13827 = vst [vmem:[#allocation59_spill] sm:$0xff] %v12700_v45  ;;  %v4182_v2 = vrot.slane %v13829_v22, 4  ;;  %v12705_v7 = vpop.f32.mrb[173].mxu0  ;;  %v12707_v36 = vpop.f32.mrb[139].mxu1  ;;  %v12711_v33 = vld [vmem:[#allocation2 + $0xb8] sm:$0xf]  ;;  %v4822_v30 = vsel %vm11763_vm0, %v4817_v41, %v4821_v49 }
 0x4b0   : > { %v12713_v59 = vpop.f32.mrb[174].mxu0  ;;  %v4188_v16 = vrot.slane %v4186_v29, 5  ;;  %v4436_v1 = vrot.slane %v12717_v52, 5  ;;  %v4439_v0 = vrot.slane %v12684_v21, 5  ;;  %v7807_v9 = vcombine.low %v4812_v63, %v4822_v30  ;;  %v4908_v47 = vld [vmem:[#allocation2 + $0xb4] sm:$0xe] }
 0x4b1   : > { %v12721_v22 = vpop.f32.mrb[175].mxu0  ;;  %v4179_v62 = vsel %vm11763_vm0, %v4174_v38, %v4178_v55  ;;  %v4183_v43 = vor.u32 %v4182_v2, %v4178_v55  ;;  %v4824_v15 = vshrl.u32 %v12693_v46, 16  ;;  %v4827_v29 = vshll.u32 %v12693_v46, 16 }
 0x4b2   : > { %v4437_v49 = vsel %vm11722_vm13, %v7663_v57, %v4436_v1  ;;  %v4438_v41 = vrot.slane %v4436_v1, 4  ;;  %v4833_v39 = vshll.u32 %v12711_v33, 16  ;;  %6882 = vmatprep.mubr.bf16.mxu0 %v7807_v9  ;;  %v4837_v63 = vshrl.u32 %v12711_v33, 16 }
 0x4b3   : > { %v4184_v4 = vrot.slane %v4183_v43, 4  ;;  %v4826_v10 = vrot.slane %v4824_v15, 4  ;;  %v4843_v30 = vshll.u32 %v4508_v17, 16  ;;  %6883 = vmatmul.mubr.bf16.gmra.mrb[16].mxu0 %v7791_v58  ;;  %v4829_v38 = vrot.slane %v4827_v29, 5 }
 0x4b4   : > { %v12731_v20 = vpop.f32.mrb[140].mxu1  ;;  %v4440_v2 = vsel %vm11722_vm13, %v4438_v41, %v4439_v0  ;;  %v4835_v55 = vrot.slane %v4833_v39, 5  ;;  %v7680_v57 = vrot.slane %v4908_v47, 9  ;;  %v4839_v15 = vrot.slane %v4837_v63, 4 }
 0x4b5   : > { %v12738_v1 = vpop.f32.mrb[141].mxu1  ;;  %v4189_v9 = vsel %vm11763_vm0, %v4184_v4, %v4188_v16  ;;  %v7775_v43 = vcombine.low %v4437_v49, %v4440_v2  ;;  %v4845_v45 = vrot.slane %v4843_v30, 5  ;;  %v4830_v41 = vor.u32 %v4829_v38, %v4826_v10  ;;  %v4299_v38 = vld [vmem:[#allocation2 + $0xa8] sm:$0xe] }
 0x4b6   : > { %v12742_v42 = vpop.f32.mrb[176].mxu0  ;;  %v12744_v35 = vpop.f32.mrb[142].mxu1  ;;  %v7758_v0 = vcombine.low %v4179_v62, %v4189_v9  ;;  %v5052_v37 = vrot.slane %v12711_v33, 5  ;;  %v5055_v58 = vrot.slane %v4508_v17, 5  ;;  %v4840_v47 = vor.u32 %v4839_v15, %v4835_v55  ;;  %v12788_v9 = vld [vmem:[#allocation2 + $0xb0] sm:$0x1] }
 0x4b7   : > { %v12747_v29 = vpop.f32.mrb[177].mxu0  ;;  %v12749_v39 = vpop.f32.mrb[143].mxu1  ;;  %v7792_v4 = vcombine.low %v12693_v46, %v12711_v33  ;;  %v8433_v16 = vadd.f32 %v12636_v61, %v12632_v13  ;;  %v12757_v49 = vadd.f32 %v12643_v28, %v12638_v34  ;;  %v4831_v10 = vrot.slane %v4830_v41, 4  ;;  %v13832_v28 = vld [vmem:[#allocation62_spill] sm:$0xff]  ;;  %v13833_v33 = vld [vmem:[#allocation63_spill] sm:$0xff]  ;;  %v13836_v15 = vld [vmem:[#allocation61_spill] sm:$0xff] }
 0x4b8   : > { %v12759_v62 = vpop.f32.mrb[178].mxu0  ;;  %6714 = vmatmul.mubr.bf16.gmra.mrb[236].mxu1 %v7758_v0  ;;  %v12763_v17 = vsel %vm11722_vm13, %v7680_v57, %v5052_v37  ;;  %v5054_v63 = vrot.slane %v5052_v37, 4  ;;  %v8436_v30 = vadd.f32 %v12652_v27, %v12641_v24  ;;  %v4841_v13 = vrot.slane %v4840_v47, 4  ;;  %v12798_v37 = vld [vmem:[#allocation2 + $0xc4] sm:$0xf] }
 0x4b9   : > { %13830 = vst [vmem:[#allocation60_spill] sm:$0xff] %v12763_v17  ;;  %v12767_v46 = vpop.f32.mrb[179].mxu0  ;;  %6721 = vmatprep.mubr.bf16.mxu1 %v7775_v43  ;;  %v12770_v61 = vadd.f32 %v12676_v44, %v8433_v16  ;;  %v12774_v34 = vadd.f32 %v12659_v26, %v12654_v56  ;;  %v4197_v2 = vor.u32 %v13833_v33, %v13832_v28  ;;  %v4200_v44 = vshll.u32 %v12717_v52, 16  ;;  %v12790_v56 = vld [vmem:[#allocation2 + $0xc0] sm:$0xf] }
 0x4ba   : > { %v4836_v57 = vsel %vm11763_vm0, %v4831_v10, %v4835_v55  ;;  %v12782_v24 = vsel %vm11722_vm13, %v5054_v63, %v5055_v58  ;;  %v12785_v27 = vadd.f32 %v12682_v6, %v8436_v30  ;;  %v4846_v26 = vsel %vm11763_vm0, %v4841_v13, %v4845_v45  ;;  %v12803_v10 = vld [vmem:[#allocation2 + $0xc8] sm:$0x1]  ;;  %v9303_v45 = vld [vmem:[#allocation2 + $0xac] sm:$0xf] }
 0x4bb   : > { %13831 = vst [vmem:[#allocation57_spill] sm:$0xff] %v12770_v61  ;;  %13834 = vst [vmem:[#allocation62_spill] sm:$0xff] %v12782_v24  ;;  %v4198_v55 = vrot.slane %v4197_v2, 4  ;;  %v13837_v0 = vshrl.u32 %v13836_v15, 16  ;;  %v7808_v58 = vcombine.low %v4836_v57, %v4846_v26  ;;  %v4202_v52 = vrot.slane %v4200_v44, 5 }
 0x4bc   : > { %13835 = vst [vmem:[#allocation63_spill] sm:$0xff] %v12785_v27  ;;  %v12800_v6 = vpop.f32.mrb[144].mxu1  ;;  %v4210_v47 = vshll.u32 %v12684_v21, 16  ;;  %v7664_v16 = vrot.slane %v4299_v38, 9  ;;  %13838 = vst [vmem:[#allocation61_spill] sm:$0xff] %v12803_v10  ;;  %v4443_v30 = vrot.slane %v9303_v45, 5 }
 0x4bd   : > { %v4206_v41 = vrot.slane %v13837_v0, 4  ;;  %v12805_v63 = vpop.f32.mrb[145].mxu1  ;;  %v4446_v13 = vrot.slane %v12788_v9, 5  ;;  %v4848_v28 = vshrl.u32 %v12790_v56, 16  ;;  %v4851_v33 = vshll.u32 %v12790_v56, 16  ;;  %6890 = vmatprep.mubr.bf16.mxu0 %v7808_v58 }
 0x4be   : > { %v12810_v2 = vpop.f32.mrb[180].mxu0  ;;  %v12812_v15 = vpop.f32.mrb[146].mxu1  ;;  %v4203_v21 = vsel %vm11763_vm0, %v4198_v55, %v4202_v52  ;;  %v4212_v57 = vrot.slane %v4210_v47, 5  ;;  %v4857_v44 = vshll.u32 %v12798_v37, 16  ;;  %v4444_v43 = vsel %vm11722_vm13, %v7664_v16, %v4443_v30  ;;  %6891 = vmatmul.mubr.bf16.gmra.mrb[20].mxu0 %v7792_v4 }
 0x4bf   : > { %v4207_v38 = vor.u32 %v4206_v41, %v4202_v52  ;;  %v12817_v26 = vpop.f32.mrb[181].mxu0  ;;  %v12819_v0 = vpop.f32.mrb[147].mxu1  ;;  %v4445_v27 = vrot.slane %v4443_v30, 4  ;;  %v4850_v61 = vrot.slane %v4848_v28, 4  ;;  %v4853_v24 = vrot.slane %v4851_v33, 5 }
 0x4c0   : > { %v12823_v17 = vpop.f32.mrb[182].mxu0  ;;  %v4859_v3 = vrot.slane %v4857_v44, 5  ;;  %v4861_v55 = vshrl.u32 %v12798_v37, 16  ;;  %v4867_v41 = vshll.u32 %v12803_v10, 16  ;;  %v8439_v4 = vadd.f32 %v12686_v53, %v12672_v54 }
 0x4c1   : > { %v4208_v58 = vrot.slane %v4207_v38, 4  ;;  %v12827_v52 = vpop.f32.mrb[183].mxu0  ;;  %v4447_v47 = vsel %vm11722_vm13, %v4445_v27, %v4446_v13  ;;  %v4854_v40 = vor.u32 %v4853_v24, %v4850_v61  ;;  %v12842_v61 = vadd.f32 %v12705_v7, %v12695_v14  ;;  %v4300_v24 = vld [vmem:[#allocation2 + $0xb4] sm:$0xe]  ;;  %v12844_v27 = vld [vmem:[#allocation2 + $0xd0] sm:$0xf] }
 0x4c2   : > { %v7776_v28 = vcombine.low %v4444_v43, %v4447_v47  ;;  %v4863_v33 = vrot.slane %v4861_v55, 4  ;;  %v4869_v38 = vrot.slane %v4867_v41, 5  ;;  %v12838_v12 = vadd.f32 %v12757_v49, %v8439_v4  ;;  %v13841_v49 = vld [vmem:[#allocation66_spill] sm:$0xff]  ;;  %v13842_v41 = vld [vmem:[#allocation64_spill] sm:$0xff] }
 0x4c3   : > { %v4213_v30 = vsel %vm11763_vm0, %v4208_v58, %v4212_v57  ;;  %v4855_v18 = vrot.slane %v4854_v40, 4  ;;  %v8442_v53 = vadd.f32 %v12707_v36, %v12697_v48  ;;  %v12852_v43 = vadd.f32 %v12721_v22, %v12713_v59  ;;  %v13840_v40 = vld [vmem:[#allocation65_spill] sm:$0xff]  ;;  %v12856_v57 = vld [vmem:[#allocation2 + $0xbc] sm:$0x1]  ;;  %v12858_v14 = vld [vmem:[#allocation2 + $0xcc] sm:$0xf] }
 0x4c4   : > { %v7759_v44 = vcombine.low %v4203_v21, %v4213_v30  ;;  %13839 = vst [vmem:[#allocation81_spill] sm:$0xff] %v12838_v12  ;;  %v12846_v13 = vpop.f32.mrb[148].mxu1  ;;  %v4864_v54 = vor.u32 %v4863_v33, %v4859_v3  ;;  %v4221_v21 = vor.u32 %v13841_v49, %v13840_v40  ;;  %v4224_v55 = vshll.u32 %v9303_v45, 16  ;;  %v4910_v40 = vld [vmem:[#allocation2 + $0xcc] sm:$0xe] }
 0x4c5   : > { %v12860_v7 = vpop.f32.mrb[149].mxu1  ;;  %v4860_v58 = vsel %vm11763_vm0, %v4855_v18, %v4859_v3  ;;  %v13843_v48 = vshrl.u32 %v13842_v41, 16  ;;  %v4234_v59 = vshll.u32 %v12788_v9, 16  ;;  %v12872_v30 = vadd.f32 %v12774_v34, %v8442_v53  ;;  %v12878_v41 = vld [vmem:[#allocation2 + $0xb8] sm:$0xf] }
 0x4c6   : > { %6722 = vmatmul.mubr.bf16.gmra.mrb[240].mxu1 %v7759_v44  ;;  %v12867_v22 = vpop.f32.mrb[184].mxu0  ;;  %v12869_v47 = vpop.f32.mrb[150].mxu1  ;;  %v4865_v4 = vrot.slane %v4864_v54, 4  ;;  %v4222_v33 = vrot.slane %v4221_v21, 4  ;;  %v7665_v44 = vrot.slane %v4300_v24, 9  ;;  %v4226_v3 = vrot.slane %v4224_v55, 5 }
 0x4c7   : > { %v4230_v36 = vrot.slane %v13843_v48, 4  ;;  %6729 = vmatprep.mubr.bf16.mxu1 %v7776_v28  ;;  %13844 = vst [vmem:[#allocation65_spill] sm:$0xff] %v12872_v30  ;;  %v12874_v49 = vpop.f32.mrb[185].mxu0  ;;  %v12876_v18 = vpop.f32.mrb[151].mxu1  ;;  %v4236_v45 = vrot.slane %v4234_v59, 5  ;;  %v4450_v9 = vrot.slane %v12878_v41, 5 }
 0x4c8   : > { %v4453_v48 = vrot.slane %v12856_v57, 5  ;;  %v12882_v28 = vpop.f32.mrb[186].mxu0  ;;  %v4870_v34 = vsel %vm11763_vm0, %v4865_v4, %v4869_v38  ;;  %v4510_v54 = vld [vmem:[#allocation2 + $0xd4] sm:$0x1]  ;;  %v4872_v24 = vshrl.u32 %v12858_v14, 16  ;;  %v4875_v53 = vshll.u32 %v12858_v14, 16 }
 0x4c9   : > { %v4881_v21 = vshll.u32 %v12844_v27, 16  ;;  %v12889_v55 = vpop.f32.mrb[187].mxu0  ;;  %v7809_v59 = vcombine.low %v4860_v58, %v4870_v34  ;;  %v4227_v16 = vsel %vm11763_vm0, %v4222_v33, %v4226_v3  ;;  %v4231_v30 = vor.u32 %v4230_v36, %v4226_v3 }
 0x4ca   : > { %v4451_v12 = vsel %vm11722_vm13, %v7665_v44, %v4450_v9  ;;  %v4452_v8 = vrot.slane %v4450_v9, 4  ;;  %v4874_v23 = vrot.slane %v4872_v24, 4  ;;  %v4877_v38 = vrot.slane %v4875_v53, 5 }
 0x4cb   : > { %v4883_v4 = vrot.slane %v4881_v21, 5  ;;  %6898 = vmatprep.mubr.bf16.mxu0 %v7809_v59  ;;  %v4232_v50 = vrot.slane %v4231_v30, 4  ;;  %v4885_v19 = vshrl.u32 %v12844_v27, 16  ;;  %v4891_v32 = vshll.u32 %v4510_v54, 16  ;;  %v13846_v30 = vld [vmem:[#allocation70_spill] sm:$0xff] }
 0x4cc   : > { %v7682_v60 = vrot.slane %v4910_v40, 9  ;;  %v12896_v31 = vpop.f32.mrb[152].mxu1  ;;  %v4454_v58 = vsel %vm11722_vm13, %v4452_v8, %v4453_v48  ;;  %v13845_v36 = vcombine.low %v12790_v56, %v12798_v37  ;;  %v4878_v33 = vor.u32 %v4877_v38, %v4874_v23 }
 0x4cd   : > { %v5066_v44 = vrot.slane %v12844_v27, 5  ;;  %v5069_v3 = vrot.slane %v4510_v54, 5  ;;  %v12904_v9 = vpop.f32.mrb[153].mxu1  ;;  %v13847_v34 = vshrl.u32 %v13846_v30, 16  ;;  %v4237_v40 = vsel %vm11763_vm0, %v4232_v50, %v4236_v45 }
 0x4ce   : > { %6899 = vmatmul.mubr.bf16.gmra.mrb[24].mxu0 %v13845_v36  ;;  %v7777_v53 = vcombine.low %v4451_v12, %v4454_v58  ;;  %v4887_v21 = vrot.slane %v4885_v19, 4  ;;  %v12912_v8 = vpop.f32.mrb[188].mxu0  ;;  %v12914_v48 = vpop.f32.mrb[154].mxu1  ;;  %v7760_v56 = vcombine.low %v4227_v16, %v4237_v40  ;;  %v4879_v23 = vrot.slane %v4878_v33, 4  ;;  %v13849_v58 = vld [vmem:[#allocation69_spill] sm:$0xff] }
 0x4cf   : > { %v12908_v24 = vrot.slane %v13847_v34, 4  ;;  %v4893_v59 = vrot.slane %v4891_v32, 5  ;;  %v5068_v38 = vrot.slane %v5066_v44, 4  ;;  %v12916_v54 = vpop.f32.mrb[189].mxu0  ;;  %v12918_v36 = vpop.f32.mrb[155].mxu1  ;;  %v12922_v34 = vsel %vm11722_vm13, %v7682_v60, %v5066_v44 }
 0x4d0   : > { %v4888_v10 = vor.u32 %v4887_v21, %v4883_v4  ;;  %v8445_v19 = vadd.f32 %v12738_v1, %v12731_v20  ;;  %v8563_v50 = vadd.f32 %v12747_v29, %v12742_v42  ;;  %v12928_v12 = vpop.f32.mrb[190].mxu0  ;;  %6730 = vmatmul.mubr.bf16.gmra.mrb[244].mxu1 %v7760_v56  ;;  %v4884_v32 = vsel %vm11763_vm0, %v4879_v23, %v4883_v4  ;;  %v13848_v4 = vld [vmem:[#allocation68_spill] sm:$0xff]  ;;  %v12949_v44 = vld [vmem:[#allocation2 + $0xc8] sm:$0x1]  ;;  %v4301_v40 = vld [vmem:[#allocation2 + $0xc0] sm:$0xe] }
 0x4d1   : > { %v12934_v16 = vsel %vm11722_vm13, %v5068_v38, %v5069_v3  ;;  %v8448_v60 = vadd.f32 %v12749_v39, %v12744_v35  ;;  %v8566_v45 = vadd.f32 %v12767_v46, %v12759_v62  ;;  %v12940_v20 = vpop.f32.mrb[191].mxu0  ;;  %6737 = vmatprep.mubr.bf16.mxu1 %v7777_v53  ;;  %v4245_v33 = vor.u32 %v13849_v58, %v13848_v4  ;;  %v13850_v62 = vld [vmem:[#allocation67_spill] sm:$0xff]  ;;  %v9305_v23 = vld [vmem:[#allocation2 + $0xc4] sm:$0xf] }
 0x4d2   : > { %v4889_v42 = vrot.slane %v4888_v10, 4  ;;  %v7826_v1 = vcombine.low %v12922_v34, %v12934_v16  ;;  %v12945_v29 = vadd.f32 %v12842_v61, %v8445_v19  ;;  %v4248_v39 = vshll.u32 %v12878_v41, 16 }
 0x4d3   : > { %v12952_v35 = vadd.f32 %v12852_v43, %v8448_v60  ;;  %v13851_v46 = vshrl.u32 %v13850_v62, 16  ;;  %v4258_v10 = vshll.u32 %v12856_v57, 16  ;;  %v13852_v53 = vshll.u32 %v13846_v30, 16 }
 0x4d4   : > { %v4894_v21 = vsel %vm11763_vm0, %v4889_v42, %v4893_v59  ;;  %v4246_v56 = vrot.slane %v4245_v33, 4  ;;  %v4457_v38 = vrot.slane %v9305_v23, 5  ;;  %v12962_v19 = vpop.f32.mrb[156].mxu1  ;;  %v7794_v43 = vcombine.low %v12858_v14, %v12844_v27 }
 0x4d5   : > { %v4254_v3 = vrot.slane %v13851_v46, 4  ;;  %v4268_v61 = vrot.slane %v13852_v53, 5  ;;  %v7810_v41 = vcombine.low %v4884_v32, %v4894_v21  ;;  %v4250_v60 = vrot.slane %v4248_v39, 5  ;;  %v12967_v57 = vpop.f32.mrb[157].mxu1 }
 0x4d6   : > { %v4460_v4 = vrot.slane %v12949_v44, 5  ;;  %v7666_v58 = vrot.slane %v4301_v40, 9  ;;  %v4459_v30 = vrot.slane %v4457_v38, 4  ;;  %v8451_v62 = vadd.f32 %v12805_v63, %v12800_v6  ;;  %v8585_v42 = vpop.f32.mrb[192].mxu0  ;;  %v12973_v33 = vpop.f32.mrb[158].mxu1 }
 0x4d7   : > { %v8569_v59 = vadd.f32 %v12817_v26, %v12810_v2  ;;  %6906 = vmatprep.mubr.bf16.mxu0 %v7810_v41  ;;  %v4255_v46 = vor.u32 %v4254_v3, %v4250_v60  ;;  %v4260_v27 = vrot.slane %v4258_v10, 5  ;;  %v8454_v14 = vadd.f32 %v12819_v0, %v12812_v15  ;;  %v8586_v39 = vpop.f32.mrb[193].mxu0  ;;  %v12979_v40 = vpop.f32.mrb[159].mxu1 }
 0x4d8   : > { %v8572_v32 = vadd.f32 %v12827_v52, %v12823_v17  ;;  %v4251_v6 = vsel %vm11763_vm0, %v4246_v56, %v4250_v60  ;;  %v4461_v63 = vsel %vm11722_vm13, %v4459_v30, %v4460_v4  ;;  %6907 = vmatmul.mubr.bf16.gmra.mrb[28].mxu0 %v7794_v43  ;;  %v12985_v2 = vadd.f32 %v8563_v50, %v8451_v62  ;;  %v8588_v3 = vpop.f32.mrb[194].mxu0  ;;  %v13853_v17 = vld [vmem:[#allocation71_spill] sm:$0xff]  ;;  %v9306_v4 = vld [vmem:[#allocation2 + $0x1c] sm:$0xf] }
 0x4d9   : > { %v4272_v26 = vshll.u32 %v9305_v23, 16  ;;  %v4256_v10 = vrot.slane %v4255_v46, 4  ;;  %v12987_v53 = vadd.f32 %v8566_v45, %v8454_v14  ;;  %v4269_v15 = vor.u32 %v4268_v61, %v12908_v24  ;;  %v8589_v21 = vpop.f32.mrb[195].mxu0  ;;  %v4895_v46 = vld [vmem:[#allocation2 + $0x18] sm:$0xe] }
 0x4da   : > { %v13854_v0 = vshrl.u32 %v13853_v17, 16  ;;  %v4458_v43 = vsel %vm11722_vm13, %v7666_v58, %v4457_v38  ;;  %v4282_v50 = vshll.u32 %v12949_v44, 16  ;;  %v8457_v23 = vadd.f32 %v12860_v7, %v12846_v13  ;;  %v9307_v38 = vld [vmem:[#allocation2 + $0x20] sm:$0x1] }
 0x4db   : > { %v4274_v41 = vrot.slane %v4272_v26, 5  ;;  %v4261_v56 = vsel %vm11763_vm0, %v4256_v10, %v4260_v27  ;;  %v7778_v60 = vcombine.low %v4458_v43, %v4461_v63  ;;  %v4961_v24 = vrot.slane %v9306_v4, 5 }
 0x4dc   : > { %v4278_v52 = vrot.slane %v13854_v0, 4  ;;  %v7761_v45 = vcombine.low %v4251_v6, %v4261_v56  ;;  %v8473_v61 = vpop.f32.mrb[160].mxu1  ;;  %v4270_v30 = vrot.slane %v4269_v15, 4  ;;  %v12999_v14 = vadd.f32 %v8569_v59, %v8457_v23 }
 0x4dd   : > { %v8575_v27 = vadd.f32 %v12874_v49, %v12867_v22  ;;  %v8474_v26 = vpop.f32.mrb[161].mxu1  ;;  %v4964_v44 = vrot.slane %v9307_v38, 5  ;;  %v8460_v13 = vadd.f32 %v12876_v18, %v12869_v47  ;;  %v8578_v7 = vadd.f32 %v12889_v55, %v12882_v28 }
 0x4de   : > { %v4279_v62 = vor.u32 %v4278_v52, %v4274_v41  ;;  %6738 = vmatmul.mubr.bf16.gmra.mrb[248].mxu1 %v7761_v45  ;;  %v8591_v58 = vpop.f32.mrb[196].mxu0  ;;  %v8476_v6 = vpop.f32.mrb[162].mxu1  ;;  %v4284_v63 = vrot.slane %v4282_v50, 5  ;;  %v8463_v59 = vadd.f32 %v12904_v9, %v12896_v31  ;;  %v7667_v22 = vrot.slane %v4895_v46, 9  ;;  %v9308_v50 = vld [vmem:[#allocation2 + $0x34] sm:$0xf] }
 0x4df   : > { %6745 = vmatprep.mubr.bf16.mxu1 %v7778_v60  ;;  %v8592_v10 = vpop.f32.mrb[197].mxu0  ;;  %v8477_v15 = vpop.f32.mrb[163].mxu1  ;;  %v4963_v49 = vrot.slane %v4961_v24, 4  ;;  %v13009_v17 = vadd.f32 %v8572_v32, %v8460_v13  ;;  %v8581_v0 = vadd.f32 %v12916_v54, %v12912_v8  ;;  %v4275_v18 = vsel %vm11763_vm0, %v4270_v30, %v4274_v41 }
 0x4e0   : > { %v8594_v47 = vpop.f32.mrb[198].mxu0  ;;  %v4280_v28 = vrot.slane %v4279_v62, 4  ;;  %v13015_v55 = vadd.f32 %v8575_v27, %v8463_v59  ;;  %v8466_v9 = vadd.f32 %v12918_v36, %v12914_v48  ;;  %v8584_v32 = vadd.f32 %v12940_v20, %v12928_v12  ;;  %v4897_v36 = vld [vmem:[#allocation2 + $0x30] sm:$0xe] }
 0x4e1   : > { %v8595_v52 = vpop.f32.mrb[199].mxu0  ;;  %v4965_v31 = vsel %vm11722_vm13, %v4963_v49, %v4964_v44  ;;  %v8469_v54 = vadd.f32 %v12967_v57, %v12962_v19  ;;  %v8587_v41 = vadd.f32 %v8586_v39, %v8585_v42  ;;  %v4962_v43 = vsel %vm11722_vm13, %v7667_v22, %v4961_v24  ;;  %v9309_v19 = vld [vmem:[#allocation2 + $0x38] sm:$0x1] }
 0x4e2   : > { %v4285_v8 = vsel %vm11763_vm0, %v4280_v28, %v4284_v63  ;;  %v4975_v23 = vrot.slane %v9308_v50, 5  ;;  %v13029_v45 = vadd.f32 %v8578_v7, %v8466_v9  ;;  %v7811_v48 = vcombine.low %v4962_v43, %v4965_v31  ;;  %v9311_v31 = vld [vmem:[#allocation2 + $0x50] sm:$0x1] }
 0x4e3   : > { %v7762_v56 = vcombine.low %v4275_v18, %v4285_v8  ;;  %v13031_v4 = vadd.f32 %v8581_v0, %v8469_v54  ;;  %v8472_v51 = vadd.f32 %v12979_v40, %v12973_v33  ;;  %v8590_v12 = vadd.f32 %v8589_v21, %v8588_v3 }
 0x4e4   : > { %v8479_v60 = vpop.f32.mrb[164].mxu1  ;;  %v4978_v57 = vrot.slane %v9309_v19, 5  ;;  %v8475_v42 = vadd.f32 %v8474_v26, %v8473_v61  ;;  %v8593_v62 = vadd.f32 %v8592_v10, %v8591_v58  ;;  %v8478_v46 = vadd.f32 %v8477_v15, %v8476_v6  ;;  %v4899_v6 = vld [vmem:[#allocation2 + $0x48] sm:$0xe]  ;;  %v9310_v10 = vld [vmem:[#allocation2 + $0x4c] sm:$0xf] }
 0x4e5   : > { %v8480_v20 = vpop.f32.mrb[165].mxu1  ;;  %v13035_v30 = vadd.f32 %v8584_v32, %v8472_v51  ;;  %v7669_v44 = vrot.slane %v4897_v36, 9  ;;  %v4977_v13 = vrot.slane %v4975_v23, 4  ;;  %v8596_v33 = vadd.f32 %v8595_v52, %v8594_v47 }
 0x4e6   : > { %6746 = vmatmul.mubr.bf16.gmra.mrb[252].mxu1 %v7762_v56  ;;  %v8597_v39 = vpop.f32.mrb[200].mxu0  ;;  %v8482_v24 = vpop.f32.mrb[166].mxu1  ;;  %v13037_v7 = vadd.f32 %v8587_v41, %v8475_v42  ;;  %v13039_v3 = vadd.f32 %v8590_v12, %v8478_v46  ;;  %v8481_v26 = vadd.f32 %v8480_v20, %v8479_v60  ;;  %v4989_v15 = vrot.slane %v9310_v10, 5  ;;  %v4909_v41 = vld [vmem:[#allocation2 + $0xc0] sm:$0xe] }
 0x4e7   : > { %8945 = vmatprep.mubr.bf16.mxu1 %v7811_v48  ;;  %v8598_v27 = vpop.f32.mrb[201].mxu0  ;;  %v8483_v38 = vpop.f32.mrb[167].mxu1  ;;  %v4979_v61 = vsel %vm11722_vm13, %v4977_v13, %v4978_v57  ;;  %v4976_v58 = vsel %vm11722_vm13, %v7669_v44, %v4975_v23  ;;  %v13855_v52 = vcombine.low %v12240_v5, %v12250_v25  ;;  %v4992_v9 = vrot.slane %v9311_v31, 5  ;;  %v13856_v25 = vld [vmem:[#allocation61_spill] sm:$0xff] }
 0x4e8   : > { %v8600_v40 = vpop.f32.mrb[202].mxu0  ;;  %v8599_v63 = vadd.f32 %v8598_v27, %v8597_v39  ;;  %v8484_v59 = vadd.f32 %v8483_v38, %v8482_v24  ;;  %v13045_v49 = vadd.f32 %v8593_v62, %v8481_v26  ;;  %v7813_v18 = vcombine.low %v4976_v58, %v4979_v61  ;;  %v4901_v46 = vld [vmem:[#allocation2 + $0x60] sm:$0xe]  ;;  %v9312_v27 = vld [vmem:[#allocation2 + $0x64] sm:$0xf] }
 0x4e9   : > { %v8601_v21 = vpop.f32.mrb[203].mxu0  ;;  %v7671_v56 = vrot.slane %v4899_v6, 9  ;;  %v4991_v23 = vrot.slane %v4989_v15, 4  ;;  %v7681_v20 = vrot.slane %v4909_v41, 9  ;;  %v5059_v5 = vrot.slane %v12798_v37, 5  ;;  %v13858_v61 = vld [vmem:[#allocation73_spill] sm:$0xff] }
 0x4ea   : > { %v8602_v22 = vadd.f32 %v8601_v21, %v8600_v40  ;;  %v13047_v0 = vadd.f32 %v8596_v33, %v8484_v59  ;;  %v5062_v19 = vrot.slane %v13856_v25, 5  ;;  %v5003_v38 = vrot.slane %v9312_v27, 5  ;;  %v13857_v21 = vld [vmem:[#allocation72_spill] sm:$0xff] }
 0x4eb   : > { %v4993_v57 = vsel %vm11722_vm13, %v4991_v23, %v4992_v9  ;;  %v5061_v24 = vrot.slane %v5059_v5, 4  ;;  %v4990_v62 = vsel %vm11722_vm13, %v7671_v56, %v4989_v15  ;;  %v13064_v37 = vsel %vm11722_vm13, %v7681_v20, %v5059_v5  ;;  %v9314_v23 = vld [vmem:[#allocation2 + $0x7c] sm:$0xf]  ;;  %v13860_v20 = vld [vmem:[#allocation74_spill] sm:$0xff]  ;;  %v13861_v5 = vld [vmem:[#allocation75_spill] sm:$0xff] }
 0x4ec   : > { %v8485_v47 = vpop.f32.mrb[168].mxu1  ;;  %v7815_v13 = vcombine.low %v4990_v62, %v4993_v57  ;;  %v13859_v26 = vcombine.low %v13857_v21, %v13858_v61  ;;  %v7673_v15 = vrot.slane %v4901_v46, 9  ;;  %v13862_v25 = vcombine.low %v13860_v20, %v13861_v5 }
 0x4ed   : > { %v8486_v28 = vpop.f32.mrb[169].mxu1  ;;  %v13068_v40 = vsel %vm11722_vm13, %v5061_v24, %v5062_v19  ;;  %v9315_v19 = vld [vmem:[#allocation2 + $0x80] sm:$0x1] }
 0x4ee   : > { %8946 = vmatmul.mubr.bf16.vlgmr.msra.gmra.mrb[0].mxu1 %v13855_v52  ;;  %v8487_v32 = vadd.f32 %v8486_v28, %v8485_v47  ;;  %v8603_v8 = vpop.f32.mrb[204].mxu0  ;;  %v8488_v54 = vpop.f32.mrb[170].mxu1  ;;  %v7825_v10 = vcombine.low %v13064_v37, %v13068_v40  ;;  %v5005_v28 = vrot.slane %v5003_v38, 4  ;;  %v5020_v57 = vrot.slane %v9315_v19, 5 }
 0x4ef   : > { %8949 = vmatprep.mubr.bf16.mxu1 %v7813_v18  ;;  %v8604_v43 = vpop.f32.mrb[205].mxu0  ;;  %v8489_v50 = vpop.f32.mrb[171].mxu1 }
 0x4f0   : > { %v13052_v60 = vadd.f32 %v8599_v63, %v8487_v32  ;;  %v8605_v48 = vadd.f32 %v8604_v43, %v8603_v8  ;;  %v8490_v36 = vadd.f32 %v8489_v50, %v8488_v54  ;;  %v8606_v51 = vpop.f32.mrb[206].mxu0  ;;  %v9313_v63 = vld [vmem:[#allocation2 + $0x68] sm:$0x1]  ;;  %v5004_v43 = vsel %vm11722_vm13, %v7673_v15, %v5003_v38  ;;  %v4903_v50 = vld [vmem:[#allocation2 + $0x78] sm:$0xe] }
 0x4f1   : > { %v8607_v12 = vpop.f32.mrb[207].mxu0  ;;  %v5006_v59 = vrot.slane %v9313_v63, 5  ;;  %v7675_v46 = vrot.slane %v4903_v50, 9  ;;  %v9316_v15 = vld [vmem:[#allocation2 + $0x94] sm:$0xf] }
 0x4f2   : > { %v13058_v42 = vadd.f32 %v8602_v22, %v8490_v36  ;;  %v8608_v39 = vadd.f32 %v8607_v12, %v8606_v51  ;;  %v5017_v36 = vrot.slane %v9314_v23, 5 }
 0x4f3   : > { %v5007_v54 = vsel %vm11722_vm13, %v5005_v28, %v5006_v59 }
 0x4f4   : > { %v8491_v44 = vpop.f32.mrb[172].mxu1  ;;  %v7817_v12 = vcombine.low %v5004_v43, %v5007_v54  ;;  %v5019_v38 = vrot.slane %v5017_v36, 4  ;;  %v9317_v54 = vld [vmem:[#allocation2 + $0x98] sm:$0x1] }
 0x4f5   : > { %v8492_v33 = vpop.f32.mrb[173].mxu1  ;;  %v5034_v43 = vrot.slane %v9317_v54, 5 }
 0x4f6   : > { %8950 = vmatmul.mubr.bf16.gmra.mrb[4].mxu1 %v13859_v26  ;;  %v8493_v22 = vadd.f32 %v8492_v33, %v8491_v44  ;;  %v8609_v58 = vpop.f32.mrb[208].mxu0  ;;  %v8494_v6 = vpop.f32.mrb[174].mxu1  ;;  %v5021_v63 = vsel %vm11722_vm13, %v5019_v38, %v5020_v57 }
 0x4f7   : > { %8953 = vmatprep.mubr.bf16.mxu1 %v7815_v13  ;;  %v8610_v47 = vpop.f32.mrb[209].mxu0  ;;  %v8495_v18 = vpop.f32.mrb[175].mxu1 }
 0x4f8   : > { %v13075_v52 = vadd.f32 %v8605_v48, %v8493_v22  ;;  %v8611_v31 = vadd.f32 %v8610_v47, %v8609_v58  ;;  %v8496_v9 = vadd.f32 %v8495_v18, %v8494_v6  ;;  %v8612_v32 = vpop.f32.mrb[210].mxu0  ;;  %v5018_v58 = vsel %vm11722_vm13, %v7675_v46, %v5017_v36  ;;  %v4905_v6 = vld [vmem:[#allocation2 + $0x90] sm:$0xe] }
 0x4f9   : > { %v8613_v8 = vpop.f32.mrb[211].mxu0  ;;  %v5031_v47 = vrot.slane %v9316_v15, 5  ;;  %v7819_v28 = vcombine.low %v5018_v58, %v5021_v63  ;;  %v13868_v63 = vld [vmem:[#allocation79_spill] sm:$0xff] }
 0x4fa   : > { %v13079_v41 = vadd.f32 %v8608_v39, %v8496_v9  ;;  %v8614_v56 = vadd.f32 %v8613_v8, %v8612_v32  ;;  %v13863_v9 = vld [vmem:[#allocation76_spill] sm:$0xff]  ;;  %v13864_v32 = vld [vmem:[#allocation77_spill] sm:$0xff] }
 0x4fb   : > { %v13865_v8 = vcombine.low %v13863_v9, %v13864_v32  ;;  %v5033_v36 = vrot.slane %v5031_v47, 4 }
 0x4fc   : > { %v8497_v51 = vpop.f32.mrb[176].mxu1 }
 0x4fd   : > { %v8498_v48 = vpop.f32.mrb[177].mxu1 }
 0x4fe   : > { %8954 = vmatmul.mubr.bf16.gmra.mrb[8].mxu1 %v13862_v25  ;;  %v8499_v24 = vadd.f32 %v8498_v48, %v8497_v51  ;;  %v8615_v62 = vpop.f32.mrb[212].mxu0  ;;  %v8500_v39 = vpop.f32.mrb[178].mxu1  ;;  %v7677_v51 = vrot.slane %v4905_v6, 9  ;;  %v13870_v6 = vld [vmem:[#allocation55_spill] sm:$0xff] }
 0x4ff   : > { %8957 = vmatprep.mubr.bf16.mxu1 %v7817_v12  ;;  %v8616_v27 = vpop.f32.mrb[213].mxu0  ;;  %v8501_v44 = vpop.f32.mrb[179].mxu1  ;;  %v5048_v15 = vrot.slane %v13870_v6, 5 }
 0x500   : > { %v13086_v13 = vadd.f32 %v8611_v31, %v8499_v24  ;;  %v8617_v33 = vadd.f32 %v8616_v27, %v8615_v62  ;;  %v8502_v21 = vadd.f32 %v8501_v44, %v8500_v39  ;;  %v8618_v61 = vpop.f32.mrb[214].mxu0  ;;  %v5035_v24 = vsel %vm11722_vm13, %v5033_v36, %v5034_v43  ;;  %v4907_v27 = vld [vmem:[#allocation2 + $0xa8] sm:$0xe] }
 0x501   : > { %v8619_v26 = vpop.f32.mrb[215].mxu0  ;;  %v5032_v46 = vsel %vm11722_vm13, %v7677_v51, %v5031_v47  ;;  %v13866_v44 = vld [vmem:[#allocation58_spill] sm:$0xff] }
 0x502   : > { %v13090_v59 = vadd.f32 %v8614_v56, %v8502_v21  ;;  %v8620_v22 = vadd.f32 %v8619_v26, %v8618_v61  ;;  %v5045_v38 = vrot.slane %v13866_v44, 5  ;;  %v7821_v61 = vcombine.low %v5032_v46, %v5035_v24  ;;  %v13867_v26 = vld [vmem:[#allocation78_spill] sm:$0xff]  ;;  %v13872_v24 = vld [vmem:[#allocation56_spill] sm:$0xff] }
 0x503   : > { %v13869_v58 = vcombine.low %v13867_v26, %v13868_v63 }
 0x504   : > { %v8503_v18 = vpop.f32.mrb[180].mxu1  ;;  %v5047_v47 = vrot.slane %v5045_v38, 4 }
 0x505   : > { %v8504_v31 = vpop.f32.mrb[181].mxu1 }
 0x506   : > { %8958 = vmatmul.mubr.bf16.gmra.mrb[12].mxu1 %v13865_v8  ;;  %v8505_v50 = vadd.f32 %v8504_v31, %v8503_v18  ;;  %v8621_v23 = vpop.f32.mrb[216].mxu0  ;;  %v8506_v56 = vpop.f32.mrb[182].mxu1  ;;  %v7679_v31 = vrot.slane %v4907_v27, 9 }
 0x507   : > { %8961 = vmatprep.mubr.bf16.mxu1 %v7819_v28  ;;  %v8622_v12 = vpop.f32.mrb[217].mxu0  ;;  %v8507_v48 = vpop.f32.mrb[183].mxu1 }
 0x508   : > { %v13097_v20 = vadd.f32 %v8617_v33, %v8505_v50  ;;  %v8623_v5 = vadd.f32 %v8622_v12, %v8621_v23  ;;  %v8508_v25 = vadd.f32 %v8507_v48, %v8506_v56  ;;  %v8624_v19 = vpop.f32.mrb[218].mxu0  ;;  %v5049_v56 = vsel %vm11722_vm13, %v5047_v47, %v5048_v15 }
 0x509   : > { %v8625_v57 = vpop.f32.mrb[219].mxu0  ;;  %v5046_v48 = vsel %vm11722_vm13, %v7679_v31, %v5045_v38 }
 0x50a   : > { %v13101_v62 = vadd.f32 %v8620_v22, %v8508_v25  ;;  %v8626_v39 = vadd.f32 %v8625_v57, %v8624_v19  ;;  %v7823_v25 = vcombine.low %v5046_v48, %v5049_v56  ;;  %v13871_v57 = vld [vmem:[#allocation54_spill] sm:$0xff] }
 0x50c   : > { %v8509_v21 = vpop.f32.mrb[184].mxu1 }
 0x50d   : > { %v8510_v33 = vpop.f32.mrb[185].mxu1 }
 0x50e   : > { %8962 = vmatmul.mubr.bf16.gmra.mrb[16].mxu1 %v13869_v58  ;;  %v8511_v18 = vadd.f32 %v8510_v33, %v8509_v21  ;;  %v8627_v28 = vpop.f32.mrb[220].mxu0  ;;  %v8512_v22 = vpop.f32.mrb[186].mxu1 }
 0x50f   : > { %8965 = vmatprep.mubr.bf16.mxu1 %v7821_v61  ;;  %v8628_v9 = vpop.f32.mrb[221].mxu0  ;;  %v8513_v32 = vpop.f32.mrb[187].mxu1 }
 0x510   : > { %v13110_v8 = vadd.f32 %v8623_v5, %v8511_v18  ;;  %v8629_v54 = vadd.f32 %v8628_v9, %v8627_v28  ;;  %v8514_v43 = vadd.f32 %v8513_v32, %v8512_v22  ;;  %v8630_v50 = vpop.f32.mrb[222].mxu0  ;;  %v13873_v5 = vcombine.low %v13871_v57, %v13872_v24  ;;  %v13874_v18 = vld [vmem:[#allocation60_spill] sm:$0xff]  ;;  %v13875_v28 = vld [vmem:[#allocation62_spill] sm:$0xff] }
 0x511   : > { %v8631_v23 = vpop.f32.mrb[223].mxu0  ;;  %v13876_v22 = vcombine.low %v13874_v18, %v13875_v28 }
 0x512   : > { %v13114_v51 = vadd.f32 %v8626_v39, %v8514_v43  ;;  %v8632_v12 = vadd.f32 %v8631_v23, %v8630_v50  ;;  %v13877_v43 = vld [vmem:[#allocation80_spill] sm:$0xff] }
 0x514   : > { %v8515_v36 = vpop.f32.mrb[188].mxu1 }
 0x515   : > { %v8516_v19 = vpop.f32.mrb[189].mxu1 }
 0x516   : > { %8966 = vmatmul.mubr.bf16.gmra.mrb[20].mxu1 %v13873_v5  ;;  %v8517_v46 = vadd.f32 %v8516_v19, %v8515_v36  ;;  %v8761_v27 = vpop.f32.mrb[224].mxu0  ;;  %v8518_v44 = vpop.f32.mrb[190].mxu1  ;;  %v13878_v36 = vld [vmem:[#allocation59_spill] sm:$0xff] }
 0x517   : > { %8969 = vmatprep.mubr.bf16.mxu1 %v7823_v25  ;;  %v8762_v21 = vpop.f32.mrb[225].mxu0  ;;  %v8519_v61 = vpop.f32.mrb[191].mxu1 }
 0x518   : > { %v13121_v33 = vadd.f32 %v8629_v54, %v8517_v46  ;;  %v13123_v39 = vadd.f32 %v8762_v21, %v8761_v27  ;;  %v8520_v26 = vadd.f32 %v8519_v61, %v8518_v44  ;;  %v8764_v11 = vpop.f32.mrb[226].mxu0  ;;  %v13879_v27 = vld [vmem:[#allocation57_spill] sm:$0xff] }
 0x519   : > { %v8765_v38 = vpop.f32.mrb[227].mxu0 }
 0x51a   : > { %v13125_v63 = vadd.f32 %v8632_v12, %v8520_v26  ;;  %v13127_v58 = vadd.f32 %v8765_v38, %v8764_v11  ;;  %v13880_v38 = vld [vmem:[#allocation63_spill] sm:$0xff] }
 0x51c   : > { %v8649_v6 = vpop.f32.mrb[192].mxu1 }
 0x51d   : > { %v8650_v15 = vpop.f32.mrb[193].mxu1 }
 0x51e   : > { %8970 = vmatmul.mubr.bf16.gmra.mrb[24].mxu1 %v13876_v22  ;;  %v8651_v31 = vadd.f32 %v8650_v15, %v8649_v6  ;;  %v8767_v9 = vpop.f32.mrb[228].mxu0  ;;  %v8652_v32 = vpop.f32.mrb[194].mxu1 }
 0x51f   : > { %8973 = vmatprep.mubr.bf16.mxu1 %v7825_v10  ;;  %v8768_v47 = vpop.f32.mrb[229].mxu0  ;;  %v8653_v54 = vpop.f32.mrb[195].mxu1 }
 0x520   : > { %v6628_v50 = vadd.f32 %v8651_v31, %v13877_v43  ;;  %v8769_v23 = vadd.f32 %v8768_v47, %v8767_v9  ;;  %v8654_v56 = vadd.f32 %v8653_v54, %v8652_v32  ;;  %v8770_v12 = vpop.f32.mrb[230].mxu0  ;;  %v13881_v43 = vld [vmem:[#allocation81_spill] sm:$0xff] }
 0x521   : > { %v8771_v48 = vpop.f32.mrb[231].mxu0 }
 0x522   : > { %v6631_v25 = vadd.f32 %v8654_v56, %v13878_v36  ;;  %v8772_v19 = vadd.f32 %v8771_v48, %v8770_v12  ;;  %v13882_v48 = vld [vmem:[#allocation65_spill] sm:$0xff] }
 0x524   : > { %v8655_v57 = vpop.f32.mrb[196].mxu1 }
 0x525   : > { %v8656_v24 = vpop.f32.mrb[197].mxu1 }
 0x526   : > { %8974 = vmatmul.mubr.bf16.gmra.mrb[28].mxu1 %v7826_v1  ;;  %v8657_v5 = vadd.f32 %v8656_v24, %v8655_v57  ;;  %v8773_v37 = vpop.f32.mrb[232].mxu0  ;;  %v8658_v40 = vpop.f32.mrb[198].mxu1 }
 0x527   : > { %v8774_v10 = vpop.f32.mrb[233].mxu0  ;;  %v8659_v46 = vpop.f32.mrb[199].mxu1 }
 0x528   : > { %v6636_v44 = vadd.f32 %v8657_v5, %v13879_v27  ;;  %v8775_v21 = vadd.f32 %v8774_v10, %v8773_v37  ;;  %v8660_v61 = vadd.f32 %v8659_v46, %v8658_v40  ;;  %v8776_v26 = vpop.f32.mrb[234].mxu0 }
 0x529   : > { %v8777_v11 = vpop.f32.mrb[235].mxu0 }
 0x52a   : > { %v6639_v6 = vadd.f32 %v8660_v61, %v13880_v38  ;;  %v8778_v15 = vadd.f32 %v8777_v11, %v8776_v26 }
 0x52e   : > { %v8779_v18 = vpop.f32.mrb[236].mxu0 }
 0x52f   : > { %v8661_v28 = vpop.f32.mrb[200].mxu1  ;;  %v8780_v22 = vpop.f32.mrb[237].mxu0 }
 0x530   : > { %v8662_v31 = vpop.f32.mrb[201].mxu1  ;;  %v8781_v34 = vadd.f32 %v8780_v22, %v8779_v18  ;;  %v8782_v16 = vpop.f32.mrb[238].mxu0  ;;  %v13146_v22 = vadd.f32 %v8769_v23, %v6636_v44 }
 0x531   : > { %v8663_v1 = vadd.f32 %v8662_v31, %v8661_v28  ;;  %v8664_v9 = vpop.f32.mrb[202].mxu1  ;;  %v8783_v32 = vpop.f32.mrb[239].mxu0 }
 0x532   : > { %v8665_v47 = vpop.f32.mrb[203].mxu1  ;;  %v8784_v54 = vadd.f32 %v8783_v32, %v8782_v16 }
 0x533   : > { %v6644_v56 = vadd.f32 %v8663_v1, %v13881_v43  ;;  %v8666_v12 = vadd.f32 %v8665_v47, %v8664_v9 }
 0x535   : > { %v6647_v36 = vadd.f32 %v8666_v12, %v13882_v48  ;;  %v13149_v12 = vadd.f32 %v13123_v39, %v6628_v50 }
 0x536   : > { %v8785_v57 = vpop.f32.mrb[240].mxu0 }
 0x537   : > { %v8786_v24 = vpop.f32.mrb[241].mxu0  ;;  %v8667_v5 = vpop.f32.mrb[204].mxu1 }
 0x538   : > { %v8787_v37 = vadd.f32 %v8786_v24, %v8785_v57  ;;  %v8788_v40 = vpop.f32.mrb[242].mxu0  ;;  %v8668_v10 = vpop.f32.mrb[205].mxu1 }
 0x539   : > { %v8789_v46 = vpop.f32.mrb[243].mxu0  ;;  %v8669_v27 = vadd.f32 %v8668_v10, %v8667_v5  ;;  %v8670_v61 = vpop.f32.mrb[206].mxu1  ;;  %v13151_v5 = vadd.f32 %v8772_v19, %v6639_v6 }
 0x53a   : > { %v8790_v26 = vadd.f32 %v8789_v46, %v8788_v40  ;;  %v8671_v11 = vpop.f32.mrb[207].mxu1 }
 0x53b   : > { %v6652_v38 = vadd.f32 %v8669_v27, %v12945_v29  ;;  %v8672_v18 = vadd.f32 %v8671_v11, %v8670_v61  ;;  %v13160_v27 = vadd.f32 %v8775_v21, %v6644_v56 }
 0x53d   : > { %v6655_v28 = vadd.f32 %v8672_v18, %v12952_v35  ;;  %v13154_v35 = vadd.f32 %v13127_v58, %v6631_v25  ;;  %v13158_v10 = vadd.f32 %v8781_v34, %v6652_v38  ;;  %v13164_v25 = vadd.f32 %v8778_v15, %v6647_v36 }
 0x53e   : > { %v8791_v31 = vpop.f32.mrb[244].mxu0 }
 0x53f   : > { %v8792_v16 = vpop.f32.mrb[245].mxu0  ;;  %v13162_v58 = vadd.f32 %v8784_v54, %v6655_v28 }
 0x540   : > { %v8793_v9 = vadd.f32 %v8792_v16, %v8791_v31  ;;  %v8794_v32 = vpop.f32.mrb[246].mxu0 }
 0x541   : > { %v8673_v1 = vpop.f32.mrb[208].mxu1  ;;  %v8795_v43 = vpop.f32.mrb[247].mxu0 }
 0x542   : > { %v8674_v47 = vpop.f32.mrb[209].mxu1  ;;  %v8796_v24 = vadd.f32 %v8795_v43, %v8794_v32 }
 0x543   : > { %v8675_v48 = vadd.f32 %v8674_v47, %v8673_v1  ;;  %v8676_v57 = vpop.f32.mrb[210].mxu1 }
 0x544   : > { %v8677_v29 = vpop.f32.mrb[211].mxu1 }
 0x545   : > { %v6660_v23 = vadd.f32 %v8675_v48, %v12985_v2  ;;  %v8678_v44 = vadd.f32 %v8677_v29, %v8676_v57 }
 0x547   : > { %v6663_v40 = vadd.f32 %v8678_v44, %v12987_v53  ;;  %v13170_v1 = vadd.f32 %v8787_v37, %v6660_v23 }
 0x549   : > { %v8797_v46 = vpop.f32.mrb[248].mxu0  ;;  %v13174_v15 = vadd.f32 %v8790_v26, %v6663_v40 }
 0x54a   : > { %v8798_v50 = vpop.f32.mrb[249].mxu0 }
 0x54b   : > { %v8679_v39 = vpop.f32.mrb[212].mxu1  ;;  %v8799_v11 = vadd.f32 %v8798_v50, %v8797_v46  ;;  %v8800_v19 = vpop.f32.mrb[250].mxu0 }
 0x54c   : > { %v8680_v61 = vpop.f32.mrb[213].mxu1  ;;  %v8801_v31 = vpop.f32.mrb[251].mxu0 }
 0x54d   : > { %v8681_v6 = vadd.f32 %v8680_v61, %v8679_v39  ;;  %v8682_v18 = vpop.f32.mrb[214].mxu1  ;;  %v8802_v16 = vadd.f32 %v8801_v31, %v8800_v19 }
 0x54e   : > { %v8683_v2 = vpop.f32.mrb[215].mxu1 }
 0x54f   : > { %v6668_v53 = vadd.f32 %v8681_v6, %v12999_v14  ;;  %v8684_v34 = vadd.f32 %v8683_v2, %v8682_v18 }
 0x551   : > { %v6671_v21 = vadd.f32 %v8684_v34, %v13009_v17  ;;  %v13168_v56 = vadd.f32 %v8793_v9, %v6668_v53  ;;  %v8803_v38 = vpop.f32.mrb[252].mxu0 }
 0x552   : > { %v8804_v32 = vpop.f32.mrb[253].mxu0 }
 0x553   : > { %v8805_v47 = vadd.f32 %v8804_v32, %v8803_v38  ;;  %v8806_v43 = vpop.f32.mrb[254].mxu0  ;;  %v13172_v28 = vadd.f32 %v8796_v24, %v6671_v21 }
 0x554   : > { %v8807_v54 = vpop.f32.mrb[255].mxu0 }
 0x555   : > { %v8808_v57 = vadd.f32 %v8807_v54, %v8806_v43 }
 0x556   : > { %v8685_v48 = vpop.f32.mrb[216].mxu1 }
 0x557   : > { %v8686_v36 = vpop.f32.mrb[217].mxu1 }
 0x558   : > { %v8687_v14 = vadd.f32 %v8686_v36, %v8685_v48  ;;  %v8688_v29 = vpop.f32.mrb[218].mxu1 }
 0x559   : > { %v8689_v44 = vpop.f32.mrb[219].mxu1 }
 0x55a   : > { %v6676_v17 = vadd.f32 %v8687_v14, %v13015_v55  ;;  %v8690_v9 = vadd.f32 %v8689_v44, %v8688_v29 }
 0x55c   : > { %v6679_v37 = vadd.f32 %v8690_v9, %v13029_v45  ;;  %v13178_v23 = vadd.f32 %v8799_v11, %v6676_v17 }
 0x55d   : > { %v8809_v39 = vpop.f32.mrb[0].mxu0 }
 0x55e   : > { %v13180_v46 = vadd.f32 %v8802_v16, %v6679_v37  ;;  %v8810_v24 = vpop.f32.mrb[1].mxu0 }
 0x55f   : > { %v8691_v50 = vpop.f32.mrb[220].mxu1  ;;  %v8811_v26 = vadd.f32 %v8810_v24, %v8809_v39  ;;  %v8812_v40 = vpop.f32.mrb[2].mxu0 }
 0x560   : > { %v8692_v61 = vpop.f32.mrb[221].mxu1  ;;  %v8813_v18 = vpop.f32.mrb[3].mxu0 }
 0x561   : > { %v8693_v19 = vadd.f32 %v8692_v61, %v8691_v50  ;;  %v8694_v6 = vpop.f32.mrb[222].mxu1  ;;  %v8814_v2 = vadd.f32 %v8813_v18, %v8812_v40 }
 0x562   : > { %v8695_v31 = vpop.f32.mrb[223].mxu1 }
 0x563   : > { %v6684_v55 = vadd.f32 %v8693_v19, %v13031_v4  ;;  %v8696_v53 = vadd.f32 %v8695_v31, %v8694_v6 }
 0x565   : > { %v6687_v45 = vadd.f32 %v8696_v53, %v13035_v30  ;;  %v13184_v11 = vadd.f32 %v8805_v47, %v6684_v55 }
 0x566   : > { %v8815_v16 = vpop.f32.mrb[4].mxu0 }
 0x567   : > { %v8816_v34 = vpop.f32.mrb[5].mxu0  ;;  %v13186_v21 = vadd.f32 %v8808_v57, %v6687_v45 }
 0x568   : > { %v8817_v38 = vadd.f32 %v8816_v34, %v8815_v16  ;;  %v8818_v32 = vpop.f32.mrb[6].mxu0 }
 0x569   : > { %v8819_v43 = vpop.f32.mrb[7].mxu0 }
 0x56a   : > { %v8697_v48 = vpop.f32.mrb[224].mxu1  ;;  %v8820_v54 = vadd.f32 %v8819_v43, %v8818_v32 }
 0x56b   : > { %v8698_v36 = vpop.f32.mrb[225].mxu1 }
 0x56c   : > { %v8699_v14 = vadd.f32 %v8698_v36, %v8697_v48  ;;  %v8700_v29 = vpop.f32.mrb[226].mxu1 }
 0x56d   : > { %v8701_v44 = vpop.f32.mrb[227].mxu1 }
 0x56e   : > { %v6692_v4 = vadd.f32 %v8699_v14, %v13037_v7  ;;  %v8702_v17 = vadd.f32 %v8701_v44, %v8700_v29 }
 0x570   : > { %v6695_v30 = vadd.f32 %v8702_v17, %v13039_v3  ;;  %v13190_v47 = vadd.f32 %v8811_v26, %v6692_v4 }
 0x572   : > { %v8821_v9 = vpop.f32.mrb[8].mxu0  ;;  %v13192_v37 = vadd.f32 %v8814_v2, %v6695_v30 }
 0x573   : > { %v8822_v57 = vpop.f32.mrb[9].mxu0 }
 0x574   : > { %v8703_v39 = vpop.f32.mrb[228].mxu1  ;;  %v8823_v50 = vadd.f32 %v8822_v57, %v8821_v9  ;;  %v8824_v24 = vpop.f32.mrb[10].mxu0 }
 0x575   : > { %v8704_v61 = vpop.f32.mrb[229].mxu1  ;;  %v8825_v40 = vpop.f32.mrb[11].mxu0 }
 0x576   : > { %v8705_v19 = vadd.f32 %v8704_v61, %v8703_v39  ;;  %v8706_v6 = vpop.f32.mrb[230].mxu1  ;;  %v8826_v18 = vadd.f32 %v8825_v40, %v8824_v24 }
 0x577   : > { %v8707_v31 = vpop.f32.mrb[231].mxu1 }
 0x578   : > { %v6700_v7 = vadd.f32 %v8705_v19, %v13045_v49  ;;  %v8708_v55 = vadd.f32 %v8707_v31, %v8706_v6 }
 0x57a   : > { %v6703_v3 = vadd.f32 %v8708_v55, %v13047_v0  ;;  %v13196_v26 = vadd.f32 %v8817_v38, %v6700_v7 }
 0x57c   : > { %v8827_v53 = vpop.f32.mrb[12].mxu0  ;;  %v13198_v2 = vadd.f32 %v8820_v54, %v6703_v3 }
 0x57d   : > { %v8828_v45 = vpop.f32.mrb[13].mxu0 }
 0x57e   : > { %v8829_v16 = vadd.f32 %v8828_v45, %v8827_v53  ;;  %v8830_v34 = vpop.f32.mrb[14].mxu0 }
 0x57f   : > { %v8831_v43 = vpop.f32.mrb[15].mxu0 }
 0x580   : > { %v8709_v32 = vpop.f32.mrb[232].mxu1  ;;  %v8832_v36 = vadd.f32 %v8831_v43, %v8830_v34 }
 0x581   : > { %v8710_v48 = vpop.f32.mrb[233].mxu1 }
 0x582   : > { %v8711_v14 = vadd.f32 %v8710_v48, %v8709_v32  ;;  %v8712_v29 = vpop.f32.mrb[234].mxu1 }
 0x583   : > { %v8713_v44 = vpop.f32.mrb[235].mxu1 }
 0x584   : > { %v6708_v49 = vadd.f32 %v8711_v14, %v13052_v60  ;;  %v8714_v4 = vadd.f32 %v8713_v44, %v8712_v29 }
 0x586   : > { %v6711_v0 = vadd.f32 %v8714_v4, %v13058_v42  ;;  %v13202_v38 = vadd.f32 %v8823_v50, %v6708_v49  ;;  %v8833_v17 = vpop.f32.mrb[16].mxu0 }
 0x587   : > { %v8834_v54 = vpop.f32.mrb[17].mxu0 }
 0x588   : > { %v13204_v30 = vadd.f32 %v8826_v18, %v6711_v0  ;;  %v8835_v9 = vadd.f32 %v8834_v54, %v8833_v17  ;;  %v8836_v57 = vpop.f32.mrb[18].mxu0 }
 0x589   : > { %v8837_v39 = vpop.f32.mrb[19].mxu0 }
 0x58a   : > { %v8838_v61 = vadd.f32 %v8837_v39, %v8836_v57 }
 0x58b   : > { %v8715_v24 = vpop.f32.mrb[236].mxu1 }
 0x58c   : > { %v8716_v40 = vpop.f32.mrb[237].mxu1 }
 0x58d   : > { %v8717_v19 = vadd.f32 %v8716_v40, %v8715_v24  ;;  %v8718_v6 = vpop.f32.mrb[238].mxu1 }
 0x58e   : > { %v8719_v31 = vpop.f32.mrb[239].mxu1 }
 0x58f   : > { %v6716_v60 = vadd.f32 %v8717_v19, %v13075_v52  ;;  %v8720_v7 = vadd.f32 %v8719_v31, %v8718_v6 }
 0x591   : > { %v6719_v42 = vadd.f32 %v8720_v7, %v13079_v41  ;;  %v13208_v50 = vadd.f32 %v8829_v16, %v6716_v60  ;;  %v8839_v55 = vpop.f32.mrb[20].mxu0 }
 0x592   : > { %v8840_v3 = vpop.f32.mrb[21].mxu0 }
 0x593   : > { %v13210_v18 = vadd.f32 %v8832_v36, %v6719_v42  ;;  %v8841_v53 = vadd.f32 %v8840_v3, %v8839_v55  ;;  %v8842_v45 = vpop.f32.mrb[22].mxu0 }
 0x594   : > { %v8843_v34 = vpop.f32.mrb[23].mxu0 }
 0x595   : > { %v8844_v32 = vadd.f32 %v8843_v34, %v8842_v45 }
 0x599   : > { %v8721_v43 = vpop.f32.mrb[240].mxu1 }
 0x59a   : > { %v8722_v48 = vpop.f32.mrb[241].mxu1 }
 0x59b   : > { %v8723_v14 = vadd.f32 %v8722_v48, %v8721_v43  ;;  %v8724_v29 = vpop.f32.mrb[242].mxu1 }
 0x59c   : > { %v8725_v44 = vpop.f32.mrb[243].mxu1 }
 0x59d   : > { %v6724_v52 = vadd.f32 %v8723_v14, %v13086_v13  ;;  %v8726_v49 = vadd.f32 %v8725_v44, %v8724_v29 }
 0x59f   : > { %v6727_v41 = vadd.f32 %v8726_v49, %v13090_v59  ;;  %v13214_v16 = vadd.f32 %v8835_v9, %v6724_v52 }
 0x5a1   : > { %v8845_v4 = vpop.f32.mrb[24].mxu0  ;;  %v13216_v36 = vadd.f32 %v8838_v61, %v6727_v41 }
 0x5a2   : > { %v8846_v0 = vpop.f32.mrb[25].mxu0 }
 0x5a3   : > { %v8847_v17 = vadd.f32 %v8846_v0, %v8845_v4  ;;  %v8848_v54 = vpop.f32.mrb[26].mxu0  ;;  %v8727_v39 = vpop.f32.mrb[244].mxu1 }
 0x5a4   : > { %v8849_v57 = vpop.f32.mrb[27].mxu0  ;;  %v8728_v40 = vpop.f32.mrb[245].mxu1 }
 0x5a5   : > { %v8850_v24 = vadd.f32 %v8849_v57, %v8848_v54  ;;  %v8729_v19 = vadd.f32 %v8728_v40, %v8727_v39  ;;  %v8730_v6 = vpop.f32.mrb[246].mxu1 }
 0x5a6   : > { %v8731_v31 = vpop.f32.mrb[247].mxu1 }
 0x5a7   : > { %v6732_v13 = vadd.f32 %v8729_v19, %v13097_v20  ;;  %v8732_v60 = vadd.f32 %v8731_v31, %v8730_v6 }
 0x5a9   : > { %v6735_v59 = vadd.f32 %v8732_v60, %v13101_v62  ;;  %v13220_v9 = vadd.f32 %v8841_v53, %v6732_v13 }
 0x5ab   : > { %v8851_v7 = vpop.f32.mrb[28].mxu0  ;;  %v13222_v61 = vadd.f32 %v8844_v32, %v6735_v59 }
 0x5ac   : > { %v8852_v42 = vpop.f32.mrb[29].mxu0 }
 0x5ad   : > { %v8853_v55 = vadd.f32 %v8852_v42, %v8851_v7  ;;  %v8854_v3 = vpop.f32.mrb[30].mxu0 }
 0x5ae   : > { %v8855_v45 = vpop.f32.mrb[31].mxu0 }
 0x5af   : > { %v8856_v34 = vadd.f32 %v8855_v45, %v8854_v3 }
 0x5b1   : > { %v8733_v43 = vpop.f32.mrb[248].mxu1 }
 0x5b2   : > { %v8734_v48 = vpop.f32.mrb[249].mxu1 }
 0x5b3   : > { %v8735_v14 = vadd.f32 %v8734_v48, %v8733_v43  ;;  %v8736_v29 = vpop.f32.mrb[250].mxu1 }
 0x5b4   : > { %v8737_v44 = vpop.f32.mrb[251].mxu1 }
 0x5b5   : > { %v6740_v20 = vadd.f32 %v8735_v14, %v13110_v8  ;;  %v8738_v52 = vadd.f32 %v8737_v44, %v8736_v29 }
 0x5b7   : > { %v6743_v62 = vadd.f32 %v8738_v52, %v13114_v51  ;;  %v13226_v53 = vadd.f32 %v8847_v17, %v6740_v20 }
 0x5b9   : > { %v8739_v49 = vpop.f32.mrb[252].mxu1  ;;  %v13228_v41 = vadd.f32 %v8850_v24, %v6743_v62 }
 0x5ba   : > { %v8740_v32 = vpop.f32.mrb[253].mxu1 }
 0x5bb   : > { %v8741_v4 = vadd.f32 %v8740_v32, %v8739_v49  ;;  %v8742_v0 = vpop.f32.mrb[254].mxu1 }
 0x5bc   : > { %v8743_v54 = vpop.f32.mrb[255].mxu1 }
 0x5bd   : > { %v6748_v57 = vadd.f32 %v8741_v4, %v13121_v33  ;;  %v8744_v39 = vadd.f32 %v8743_v54, %v8742_v0 }
 0x5bf   : > { %v6751_v40 = vadd.f32 %v8744_v39, %v13125_v63  ;;  %v13232_v19 = vadd.f32 %v8853_v55, %v6748_v57 }
 0x5c1   : > { %v8947_v8 = vpop.f32.mrb[0].mxu1  ;;  %v13234_v6 = vadd.f32 %v8856_v34, %v6751_v40 }
 0x5c2   : > { %v13237_v51 = vadd.f32 %v8947_v8, %v13146_v22  ;;  %v6949_v17 = vpop.f32.mrb[1].mxu1 }
 0x5c3   : > { %v13240_v24 = vadd.f32 %v6949_v17, %v13149_v12  ;;  %v8948_v31 = vpop.f32.mrb[2].mxu1 }
 0x5c4   : > { %v13243_v13 = vadd.f32 %v8948_v31, %v13151_v5  ;;  %v6952_v33 = vpop.f32.mrb[3].mxu1  ;;  %v7115_v12 = vmul.f32 %v13237_v51, %v13237_v51 }
 0x5c5   : > { %v13246_v60 = vadd.f32 %v6952_v33, %v13154_v35  ;;  %v7113_v63 = vmul.f32 %v13240_v24, %v13240_v24 }
 0x5c6   : > { %v7116_v3 = vmul.f32 %v13243_v13, %v13243_v13 }
 0x5c7   : > { %v7076_v59 = vadd.f32 %v13246_v60, %v13240_v24  ;;  %v7114_v22 = vmul.f32 %v13246_v60, %v13246_v60 }
 0x5c9   : > { %v7077_v7 = vadd.f32 %v7076_v59, %v13237_v51  ;;  %v7145_v5 = vadd.f32 %v7114_v22, %v7113_v63  ;;  %v8951_v42 = vpop.f32.mrb[4].mxu1 }
 0x5ca   : > { %v13258_v55 = vadd.f32 %v8951_v42, %v13158_v10  ;;  %v6965_v35 = vpop.f32.mrb[5].mxu1 }
 0x5cb   : > { %v7146_v45 = vadd.f32 %v7145_v5, %v7115_v12  ;;  %v13263_v34 = vadd.f32 %v6965_v35, %v13160_v27  ;;  %v7078_v43 = vadd.f32 %v7077_v7, %v13243_v13  ;;  %v8952_v48 = vpop.f32.mrb[6].mxu1 }
 0x5cc   : > { %v13267_v14 = vadd.f32 %v8952_v48, %v13162_v58  ;;  %v6968_v29 = vpop.f32.mrb[7].mxu1  ;;  %v7119_v58 = vmul.f32 %v13258_v55, %v13258_v55 }
 0x5cd   : > { %v7079_v44 = vadd.f32 %v7078_v43, %v13263_v34  ;;  %v7117_v10 = vmul.f32 %v13263_v34, %v13263_v34  ;;  %v7147_v20 = vadd.f32 %v7146_v45, %v7116_v3  ;;  %v13273_v52 = vadd.f32 %v6968_v29, %v13164_v25 }
 0x5ce   : > { %v7120_v25 = vmul.f32 %v13267_v14, %v13267_v14 }
 0x5cf   : > { %v7148_v62 = vadd.f32 %v7147_v20, %v7117_v10  ;;  %v7080_v27 = vadd.f32 %v7079_v44, %v13273_v52  ;;  %v7118_v49 = vmul.f32 %v13273_v52, %v13273_v52 }
 0x5d1   : > { %v7081_v32 = vadd.f32 %v7080_v27, %v13258_v55  ;;  %v7149_v4 = vadd.f32 %v7148_v62, %v7118_v49  ;;  %v8955_v0 = vpop.f32.mrb[8].mxu1 }
 0x5d2   : > { %v13282_v54 = vadd.f32 %v8955_v0, %v13168_v56  ;;  %v6981_v57 = vpop.f32.mrb[9].mxu1 }
 0x5d3   : > { %v7150_v39 = vadd.f32 %v7149_v4, %v7119_v58  ;;  %v13287_v40 = vadd.f32 %v6981_v57, %v13170_v1  ;;  %v7082_v8 = vadd.f32 %v7081_v32, %v13267_v14  ;;  %v8956_v17 = vpop.f32.mrb[10].mxu1 }
 0x5d4   : > { %v13291_v31 = vadd.f32 %v8956_v17, %v13172_v28  ;;  %v6984_v33 = vpop.f32.mrb[11].mxu1  ;;  %v7123_v28 = vmul.f32 %v13282_v54, %v13282_v54 }
 0x5d5   : > { %v7083_v63 = vadd.f32 %v7082_v8, %v13287_v40  ;;  %v7121_v56 = vmul.f32 %v13287_v40, %v13287_v40  ;;  %v7151_v59 = vadd.f32 %v7150_v39, %v7120_v25  ;;  %v13297_v22 = vadd.f32 %v6984_v33, %v13174_v15 }
 0x5d6   : > { %v7124_v15 = vmul.f32 %v13291_v31, %v13291_v31 }
 0x5d7   : > { %v7152_v12 = vadd.f32 %v7151_v59, %v7121_v56  ;;  %v7084_v1 = vadd.f32 %v7083_v63, %v13297_v22  ;;  %v7122_v7 = vmul.f32 %v13297_v22, %v13297_v22 }
 0x5d9   : > { %v7085_v5 = vadd.f32 %v7084_v1, %v13282_v54  ;;  %v7153_v42 = vadd.f32 %v7152_v12, %v7122_v7  ;;  %v8959_v35 = vpop.f32.mrb[12].mxu1 }
 0x5da   : > { %v13306_v3 = vadd.f32 %v8959_v35, %v13184_v11  ;;  %v6997_v45 = vpop.f32.mrb[13].mxu1 }
 0x5db   : > { %v7154_v43 = vadd.f32 %v7153_v42, %v7123_v28  ;;  %v13311_v48 = vadd.f32 %v6997_v45, %v13178_v23  ;;  %v7086_v29 = vadd.f32 %v7085_v5, %v13291_v31  ;;  %v8960_v44 = vpop.f32.mrb[14].mxu1 }
 0x5dc   : > { %v13315_v10 = vadd.f32 %v8960_v44, %v13186_v21  ;;  %v7000_v20 = vpop.f32.mrb[15].mxu1  ;;  %v7127_v21 = vmul.f32 %v13306_v3, %v13306_v3 }
 0x5dd   : > { %v7087_v62 = vadd.f32 %v7086_v29, %v13311_v48  ;;  %v7125_v11 = vmul.f32 %v13311_v48, %v13311_v48  ;;  %v7155_v27 = vadd.f32 %v7154_v43, %v7124_v15  ;;  %v13321_v49 = vadd.f32 %v7000_v20, %v13180_v46 }
 0x5de   : > { %v7128_v46 = vmul.f32 %v13315_v10, %v13315_v10 }
 0x5df   : > { %v7156_v58 = vadd.f32 %v7155_v27, %v7125_v11  ;;  %v7088_v23 = vadd.f32 %v7087_v62, %v13321_v49  ;;  %v7126_v32 = vmul.f32 %v13321_v49, %v13321_v49 }
 0x5e1   : > { %v7089_v4 = vadd.f32 %v7088_v23, %v13306_v3  ;;  %v7157_v0 = vadd.f32 %v7156_v58, %v7126_v32  ;;  %v8963_v57 = vpop.f32.mrb[16].mxu1 }
 0x5e2   : > { %v13330_v25 = vadd.f32 %v8963_v57, %v13196_v26  ;;  %v7013_v39 = vpop.f32.mrb[17].mxu1 }
 0x5e3   : > { %v7158_v8 = vadd.f32 %v7157_v0, %v7127_v21  ;;  %v13335_v17 = vadd.f32 %v7013_v39, %v13190_v47  ;;  %v7090_v33 = vadd.f32 %v7089_v4, %v13315_v10  ;;  %v8964_v63 = vpop.f32.mrb[18].mxu1 }
 0x5e4   : > { %v13339_v56 = vadd.f32 %v8964_v63, %v13198_v2  ;;  %v7016_v59 = vpop.f32.mrb[19].mxu1  ;;  %v7131_v2 = vmul.f32 %v13330_v25, %v13330_v25 }
 0x5e5   : > { %v7091_v12 = vadd.f32 %v7090_v33, %v13335_v17  ;;  %v7129_v26 = vmul.f32 %v13335_v17, %v13335_v17  ;;  %v7159_v1 = vadd.f32 %v7158_v8, %v7128_v46  ;;  %v13345_v7 = vadd.f32 %v7016_v59, %v13192_v37 }
 0x5e6   : > { %v7132_v37 = vmul.f32 %v13339_v56, %v13339_v56 }
 0x5e7   : > { %v7160_v28 = vadd.f32 %v7159_v1, %v7129_v26  ;;  %v7092_v47 = vadd.f32 %v7091_v12, %v13345_v7  ;;  %v7130_v5 = vmul.f32 %v13345_v7, %v13345_v7 }
 0x5e9   : > { %v7093_v42 = vadd.f32 %v7092_v47, %v13330_v25  ;;  %v7161_v35 = vadd.f32 %v7160_v28, %v7130_v5  ;;  %v8967_v45 = vpop.f32.mrb[20].mxu1 }
 0x5ea   : > { %v13354_v15 = vadd.f32 %v8967_v45, %v13208_v50  ;;  %v7029_v43 = vpop.f32.mrb[21].mxu1 }
 0x5eb   : > { %v7162_v29 = vadd.f32 %v7161_v35, %v7131_v2  ;;  %v13359_v44 = vadd.f32 %v7029_v43, %v13202_v38  ;;  %v7094_v20 = vadd.f32 %v7093_v42, %v13339_v56  ;;  %v8968_v62 = vpop.f32.mrb[22].mxu1 }
 0x5ec   : > { %v13363_v11 = vadd.f32 %v8968_v62, %v13210_v18  ;;  %v7032_v27 = vpop.f32.mrb[23].mxu1  ;;  %v7135_v18 = vmul.f32 %v13354_v15, %v13354_v15 }
 0x5ed   : > { %v7095_v58 = vadd.f32 %v7094_v20, %v13359_v44  ;;  %v7133_v50 = vmul.f32 %v13359_v44, %v13359_v44  ;;  %v7163_v23 = vadd.f32 %v7162_v29, %v7132_v37  ;;  %v13369_v32 = vadd.f32 %v7032_v27, %v13204_v30 }
 0x5ee   : > { %v7136_v30 = vmul.f32 %v13363_v11, %v13363_v11 }
 0x5ef   : > { %v7164_v21 = vadd.f32 %v7163_v23, %v7133_v50  ;;  %v7096_v38 = vadd.f32 %v7095_v58, %v13369_v32  ;;  %v7134_v4 = vmul.f32 %v13369_v32, %v13369_v32 }
 0x5f1   : > { %v7097_v0 = vadd.f32 %v7096_v38, %v13354_v15  ;;  %v7165_v57 = vadd.f32 %v7164_v21, %v7134_v4  ;;  %v8971_v39 = vpop.f32.mrb[24].mxu1 }
 0x5f2   : > { %v13378_v46 = vadd.f32 %v8971_v39, %v13220_v9  ;;  %v7045_v8 = vpop.f32.mrb[25].mxu1 }
 0x5f3   : > { %v7166_v33 = vadd.f32 %v7165_v57, %v7135_v18  ;;  %v13383_v63 = vadd.f32 %v7045_v8, %v13214_v16  ;;  %v7098_v59 = vadd.f32 %v7097_v0, %v13363_v11  ;;  %v8972_v12 = vpop.f32.mrb[26].mxu1 }
 0x5f4   : > { %v13387_v26 = vadd.f32 %v8972_v12, %v13222_v61  ;;  %v7048_v1 = vpop.f32.mrb[27].mxu1  ;;  %v7139_v61 = vmul.f32 %v13378_v46, %v13378_v46 }
 0x5f5   : > { %v7099_v28 = vadd.f32 %v7098_v59, %v13383_v63  ;;  %v7137_v9 = vmul.f32 %v13383_v63, %v13383_v63  ;;  %v7167_v47 = vadd.f32 %v7166_v33, %v7136_v30  ;;  %v13393_v5 = vadd.f32 %v7048_v1, %v13216_v36 }
 0x5f6   : > { %v7140_v36 = vmul.f32 %v13387_v26, %v13387_v26 }
 0x5f7   : > { %v7168_v2 = vadd.f32 %v7167_v47, %v7137_v9  ;;  %v7100_v16 = vadd.f32 %v7099_v28, %v13393_v5  ;;  %v7138_v42 = vmul.f32 %v13393_v5, %v13393_v5 }
 0x5f9   : > { %v7101_v35 = vadd.f32 %v7100_v16, %v13378_v46  ;;  %v7169_v45 = vadd.f32 %v7168_v2, %v7138_v42  ;;  %v8975_v43 = vpop.f32.mrb[28].mxu1 }
 0x5fa   : > { %v13402_v37 = vadd.f32 %v8975_v43, %v13232_v19  ;;  %v7061_v29 = vpop.f32.mrb[29].mxu1 }
 0x5fb   : > { %v7170_v20 = vadd.f32 %v7169_v45, %v7139_v61  ;;  %v13407_v62 = vadd.f32 %v7061_v29, %v13226_v53  ;;  %v7102_v27 = vadd.f32 %v7101_v35, %v13387_v26  ;;  %v8976_v58 = vpop.f32.mrb[30].mxu1 }
 0x5fc   : > { %v13411_v50 = vadd.f32 %v8976_v58, %v13234_v6  ;;  %v7064_v23 = vpop.f32.mrb[31].mxu1  ;;  %v7143_v53 = vmul.f32 %v13402_v37, %v13402_v37  ;;  %v7186_v58 = vld [vmem:[#allocation12] sm:$0x1] }
 0x5fd   : > { %v7103_v21 = vadd.f32 %v7102_v27, %v13407_v62  ;;  %v7141_v19 = vmul.f32 %v13407_v62, %v13407_v62  ;;  %v7171_v38 = vadd.f32 %v7170_v20, %v7140_v36  ;;  %v7065_v4 = vadd.f32 %v7064_v23, %v13228_v41 }
 0x5fe   : > { %v7144_v6 = vmul.f32 %v13411_v50, %v13411_v50 }
 0x5ff   : > { %v7172_v18 = vadd.f32 %v7171_v38, %v7141_v19  ;;  %v7104_v0 = vadd.f32 %v7103_v21, %v7065_v4  ;;  %v7142_v57 = vmul.f32 %v7065_v4, %v7065_v4  ;;  %v7190_v19 = vld [vmem:[#allocation14] sm:$0x1] }
 0x601   : > { %v7105_v39 = vadd.f32 %v7104_v0, %v13402_v37  ;;  %v7173_v8 = vadd.f32 %v7172_v18, %v7142_v57  ;;  %v13883_v18 = vld [vmem:[#allocation53_spill] sm:$0xff] }
 0x603   : > { %v7106_v30 = vadd.f32 %v7105_v39, %v13411_v50  ;;  %v7174_v33 = vadd.f32 %v7173_v8, %v7143_v53 }
 0x605   : > { %v7107_v59 = vrot.slane %v7106_v30, 4  ;;  %v7175_v12 = vadd.f32 %v7174_v33, %v7144_v6 }
 0x607   : > { %v7108_v1 = vadd.f32 %v7107_v59, %v7106_v30  ;;  %v7176_v28 = vrot.slane %v7175_v12, 4 }
 0x609   : > { %v7109_v41 = vrot.slane %v7108_v1, 2  ;;  %v7177_v9 = vadd.f32 %v7176_v28, %v7175_v12 }
 0x60b   : > { %v7110_v47 = vadd.f32 %v7109_v41, %v7108_v1  ;;  %v7178_v2 = vrot.slane %v7177_v9, 2 }
 0x60d   : > { %v7111_v16 = vrot.slane %v7110_v47, 1  ;;  %v7179_v42 = vadd.f32 %v7178_v2, %v7177_v9 }
 0x60f   : > { %v7112_v61 = vadd.f32 %v7111_v16, %v7110_v47  ;;  %v7180_v35 = vrot.slane %v7179_v42, 1 }
 0x611   : > { %v7181_v45 = vadd.f32 %v7180_v35, %v7179_v42  ;;  %v7182_v43 = vmul.f32 0.00390625, %v7112_v61 }
 0x613   : > { %v7183_v29 = vmul.f32 0.00390625, %v7181_v45  ;;  %v7184_v36 = vmul.f32 %v7182_v43, %v7182_v43 }
 0x615   : > { %v7185_v20 = vsub.f32 %v7183_v29, %v7184_v36 }
 0x617   : > { %v7187_v27 = vadd.f32 1e-05, %v7185_v20 }
 0x619   : > { %9287 = vrsqrt.f32 %v7187_v27 }
 0x623   : > { %v9288_v23 = vpop.eup %9287 }
 0x624   : > { %v7189_v21 = vmul.f32 %v9288_v23, %v7186_v58 }
 0x626   : > { %v7191_v38 = vmul.f32 %v7189_v21, %v7182_v43  ;;  %v7197_v0 = vrot.slane %v7189_v21, %v13883_v18 }
 0x628   : > { %v7192_v57 = vsub.f32 %v7190_v19, %v7191_v38  ;;  %v7228_v53 = vmul.f32 %v7197_v0, %v7065_v4  ;;  %v7199_v39 = vmul.f32 %v7197_v0, %v13240_v24  ;;  %v7200_v8 = vmul.f32 %v7197_v0, %v13246_v60 }
 0x629   : > { %v7201_v6 = vmul.f32 %v7197_v0, %v13237_v51  ;;  %v7202_v30 = vmul.f32 %v7197_v0, %v13243_v13  ;;  %v7203_v33 = vmul.f32 %v7197_v0, %v13263_v34  ;;  %v7204_v59 = vmul.f32 %v7197_v0, %v13273_v52 }
 0x62a   : > { %v7235_v12 = vrot.slane %v7192_v57, %v13883_v18  ;;  %v7205_v1 = vmul.f32 %v7197_v0, %v13258_v55  ;;  %v7206_v28 = vmul.f32 %v7197_v0, %v13267_v14  ;;  %v7207_v4 = vmul.f32 %v7197_v0, %v13287_v40 }
 0x62b   : > { %v7208_v24 = vmul.f32 %v7197_v0, %v13297_v22  ;;  %v7209_v60 = vmul.f32 %v7197_v0, %v13282_v54  ;;  %v7210_v51 = vmul.f32 %v7197_v0, %v13291_v31  ;;  %v7211_v13 = vmul.f32 %v7197_v0, %v13311_v48  ;;  %v13884_v54 = vld [vmem:[#allocation50_spill] sm:$0xff] }
 0x62c   : > { %v7266_v34 = vadd.f32 %v7235_v12, %v7228_v53  ;;  %v7212_v52 = vmul.f32 %v7197_v0, %v13321_v49  ;;  %v7213_v41 = vmul.f32 %v7197_v0, %v13306_v3  ;;  %v7214_v9 = vmul.f32 %v7197_v0, %v13315_v10 }
 0x62d   : > { %v7215_v55 = vmul.f32 %v7197_v0, %v13335_v17  ;;  %v7216_v14 = vmul.f32 %v7197_v0, %v13345_v7  ;;  %v7217_v40 = vmul.f32 %v7197_v0, %v13330_v25  ;;  %v7218_v22 = vmul.f32 %v7197_v0, %v13339_v56 }
 0x62e   : > { %v7298_v47 = vadd.f32 %v7266_v34, %v13884_v54  ;;  %v7219_v31 = vmul.f32 %v7197_v0, %v13359_v44  ;;  %v7220_v48 = vmul.f32 %v7197_v0, %v13369_v32  ;;  %v7221_v49 = vmul.f32 %v7197_v0, %v13354_v15  ;;  %v13895_v54 = vld [vmem:[#allocation31_spill] sm:$0xff] }
 0x62f   : > { %v7222_v3 = vmul.f32 %v7197_v0, %v13363_v11  ;;  %v7223_v10 = vmul.f32 %v7197_v0, %v13383_v63  ;;  %v7224_v17 = vmul.f32 %v7197_v0, %v13393_v5  ;;  %v7225_v7 = vmul.f32 %v7197_v0, %v13378_v46 }
 0x630   : > { %7330 = vst [vmem:[%s13454_s17 + $0xe8] sm:$0xff] %v7298_v47  ;;  %v7226_v25 = vmul.f32 %v7197_v0, %v13387_v26  ;;  %v7227_v56 = vmul.f32 %v7197_v0, %v13407_v62  ;;  %v7229_v44 = vmul.f32 %v7197_v0, %v13402_v37  ;;  %v7230_v15 = vmul.f32 %v7197_v0, %v13411_v50 }
 0x631   : > { %v7237_v32 = vadd.f32 %v7235_v12, %v7199_v39  ;;  %v7238_v11 = vadd.f32 %v7235_v12, %v7200_v8  ;;  %v7239_v2 = vadd.f32 %v7235_v12, %v7201_v6  ;;  %v7240_v63 = vadd.f32 %v7235_v12, %v7202_v30  ;;  %v13885_v6 = vld [vmem:[#allocation21_spill] sm:$0xff] }
 0x632   : > { %v7241_v16 = vadd.f32 %v7235_v12, %v7203_v33  ;;  %v7242_v5 = vadd.f32 %v7235_v12, %v7204_v59  ;;  %v7243_v42 = vadd.f32 %v7235_v12, %v7205_v1  ;;  %v7244_v46 = vadd.f32 %v7235_v12, %v7206_v28  ;;  %v13886_v33 = vld [vmem:[#allocation22_spill] sm:$0xff]  ;;  %v13887_v1 = vld [vmem:[#allocation23_spill] sm:$0xff] }
 0x633   : > { %v7245_v61 = vadd.f32 %v7235_v12, %v7207_v4  ;;  %v7246_v35 = vadd.f32 %v7235_v12, %v7208_v24  ;;  %v7247_v45 = vadd.f32 %v7235_v12, %v7209_v60  ;;  %v7248_v43 = vadd.f32 %v7235_v12, %v7210_v51  ;;  %v13888_v4 = vld [vmem:[#allocation24_spill] sm:$0xff]  ;;  %v13889_v60 = vld [vmem:[#allocation25_spill] sm:$0xff] }
 0x634   : > { %v7249_v29 = vadd.f32 %v7235_v12, %v7211_v13  ;;  %v7250_v26 = vadd.f32 %v7235_v12, %v7212_v52  ;;  %v7251_v36 = vadd.f32 %v7235_v12, %v7213_v41  ;;  %v7252_v62 = vadd.f32 %v7235_v12, %v7214_v9  ;;  %v13890_v13 = vld [vmem:[#allocation26_spill] sm:$0xff]  ;;  %v13891_v52 = vld [vmem:[#allocation27_spill] sm:$0xff]  ;;  %v13892_v9 = vld [vmem:[#allocation28_spill] sm:$0xff] }
 0x635   : > { %v7253_v20 = vadd.f32 %v7235_v12, %v7215_v55  ;;  %v7254_v37 = vadd.f32 %v7235_v12, %v7216_v14  ;;  %v7255_v27 = vadd.f32 %v7235_v12, %v7217_v40  ;;  %v7256_v50 = vadd.f32 %v7235_v12, %v7218_v22  ;;  %v13893_v55 = vld [vmem:[#allocation29_spill] sm:$0xff]  ;;  %v13894_v40 = vld [vmem:[#allocation30_spill] sm:$0xff] }
 0x636   : > { %v7257_v58 = vadd.f32 %v7235_v12, %v7219_v31  ;;  %v7258_v23 = vadd.f32 %v7235_v12, %v7220_v48  ;;  %v7259_v21 = vadd.f32 %v7235_v12, %v7221_v49  ;;  %v7260_v19 = vadd.f32 %v7235_v12, %v7222_v3  ;;  %v13896_v31 = vld [vmem:[#allocation32_spill] sm:$0xff]  ;;  %v13897_v49 = vld [vmem:[#allocation33_spill] sm:$0xff] }
 0x637   : > { %v7261_v38 = vadd.f32 %v7235_v12, %v7223_v10  ;;  %v7262_v18 = vadd.f32 %v7235_v12, %v7224_v17  ;;  %v7263_v0 = vadd.f32 %v7235_v12, %v7225_v7  ;;  %v7264_v57 = vadd.f32 %v7235_v12, %v7226_v25  ;;  %v13898_v10 = vld [vmem:[#allocation34_spill] sm:$0xff]  ;;  %v13899_v7 = vld [vmem:[#allocation35_spill] sm:$0xff] }
 0x638   : > { %v7265_v53 = vadd.f32 %v7235_v12, %v7227_v56  ;;  %v7267_v39 = vadd.f32 %v7235_v12, %v7229_v44  ;;  %v7268_v8 = vadd.f32 %v7235_v12, %v7230_v15  ;;  %v7269_v30 = vadd.f32 %v7237_v32, %v13885_v6  ;;  %v13900_v56 = vld [vmem:[#allocation36_spill] sm:$0xff]  ;;  %v13901_v15 = vld [vmem:[#allocation37_spill] sm:$0xff] }
 0x639   : > { %v7270_v59 = vadd.f32 %v7238_v11, %v13886_v33  ;;  %v7271_v28 = vadd.f32 %v7239_v2, %v13887_v1  ;;  %v7272_v24 = vadd.f32 %v7240_v63, %v13888_v4  ;;  %v7273_v51 = vadd.f32 %v7241_v16, %v13889_v60  ;;  %v13902_v11 = vld [vmem:[#allocation38_spill] sm:$0xff]  ;;  %v13903_v63 = vld [vmem:[#allocation39_spill] sm:$0xff]  ;;  %v13913_v6 = vld [vmem:[#allocation49_spill] sm:$0xff] }
 0x63a   : > { %v7274_v34 = vadd.f32 %v7242_v5, %v13890_v13  ;;  %v7275_v41 = vadd.f32 %v7243_v42, %v13891_v52  ;;  %v7276_v12 = vadd.f32 %v7244_v46, %v13892_v9  ;;  %v7277_v14 = vadd.f32 %v7245_v61, %v13893_v55  ;;  %7301 = vst [vmem:[%s13454_s17] sm:$0xff] %v7269_v30  ;;  %v13904_v5 = vld [vmem:[#allocation40_spill] sm:$0xff]  ;;  %v13905_v46 = vld [vmem:[#allocation41_spill] sm:$0xff] }
 0x63b   : > { %v7278_v22 = vadd.f32 %v7246_v35, %v13894_v40  ;;  %v7279_v47 = vadd.f32 %v7247_v45, %v13895_v54  ;;  %v7280_v48 = vadd.f32 %v7248_v43, %v13896_v31  ;;  %v7281_v3 = vadd.f32 %v7249_v29, %v13897_v49  ;;  %7302 = vst [vmem:[%s13454_s17 + $0x8] sm:$0xff] %v7270_v59  ;;  %v13906_v35 = vld [vmem:[#allocation42_spill] sm:$0xff]  ;;  %v13907_v43 = vld [vmem:[#allocation43_spill] sm:$0xff] }
 0x63c   : > { %7303 = vst [vmem:[%s13454_s17 + $0x10] sm:$0xff] %v7271_v28  ;;  %7304 = vst [vmem:[%s13454_s17 + $0x18] sm:$0xff] %v7272_v24  ;;  %v7282_v17 = vadd.f32 %v7250_v26, %v13898_v10  ;;  %v7283_v25 = vadd.f32 %v7251_v36, %v13899_v7  ;;  %v7284_v44 = vadd.f32 %v7252_v62, %v13900_v56  ;;  %v13908_v26 = vld [vmem:[#allocation44_spill] sm:$0xff]  ;;  %v13909_v62 = vld [vmem:[#allocation45_spill] sm:$0xff] }
 0x63d   : > { %7305 = vst [vmem:[%s13454_s17 + $0x20] sm:$0xff] %v7273_v51  ;;  %v7285_v32 = vadd.f32 %v7253_v20, %v13901_v15  ;;  %7306 = vst [vmem:[%s13454_s17 + $0x28] sm:$0xff] %v7274_v34  ;;  %v7286_v2 = vadd.f32 %v7254_v37, %v13902_v11  ;;  %v7287_v16 = vadd.f32 %v7255_v27, %v13903_v63  ;;  %v13910_v37 = vld [vmem:[#allocation46_spill] sm:$0xff] }
 0x63e   : > { %7307 = vst [vmem:[%s13454_s17 + $0x30] sm:$0xff] %v7275_v41  ;;  %7308 = vst [vmem:[%s13454_s17 + $0x38] sm:$0xff] %v7276_v12  ;;  %v7288_v42 = vadd.f32 %v7256_v50, %v13904_v5  ;;  %v7289_v61 = vadd.f32 %v7257_v58, %v13905_v46  ;;  %v7290_v45 = vadd.f32 %v7258_v23, %v13906_v35  ;;  %v13911_v50 = vld [vmem:[#allocation47_spill] sm:$0xff]  ;;  %v13912_v23 = vld [vmem:[#allocation48_spill] sm:$0xff] }
 0x63f   : > { %7309 = vst [vmem:[%s13454_s17 + $0x40] sm:$0xff] %v7277_v14  ;;  %7310 = vst [vmem:[%s13454_s17 + $0x48] sm:$0xff] %v7278_v22  ;;  %v7291_v29 = vadd.f32 %v7259_v21, %v13907_v43  ;;  %v7292_v36 = vadd.f32 %v7260_v19, %v13908_v26  ;;  %v7293_v20 = vadd.f32 %v7261_v38, %v13909_v62  ;;  %v13914_v38 = vld [vmem:[#allocation51_spill] sm:$0xff] }
 0x640   : > { %7311 = vst [vmem:[%s13454_s17 + $0x50] sm:$0xff] %v7279_v47  ;;  %7312 = vst [vmem:[%s13454_s17 + $0x58] sm:$0xff] %v7280_v48  ;;  %v7294_v27 = vadd.f32 %v7262_v18, %v13910_v37  ;;  %v7295_v58 = vadd.f32 %v7263_v0, %v13911_v50  ;;  %v7296_v21 = vadd.f32 %v7264_v57, %v13912_v23  ;;  %v13915_v0 = vld [vmem:[#allocation52_spill] sm:$0xff] }
 0x641   : > { %7313 = vst [vmem:[%s13454_s17 + $0x60] sm:$0xff] %v7281_v3  ;;  %7314 = vst [vmem:[%s13454_s17 + $0x68] sm:$0xff] %v7282_v17  ;;  %v7297_v19 = vadd.f32 %v7265_v53, %v13913_v6  ;;  %v7299_v18 = vadd.f32 %v7267_v39, %v13914_v38  ;;  %v7300_v57 = vadd.f32 %v7268_v8, %v13915_v0 }
 0x642   : > { %7315 = vst [vmem:[%s13454_s17 + $0x70] sm:$0xff] %v7283_v25  ;;  %7316 = vst [vmem:[%s13454_s17 + $0x78] sm:$0xff] %v7284_v44 }
 0x643   : > { %7317 = vst [vmem:[%s13454_s17 + $0x80] sm:$0xff] %v7285_v32  ;;  %7318 = vst [vmem:[%s13454_s17 + $0x88] sm:$0xff] %v7286_v2 }
 0x644   : > { %7319 = vst [vmem:[%s13454_s17 + $0x90] sm:$0xff] %v7287_v16  ;;  %7320 = vst [vmem:[%s13454_s17 + $0x98] sm:$0xff] %v7288_v42 }
 0x645   : > { %7321 = vst [vmem:[%s13454_s17 + $0xa0] sm:$0xff] %v7289_v61  ;;  %7322 = vst [vmem:[%s13454_s17 + $0xa8] sm:$0xff] %v7290_v45 }
 0x646   : > { %7323 = vst [vmem:[%s13454_s17 + $0xb0] sm:$0xff] %v7291_v29  ;;  %7324 = vst [vmem:[%s13454_s17 + $0xb8] sm:$0xff] %v7292_v36 }
 0x647   : > { %7325 = vst [vmem:[%s13454_s17 + $0xc0] sm:$0xff] %v7293_v20  ;;  %7326 = vst [vmem:[%s13454_s17 + $0xc8] sm:$0xff] %v7294_v27 }
 0x648   : > { %7327 = vst [vmem:[%s13454_s17 + $0xd0] sm:$0xff] %v7295_v58  ;;  %7328 = vst [vmem:[%s13454_s17 + $0xd8] sm:$0xff] %v7296_v21 }
 0x649   : > { %7329 = vst [vmem:[%s13454_s17 + $0xe0] sm:$0xff] %v7297_v19  ;;  %7331 = vst [vmem:[%s13454_s17 + $0xf0] sm:$0xff] %v7299_v18 }
 0x64a   : > { %7332 = vst [vmem:[%s13454_s17 + $0xf8] sm:$0xff] %v7300_v57 }
 0x64b   : > { %9529 = shalt.err (!%p9526_p8)
}
 0x64c   : > { %s9530_s22 = scalar_lea.hbm %s13516_s19, 4096  ;;  %s9534_s8 = scalar_lea.hbm %s13581_s7, 8192 }
 0x64d   : > { %p9531_p4 = scmp.ne.s32.totalorder %s13516_s19, %s9530_s22  ;;  %p9535_p0 = scmp.lt.u32.totalorder %s13516_s19, %s13581_s7 }
 0x64e   : > { %p9536_p6 = scmp.lt.u32.totalorder %s9534_s8, %s9530_s22  ;;  %p9538_p5 = scmp.lt.u32.totalorder %s9530_s22, %s13516_s19 }
 0x64f   : > { %p9532_p10 = pnand %p9531_p4, %p13916_p9 }
 0x650   : > { %p9537_p7 = por %p9536_p6, %p9535_p0 }
 0x651   : > { %p9533_p11 = pneg %p9532_p10 }
 0x652   : > { %p9539_p12 = por %p9538_p5, %p9537_p7 }
 0x654   : > { %p9540_p13 = pnand %p9539_p12, %p9533_p11 }
 0x656   : > { %9543 = shalt.err (!%p9540_p13)
}
 0x657   : > { %s9608_s30 = smov 128   ;;  %s9609_s13 = smov 8  }
 0x658   : > { %9006 = dma.vmem_to_hbm [thread:$0]  (%p13916_p9), %s13518_s28, 4096, %s13516_s19, %s7334_s21, %s9608_s30, %s9608_s30, %s9609_s13  }
 0x659 PF: > { %s7362_s16 = sand.u32 1, %s9582_s24   ;;  %p13917_p1 = scmp.ne.s32.totalorder %s13652_s20, 0 }
 0x65a   : > { %p13918_p3 = scmp.ge.s32.totalorder %s9594_s27, 2  ;;  %s7363_s1 = scalar_lea.sflag [#allocation5], %s7362_s16 }
 0x65c   : > { %p9032_p2 = pnand %p13918_p3, %p13917_p1 }
 0x65e   : > { %9577 = dma.done.wait (!%p9032_p2), %s7363_s1, 4096  }
 0x65f   : > { %9579 = vsyncadd (!%p9032_p2), %s7363_s1, 4294963200  ;;  %p23_p8 = scmp.ge.s32.totalorder %s9834_s11, 4   ;;  %s13919_s24 = smov %s9586_s25 }
 0x660   : > { %s13920_s25 = smov %s9590_s26  ;;  %s13921_s26 = smov %s9845_s12 }
 0x661   : > { %s13922_s27 = smov %s9834_s11  ;;  %25 = sbr.rel (!%p23_p8) target bundleno = 10 (0xa), region = 120 }
 0x668   :  { %7368 = vsyncpa [#allocation4], 1 }
 0x669   :  { %7370 = vsyncpa [#allocation4 + $0x1], 1 }
 0x66a   :  { %7371 = vsyncpa [#allocation7], 1 }
 0x66b   :  { %7372 = vsyncpa [#allocation10], 1 }
 0x66c   :  { %7373 = vsyncpa [#allocation13], 1 }
 0x66d   :  { %7374 = vsyncpa [#allocation5], 1 }
 0x66e   :  { %7376 = vsyncpa [#allocation5 + $0x1], 1 }

</bundles_post_ra>
